<compile_context>
chip_gen: v7x
topology: tpu7x:2x2x1
jax: 0.10.0
libtpu: 0.0.40
codegen_flags: <defaults>
</compile_context>

<pallas_src>
import functools

import jax
import jax.numpy as jnp
from jax import lax
from jax.experimental import pallas as pl
from jax.experimental.pallas import tpu as pltpu


_B_TILE_MAX = 64          # images stacked along the MXU M dim per grid step


def _round_up(n, m):
    return ((n + m - 1) // m) * m


# ------------------------------ fused kernel --------------------------------

def _lenet_kernel(xe_ref, xo_ref, t1_ref, b1_ref, t2_ref, b2_ref,
                  wf1_ref, bf1_ref, wf2_ref, bf2_ref, wf3_ref, bf3_ref,
                  o_ref, *, bt):
    f32 = jnp.float32
    bf16 = jnp.bfloat16
    m1_rows = 14 * bt          # conv1 pooled rows, batch-stacked
    m2_rows = 5 * bt           # conv2 pooled rows, batch-stacked

    # ---- conv1 + relu + pool1 :  input rows -> p1 (14*bt, 224) ----
    # For pool row-phase dh and kernel row i (k = dh+i), pooled row p of every
    # image needs input row k+2p.  The even/odd pre-split, plane-major input
    # layout (row = p*bt + b) makes each band a contiguous (14*bt, 96) slice.
    m1 = None
    for dh in range(2):
        acc = jnp.zeros((m1_rows, 448), f32)
        for i in range(5):
            k = dh + i
            src = xe_ref if k % 2 == 0 else xo_ref
            base = (k // 2) * bt
            band = src[base:base + m1_rows, :]                      # (14*bt, 96) bf16
            acc = acc + jnp.dot(band, t1_ref[i], preferred_element_type=f32)
        ph = jnp.maximum(acc[:, :224], acc[:, 224:])                # width pool (dw fold)
        m1 = ph if dh == 0 else jnp.maximum(m1, ph)                 # height pool (running max)
    p1 = jnp.maximum(m1 + b1_ref[...], 0.0).astype(bf16)            # (14*bt, 224); cols oc*14+q

    # ---- conv2 + relu + pool2 :  p1 -> p2 (5*bt, 160) ----
    m2 = None
    for dh in range(2):
        acc = jnp.zeros((m2_rows, 320), f32)
        for i in range(5):
            k = dh + i
            band = jnp.concatenate(
                [p1[(k + 2 * j) * bt:(k + 2 * j + 1) * bt] for j in range(5)],
                axis=0)                                              # (5*bt, 224) bf16
            acc = acc + jnp.dot(band, t2_ref[i], preferred_element_type=f32)
        ph = jnp.maximum(acc[:, :160], acc[:, 160:])
        m2 = ph if dh == 0 else jnp.maximum(m2, ph)
    p2 = jnp.maximum(m2 + b2_ref[...], 0.0).astype(bf16)            # (5*bt, 160); cols oc*5+q

    # ---- fc1 (torch NCHW flatten folded into packed weight; h over row blocks) ----
    acc = jnp.zeros((bt, 120), f32)
    for h in range(5):
        acc = acc + jnp.dot(p2[h * bt:(h + 1) * bt], wf1_ref[h],
                            preferred_element_type=f32)
    y = jnp.maximum(acc + bf1_ref[...], 0.0).astype(bf16)           # (bt, 120)

    # ---- fc2 / fc3 ----
    y = jnp.maximum(jnp.dot(y, wf2_ref[...], preferred_element_type=f32)
                    + bf2_ref[...], 0.0).astype(bf16)                # (bt, 84)
    y = jnp.dot(y, wf3_ref[...], preferred_element_type=f32) + bf3_ref[...]
    o_ref[...] = y.astype(o_ref.dtype)                               # (bt, 10)


# --------------------------- one-time weight packing ------------------------

def _conv_toeplitz(w, in_w, out_w):
    """Pack torch conv weight (OC, IC, 5, 5) into 5 matmul matrices
    (kh, IC*in_w, 2*OC*out_w): K = ic*in_w + w_in, N = dw*OC*out_w + oc*out_w + q.
    The 2x2-pool width phase dw and the stride-2 width subsampling are folded in."""
    oc_n, ic_n, kh, kw = w.shape
    i = jnp.arange(kh).reshape(kh, 1, 1, 1, 1, 1)
    ic = jnp.arange(ic_n).reshape(1, ic_n, 1, 1, 1, 1)
    wi = jnp.arange(in_w).reshape(1, 1, in_w, 1, 1, 1)
    dw = jnp.arange(2).reshape(1, 1, 1, 2, 1, 1)
    oc = jnp.arange(oc_n).reshape(1, 1, 1, 1, oc_n, 1)
    q = jnp.arange(out_w).reshape(1, 1, 1, 1, 1, out_w)
    j = wi - 2 * q - dw
    valid = (j >= 0) & (j < kw)
    vals = w[oc, ic, i, jnp.clip(j, 0, kw - 1)]    # (kh, ic, in_w, 2, oc, out_w)
    t = jnp.where(valid, vals, 0.0)
    return t.reshape(kh, ic_n * in_w, 2 * oc_n * out_w).astype(jnp.bfloat16)


def pack_params(p):
    """Convert torch-layout parameters into matmul-ready (bf16) matrices once."""
    f32 = jnp.float32
    bf16 = jnp.bfloat16
    wfc1 = p["fc1_w"].astype(f32)                   # (120, 800); col = oc*25 + h*5 + w
    wfc1 = wfc1.reshape(120, 32, 5, 5).transpose(2, 1, 3, 0).reshape(5, 160, 120)
    return {
        "t1": _conv_toeplitz(p["conv1_w"].astype(f32), 32, 14),   # (5, 96, 448)
        "b1": jnp.repeat(p["conv1_b"].astype(f32), 14).reshape(1, 224),
        "t2": _conv_toeplitz(p["conv2_w"].astype(f32), 14, 5),    # (5, 224, 320)
        "b2": jnp.repeat(p["conv2_b"].astype(f32), 5).reshape(1, 160),
        "wfc1": wfc1.astype(bf16),                  # (5, 160, 120)
        "bfc1": p["fc1_b"].astype(f32).reshape(1, 120),
        "wfc2": p["fc2_w"].astype(f32).T.astype(bf16),   # (120, 84)
        "bfc2": p["fc2_b"].astype(f32).reshape(1, 84),
        "wfc3": p["fc3_w"].astype(f32).T.astype(bf16),   # (84, 10)
        "bfc3": p["fc3_b"].astype(f32).reshape(1, 10),
    }


# ------------------------------- forward ------------------------------------

def lenet_forward(packed, x_nchw):
    B = x_nchw.shape[0]
    bt = min(_B_TILE_MAX, _round_up(B, 16))          # batch tile (sublane aligned)
    b_pad = _round_up(B, bt)
    nt = b_pad // bt

    x = x_nchw.astype(jnp.float32)
    if b_pad != B:
        x = jnp.pad(x, ((0, b_pad - B), (0, 0), (0, 0), (0, 0)))
    # One cheap relayout: NCHW -> (32, B, 96) rows; per input row h a
    # (c*32 + w)-ordered vector (matches the conv1 Toeplitz K order).
    xr = jnp.transpose(x, (2, 0, 1, 3)).reshape(32, b_pad, 96)

    def tiles(a):   # (16, b_pad, 96) -> (nt*16*bt, 96); in-tile row = p*bt + b
        a = a.reshape(16, nt, bt, 96).transpose(1, 0, 2, 3)
        return a.reshape(nt * 16 * bt, 96).astype(jnp.bfloat16)

    xe, xo = tiles(xr[0::2]), tiles(xr[1::2])         # even / odd input rows

    const2 = lambda t: (0, 0)
    const3 = lambda t: (0, 0, 0)
    out = pl.pallas_call(
        functools.partial(_lenet_kernel, bt=bt),
        grid=(nt,),
        in_specs=[
            pl.BlockSpec((16 * bt, 96), lambda t: (t, 0)),   # even input rows (per batch tile)
            pl.BlockSpec((16 * bt, 96), lambda t: (t, 0)),   # odd input rows
            pl.BlockSpec((5, 96, 448), const3),              # conv1 Toeplitz (dw folded in N)
            pl.BlockSpec((1, 224), const2),                  # conv1 bias row
            pl.BlockSpec((5, 224, 320), const3),             # conv2 Toeplitz
            pl.BlockSpec((1, 160), const2),                  # conv2 bias row
            pl.BlockSpec((5, 160, 120), const3),             # fc1 (per conv row)
            pl.BlockSpec((1, 120), const2),
            pl.BlockSpec((120, 84), const2),                 # fc2
            pl.BlockSpec((1, 84), const2),
            pl.BlockSpec((84, 10), const2),                  # fc3
            pl.BlockSpec((1, 10), const2),
        ],
        out_specs=pl.BlockSpec((bt, 10), lambda t: (t, 0)),
        out_shape=jax.ShapeDtypeStruct((b_pad, 10), jnp.float32),
        compiler_params=pltpu.CompilerParams(
            dimension_semantics=("parallel",)),              # batch tiles are independent
    )(xe, xo, packed["t1"], packed["b1"], packed["t2"], packed["b2"],
      packed["wfc1"], packed["bfc1"], packed["wfc2"], packed["bfc2"],
      packed["wfc3"], packed["bfc3"])
    return out[:B]


# ---------------------------- reference & init -------------------------------

def lenet_reference(params, x_nchw):
    """Pure-JAX (f32) reference matching the PyTorch module."""
    dn = ("NCHW", "OIHW", "NCHW")
    x = lax.conv_general_dilated(x_nchw, params["conv1_w"], (1, 1), "VALID",
                                 dimension_numbers=dn)
    x = jax.nn.relu(x + params["conv1_b"].reshape(1, -1, 1, 1))
    x = lax.reduce_window(x, -jnp.inf, lax.max, (1, 1, 2, 2), (1, 1, 2, 2), "VALID")
    x = lax.conv_general_dilated(x, params["conv2_w"], (1, 1), "VALID",
                                 dimension_numbers=dn)
    x = jax.nn.relu(x + params["conv2_b"].reshape(1, -1, 1, 1))
    x = lax.reduce_window(x, -jnp.inf, lax.max, (1, 1, 2, 2), (1, 1, 2, 2), "VALID")
    x = x.reshape(x.shape[0], -1)
    x = jax.nn.relu(x @ params["fc1_w"].T + params["fc1_b"])
    x = jax.nn.relu(x @ params["fc2_w"].T + params["fc2_b"])
    return x @ params["fc3_w"].T + params["fc3_b"]


def init_params(key):
    """Deterministic synthetic parameters (PyTorch default-ish uniform init)."""
    ks = jax.random.split(key, 10)

    def u(k, shape, fan_in):
        bound = 1.0 / (fan_in ** 0.5)
        return jax.random.uniform(k, shape, jnp.float32, -bound, bound)

    return {
        "conv1_w": u(ks[0], (16, 3, 5, 5), 3 * 5 * 5),
        "conv1_b": u(ks[1], (16,), 3 * 5 * 5),
        "conv2_w": u(ks[2], (32, 16, 5, 5), 16 * 5 * 5),
        "conv2_b": u(ks[3], (32,), 16 * 5 * 5),
        "fc1_w": u(ks[4], (120, 32 * 5 * 5), 32 * 5 * 5),
        "fc1_b": u(ks[5], (120,), 32 * 5 * 5),
        "fc2_w": u(ks[6], (84, 120), 120),
        "fc2_b": u(ks[7], (84,), 120),
        "fc3_w": u(ks[8], (10, 84), 84),
        "fc3_b": u(ks[9], (10,), 84),
    }


if __name__ == "__main__":
    key = jax.random.PRNGKey(0)
    pkey, xkey = jax.random.split(key)
    params = init_params(pkey)
    packed = pack_params(params)          # one-time weight packing
    # The module's forward (32*5*5 flatten) implies 3x32x32 inputs; batch=2.
    x = jax.random.normal(xkey, (2, 3, 32, 32), dtype=jnp.float32)

    out = jax.block_until_ready(jax.jit(lenet_forward)(packed, x))
    ref = jax.block_until_ready(jax.jit(lenet_reference)(params, x))

    assert out.shape == (2, 10), out.shape
    assert out.dtype == jnp.float32
    assert bool(jnp.all(jnp.isfinite(out)))
    # bf16 MXU operands with f32 accumulation -> tolerant comparison vs f32 ref.
    assert bool(jnp.allclose(out, ref, atol=1e-1, rtol=1e-1)), (out, ref)
    print("KERNEL_OK")
</pallas_src>

<mosaic_0001>
module attributes {stable_mosaic.version = 11 : i64} {
  func.func @_lenet_kernel(%arg0: i32, %arg1: memref<256x96xbf16, #tpu.memory_space<vmem>>, %arg2: memref<256x96xbf16, #tpu.memory_space<vmem>>, %arg3: memref<5x96x448xbf16, #tpu.memory_space<vmem>>, %arg4: memref<1x224xf32, #tpu.memory_space<vmem>>, %arg5: memref<5x224x320xbf16, #tpu.memory_space<vmem>>, %arg6: memref<1x160xf32, #tpu.memory_space<vmem>>, %arg7: memref<5x160x120xbf16, #tpu.memory_space<vmem>>, %arg8: memref<1x120xf32, #tpu.memory_space<vmem>>, %arg9: memref<120x84xbf16, #tpu.memory_space<vmem>>, %arg10: memref<1x84xf32, #tpu.memory_space<vmem>>, %arg11: memref<84x10xbf16, #tpu.memory_space<vmem>>, %arg12: memref<1x10xf32, #tpu.memory_space<vmem>>, %arg13: memref<16x10xf32, #tpu.memory_space<vmem>>) attributes {dimension_semantics = [#tpu.dimension_semantics<parallel>], iteration_bounds = array<i64: 1>, scalar_prefetch = 0 : i64, scratch_operands = 0 : i64, tpu.core_type = #tpu.core_type<tc>, window_params = [{transform_indices = @transform_0, window_bounds = array<i64: 256, 96>}, {transform_indices = @transform_1, window_bounds = array<i64: 256, 96>}, {pipeline_mode = #tpu.pipeline_mode<synchronous>, transform_indices = @transform_2, window_bounds = array<i64: 5, 96, 448>}, {pipeline_mode = #tpu.pipeline_mode<synchronous>, transform_indices = @transform_3, window_bounds = array<i64: 1, 224>}, {pipeline_mode = #tpu.pipeline_mode<synchronous>, transform_indices = @transform_4, window_bounds = array<i64: 5, 224, 320>}, {pipeline_mode = #tpu.pipeline_mode<synchronous>, transform_indices = @transform_5, window_bounds = array<i64: 1, 160>}, {pipeline_mode = #tpu.pipeline_mode<synchronous>, transform_indices = @transform_6, window_bounds = array<i64: 5, 160, 120>}, {pipeline_mode = #tpu.pipeline_mode<synchronous>, transform_indices = @transform_7, window_bounds = array<i64: 1, 120>}, {pipeline_mode = #tpu.pipeline_mode<synchronous>, transform_indices = @transform_8, window_bounds = array<i64: 120, 84>}, {pipeline_mode = #tpu.pipeline_mode<synchronous>, transform_indices = @transform_9, window_bounds = array<i64: 1, 84>}, {pipeline_mode = #tpu.pipeline_mode<synchronous>, transform_indices = @transform_10, window_bounds = array<i64: 84, 10>}, {pipeline_mode = #tpu.pipeline_mode<synchronous>, transform_indices = @transform_11, window_bounds = array<i64: 1, 10>}, {transform_indices = @transform_12, window_bounds = array<i64: 16, 10>}]} {
    %cst = arith.constant 0.000000e+00 : f32
    %0 = vector.broadcast %cst : f32 to vector<224x448xf32>
    %c0 = arith.constant 0 : index
    %c0_0 = arith.constant 0 : index
    %1 = vector.load %arg1[%c0, %c0_0] : memref<256x96xbf16, #tpu.memory_space<vmem>>, vector<224x96xbf16>
    %c0_1 = arith.constant 0 : index
    %c0_2 = arith.constant 0 : index
    %c0_3 = arith.constant 0 : index
    %2 = vector.load %arg3[%c0_1, %c0_2, %c0_3] : memref<5x96x448xbf16, #tpu.memory_space<vmem>>, vector<1x96x448xbf16>
    %3 = vector.shape_cast %2 : vector<1x96x448xbf16> to vector<96x448xbf16>
    %cst_4 = arith.constant dense<0.000000e+00> : vector<224x448xf32>
    %4 = tpu.matmul %1, %3, %cst_4 {dimension_numbers = #tpu.dot_dimension_numbers<[1], [0], [0], [1], [0, 0, 1, 1], [], []>} : vector<224x96xbf16>, vector<96x448xbf16>, vector<224x448xf32> -> vector<224x448xf32>
    %5 = arith.addf %0, %4 : vector<224x448xf32>
    %c0_5 = arith.constant 0 : index
    %c0_6 = arith.constant 0 : index
    %6 = vector.load %arg2[%c0_5, %c0_6] : memref<256x96xbf16, #tpu.memory_space<vmem>>, vector<224x96xbf16>
    %c1 = arith.constant 1 : index
    %c0_7 = arith.constant 0 : index
    %c0_8 = arith.constant 0 : index
    %7 = vector.load %arg3[%c1, %c0_7, %c0_8] : memref<5x96x448xbf16, #tpu.memory_space<vmem>>, vector<1x96x448xbf16>
    %8 = vector.shape_cast %7 : vector<1x96x448xbf16> to vector<96x448xbf16>
    %cst_9 = arith.constant dense<0.000000e+00> : vector<224x448xf32>
    %9 = tpu.matmul %6, %8, %cst_9 {dimension_numbers = #tpu.dot_dimension_numbers<[1], [0], [0], [1], [0, 0, 1, 1], [], []>} : vector<224x96xbf16>, vector<96x448xbf16>, vector<224x448xf32> -> vector<224x448xf32>
    %10 = arith.addf %5, %9 : vector<224x448xf32>
    %c16 = arith.constant 16 : index
    %c0_10 = arith.constant 0 : index
    %11 = vector.load %arg1[%c16, %c0_10] : memref<256x96xbf16, #tpu.memory_space<vmem>>, vector<224x96xbf16>
    %c2 = arith.constant 2 : index
    %c0_11 = arith.constant 0 : index
    %c0_12 = arith.constant 0 : index
    %12 = vector.load %arg3[%c2, %c0_11, %c0_12] : memref<5x96x448xbf16, #tpu.memory_space<vmem>>, vector<1x96x448xbf16>
    %13 = vector.shape_cast %12 : vector<1x96x448xbf16> to vector<96x448xbf16>
    %cst_13 = arith.constant dense<0.000000e+00> : vector<224x448xf32>
    %14 = tpu.matmul %11, %13, %cst_13 {dimension_numbers = #tpu.dot_dimension_numbers<[1], [0], [0], [1], [0, 0, 1, 1], [], []>} : vector<224x96xbf16>, vector<96x448xbf16>, vector<224x448xf32> -> vector<224x448xf32>
    %15 = arith.addf %10, %14 : vector<224x448xf32>
    %c16_14 = arith.constant 16 : index
    %c0_15 = arith.constant 0 : index
    %16 = vector.load %arg2[%c16_14, %c0_15] : memref<256x96xbf16, #tpu.memory_space<vmem>>, vector<224x96xbf16>
    %c3 = arith.constant 3 : index
    %c0_16 = arith.constant 0 : index
    %c0_17 = arith.constant 0 : index
    %17 = vector.load %arg3[%c3, %c0_16, %c0_17] : memref<5x96x448xbf16, #tpu.memory_space<vmem>>, vector<1x96x448xbf16>
    %18 = vector.shape_cast %17 : vector<1x96x448xbf16> to vector<96x448xbf16>
    %cst_18 = arith.constant dense<0.000000e+00> : vector<224x448xf32>
    %19 = tpu.matmul %16, %18, %cst_18 {dimension_numbers = #tpu.dot_dimension_numbers<[1], [0], [0], [1], [0, 0, 1, 1], [], []>} : vector<224x96xbf16>, vector<96x448xbf16>, vector<224x448xf32> -> vector<224x448xf32>
    %20 = arith.addf %15, %19 : vector<224x448xf32>
    %c32 = arith.constant 32 : index
    %c0_19 = arith.constant 0 : index
    %21 = vector.load %arg1[%c32, %c0_19] : memref<256x96xbf16, #tpu.memory_space<vmem>>, vector<224x96xbf16>
    %c4 = arith.constant 4 : index
    %c0_20 = arith.constant 0 : index
    %c0_21 = arith.constant 0 : index
    %22 = vector.load %arg3[%c4, %c0_20, %c0_21] : memref<5x96x448xbf16, #tpu.memory_space<vmem>>, vector<1x96x448xbf16>
    %23 = vector.shape_cast %22 : vector<1x96x448xbf16> to vector<96x448xbf16>
    %cst_22 = arith.constant dense<0.000000e+00> : vector<224x448xf32>
    %24 = tpu.matmul %21, %23, %cst_22 {dimension_numbers = #tpu.dot_dimension_numbers<[1], [0], [0], [1], [0, 0, 1, 1], [], []>} : vector<224x96xbf16>, vector<96x448xbf16>, vector<224x448xf32> -> vector<224x448xf32>
    %25 = arith.addf %20, %24 : vector<224x448xf32>
    %26 = vector.extract_strided_slice %25 {offsets = [0, 0], sizes = [224, 224], strides = [1, 1]} : vector<224x448xf32> to vector<224x224xf32>
    %27 = vector.extract_strided_slice %25 {offsets = [0, 224], sizes = [224, 224], strides = [1, 1]} : vector<224x448xf32> to vector<224x224xf32>
    %28 = arith.maximumf %26, %27 : vector<224x224xf32>
    %cst_23 = arith.constant 0.000000e+00 : f32
    %29 = vector.broadcast %cst_23 : f32 to vector<224x448xf32>
    %c0_24 = arith.constant 0 : index
    %c0_25 = arith.constant 0 : index
    %30 = vector.load %arg2[%c0_24, %c0_25] : memref<256x96xbf16, #tpu.memory_space<vmem>>, vector<224x96xbf16>
    %c0_26 = arith.constant 0 : index
    %c0_27 = arith.constant 0 : index
    %c0_28 = arith.constant 0 : index
    %31 = vector.load %arg3[%c0_26, %c0_27, %c0_28] : memref<5x96x448xbf16, #tpu.memory_space<vmem>>, vector<1x96x448xbf16>
    %32 = vector.shape_cast %31 : vector<1x96x448xbf16> to vector<96x448xbf16>
    %cst_29 = arith.constant dense<0.000000e+00> : vector<224x448xf32>
    %33 = tpu.matmul %30, %32, %cst_29 {dimension_numbers = #tpu.dot_dimension_numbers<[1], [0], [0], [1], [0, 0, 1, 1], [], []>} : vector<224x96xbf16>, vector<96x448xbf16>, vector<224x448xf32> -> vector<224x448xf32>
    %34 = arith.addf %29, %33 : vector<224x448xf32>
    %c16_30 = arith.constant 16 : index
    %c0_31 = arith.constant 0 : index
    %35 = vector.load %arg1[%c16_30, %c0_31] : memref<256x96xbf16, #tpu.memory_space<vmem>>, vector<224x96xbf16>
    %c1_32 = arith.constant 1 : index
    %c0_33 = arith.constant 0 : index
    %c0_34 = arith.constant 0 : index
    %36 = vector.load %arg3[%c1_32, %c0_33, %c0_34] : memref<5x96x448xbf16, #tpu.memory_space<vmem>>, vector<1x96x448xbf16>
    %37 = vector.shape_cast %36 : vector<1x96x448xbf16> to vector<96x448xbf16>
    %cst_35 = arith.constant dense<0.000000e+00> : vector<224x448xf32>
    %38 = tpu.matmul %35, %37, %cst_35 {dimension_numbers = #tpu.dot_dimension_numbers<[1], [0], [0], [1], [0, 0, 1, 1], [], []>} : vector<224x96xbf16>, vector<96x448xbf16>, vector<224x448xf32> -> vector<224x448xf32>
    %39 = arith.addf %34, %38 : vector<224x448xf32>
    %c16_36 = arith.constant 16 : index
    %c0_37 = arith.constant 0 : index
    %40 = vector.load %arg2[%c16_36, %c0_37] : memref<256x96xbf16, #tpu.memory_space<vmem>>, vector<224x96xbf16>
    %c2_38 = arith.constant 2 : index
    %c0_39 = arith.constant 0 : index
    %c0_40 = arith.constant 0 : index
    %41 = vector.load %arg3[%c2_38, %c0_39, %c0_40] : memref<5x96x448xbf16, #tpu.memory_space<vmem>>, vector<1x96x448xbf16>
    %42 = vector.shape_cast %41 : vector<1x96x448xbf16> to vector<96x448xbf16>
    %cst_41 = arith.constant dense<0.000000e+00> : vector<224x448xf32>
    %43 = tpu.matmul %40, %42, %cst_41 {dimension_numbers = #tpu.dot_dimension_numbers<[1], [0], [0], [1], [0, 0, 1, 1], [], []>} : vector<224x96xbf16>, vector<96x448xbf16>, vector<224x448xf32> -> vector<224x448xf32>
    %44 = arith.addf %39, %43 : vector<224x448xf32>
    %c32_42 = arith.constant 32 : index
    %c0_43 = arith.constant 0 : index
    %45 = vector.load %arg1[%c32_42, %c0_43] : memref<256x96xbf16, #tpu.memory_space<vmem>>, vector<224x96xbf16>
    %c3_44 = arith.constant 3 : index
    %c0_45 = arith.constant 0 : index
    %c0_46 = arith.constant 0 : index
    %46 = vector.load %arg3[%c3_44, %c0_45, %c0_46] : memref<5x96x448xbf16, #tpu.memory_space<vmem>>, vector<1x96x448xbf16>
    %47 = vector.shape_cast %46 : vector<1x96x448xbf16> to vector<96x448xbf16>
    %cst_47 = arith.constant dense<0.000000e+00> : vector<224x448xf32>
    %48 = tpu.matmul %45, %47, %cst_47 {dimension_numbers = #tpu.dot_dimension_numbers<[1], [0], [0], [1], [0, 0, 1, 1], [], []>} : vector<224x96xbf16>, vector<96x448xbf16>, vector<224x448xf32> -> vector<224x448xf32>
    %49 = arith.addf %44, %48 : vector<224x448xf32>
    %c32_48 = arith.constant 32 : index
    %c0_49 = arith.constant 0 : index
    %50 = vector.load %arg2[%c32_48, %c0_49] : memref<256x96xbf16, #tpu.memory_space<vmem>>, vector<224x96xbf16>
    %c4_50 = arith.constant 4 : index
    %c0_51 = arith.constant 0 : index
    %c0_52 = arith.constant 0 : index
    %51 = vector.load %arg3[%c4_50, %c0_51, %c0_52] : memref<5x96x448xbf16, #tpu.memory_space<vmem>>, vector<1x96x448xbf16>
    %52 = vector.shape_cast %51 : vector<1x96x448xbf16> to vector<96x448xbf16>
    %cst_53 = arith.constant dense<0.000000e+00> : vector<224x448xf32>
    %53 = tpu.matmul %50, %52, %cst_53 {dimension_numbers = #tpu.dot_dimension_numbers<[1], [0], [0], [1], [0, 0, 1, 1], [], []>} : vector<224x96xbf16>, vector<96x448xbf16>, vector<224x448xf32> -> vector<224x448xf32>
    %54 = arith.addf %49, %53 : vector<224x448xf32>
    %55 = vector.extract_strided_slice %54 {offsets = [0, 0], sizes = [224, 224], strides = [1, 1]} : vector<224x448xf32> to vector<224x224xf32>
    %56 = vector.extract_strided_slice %54 {offsets = [0, 224], sizes = [224, 224], strides = [1, 1]} : vector<224x448xf32> to vector<224x224xf32>
    %57 = arith.maximumf %55, %56 : vector<224x224xf32>
    %58 = arith.maximumf %28, %57 : vector<224x224xf32>
    %c0_54 = arith.constant 0 : index
    %c0_55 = arith.constant 0 : index
    %59 = vector.load %arg4[%c0_54, %c0_55] : memref<1x224xf32, #tpu.memory_space<vmem>>, vector<1x224xf32>
    %60 = vector.broadcast %59 : vector<1x224xf32> to vector<224x224xf32>
    %61 = arith.addf %58, %60 : vector<224x224xf32>
    %cst_56 = arith.constant 0.000000e+00 : f32
    %62 = vector.broadcast %cst_56 : f32 to vector<224x224xf32>
    %63 = arith.maximumf %61, %62 : vector<224x224xf32>
    %64 = arith.truncf %63 : vector<224x224xf32> to vector<224x224xbf16>
    %cst_57 = arith.constant 0.000000e+00 : f32
    %65 = vector.broadcast %cst_57 : f32 to vector<80x320xf32>
    %66 = vector.extract_strided_slice %64 {offsets = [0, 0], sizes = [16, 224], strides = [1, 1]} : vector<224x224xbf16> to vector<16x224xbf16>
    %67 = vector.extract_strided_slice %64 {offsets = [32, 0], sizes = [16, 224], strides = [1, 1]} : vector<224x224xbf16> to vector<16x224xbf16>
    %68 = vector.extract_strided_slice %64 {offsets = [64, 0], sizes = [16, 224], strides = [1, 1]} : vector<224x224xbf16> to vector<16x224xbf16>
    %69 = vector.extract_strided_slice %64 {offsets = [96, 0], sizes = [16, 224], strides = [1, 1]} : vector<224x224xbf16> to vector<16x224xbf16>
    %70 = vector.extract_strided_slice %64 {offsets = [128, 0], sizes = [16, 224], strides = [1, 1]} : vector<224x224xbf16> to vector<16x224xbf16>
    %71 = tpu.concatenate %66, %67, %68, %69, %70 in 0 : vector<16x224xbf16>, vector<16x224xbf16>, vector<16x224xbf16>, vector<16x224xbf16>, vector<16x224xbf16> -> vector<80x224xbf16>
    %c0_58 = arith.constant 0 : index
    %c0_59 = arith.constant 0 : index
    %c0_60 = arith.constant 0 : index
    %72 = vector.load %arg5[%c0_58, %c0_59, %c0_60] : memref<5x224x320xbf16, #tpu.memory_space<vmem>>, vector<1x224x320xbf16>
    %73 = vector.shape_cast %72 : vector<1x224x320xbf16> to vector<224x320xbf16>
    %cst_61 = arith.constant dense<0.000000e+00> : vector<80x320xf32>
    %74 = tpu.matmul %71, %73, %cst_61 {dimension_numbers = #tpu.dot_dimension_numbers<[1], [0], [0], [1], [0, 0, 1, 1], [], []>} : vector<80x224xbf16>, vector<224x320xbf16>, vector<80x320xf32> -> vector<80x320xf32>
    %75 = arith.addf %65, %74 : vector<80x320xf32>
    %76 = vector.extract_strided_slice %64 {offsets = [16, 0], sizes = [16, 224], strides = [1, 1]} : vector<224x224xbf16> to vector<16x224xbf16>
    %77 = vector.extract_strided_slice %64 {offsets = [48, 0], sizes = [16, 224], strides = [1, 1]} : vector<224x224xbf16> to vector<16x224xbf16>
    %78 = vector.extract_strided_slice %64 {offsets = [80, 0], sizes = [16, 224], strides = [1, 1]} : vector<224x224xbf16> to vector<16x224xbf16>
    %79 = vector.extract_strided_slice %64 {offsets = [112, 0], sizes = [16, 224], strides = [1, 1]} : vector<224x224xbf16> to vector<16x224xbf16>
    %80 = vector.extract_strided_slice %64 {offsets = [144, 0], sizes = [16, 224], strides = [1, 1]} : vector<224x224xbf16> to vector<16x224xbf16>
    %81 = tpu.concatenate %76, %77, %78, %79, %80 in 0 : vector<16x224xbf16>, vector<16x224xbf16>, vector<16x224xbf16>, vector<16x224xbf16>, vector<16x224xbf16> -> vector<80x224xbf16>
    %c1_62 = arith.constant 1 : index
    %c0_63 = arith.constant 0 : index
    %c0_64 = arith.constant 0 : index
    %82 = vector.load %arg5[%c1_62, %c0_63, %c0_64] : memref<5x224x320xbf16, #tpu.memory_space<vmem>>, vector<1x224x320xbf16>
    %83 = vector.shape_cast %82 : vector<1x224x320xbf16> to vector<224x320xbf16>
    %cst_65 = arith.constant dense<0.000000e+00> : vector<80x320xf32>
    %84 = tpu.matmul %81, %83, %cst_65 {dimension_numbers = #tpu.dot_dimension_numbers<[1], [0], [0], [1], [0, 0, 1, 1], [], []>} : vector<80x224xbf16>, vector<224x320xbf16>, vector<80x320xf32> -> vector<80x320xf32>
    %85 = arith.addf %75, %84 : vector<80x320xf32>
    %86 = vector.extract_strided_slice %64 {offsets = [32, 0], sizes = [16, 224], strides = [1, 1]} : vector<224x224xbf16> to vector<16x224xbf16>
    %87 = vector.extract_strided_slice %64 {offsets = [64, 0], sizes = [16, 224], strides = [1, 1]} : vector<224x224xbf16> to vector<16x224xbf16>
    %88 = vector.extract_strided_slice %64 {offsets = [96, 0], sizes = [16, 224], strides = [1, 1]} : vector<224x224xbf16> to vector<16x224xbf16>
    %89 = vector.extract_strided_slice %64 {offsets = [128, 0], sizes = [16, 224], strides = [1, 1]} : vector<224x224xbf16> to vector<16x224xbf16>
    %90 = vector.extract_strided_slice %64 {offsets = [160, 0], sizes = [16, 224], strides = [1, 1]} : vector<224x224xbf16> to vector<16x224xbf16>
    %91 = tpu.concatenate %86, %87, %88, %89, %90 in 0 : vector<16x224xbf16>, vector<16x224xbf16>, vector<16x224xbf16>, vector<16x224xbf16>, vector<16x224xbf16> -> vector<80x224xbf16>
    %c2_66 = arith.constant 2 : index
    %c0_67 = arith.constant 0 : index
    %c0_68 = arith.constant 0 : index
    %92 = vector.load %arg5[%c2_66, %c0_67, %c0_68] : memref<5x224x320xbf16, #tpu.memory_space<vmem>>, vector<1x224x320xbf16>
    %93 = vector.shape_cast %92 : vector<1x224x320xbf16> to vector<224x320xbf16>
    %cst_69 = arith.constant dense<0.000000e+00> : vector<80x320xf32>
    %94 = tpu.matmul %91, %93, %cst_69 {dimension_numbers = #tpu.dot_dimension_numbers<[1], [0], [0], [1], [0, 0, 1, 1], [], []>} : vector<80x224xbf16>, vector<224x320xbf16>, vector<80x320xf32> -> vector<80x320xf32>
    %95 = arith.addf %85, %94 : vector<80x320xf32>
    %96 = vector.extract_strided_slice %64 {offsets = [48, 0], sizes = [16, 224], strides = [1, 1]} : vector<224x224xbf16> to vector<16x224xbf16>
    %97 = vector.extract_strided_slice %64 {offsets = [80, 0], sizes = [16, 224], strides = [1, 1]} : vector<224x224xbf16> to vector<16x224xbf16>
    %98 = vector.extract_strided_slice %64 {offsets = [112, 0], sizes = [16, 224], strides = [1, 1]} : vector<224x224xbf16> to vector<16x224xbf16>
    %99 = vector.extract_strided_slice %64 {offsets = [144, 0], sizes = [16, 224], strides = [1, 1]} : vector<224x224xbf16> to vector<16x224xbf16>
    %100 = vector.extract_strided_slice %64 {offsets = [176, 0], sizes = [16, 224], strides = [1, 1]} : vector<224x224xbf16> to vector<16x224xbf16>
    %101 = tpu.concatenate %96, %97, %98, %99, %100 in 0 : vector<16x224xbf16>, vector<16x224xbf16>, vector<16x224xbf16>, vector<16x224xbf16>, vector<16x224xbf16> -> vector<80x224xbf16>
    %c3_70 = arith.constant 3 : index
    %c0_71 = arith.constant 0 : index
    %c0_72 = arith.constant 0 : index
    %102 = vector.load %arg5[%c3_70, %c0_71, %c0_72] : memref<5x224x320xbf16, #tpu.memory_space<vmem>>, vector<1x224x320xbf16>
    %103 = vector.shape_cast %102 : vector<1x224x320xbf16> to vector<224x320xbf16>
    %cst_73 = arith.constant dense<0.000000e+00> : vector<80x320xf32>
    %104 = tpu.matmul %101, %103, %cst_73 {dimension_numbers = #tpu.dot_dimension_numbers<[1], [0], [0], [1], [0, 0, 1, 1], [], []>} : vector<80x224xbf16>, vector<224x320xbf16>, vector<80x320xf32> -> vector<80x320xf32>
    %105 = arith.addf %95, %104 : vector<80x320xf32>
    %106 = vector.extract_strided_slice %64 {offsets = [64, 0], sizes = [16, 224], strides = [1, 1]} : vector<224x224xbf16> to vector<16x224xbf16>
    %107 = vector.extract_strided_slice %64 {offsets = [96, 0], sizes = [16, 224], strides = [1, 1]} : vector<224x224xbf16> to vector<16x224xbf16>
    %108 = vector.extract_strided_slice %64 {offsets = [128, 0], sizes = [16, 224], strides = [1, 1]} : vector<224x224xbf16> to vector<16x224xbf16>
    %109 = vector.extract_strided_slice %64 {offsets = [160, 0], sizes = [16, 224], strides = [1, 1]} : vector<224x224xbf16> to vector<16x224xbf16>
    %110 = vector.extract_strided_slice %64 {offsets = [192, 0], sizes = [16, 224], strides = [1, 1]} : vector<224x224xbf16> to vector<16x224xbf16>
    %111 = tpu.concatenate %106, %107, %108, %109, %110 in 0 : vector<16x224xbf16>, vector<16x224xbf16>, vector<16x224xbf16>, vector<16x224xbf16>, vector<16x224xbf16> -> vector<80x224xbf16>
    %c4_74 = arith.constant 4 : index
    %c0_75 = arith.constant 0 : index
    %c0_76 = arith.constant 0 : index
    %112 = vector.load %arg5[%c4_74, %c0_75, %c0_76] : memref<5x224x320xbf16, #tpu.memory_space<vmem>>, vector<1x224x320xbf16>
    %113 = vector.shape_cast %112 : vector<1x224x320xbf16> to vector<224x320xbf16>
    %cst_77 = arith.constant dense<0.000000e+00> : vector<80x320xf32>
    %114 = tpu.matmul %111, %113, %cst_77 {dimension_numbers = #tpu.dot_dimension_numbers<[1], [0], [0], [1], [0, 0, 1, 1], [], []>} : vector<80x224xbf16>, vector<224x320xbf16>, vector<80x320xf32> -> vector<80x320xf32>
    %115 = arith.addf %105, %114 : vector<80x320xf32>
    %116 = vector.extract_strided_slice %115 {offsets = [0, 0], sizes = [80, 160], strides = [1, 1]} : vector<80x320xf32> to vector<80x160xf32>
    %117 = vector.extract_strided_slice %115 {offsets = [0, 160], sizes = [80, 160], strides = [1, 1]} : vector<80x320xf32> to vector<80x160xf32>
    %118 = arith.maximumf %116, %117 : vector<80x160xf32>
    %cst_78 = arith.constant 0.000000e+00 : f32
    %119 = vector.broadcast %cst_78 : f32 to vector<80x320xf32>
    %120 = vector.extract_strided_slice %64 {offsets = [16, 0], sizes = [16, 224], strides = [1, 1]} : vector<224x224xbf16> to vector<16x224xbf16>
    %121 = vector.extract_strided_slice %64 {offsets = [48, 0], sizes = [16, 224], strides = [1, 1]} : vector<224x224xbf16> to vector<16x224xbf16>
    %122 = vector.extract_strided_slice %64 {offsets = [80, 0], sizes = [16, 224], strides = [1, 1]} : vector<224x224xbf16> to vector<16x224xbf16>
    %123 = vector.extract_strided_slice %64 {offsets = [112, 0], sizes = [16, 224], strides = [1, 1]} : vector<224x224xbf16> to vector<16x224xbf16>
    %124 = vector.extract_strided_slice %64 {offsets = [144, 0], sizes = [16, 224], strides = [1, 1]} : vector<224x224xbf16> to vector<16x224xbf16>
    %125 = tpu.concatenate %120, %121, %122, %123, %124 in 0 : vector<16x224xbf16>, vector<16x224xbf16>, vector<16x224xbf16>, vector<16x224xbf16>, vector<16x224xbf16> -> vector<80x224xbf16>
    %c0_79 = arith.constant 0 : index
    %c0_80 = arith.constant 0 : index
    %c0_81 = arith.constant 0 : index
    %126 = vector.load %arg5[%c0_79, %c0_80, %c0_81] : memref<5x224x320xbf16, #tpu.memory_space<vmem>>, vector<1x224x320xbf16>
    %127 = vector.shape_cast %126 : vector<1x224x320xbf16> to vector<224x320xbf16>
    %cst_82 = arith.constant dense<0.000000e+00> : vector<80x320xf32>
    %128 = tpu.matmul %125, %127, %cst_82 {dimension_numbers = #tpu.dot_dimension_numbers<[1], [0], [0], [1], [0, 0, 1, 1], [], []>} : vector<80x224xbf16>, vector<224x320xbf16>, vector<80x320xf32> -> vector<80x320xf32>
    %129 = arith.addf %119, %128 : vector<80x320xf32>
    %130 = vector.extract_strided_slice %64 {offsets = [32, 0], sizes = [16, 224], strides = [1, 1]} : vector<224x224xbf16> to vector<16x224xbf16>
    %131 = vector.extract_strided_slice %64 {offsets = [64, 0], sizes = [16, 224], strides = [1, 1]} : vector<224x224xbf16> to vector<16x224xbf16>
    %132 = vector.extract_strided_slice %64 {offsets = [96, 0], sizes = [16, 224], strides = [1, 1]} : vector<224x224xbf16> to vector<16x224xbf16>
    %133 = vector.extract_strided_slice %64 {offsets = [128, 0], sizes = [16, 224], strides = [1, 1]} : vector<224x224xbf16> to vector<16x224xbf16>
    %134 = vector.extract_strided_slice %64 {offsets = [160, 0], sizes = [16, 224], strides = [1, 1]} : vector<224x224xbf16> to vector<16x224xbf16>
    %135 = tpu.concatenate %130, %131, %132, %133, %134 in 0 : vector<16x224xbf16>, vector<16x224xbf16>, vector<16x224xbf16>, vector<16x224xbf16>, vector<16x224xbf16> -> vector<80x224xbf16>
    %c1_83 = arith.constant 1 : index
    %c0_84 = arith.constant 0 : index
    %c0_85 = arith.constant 0 : index
    %136 = vector.load %arg5[%c1_83, %c0_84, %c0_85] : memref<5x224x320xbf16, #tpu.memory_space<vmem>>, vector<1x224x320xbf16>
    %137 = vector.shape_cast %136 : vector<1x224x320xbf16> to vector<224x320xbf16>
    %cst_86 = arith.constant dense<0.000000e+00> : vector<80x320xf32>
    %138 = tpu.matmul %135, %137, %cst_86 {dimension_numbers = #tpu.dot_dimension_numbers<[1], [0], [0], [1], [0, 0, 1, 1], [], []>} : vector<80x224xbf16>, vector<224x320xbf16>, vector<80x320xf32> -> vector<80x320xf32>
    %139 = arith.addf %129, %138 : vector<80x320xf32>
    %140 = vector.extract_strided_slice %64 {offsets = [48, 0], sizes = [16, 224], strides = [1, 1]} : vector<224x224xbf16> to vector<16x224xbf16>
    %141 = vector.extract_strided_slice %64 {offsets = [80, 0], sizes = [16, 224], strides = [1, 1]} : vector<224x224xbf16> to vector<16x224xbf16>
    %142 = vector.extract_strided_slice %64 {offsets = [112, 0], sizes = [16, 224], strides = [1, 1]} : vector<224x224xbf16> to vector<16x224xbf16>
    %143 = vector.extract_strided_slice %64 {offsets = [144, 0], sizes = [16, 224], strides = [1, 1]} : vector<224x224xbf16> to vector<16x224xbf16>
    %144 = vector.extract_strided_slice %64 {offsets = [176, 0], sizes = [16, 224], strides = [1, 1]} : vector<224x224xbf16> to vector<16x224xbf16>
    %145 = tpu.concatenate %140, %141, %142, %143, %144 in 0 : vector<16x224xbf16>, vector<16x224xbf16>, vector<16x224xbf16>, vector<16x224xbf16>, vector<16x224xbf16> -> vector<80x224xbf16>
    %c2_87 = arith.constant 2 : index
    %c0_88 = arith.constant 0 : index
    %c0_89 = arith.constant 0 : index
    %146 = vector.load %arg5[%c2_87, %c0_88, %c0_89] : memref<5x224x320xbf16, #tpu.memory_space<vmem>>, vector<1x224x320xbf16>
    %147 = vector.shape_cast %146 : vector<1x224x320xbf16> to vector<224x320xbf16>
    %cst_90 = arith.constant dense<0.000000e+00> : vector<80x320xf32>
    %148 = tpu.matmul %145, %147, %cst_90 {dimension_numbers = #tpu.dot_dimension_numbers<[1], [0], [0], [1], [0, 0, 1, 1], [], []>} : vector<80x224xbf16>, vector<224x320xbf16>, vector<80x320xf32> -> vector<80x320xf32>
    %149 = arith.addf %139, %148 : vector<80x320xf32>
    %150 = vector.extract_strided_slice %64 {offsets = [64, 0], sizes = [16, 224], strides = [1, 1]} : vector<224x224xbf16> to vector<16x224xbf16>
    %151 = vector.extract_strided_slice %64 {offsets = [96, 0], sizes = [16, 224], strides = [1, 1]} : vector<224x224xbf16> to vector<16x224xbf16>
    %152 = vector.extract_strided_slice %64 {offsets = [128, 0], sizes = [16, 224], strides = [1, 1]} : vector<224x224xbf16> to vector<16x224xbf16>
    %153 = vector.extract_strided_slice %64 {offsets = [160, 0], sizes = [16, 224], strides = [1, 1]} : vector<224x224xbf16> to vector<16x224xbf16>
    %154 = vector.extract_strided_slice %64 {offsets = [192, 0], sizes = [16, 224], strides = [1, 1]} : vector<224x224xbf16> to vector<16x224xbf16>
    %155 = tpu.concatenate %150, %151, %152, %153, %154 in 0 : vector<16x224xbf16>, vector<16x224xbf16>, vector<16x224xbf16>, vector<16x224xbf16>, vector<16x224xbf16> -> vector<80x224xbf16>
    %c3_91 = arith.constant 3 : index
    %c0_92 = arith.constant 0 : index
    %c0_93 = arith.constant 0 : index
    %156 = vector.load %arg5[%c3_91, %c0_92, %c0_93] : memref<5x224x320xbf16, #tpu.memory_space<vmem>>, vector<1x224x320xbf16>
    %157 = vector.shape_cast %156 : vector<1x224x320xbf16> to vector<224x320xbf16>
    %cst_94 = arith.constant dense<0.000000e+00> : vector<80x320xf32>
    %158 = tpu.matmul %155, %157, %cst_94 {dimension_numbers = #tpu.dot_dimension_numbers<[1], [0], [0], [1], [0, 0, 1, 1], [], []>} : vector<80x224xbf16>, vector<224x320xbf16>, vector<80x320xf32> -> vector<80x320xf32>
    %159 = arith.addf %149, %158 : vector<80x320xf32>
    %160 = vector.extract_strided_slice %64 {offsets = [80, 0], sizes = [16, 224], strides = [1, 1]} : vector<224x224xbf16> to vector<16x224xbf16>
    %161 = vector.extract_strided_slice %64 {offsets = [112, 0], sizes = [16, 224], strides = [1, 1]} : vector<224x224xbf16> to vector<16x224xbf16>
    %162 = vector.extract_strided_slice %64 {offsets = [144, 0], sizes = [16, 224], strides = [1, 1]} : vector<224x224xbf16> to vector<16x224xbf16>
    %163 = vector.extract_strided_slice %64 {offsets = [176, 0], sizes = [16, 224], strides = [1, 1]} : vector<224x224xbf16> to vector<16x224xbf16>
    %164 = vector.extract_strided_slice %64 {offsets = [208, 0], sizes = [16, 224], strides = [1, 1]} : vector<224x224xbf16> to vector<16x224xbf16>
    %165 = tpu.concatenate %160, %161, %162, %163, %164 in 0 : vector<16x224xbf16>, vector<16x224xbf16>, vector<16x224xbf16>, vector<16x224xbf16>, vector<16x224xbf16> -> vector<80x224xbf16>
    %c4_95 = arith.constant 4 : index
    %c0_96 = arith.constant 0 : index
    %c0_97 = arith.constant 0 : index
    %166 = vector.load %arg5[%c4_95, %c0_96, %c0_97] : memref<5x224x320xbf16, #tpu.memory_space<vmem>>, vector<1x224x320xbf16>
    %167 = vector.shape_cast %166 : vector<1x224x320xbf16> to vector<224x320xbf16>
    %cst_98 = arith.constant dense<0.000000e+00> : vector<80x320xf32>
    %168 = tpu.matmul %165, %167, %cst_98 {dimension_numbers = #tpu.dot_dimension_numbers<[1], [0], [0], [1], [0, 0, 1, 1], [], []>} : vector<80x224xbf16>, vector<224x320xbf16>, vector<80x320xf32> -> vector<80x320xf32>
    %169 = arith.addf %159, %168 : vector<80x320xf32>
    %170 = vector.extract_strided_slice %169 {offsets = [0, 0], sizes = [80, 160], strides = [1, 1]} : vector<80x320xf32> to vector<80x160xf32>
    %171 = vector.extract_strided_slice %169 {offsets = [0, 160], sizes = [80, 160], strides = [1, 1]} : vector<80x320xf32> to vector<80x160xf32>
    %172 = arith.maximumf %170, %171 : vector<80x160xf32>
    %173 = arith.maximumf %118, %172 : vector<80x160xf32>
    %c0_99 = arith.constant 0 : index
    %c0_100 = arith.constant 0 : index
    %174 = vector.load %arg6[%c0_99, %c0_100] : memref<1x160xf32, #tpu.memory_space<vmem>>, vector<1x160xf32>
    %175 = vector.broadcast %174 : vector<1x160xf32> to vector<80x160xf32>
    %176 = arith.addf %173, %175 : vector<80x160xf32>
    %cst_101 = arith.constant 0.000000e+00 : f32
    %177 = vector.broadcast %cst_101 : f32 to vector<80x160xf32>
    %178 = arith.maximumf %176, %177 : vector<80x160xf32>
    %179 = arith.truncf %178 : vector<80x160xf32> to vector<80x160xbf16>
    %cst_102 = arith.constant 0.000000e+00 : f32
    %180 = vector.broadcast %cst_102 : f32 to vector<16x120xf32>
    %181 = vector.extract_strided_slice %179 {offsets = [0, 0], sizes = [16, 160], strides = [1, 1]} : vector<80x160xbf16> to vector<16x160xbf16>
    %c0_103 = arith.constant 0 : index
    %c0_104 = arith.constant 0 : index
    %c0_105 = arith.constant 0 : index
    %182 = vector.load %arg7[%c0_103, %c0_104, %c0_105] : memref<5x160x120xbf16, #tpu.memory_space<vmem>>, vector<1x160x120xbf16>
    %183 = vector.shape_cast %182 : vector<1x160x120xbf16> to vector<160x120xbf16>
    %cst_106 = arith.constant dense<0.000000e+00> : vector<16x120xf32>
    %184 = tpu.matmul %181, %183, %cst_106 {dimension_numbers = #tpu.dot_dimension_numbers<[1], [0], [0], [1], [0, 0, 1, 1], [], []>} : vector<16x160xbf16>, vector<160x120xbf16>, vector<16x120xf32> -> vector<16x120xf32>
    %185 = arith.addf %180, %184 : vector<16x120xf32>
    %186 = vector.extract_strided_slice %179 {offsets = [16, 0], sizes = [16, 160], strides = [1, 1]} : vector<80x160xbf16> to vector<16x160xbf16>
    %c1_107 = arith.constant 1 : index
    %c0_108 = arith.constant 0 : index
    %c0_109 = arith.constant 0 : index
    %187 = vector.load %arg7[%c1_107, %c0_108, %c0_109] : memref<5x160x120xbf16, #tpu.memory_space<vmem>>, vector<1x160x120xbf16>
    %188 = vector.shape_cast %187 : vector<1x160x120xbf16> to vector<160x120xbf16>
    %cst_110 = arith.constant dense<0.000000e+00> : vector<16x120xf32>
    %189 = tpu.matmul %186, %188, %cst_110 {dimension_numbers = #tpu.dot_dimension_numbers<[1], [0], [0], [1], [0, 0, 1, 1], [], []>} : vector<16x160xbf16>, vector<160x120xbf16>, vector<16x120xf32> -> vector<16x120xf32>
    %190 = arith.addf %185, %189 : vector<16x120xf32>
    %191 = vector.extract_strided_slice %179 {offsets = [32, 0], sizes = [16, 160], strides = [1, 1]} : vector<80x160xbf16> to vector<16x160xbf16>
    %c2_111 = arith.constant 2 : index
    %c0_112 = arith.constant 0 : index
    %c0_113 = arith.constant 0 : index
    %192 = vector.load %arg7[%c2_111, %c0_112, %c0_113] : memref<5x160x120xbf16, #tpu.memory_space<vmem>>, vector<1x160x120xbf16>
    %193 = vector.shape_cast %192 : vector<1x160x120xbf16> to vector<160x120xbf16>
    %cst_114 = arith.constant dense<0.000000e+00> : vector<16x120xf32>
    %194 = tpu.matmul %191, %193, %cst_114 {dimension_numbers = #tpu.dot_dimension_numbers<[1], [0], [0], [1], [0, 0, 1, 1], [], []>} : vector<16x160xbf16>, vector<160x120xbf16>, vector<16x120xf32> -> vector<16x120xf32>
    %195 = arith.addf %190, %194 : vector<16x120xf32>
    %196 = vector.extract_strided_slice %179 {offsets = [48, 0], sizes = [16, 160], strides = [1, 1]} : vector<80x160xbf16> to vector<16x160xbf16>
    %c3_115 = arith.constant 3 : index
    %c0_116 = arith.constant 0 : index
    %c0_117 = arith.constant 0 : index
    %197 = vector.load %arg7[%c3_115, %c0_116, %c0_117] : memref<5x160x120xbf16, #tpu.memory_space<vmem>>, vector<1x160x120xbf16>
    %198 = vector.shape_cast %197 : vector<1x160x120xbf16> to vector<160x120xbf16>
    %cst_118 = arith.constant dense<0.000000e+00> : vector<16x120xf32>
    %199 = tpu.matmul %196, %198, %cst_118 {dimension_numbers = #tpu.dot_dimension_numbers<[1], [0], [0], [1], [0, 0, 1, 1], [], []>} : vector<16x160xbf16>, vector<160x120xbf16>, vector<16x120xf32> -> vector<16x120xf32>
    %200 = arith.addf %195, %199 : vector<16x120xf32>
    %201 = vector.extract_strided_slice %179 {offsets = [64, 0], sizes = [16, 160], strides = [1, 1]} : vector<80x160xbf16> to vector<16x160xbf16>
    %c4_119 = arith.constant 4 : index
    %c0_120 = arith.constant 0 : index
    %c0_121 = arith.constant 0 : index
    %202 = vector.load %arg7[%c4_119, %c0_120, %c0_121] : memref<5x160x120xbf16, #tpu.memory_space<vmem>>, vector<1x160x120xbf16>
    %203 = vector.shape_cast %202 : vector<1x160x120xbf16> to vector<160x120xbf16>
    %cst_122 = arith.constant dense<0.000000e+00> : vector<16x120xf32>
    %204 = tpu.matmul %201, %203, %cst_122 {dimension_numbers = #tpu.dot_dimension_numbers<[1], [0], [0], [1], [0, 0, 1, 1], [], []>} : vector<16x160xbf16>, vector<160x120xbf16>, vector<16x120xf32> -> vector<16x120xf32>
    %205 = arith.addf %200, %204 : vector<16x120xf32>
    %c0_123 = arith.constant 0 : index
    %c0_124 = arith.constant 0 : index
    %206 = vector.load %arg8[%c0_123, %c0_124] : memref<1x120xf32, #tpu.memory_space<vmem>>, vector<1x120xf32>
    %207 = vector.broadcast %206 : vector<1x120xf32> to vector<16x120xf32>
    %208 = arith.addf %205, %207 : vector<16x120xf32>
    %cst_125 = arith.constant 0.000000e+00 : f32
    %209 = vector.broadcast %cst_125 : f32 to vector<16x120xf32>
    %210 = arith.maximumf %208, %209 : vector<16x120xf32>
    %211 = arith.truncf %210 : vector<16x120xf32> to vector<16x120xbf16>
    %c0_126 = arith.constant 0 : index
    %c0_127 = arith.constant 0 : index
    %212 = vector.load %arg9[%c0_126, %c0_127] : memref<120x84xbf16, #tpu.memory_space<vmem>>, vector<120x84xbf16>
    %cst_128 = arith.constant dense<0.000000e+00> : vector<16x84xf32>
    %213 = tpu.matmul %211, %212, %cst_128 {dimension_numbers = #tpu.dot_dimension_numbers<[1], [0], [0], [1], [0, 0, 1, 1], [], []>} : vector<16x120xbf16>, vector<120x84xbf16>, vector<16x84xf32> -> vector<16x84xf32>
    %c0_129 = arith.constant 0 : index
    %c0_130 = arith.constant 0 : index
    %214 = vector.load %arg10[%c0_129, %c0_130] : memref<1x84xf32, #tpu.memory_space<vmem>>, vector<1x84xf32>
    %215 = vector.broadcast %214 : vector<1x84xf32> to vector<16x84xf32>
    %216 = arith.addf %213, %215 : vector<16x84xf32>
    %cst_131 = arith.constant 0.000000e+00 : f32
    %217 = vector.broadcast %cst_131 : f32 to vector<16x84xf32>
    %218 = arith.maximumf %216, %217 : vector<16x84xf32>
    %219 = arith.truncf %218 : vector<16x84xf32> to vector<16x84xbf16>
    %c0_132 = arith.constant 0 : index
    %c0_133 = arith.constant 0 : index
    %220 = vector.load %arg11[%c0_132, %c0_133] : memref<84x10xbf16, #tpu.memory_space<vmem>>, vector<84x10xbf16>
    %cst_134 = arith.constant dense<0.000000e+00> : vector<16x10xf32>
    %221 = tpu.matmul %219, %220, %cst_134 {dimension_numbers = #tpu.dot_dimension_numbers<[1], [0], [0], [1], [0, 0, 1, 1], [], []>} : vector<16x84xbf16>, vector<84x10xbf16>, vector<16x10xf32> -> vector<16x10xf32>
    %c0_135 = arith.constant 0 : index
    %c0_136 = arith.constant 0 : index
    %222 = vector.load %arg12[%c0_135, %c0_136] : memref<1x10xf32, #tpu.memory_space<vmem>>, vector<1x10xf32>
    %223 = vector.broadcast %222 : vector<1x10xf32> to vector<16x10xf32>
    %224 = arith.addf %221, %223 : vector<16x10xf32>
    %c0_137 = arith.constant 0 : index
    %c0_138 = arith.constant 0 : index
    %225 = vector.load %arg13[%c0_137, %c0_138] : memref<16x10xf32, #tpu.memory_space<vmem>>, vector<16x10xf32>
    tpu.vector_store %arg13[%c0_137, %c0_138], %224 {strides = array<i32>} : memref<16x10xf32, #tpu.memory_space<vmem>>, vector<16x10xf32>,
    return
  }
  func.func @transform_0(%arg0: i32) -> (i32, i32) {
    %c0_i32 = arith.constant 0 : i32
    %c0_i32_0 = arith.constant 0 : i32
    return %arg0, %c0_i32 : i32, i32
  }
  func.func @transform_1(%arg0: i32) -> (i32, i32) {
    %c0_i32 = arith.constant 0 : i32
    %c0_i32_0 = arith.constant 0 : i32
    return %arg0, %c0_i32 : i32, i32
  }
  func.func @transform_2(%arg0: i32) -> (i32, i32, i32) {
    %c0_i32 = arith.constant 0 : i32
    %c0_i32_0 = arith.constant 0 : i32
    %c0_i32_1 = arith.constant 0 : i32
    %c0_i32_2 = arith.constant 0 : i32
    return %c0_i32, %c0_i32_0, %c0_i32_1 : i32, i32, i32
  }
  func.func @transform_3(%arg0: i32) -> (i32, i32) {
    %c0_i32 = arith.constant 0 : i32
    %c0_i32_0 = arith.constant 0 : i32
    %c0_i32_1 = arith.constant 0 : i32
    return %c0_i32, %c0_i32_0 : i32, i32
  }
  func.func @transform_4(%arg0: i32) -> (i32, i32, i32) {
    %c0_i32 = arith.constant 0 : i32
    %c0_i32_0 = arith.constant 0 : i32
    %c0_i32_1 = arith.constant 0 : i32
    %c0_i32_2 = arith.constant 0 : i32
    return %c0_i32, %c0_i32_0, %c0_i32_1 : i32, i32, i32
  }
  func.func @transform_5(%arg0: i32) -> (i32, i32) {
    %c0_i32 = arith.constant 0 : i32
    %c0_i32_0 = arith.constant 0 : i32
    %c0_i32_1 = arith.constant 0 : i32
    return %c0_i32, %c0_i32_0 : i32, i32
  }
  func.func @transform_6(%arg0: i32) -> (i32, i32, i32) {
    %c0_i32 = arith.constant 0 : i32
    %c0_i32_0 = arith.constant 0 : i32
    %c0_i32_1 = arith.constant 0 : i32
    %c0_i32_2 = arith.constant 0 : i32
    return %c0_i32, %c0_i32_0, %c0_i32_1 : i32, i32, i32
  }
  func.func @transform_7(%arg0: i32) -> (i32, i32) {
    %c0_i32 = arith.constant 0 : i32
    %c0_i32_0 = arith.constant 0 : i32
    %c0_i32_1 = arith.constant 0 : i32
    return %c0_i32, %c0_i32_0 : i32, i32
  }
  func.func @transform_8(%arg0: i32) -> (i32, i32) {
    %c0_i32 = arith.constant 0 : i32
    %c0_i32_0 = arith.constant 0 : i32
    %c0_i32_1 = arith.constant 0 : i32
    return %c0_i32, %c0_i32_0 : i32, i32
  }
  func.func @transform_9(%arg0: i32) -> (i32, i32) {
    %c0_i32 = arith.constant 0 : i32
    %c0_i32_0 = arith.constant 0 : i32
    %c0_i32_1 = arith.constant 0 : i32
    return %c0_i32, %c0_i32_0 : i32, i32
  }
  func.func @transform_10(%arg0: i32) -> (i32, i32) {
    %c0_i32 = arith.constant 0 : i32
    %c0_i32_0 = arith.constant 0 : i32
    %c0_i32_1 = arith.constant 0 : i32
    return %c0_i32, %c0_i32_0 : i32, i32
  }
  func.func @transform_11(%arg0: i32) -> (i32, i32) {
    %c0_i32 = arith.constant 0 : i32
    %c0_i32_0 = arith.constant 0 : i32
    %c0_i32_1 = arith.constant 0 : i32
    return %c0_i32, %c0_i32_0 : i32, i32
  }
  func.func @transform_12(%arg0: i32) -> (i32, i32) {
    %c0_i32 = arith.constant 0 : i32
    %c0_i32_0 = arith.constant 0 : i32
    return %arg0, %c0_i32 : i32, i32
  }
}

</mosaic_0001>

<bundles_post_ra>
// kernel: lenet_forward.1
= control target key start
LH: loop header
LB: loop body
LE: loop exit
PB: predicated region body
PF: predicated region fallthrough
CT: control target
= control target key end

     0   :  { %v19912_v1 = vmov 0   ;;  %vm337_vm0 = vcmask 785408   ;;  %s14597_s30 = smov 32   ;;  %vm3785_vm1 = vcmask 261120   ;;  %s14598_s24 = smov 96   ;;  %vm10989_vm2 = vcmask 1043456   ;;  %s19899_s2 = inlined_call_operand.vmem [shape: bf16[5,96,448], index: 2, kind: input, shape index: {}]   ;;  %s19900_s1 = inlined_call_operand.vmem [shape: bf16[256,96], index: 1, kind: input, shape index: {}]   ;;  %s19901_s0 = inlined_call_operand.vmem [shape: bf16[256,96], index: 0, kind: input, shape index: {}]   ;;  %s19902_s4 = inlined_call_operand.vmem [shape: bf16[5,224,320], index: 4, kind: input, shape index: {}]   ;;  %s19903_s3 = inlined_call_operand.vmem [shape: f32[1,224], index: 3, kind: input, shape index: {}]   ;;  %s19904_s6 = inlined_call_operand.vmem [shape: bf16[5,160,120], index: 6, kind: input, shape index: {}]   ;;  %s19905_s5 = inlined_call_operand.vmem [shape: f32[1,160], index: 5, kind: input, shape index: {}]   ;;  %s19906_s8 = inlined_call_operand.vmem [shape: bf16[120,84], index: 8, kind: input, shape index: {}]   ;;  %s19907_s10 = inlined_call_operand.vmem [shape: bf16[84,10], index: 10, kind: input, shape index: {}]   ;;  %s19908_s7 = inlined_call_operand.vmem [shape: f32[1,120], index: 7, kind: input, shape index: {}]   ;;  %s19909_s9 = inlined_call_operand.vmem [shape: f32[1,84], index: 9, kind: input, shape index: {}]   ;;  %s19910_s11 = inlined_call_operand.vmem [shape: f32[1,10], index: 11, kind: input, shape index: {}]   ;;  %s19911_s12 = inlined_call_operand.vmem [shape: f32[16,10], index: 12, kind: output, shape index: {}]  }
   0x1   :  { %v13685_v0 = vld [vmem:[%s19899_s2 + $0xc4] ss:$16 sps:$4 sm:$0xff]   ;;  %412 = vmatprep.mubr.bf16.mxu0 %v19912_v1  ;;  %585 = vmatprep.mubr.bf16.mxu1 %v19912_v1  ;;  %v13687_v2 = vld [vmem:[%s19899_s2 + $0xcc] ss:$16 sps:$4 sm:$0xff]   ;;  %v13689_v3 = vld [vmem:[%s19899_s2 + $0xc0] ss:$16 sps:$4 sm:$0xff]  }
   0x2   :  { %380 = vmatprep.subr.bf16.mxu0 %v13685_v0  ;;  %v13690_v4 = vld [vmem:[%s19899_s2 + $0xc8] ss:$16 sps:$4 sm:$0xff]   ;;  %553 = vmatprep.subr.bf16.mxu1 %v13687_v2  ;;  %v13691_v5 = vld [vmem:[%s19899_s2 + $0xe4] ss:$16 sps:$4 sm:$0xff]   ;;  %v13693_v6 = vld [vmem:[%s19899_s2 + $0xec] ss:$16 sps:$4 sm:$0xff]  }
   0x3   :  { %381 = vmatpush1.bf16.msra.mxu0 %v13689_v3  ;;  %554 = vmatpush1.bf16.msra.mxu1 %v13690_v4  ;;  %v13695_v7 = vld [vmem:[%s19899_s2 + $0xe0] ss:$16 sps:$4 sm:$0xff]   ;;  %v13696_v8 = vld [vmem:[%s19899_s2 + $0xe8] ss:$16 sps:$4 sm:$0xff]   ;;  %v13697_v9 = vld [vmem:[%s19899_s2 + $0x104] ss:$16 sps:$4 sm:$0xff]  }
   0x4   :  { %382 = vmatprep.subr.bf16.mxu0 %v13691_v5  ;;  %555 = vmatprep.subr.bf16.mxu1 %v13693_v6  ;;  %v13699_v10 = vld [vmem:[%s19899_s2 + $0x10c] ss:$16 sps:$4 sm:$0xff]   ;;  %v13701_v11 = vld [vmem:[%s19899_s2 + $0x100] ss:$16 sps:$4 sm:$0xff]   ;;  %v13702_v12 = vld [vmem:[%s19899_s2 + $0x108] ss:$16 sps:$4 sm:$0xff]  }
   0x5   :  { %v13703_v13 = vld [vmem:[%s19899_s2 + $0x124] ss:$16 sps:$4 sm:$0xff]   ;;  %v13705_v14 = vld [vmem:[%s19899_s2 + $0x12c] ss:$16 sps:$4 sm:$0xff]   ;;  %v13707_v15 = vld [vmem:[%s19899_s2 + $0x120] ss:$16 sps:$4 sm:$0xff]  }
   0x6   :  { %v13708_v16 = vld [vmem:[%s19899_s2 + $0x128] ss:$16 sps:$4 sm:$0xff]   ;;  %v13709_v17 = vld [vmem:[%s19899_s2 + $0x144] ss:$16 sps:$4 sm:$0xff]   ;;  %v13711_v18 = vld [vmem:[%s19899_s2 + $0x14c] ss:$16 sps:$4 sm:$0xff]  }
   0x7   :  { %383 = vmatpush1.bf16.msra.mxu0 %v13695_v7  ;;  %556 = vmatpush1.bf16.msra.mxu1 %v13696_v8  ;;  %v13713_v19 = vld [vmem:[%s19899_s2 + $0x140] ss:$16 sps:$4 sm:$0xff]   ;;  %v13714_v20 = vld [vmem:[%s19899_s2 + $0x148] ss:$16 sps:$4 sm:$0xff]   ;;  %v13715_v21 = vld [vmem:[%s19899_s2 + $0x164] ss:$16 sps:$4 sm:$0xff]  }
   0x8   :  { %384 = vmatprep.subr.bf16.mxu0 %v13697_v9  ;;  %557 = vmatprep.subr.bf16.mxu1 %v13699_v10  ;;  %v13717_v22 = vld [vmem:[%s19899_s2 + $0x16c] ss:$16 sps:$4 sm:$0xff]   ;;  %v13719_v23 = vld [vmem:[%s19899_s2 + $0x160] ss:$16 sps:$4 sm:$0xff]   ;;  %v13720_v24 = vld [vmem:[%s19899_s2 + $0x168] ss:$16 sps:$4 sm:$0xff]  }
   0x9   :  { %v13724_v25 = vld [vmem:[%s19899_s2 + $0xc] ss:$16 sps:$4 sm:$0xff]   ;;  %v13727_v26 = vld [vmem:[%s19899_s2 + $0x4] ss:$16 sps:$4 sm:$0xff]   ;;  %v13722_v28 = vld [vmem:[%s19899_s2 + $0x8] ss:$16 sps:$4 sm:$0xff]  }
   0xa   :  { %v13721_v27 = vld [vmem:[%s19900_s1] sm:$0xff]   ;;  %v13732_v30 = vld [vmem:[%s19899_s2 + $0x2c] ss:$16 sps:$4 sm:$0xff]   ;;  %v13730_v32 = vld [vmem:[%s19899_s2 + $0x28] ss:$16 sps:$4 sm:$0xff]   ;;  %vm14600_vm3 = vmmov 0  }
   0xb   :  { %385 = vmatpush1.bf16.msra.mxu0 %v13701_v11  ;;  %558 = vmatpush1.bf16.msra.mxu1 %v13702_v12  ;;  %v13725_v29 = vld [vmem:[%s19899_s2] ss:$16 sps:$4 sm:$0xff]   ;;  %v13735_v31 = vld [vmem:[%s19899_s2 + $0x24] ss:$16 sps:$4 sm:$0xff]   ;;  %v13740_v34 = vld [vmem:[%s19899_s2 + $0x4c] ss:$16 sps:$4 sm:$0xff]  }
   0xc   :  { %386 = vmatprep.subr.bf16.mxu0 %v13703_v13  ;;  %559 = vmatprep.subr.bf16.mxu1 %v13705_v14  ;;  %v13733_v33 = vld [vmem:[%s19899_s2 + $0x20] ss:$16 sps:$4 sm:$0xff]   ;;  %v13744_v35 = vld [vmem:[%s19899_s2 + $0x44] ss:$16 sps:$4 sm:$0xff]   ;;  %v13728_v36 = vld [vmem:[%s19900_s1 + $0x8] sm:$0xff]   ;;  %vm10985_vm4 = vcmask 982016  }
   0xd   :  { %v13738_v37 = vld [vmem:[%s19899_s2 + $0x48] ss:$16 sps:$4 sm:$0xff]   ;;  %v13742_v38 = vld [vmem:[%s19899_s2 + $0x40] ss:$16 sps:$4 sm:$0xff]   ;;  %v13749_v39 = vld [vmem:[%s19899_s2 + $0x6c] ss:$16 sps:$4 sm:$0xff]  }
   0xe   :  { %v13752_v40 = vld [vmem:[%s19899_s2 + $0x64] ss:$16 sps:$4 sm:$0xff]   ;;  %v13747_v42 = vld [vmem:[%s19899_s2 + $0x68] ss:$16 sps:$4 sm:$0xff]   ;;  %v13750_v43 = vld [vmem:[%s19899_s2 + $0x60] ss:$16 sps:$4 sm:$0xff]  }
   0xf   :  { %387 = vmatpush1.bf16.msra.mxu0 %v13707_v15  ;;  %560 = vmatpush1.bf16.msra.mxu1 %v13708_v16  ;;  %v13729_v41 = vld [vmem:[%s19900_s1 + $0x10] sm:$0xff]   ;;  %v13757_v44 = vld [vmem:[%s19899_s2 + $0x8c] ss:$16 sps:$4 sm:$0xff]   ;;  %v13755_v46 = vld [vmem:[%s19899_s2 + $0x88] ss:$16 sps:$4 sm:$0xff]   ;;  %vm11092_vm5 = vcmask 1041408  }
  0x10   :  { %388 = vmatprep.subr.bf16.mxu0 %v13709_v17  ;;  %561 = vmatprep.subr.bf16.mxu1 %v13711_v18  ;;  %v13760_v45 = vld [vmem:[%s19899_s2 + $0x84] ss:$16 sps:$4 sm:$0xff]   ;;  %v13758_v47 = vld [vmem:[%s19899_s2 + $0x80] ss:$16 sps:$4 sm:$0xff]   ;;  %v13765_v48 = vld [vmem:[%s19899_s2 + $0xac] ss:$16 sps:$4 sm:$0xff]  }
  0x11   :  { %v13763_v49 = vld [vmem:[%s19899_s2 + $0xa8] ss:$16 sps:$4 sm:$0xff]   ;;  %v13769_v50 = vld [vmem:[%s19899_s2 + $0xa4] ss:$16 sps:$4 sm:$0xff]   ;;  %v13767_v51 = vld [vmem:[%s19899_s2 + $0xa0] ss:$16 sps:$4 sm:$0xff]  }
  0x12   :  { %v13736_v52 = vld [vmem:[%s19900_s1 + $0x18] sm:$0xff]   ;;  %v13777_v54 = vld [vmem:[%s19899_s2 + $0x184] ss:$16 sps:$4 sm:$0xff]   ;;  %v13741_v56 = vld [vmem:[%s19900_s1 + $0x28] sm:$0xff]   ;;  %vm11088_vm6 = vcmask 687104   ;;  %vm11137_vm7 = vcmask 80896  }
  0x13   :  { %389 = vmatpush1.bf16.msra.mxu0 %v13713_v19  ;;  %562 = vmatpush1.bf16.msra.mxu1 %v13714_v20  ;;  %v13774_v53 = vld [vmem:[%s19899_s2 + $0x18c] ss:$16 sps:$4 sm:$0xff]   ;;  %v13737_v55 = vld [vmem:[%s19900_s1 + $0x20] sm:$0xff]   ;;  %v13745_v57 = vld [vmem:[%s19900_s1 + $0x30] sm:$0xff]  }
  0x14   :  { %390 = vmatprep.subr.bf16.mxu0 %v13715_v21  ;;  %563 = vmatprep.subr.bf16.mxu1 %v13717_v22  ;;  %v13746_v58 = vld [vmem:[%s19900_s1 + $0x38] sm:$0xff]   ;;  %v13753_v59 = vld [vmem:[%s19900_s1 + $0x40] sm:$0xff]   ;;  %v13754_v60 = vld [vmem:[%s19900_s1 + $0x48] sm:$0xff]  }
  0x15   :  { %v13761_v61 = vld [vmem:[%s19900_s1 + $0x50] sm:$0xff]   ;;  %v13762_v62 = vld [vmem:[%s19900_s1 + $0x58] sm:$0xff]   ;;  %v13766_v63 = vld [vmem:[%s19900_s1 + $0x60] sm:$0xff]  }
  0x16   :  { %v13770_v0 = vld [vmem:[%s19900_s1 + $0x68] sm:$0xff]   ;;  %v13771_v2 = vld [vmem:[%s19901_s0] sm:$0xff]   ;;  %v13779_v20 = vld [vmem:[%s19901_s0 + $0x10] sm:$0xff]  }
  0x17   :  { %391 = vmatpush1.bf16.msra.mxu0 %v13719_v23  ;;  %564 = vmatpush1.bf16.msra.mxu1 %v13720_v24  ;;  %v13772_v3 = vld [vmem:[%s19899_s2 + $0x188] ss:$16 sps:$4 sm:$0xff]   ;;  %v13775_v4 = vld [vmem:[%s19899_s2 + $0x180] ss:$16 sps:$4 sm:$0xff]   ;;  %v13782_v5 = vld [vmem:[%s19899_s2 + $0x1ac] ss:$16 sps:$4 sm:$0xff]  }
  0x18   :  { %1131 = vmatprep.subr.bf16.mxu1 %v13724_v25  ;;  %958 = vmatprep.subr.bf16.mxu0 %v13727_v26  ;;  %v13785_v6 = vld [vmem:[%s19899_s2 + $0x1a4] ss:$16 sps:$4 sm:$0xff]   ;;  %v13780_v7 = vld [vmem:[%s19899_s2 + $0x1a8] ss:$16 sps:$4 sm:$0xff]   ;;  %v13783_v8 = vld [vmem:[%s19899_s2 + $0x1a0] ss:$16 sps:$4 sm:$0xff]  }
  0x19   :  { %v13790_v9 = vld [vmem:[%s19899_s2 + $0x1cc] ss:$16 sps:$4 sm:$0xff]   ;;  %v13794_v10 = vld [vmem:[%s19899_s2 + $0x1c4] ss:$16 sps:$4 sm:$0xff]   ;;  %v13788_v12 = vld [vmem:[%s19899_s2 + $0x1c8] ss:$16 sps:$4 sm:$0xff]  }
  0x1a   :  { %11206 = vmatmul.mubr.msk.bf16.vlgmr.msra.gmra.mrb[0].mxu0 %vm337_vm0, %v13721_v27  ;;  %11220 = vmatmul.mubr.msk.bf16.vlgmr.msra.gmra.mrb[0].mxu1 %vm337_vm0, %v13721_v27  ;;  %v13778_v11 = vld [vmem:[%s19901_s0 + $0x8] sm:$0xff]   ;;  %v13792_v13 = vld [vmem:[%s19899_s2 + $0x1c0] ss:$16 sps:$4 sm:$0xff]   ;;  %v13802_v15 = vld [vmem:[%s19899_s2 + $0x1e4] ss:$16 sps:$4 sm:$0xff]  }
  0x1b   :  { %1132 = vmatpush1.bf16.msra.mxu1 %v13722_v28  ;;  %959 = vmatpush1.bf16.msra.mxu0 %v13725_v29  ;;  %v13799_v14 = vld [vmem:[%s19899_s2 + $0x1ec] ss:$16 sps:$4 sm:$0xff]   ;;  %v13797_v16 = vld [vmem:[%s19899_s2 + $0x1e8] ss:$16 sps:$4 sm:$0xff]   ;;  %v13800_v17 = vld [vmem:[%s19899_s2 + $0x1e0] ss:$16 sps:$4 sm:$0xff]  }
  0x1c   :  { %422 = vmatprep.mubr.bf16.mxu0 %v19912_v1  ;;  %595 = vmatprep.mubr.bf16.mxu1 %v19912_v1  ;;  %v13807_v18 = vld [vmem:[%s19899_s2 + $0x20c] ss:$16 sps:$4 sm:$0xff]   ;;  %v13810_v19 = vld [vmem:[%s19899_s2 + $0x204] ss:$16 sps:$4 sm:$0xff]   ;;  %v13805_v21 = vld [vmem:[%s19899_s2 + $0x208] ss:$16 sps:$4 sm:$0xff]  }
  0x1d   :  { %1133 = vmatprep.subr.bf16.mxu1 %v13732_v30  ;;  %960 = vmatprep.subr.bf16.mxu0 %v13735_v31  ;;  %v13808_v22 = vld [vmem:[%s19899_s2 + $0x200] ss:$16 sps:$4 sm:$0xff]   ;;  %v13815_v23 = vld [vmem:[%s19899_s2 + $0x22c] ss:$16 sps:$4 sm:$0xff]   ;;  %v13819_v24 = vld [vmem:[%s19899_s2 + $0x224] ss:$16 sps:$4 sm:$0xff]  }
  0x1e   :  { %v13813_v25 = vld [vmem:[%s19899_s2 + $0x228] ss:$16 sps:$4 sm:$0xff]   ;;  %v13817_v26 = vld [vmem:[%s19899_s2 + $0x220] ss:$16 sps:$4 sm:$0xff]   ;;  %v13824_v27 = vld [vmem:[%s19899_s2 + $0x24c] ss:$16 sps:$4 sm:$0xff]  }
  0x1f   :  { %1134 = vmatpush1.bf16.msra.mxu1 %v13730_v32  ;;  %961 = vmatpush1.bf16.msra.mxu0 %v13733_v33  ;;  %v13827_v28 = vld [vmem:[%s19899_s2 + $0x244] ss:$16 sps:$4 sm:$0xff]   ;;  %v13786_v29 = vld [vmem:[%s19901_s0 + $0x18] sm:$0xff]   ;;  %v13791_v31 = vld [vmem:[%s19901_s0 + $0x28] sm:$0xff]  }
  0x20   :  { %1135 = vmatprep.subr.bf16.mxu1 %v13740_v34  ;;  %962 = vmatprep.subr.bf16.mxu0 %v13744_v35  ;;  %v13787_v30 = vld [vmem:[%s19901_s0 + $0x20] sm:$0xff]   ;;  %v13795_v32 = vld [vmem:[%s19901_s0 + $0x30] sm:$0xff]   ;;  %v13796_v33 = vld [vmem:[%s19901_s0 + $0x38] sm:$0xff]  }
  0x21   :  { %v13803_v34 = vld [vmem:[%s19901_s0 + $0x40] sm:$0xff]   ;;  %v13804_v35 = vld [vmem:[%s19901_s0 + $0x48] sm:$0xff]  }
  0x22   :  { %11207 = vmatmul.mubr.msk.bf16.gmra.mrb[4].mxu0 %vm337_vm0, %v13728_v36  ;;  %11221 = vmatmul.mubr.msk.bf16.gmra.mrb[4].mxu1 %vm337_vm0, %v13728_v36  ;;  %v13811_v36 = vld [vmem:[%s19901_s0 + $0x50] sm:$0xff]  }
  0x23   :  { %432 = vmatprep.mubr.bf16.mxu0 %v19912_v1  ;;  %605 = vmatprep.mubr.bf16.mxu1 %v19912_v1 }
  0x24   :  { %1136 = vmatpush1.bf16.msra.mxu1 %v13738_v37  ;;  %963 = vmatpush1.bf16.msra.mxu0 %v13742_v38  ;;  %v13812_v37 = vld [vmem:[%s19901_s0 + $0x58] sm:$0xff]   ;;  %v13816_v38 = vld [vmem:[%s19901_s0 + $0x60] sm:$0xff]  }
  0x25   :  { %1137 = vmatprep.subr.bf16.mxu1 %v13749_v39  ;;  %964 = vmatprep.subr.bf16.mxu0 %v13752_v40  ;;  %v13820_v39 = vld [vmem:[%s19901_s0 + $0x68] sm:$0xff]  }
  0x26   :  { %v15089_v40 = vld [vmem:[%s19901_s0 + $0x8] sm:$0xff]  }
  0x28   :  { %1138 = vmatpush1.bf16.msra.mxu1 %v13747_v42  ;;  %965 = vmatpush1.bf16.msra.mxu0 %v13750_v43  ;;  %v13825_v42 = vld [vmem:[%s19899_s2 + $0x240] ss:$16 sps:$4 sm:$0xff]   ;;  %v13832_v43 = vld [vmem:[%s19899_s2 + $0x26c] ss:$16 sps:$4 sm:$0xff]  }
  0x29   :  { %1139 = vmatprep.subr.bf16.mxu1 %v13757_v44  ;;  %966 = vmatprep.subr.bf16.mxu0 %v13760_v45  ;;  %v13835_v44 = vld [vmem:[%s19899_s2 + $0x264] ss:$16 sps:$4 sm:$0xff]   ;;  %v13830_v45 = vld [vmem:[%s19899_s2 + $0x268] ss:$16 sps:$4 sm:$0xff]  }
  0x2a   :  { %11208 = vmatmul.mubr.msk.bf16.gmra.mrb[8].mxu0 %vm337_vm0, %v13729_v41  ;;  %11222 = vmatmul.mubr.msk.bf16.gmra.mrb[8].mxu1 %vm337_vm0, %v13729_v41  ;;  %v13822_v41 = vld [vmem:[%s19899_s2 + $0x248] ss:$16 sps:$4 sm:$0xff]  }
  0x2b   :  { %442 = vmatprep.mubr.bf16.mxu0 %v19912_v1  ;;  %615 = vmatprep.mubr.bf16.mxu1 %v19912_v1 }
  0x2c   :  { %1140 = vmatpush1.bf16.msra.mxu1 %v13755_v46  ;;  %967 = vmatpush1.bf16.msra.mxu0 %v13758_v47  ;;  %v13833_v46 = vld [vmem:[%s19899_s2 + $0x260] ss:$16 sps:$4 sm:$0xff]   ;;  %v13840_v47 = vld [vmem:[%s19899_s2 + $0x28c] ss:$16 sps:$4 sm:$0xff]  }
  0x2d   :  { %1141 = vmatprep.subr.bf16.mxu1 %v13765_v48  ;;  %968 = vmatprep.subr.bf16.mxu0 %v13769_v50  ;;  %v13844_v48 = vld [vmem:[%s19899_s2 + $0x284] ss:$16 sps:$4 sm:$0xff]   ;;  %v13838_v50 = vld [vmem:[%s19899_s2 + $0x288] ss:$16 sps:$4 sm:$0xff]  }
  0x30   :  { %1142 = vmatpush1.bf16.msra.mxu1 %v13763_v49  ;;  %969 = vmatpush1.bf16.msra.mxu0 %v13767_v51  ;;  %v15124_v49 = vld [vmem:[%s19901_s0 + $0x10] sm:$0xff]  }
  0x31   :  { %1762 = vmatprep.subr.bf16.mxu1 %v13774_v53  ;;  %1589 = vmatprep.subr.bf16.mxu0 %v13777_v54  ;;  %v13842_v51 = vld [vmem:[%s19899_s2 + $0x280] ss:$16 sps:$4 sm:$0xff]   ;;  %v13852_v53 = vld [vmem:[%s19899_s2 + $0x2a4] ss:$16 sps:$4 sm:$0xff]   ;;  %v13847_v54 = vld [vmem:[%s19899_s2 + $0x2a8] ss:$16 sps:$4 sm:$0xff]  }
  0x32   :  { %11209 = vmatmul.mubr.msk.bf16.gmra.mrb[12].mxu0 %vm337_vm0, %v13736_v52  ;;  %11223 = vmatmul.mubr.msk.bf16.gmra.mrb[12].mxu1 %vm337_vm0, %v13736_v52  ;;  %v13849_v52 = vld [vmem:[%s19899_s2 + $0x2ac] ss:$16 sps:$4 sm:$0xff]  }
  0x33   :  { %452 = vmatprep.mubr.bf16.mxu0 %v19912_v1  ;;  %625 = vmatprep.mubr.bf16.mxu1 %v19912_v1 }
  0x3a   :  { %11210 = vmatmul.mubr.msk.bf16.gmra.mrb[16].mxu0 %vm337_vm0, %v13737_v55  ;;  %11224 = vmatmul.mubr.msk.bf16.gmra.mrb[16].mxu1 %vm337_vm0, %v13737_v55  ;;  %v13850_v55 = vld [vmem:[%s19899_s2 + $0x2a0] ss:$16 sps:$4 sm:$0xff]  }
  0x3b   :  { %462 = vmatprep.mubr.bf16.mxu0 %v19912_v1  ;;  %635 = vmatprep.mubr.bf16.mxu1 %v19912_v1 }
  0x42   :  { %11211 = vmatmul.mubr.msk.bf16.gmra.mrb[20].mxu0 %vm337_vm0, %v13741_v56  ;;  %11225 = vmatmul.mubr.msk.bf16.gmra.mrb[20].mxu1 %vm337_vm0, %v13741_v56  ;;  %v13857_v56 = vld [vmem:[%s19899_s2 + $0x2cc] ss:$16 sps:$4 sm:$0xff]  }
  0x43   :  { %472 = vmatprep.mubr.bf16.mxu0 %v19912_v1  ;;  %645 = vmatprep.mubr.bf16.mxu1 %v19912_v1 }
  0x4a   :  { %11212 = vmatmul.mubr.msk.bf16.gmra.mrb[24].mxu0 %vm337_vm0, %v13745_v57  ;;  %11226 = vmatmul.mubr.msk.bf16.gmra.mrb[24].mxu1 %vm337_vm0, %v13745_v57  ;;  %v13860_v57 = vld [vmem:[%s19899_s2 + $0x2c4] ss:$16 sps:$4 sm:$0xff]  }
  0x4b   :  { %482 = vmatprep.mubr.bf16.mxu0 %v19912_v1  ;;  %655 = vmatprep.mubr.bf16.mxu1 %v19912_v1 }
  0x52   :  { %11213 = vmatmul.mubr.msk.bf16.gmra.mrb[28].mxu0 %vm337_vm0, %v13746_v58  ;;  %11227 = vmatmul.mubr.msk.bf16.gmra.mrb[28].mxu1 %vm337_vm0, %v13746_v58  ;;  %v15159_v58 = vld [vmem:[%s19901_s0 + $0x18] sm:$0xff]  }
  0x53   :  { %492 = vmatprep.mubr.bf16.mxu0 %v19912_v1  ;;  %665 = vmatprep.mubr.bf16.mxu1 %v19912_v1 }
  0x5a   :  { %11214 = vmatmul.mubr.msk.bf16.gmra.mrb[32].mxu0 %vm337_vm0, %v13753_v59  ;;  %11228 = vmatmul.mubr.msk.bf16.gmra.mrb[32].mxu1 %vm337_vm0, %v13753_v59  ;;  %v13855_v59 = vld [vmem:[%s19899_s2 + $0x2c8] ss:$16 sps:$4 sm:$0xff]  }
  0x5b   :  { %502 = vmatprep.mubr.bf16.mxu0 %v19912_v1  ;;  %675 = vmatprep.mubr.bf16.mxu1 %v19912_v1 }
  0x62   :  { %11215 = vmatmul.mubr.msk.bf16.gmra.mrb[36].mxu0 %vm337_vm0, %v13754_v60  ;;  %11229 = vmatmul.mubr.msk.bf16.gmra.mrb[36].mxu1 %vm337_vm0, %v13754_v60  ;;  %v13858_v60 = vld [vmem:[%s19899_s2 + $0x2c0] ss:$16 sps:$4 sm:$0xff]  }
  0x63   :  { %512 = vmatprep.mubr.bf16.mxu0 %v19912_v1  ;;  %685 = vmatprep.mubr.bf16.mxu1 %v19912_v1 }
  0x6a   :  { %11216 = vmatmul.mubr.msk.bf16.gmra.mrb[40].mxu0 %vm337_vm0, %v13761_v61  ;;  %11230 = vmatmul.mubr.msk.bf16.gmra.mrb[40].mxu1 %vm337_vm0, %v13761_v61  ;;  %v13865_v61 = vld [vmem:[%s19899_s2 + $0x2ec] ss:$16 sps:$4 sm:$0xff]  }
  0x6b   :  { %522 = vmatprep.mubr.bf16.mxu0 %v19912_v1  ;;  %695 = vmatprep.mubr.bf16.mxu1 %v19912_v1 }
  0x72   :  { %11217 = vmatmul.mubr.msk.bf16.gmra.mrb[44].mxu0 %vm337_vm0, %v13762_v62  ;;  %11231 = vmatmul.mubr.msk.bf16.gmra.mrb[44].mxu1 %vm337_vm0, %v13762_v62  ;;  %v13869_v62 = vld [vmem:[%s19899_s2 + $0x2e4] ss:$16 sps:$4 sm:$0xff]  }
  0x73   :  { %532 = vmatprep.mubr.bf16.mxu0 %v19912_v1  ;;  %705 = vmatprep.mubr.bf16.mxu1 %v19912_v1 }
  0x7a   :  { %11218 = vmatmul.mubr.msk.bf16.gmra.mrb[48].mxu0 %vm337_vm0, %v13766_v63  ;;  %11232 = vmatmul.mubr.msk.bf16.gmra.mrb[48].mxu1 %vm337_vm0, %v13766_v63  ;;  %v13863_v63 = vld [vmem:[%s19899_s2 + $0x2e8] ss:$16 sps:$4 sm:$0xff]  }
  0x7b   :  { %542 = vmatprep.mubr.bf16.mxu0 %v19912_v1  ;;  %715 = vmatprep.mubr.bf16.mxu1 %v19912_v1 }
  0x82   :  { %11219 = vmatmul.mubr.msk.bf16.gmra.mrb[52].mxu0 %vm337_vm0, %v13770_v0  ;;  %11233 = vmatmul.mubr.msk.bf16.gmra.mrb[52].mxu1 %vm337_vm0, %v13770_v0  ;;  %v13867_v0 = vld [vmem:[%s19899_s2 + $0x2e0] ss:$16 sps:$4 sm:$0xff]  }
  0x83   :  { %990 = vmatprep.mubr.bf16.mxu0 %v19912_v1  ;;  %1163 = vmatprep.mubr.bf16.mxu1 %v19912_v1 }
  0x8a   :  { %11272 = vmatmul.mubr.msk.bf16.vlgmr.msra.gmra.mrb[0].mxu0 %vm337_vm0, %v13771_v2  ;;  %11286 = vmatmul.mubr.msk.bf16.vlgmr.msra.gmra.mrb[0].mxu1 %vm337_vm0, %v13771_v2  ;;  %v13874_v2 = vld [vmem:[%s19899_s2 + $0x30c] ss:$16 sps:$4 sm:$0xff]  }
  0x8b   :  { %1763 = vmatpush1.bf16.msra.mxu1 %v13772_v3  ;;  %1590 = vmatpush1.bf16.msra.mxu0 %v13775_v4  ;;  %v13877_v3 = vld [vmem:[%s19899_s2 + $0x304] ss:$16 sps:$4 sm:$0xff]  }
  0x8c   :  { %1000 = vmatprep.mubr.bf16.mxu0 %v19912_v1  ;;  %1173 = vmatprep.mubr.bf16.mxu1 %v19912_v1  ;;  %v15194_v4 = vld [vmem:[%s19901_s0 + $0x20] sm:$0xff]  }
  0x8d   :  { %1764 = vmatprep.subr.bf16.mxu1 %v13782_v5  ;;  %1591 = vmatprep.subr.bf16.mxu0 %v13785_v6  ;;  %v15205_v5 = vld [vmem:[%s19901_s0 + $0x28] sm:$0xff]   ;;  %v15216_v6 = vld [vmem:[%s19901_s0 + $0x30] sm:$0xff]  }
  0x8f   :  { %1765 = vmatpush1.bf16.msra.mxu1 %v13780_v7  ;;  %1592 = vmatpush1.bf16.msra.mxu0 %v13783_v8  ;;  %v15227_v7 = vld [vmem:[%s19901_s0 + $0x38] sm:$0xff]   ;;  %v15238_v8 = vld [vmem:[%s19901_s0 + $0x40] sm:$0xff]  }
  0x90   :  { %1766 = vmatprep.subr.bf16.mxu1 %v13790_v9  ;;  %1593 = vmatprep.subr.bf16.mxu0 %v13794_v10  ;;  %v15249_v9 = vld [vmem:[%s19901_s0 + $0x48] sm:$0xff]   ;;  %v15260_v10 = vld [vmem:[%s19901_s0 + $0x50] sm:$0xff]  }
  0x92   :  { %11273 = vmatmul.mubr.msk.bf16.gmra.mrb[4].mxu0 %vm337_vm0, %v13778_v11  ;;  %11287 = vmatmul.mubr.msk.bf16.gmra.mrb[4].mxu1 %vm337_vm0, %v13778_v11  ;;  %v15271_v11 = vld [vmem:[%s19901_s0 + $0x58] sm:$0xff]  }
  0x93   :  { %1010 = vmatprep.mubr.bf16.mxu0 %v19912_v1  ;;  %1183 = vmatprep.mubr.bf16.mxu1 %v19912_v1 }
  0x94   :  { %1767 = vmatpush1.bf16.msra.mxu1 %v13788_v12  ;;  %1594 = vmatpush1.bf16.msra.mxu0 %v13792_v13  ;;  %v15282_v12 = vld [vmem:[%s19901_s0 + $0x60] sm:$0xff]   ;;  %v15293_v13 = vld [vmem:[%s19901_s0 + $0x68] sm:$0xff]  }
  0x95   :  { %1768 = vmatprep.subr.bf16.mxu1 %v13799_v14  ;;  %1595 = vmatprep.subr.bf16.mxu0 %v13802_v15  ;;  %v15304_v14 = vld [vmem:[%s19901_s0 + $0x70] sm:$0xff]   ;;  %v13871_v15 = vld [vmem:[%s19900_s1 + $0x8] sm:$0xff]  }
  0x98   :  { %1769 = vmatpush1.bf16.msra.mxu1 %v13797_v16  ;;  %1596 = vmatpush1.bf16.msra.mxu0 %v13800_v17  ;;  %v13872_v16 = vld [vmem:[%s19899_s2 + $0x308] ss:$16 sps:$4 sm:$0xff]   ;;  %v13875_v17 = vld [vmem:[%s19899_s2 + $0x300] ss:$16 sps:$4 sm:$0xff]  }
  0x99   :  { %1770 = vmatprep.subr.bf16.mxu1 %v13807_v18  ;;  %1597 = vmatprep.subr.bf16.mxu0 %v13810_v19  ;;  %v13882_v18 = vld [vmem:[%s19899_s2 + $0x32c] ss:$16 sps:$4 sm:$0xff]   ;;  %v13885_v19 = vld [vmem:[%s19899_s2 + $0x324] ss:$16 sps:$4 sm:$0xff]  }
  0x9a   :  { %11274 = vmatmul.mubr.msk.bf16.gmra.mrb[8].mxu0 %vm337_vm0, %v13779_v20  ;;  %11288 = vmatmul.mubr.msk.bf16.gmra.mrb[8].mxu1 %vm337_vm0, %v13779_v20  ;;  %v13880_v20 = vld [vmem:[%s19899_s2 + $0x328] ss:$16 sps:$4 sm:$0xff]  }
  0x9b   :  { %1020 = vmatprep.mubr.bf16.mxu0 %v19912_v1  ;;  %1193 = vmatprep.mubr.bf16.mxu1 %v19912_v1 }
  0x9c   :  { %1771 = vmatpush1.bf16.msra.mxu1 %v13805_v21  ;;  %1598 = vmatpush1.bf16.msra.mxu0 %v13808_v22  ;;  %v13883_v21 = vld [vmem:[%s19899_s2 + $0x320] ss:$16 sps:$4 sm:$0xff]   ;;  %v13890_v22 = vld [vmem:[%s19899_s2 + $0x34c] ss:$16 sps:$4 sm:$0xff]  }
  0x9d   :  { %1772 = vmatprep.subr.bf16.mxu1 %v13815_v23  ;;  %1599 = vmatprep.subr.bf16.mxu0 %v13819_v24  ;;  %v13894_v23 = vld [vmem:[%s19899_s2 + $0x344] ss:$16 sps:$4 sm:$0xff]  }
  0x9e   :  { %v13878_v24 = vld [vmem:[%s19900_s1 + $0x10] sm:$0xff]  }
  0xa0   :  { %1773 = vmatpush1.bf16.msra.mxu1 %v13813_v25  ;;  %1600 = vmatpush1.bf16.msra.mxu0 %v13817_v26  ;;  %v13888_v25 = vld [vmem:[%s19899_s2 + $0x348] ss:$16 sps:$4 sm:$0xff]   ;;  %v13892_v26 = vld [vmem:[%s19899_s2 + $0x340] ss:$16 sps:$4 sm:$0xff]  }
  0xa1   :  { %2505 = vmatprep.subr.bf16.mxu1 %v13824_v27  ;;  %2332 = vmatprep.subr.bf16.mxu0 %v13827_v28  ;;  %v13899_v27 = vld [vmem:[%s19899_s2 + $0x36c] ss:$16 sps:$4 sm:$0xff]   ;;  %v13902_v28 = vld [vmem:[%s19899_s2 + $0x364] ss:$16 sps:$4 sm:$0xff]  }
  0xa2   :  { %11275 = vmatmul.mubr.msk.bf16.gmra.mrb[12].mxu0 %vm337_vm0, %v13786_v29  ;;  %11289 = vmatmul.mubr.msk.bf16.gmra.mrb[12].mxu1 %vm337_vm0, %v13786_v29  ;;  %v13897_v29 = vld [vmem:[%s19899_s2 + $0x368] ss:$16 sps:$4 sm:$0xff]  }
  0xa3   :  { %1030 = vmatprep.mubr.bf16.mxu0 %v19912_v1  ;;  %1203 = vmatprep.mubr.bf16.mxu1 %v19912_v1 }
  0xaa   :  { %11276 = vmatmul.mubr.msk.bf16.gmra.mrb[16].mxu0 %vm337_vm0, %v13787_v30  ;;  %11290 = vmatmul.mubr.msk.bf16.gmra.mrb[16].mxu1 %vm337_vm0, %v13787_v30  ;;  %v13900_v30 = vld [vmem:[%s19899_s2 + $0x360] ss:$16 sps:$4 sm:$0xff]  }
  0xab   :  { %1040 = vmatprep.mubr.bf16.mxu0 %v19912_v1  ;;  %1213 = vmatprep.mubr.bf16.mxu1 %v19912_v1 }
  0xb2   :  { %11277 = vmatmul.mubr.msk.bf16.gmra.mrb[20].mxu0 %vm337_vm0, %v13791_v31  ;;  %11291 = vmatmul.mubr.msk.bf16.gmra.mrb[20].mxu1 %vm337_vm0, %v13791_v31  ;;  %v13907_v31 = vld [vmem:[%s19899_s2 + $0x38c] ss:$16 sps:$4 sm:$0xff]  }
  0xb3   :  { %1050 = vmatprep.mubr.bf16.mxu0 %v19912_v1  ;;  %1223 = vmatprep.mubr.bf16.mxu1 %v19912_v1 }
  0xba   :  { %11278 = vmatmul.mubr.msk.bf16.gmra.mrb[24].mxu0 %vm337_vm0, %v13795_v32  ;;  %11292 = vmatmul.mubr.msk.bf16.gmra.mrb[24].mxu1 %vm337_vm0, %v13795_v32  ;;  %v13910_v32 = vld [vmem:[%s19899_s2 + $0x384] ss:$16 sps:$4 sm:$0xff]  }
  0xbb   :  { %1060 = vmatprep.mubr.bf16.mxu0 %v19912_v1  ;;  %1233 = vmatprep.mubr.bf16.mxu1 %v19912_v1 }
  0xc2   :  { %11279 = vmatmul.mubr.msk.bf16.gmra.mrb[28].mxu0 %vm337_vm0, %v13796_v33  ;;  %11293 = vmatmul.mubr.msk.bf16.gmra.mrb[28].mxu1 %vm337_vm0, %v13796_v33  ;;  %v13879_v33 = vld [vmem:[%s19900_s1 + $0x18] sm:$0xff]  }
  0xc3   :  { %1070 = vmatprep.mubr.bf16.mxu0 %v19912_v1  ;;  %1243 = vmatprep.mubr.bf16.mxu1 %v19912_v1 }
  0xca   :  { %11280 = vmatmul.mubr.msk.bf16.gmra.mrb[32].mxu0 %vm337_vm0, %v13803_v34  ;;  %11294 = vmatmul.mubr.msk.bf16.gmra.mrb[32].mxu1 %vm337_vm0, %v13803_v34  ;;  %v13905_v34 = vld [vmem:[%s19899_s2 + $0x388] ss:$16 sps:$4 sm:$0xff]  }
  0xcb   :  { %1080 = vmatprep.mubr.bf16.mxu0 %v19912_v1  ;;  %1253 = vmatprep.mubr.bf16.mxu1 %v19912_v1 }
  0xd2   :  { %11281 = vmatmul.mubr.msk.bf16.gmra.mrb[36].mxu0 %vm337_vm0, %v13804_v35  ;;  %11295 = vmatmul.mubr.msk.bf16.gmra.mrb[36].mxu1 %vm337_vm0, %v13804_v35  ;;  %v13908_v35 = vld [vmem:[%s19899_s2 + $0x380] ss:$16 sps:$4 sm:$0xff]  }
  0xd3   :  { %1090 = vmatprep.mubr.bf16.mxu0 %v19912_v1  ;;  %1263 = vmatprep.mubr.bf16.mxu1 %v19912_v1 }
  0xda   :  { %11282 = vmatmul.mubr.msk.bf16.gmra.mrb[40].mxu0 %vm337_vm0, %v13811_v36  ;;  %11296 = vmatmul.mubr.msk.bf16.gmra.mrb[40].mxu1 %vm337_vm0, %v13811_v36  ;;  %v13915_v36 = vld [vmem:[%s19899_s2 + $0x3ac] ss:$16 sps:$4 sm:$0xff]  }
  0xdb   :  { %1100 = vmatprep.mubr.bf16.mxu0 %v19912_v1  ;;  %1273 = vmatprep.mubr.bf16.mxu1 %v19912_v1 }
  0xe2   :  { %11283 = vmatmul.mubr.msk.bf16.gmra.mrb[44].mxu0 %vm337_vm0, %v13812_v37  ;;  %11297 = vmatmul.mubr.msk.bf16.gmra.mrb[44].mxu1 %vm337_vm0, %v13812_v37  ;;  %v13919_v37 = vld [vmem:[%s19899_s2 + $0x3a4] ss:$16 sps:$4 sm:$0xff]  }
  0xe3   :  { %1110 = vmatprep.mubr.bf16.mxu0 %v19912_v1  ;;  %1283 = vmatprep.mubr.bf16.mxu1 %v19912_v1 }
  0xea   :  { %11284 = vmatmul.mubr.msk.bf16.gmra.mrb[48].mxu0 %vm337_vm0, %v13816_v38  ;;  %11298 = vmatmul.mubr.msk.bf16.gmra.mrb[48].mxu1 %vm337_vm0, %v13816_v38  ;;  %v13913_v38 = vld [vmem:[%s19899_s2 + $0x3a8] ss:$16 sps:$4 sm:$0xff]  }
  0xeb   :  { %1120 = vmatprep.mubr.bf16.mxu0 %v19912_v1  ;;  %1293 = vmatprep.mubr.bf16.mxu1 %v19912_v1 }
  0xf2   :  { %11285 = vmatmul.mubr.msk.bf16.gmra.mrb[52].mxu0 %vm337_vm0, %v13820_v39  ;;  %11299 = vmatmul.mubr.msk.bf16.gmra.mrb[52].mxu1 %vm337_vm0, %v13820_v39  ;;  %v13917_v39 = vld [vmem:[%s19899_s2 + $0x3a0] ss:$16 sps:$4 sm:$0xff]  }
  0xf3   :  { %1621 = vmatprep.mubr.bf16.mxu0 %v19912_v1  ;;  %1794 = vmatprep.mubr.bf16.mxu1 %v19912_v1 }
  0xfa   :  { %11362 = vmatmul.mubr.msk.bf16.vlgmr.msra.gmra.mrb[0].mxu0 %vm337_vm0, %v15089_v40  ;;  %11376 = vmatmul.mubr.msk.bf16.vlgmr.msra.gmra.mrb[0].mxu1 %vm337_vm0, %v15089_v40 }
  0xfb   :  { %2506 = vmatpush1.bf16.msra.mxu1 %v13822_v41  ;;  %2333 = vmatpush1.bf16.msra.mxu0 %v13825_v42  ;;  %v15402_v41 = vld [vmem:[%s19900_s1 + $0x20] sm:$0xff]   ;;  %v14293_v42 = vld [vmem:[%s19899_s2 + $0xcc] ss:$16 sps:$4 sm:$0xff]  }
  0xfc   :  { %1631 = vmatprep.mubr.bf16.mxu0 %v19912_v1  ;;  %1804 = vmatprep.mubr.bf16.mxu1 %v19912_v1 }
  0xfd   :  { %2507 = vmatprep.subr.bf16.mxu1 %v13832_v43  ;;  %2334 = vmatprep.subr.bf16.mxu0 %v13835_v44  ;;  %v14294_v43 = vld [vmem:[%s19899_s2 + $0xc4] ss:$16 sps:$4 sm:$0xff]   ;;  %v15419_v44 = vld [vmem:[%s19900_s1 + $0x28] sm:$0xff]  }
  0xff   :  { %2508 = vmatpush1.bf16.msra.mxu1 %v13830_v45  ;;  %2335 = vmatpush1.bf16.msra.mxu0 %v13833_v46  ;;  %v15430_v45 = vld [vmem:[%s19900_s1 + $0x30] sm:$0xff]   ;;  %v15441_v46 = vld [vmem:[%s19900_s1 + $0x38] sm:$0xff]  }
 0x100   :  { %2509 = vmatprep.subr.bf16.mxu1 %v13840_v47  ;;  %2336 = vmatprep.subr.bf16.mxu0 %v13844_v48  ;;  %v15452_v47 = vld [vmem:[%s19900_s1 + $0x40] sm:$0xff]   ;;  %v15463_v48 = vld [vmem:[%s19900_s1 + $0x48] sm:$0xff]  }
 0x102   :  { %11363 = vmatmul.mubr.msk.bf16.gmra.mrb[4].mxu0 %vm337_vm0, %v15124_v49  ;;  %11377 = vmatmul.mubr.msk.bf16.gmra.mrb[4].mxu1 %vm337_vm0, %v15124_v49 }
 0x103   :  { %1641 = vmatprep.mubr.bf16.mxu0 %v19912_v1  ;;  %1814 = vmatprep.mubr.bf16.mxu1 %v19912_v1 }
 0x104   :  { %2510 = vmatpush1.bf16.msra.mxu1 %v13838_v50  ;;  %2337 = vmatpush1.bf16.msra.mxu0 %v13842_v51  ;;  %v15474_v50 = vld [vmem:[%s19900_s1 + $0x50] sm:$0xff]   ;;  %v15485_v51 = vld [vmem:[%s19900_s1 + $0x58] sm:$0xff]  }
 0x105   :  { %2511 = vmatprep.subr.bf16.mxu1 %v13849_v52  ;;  %2338 = vmatprep.subr.bf16.mxu0 %v13852_v53  ;;  %v15496_v52 = vld [vmem:[%s19900_s1 + $0x60] sm:$0xff]   ;;  %v15507_v53 = vld [vmem:[%s19900_s1 + $0x68] sm:$0xff]  }
 0x108   :  { %2512 = vmatpush1.bf16.msra.mxu1 %v13847_v54  ;;  %2339 = vmatpush1.bf16.msra.mxu0 %v13850_v55  ;;  %v15518_v54 = vld [vmem:[%s19900_s1 + $0x70] sm:$0xff]  }
 0x109   :  { %2513 = vmatprep.subr.bf16.mxu1 %v13857_v56  ;;  %2340 = vmatprep.subr.bf16.mxu0 %v13860_v57  ;;  %v15529_v55 = vld [vmem:[%s19901_s0 + $0x10] sm:$0xff]   ;;  %v14295_v56 = vld [vmem:[%s19899_s2 + $0xc8] ss:$16 sps:$4 sm:$0xff]  }
 0x10a   :  { %11364 = vmatmul.mubr.msk.bf16.gmra.mrb[8].mxu0 %vm337_vm0, %v15159_v58  ;;  %11378 = vmatmul.mubr.msk.bf16.gmra.mrb[8].mxu1 %vm337_vm0, %v15159_v58  ;;  %v14296_v57 = vld [vmem:[%s19899_s2 + $0xc0] ss:$16 sps:$4 sm:$0xff]  }
 0x10b   :  { %1651 = vmatprep.mubr.bf16.mxu0 %v19912_v1  ;;  %1824 = vmatprep.mubr.bf16.mxu1 %v19912_v1 }
 0x10c   :  { %2514 = vmatpush1.bf16.msra.mxu1 %v13855_v59  ;;  %2341 = vmatpush1.bf16.msra.mxu0 %v13858_v60  ;;  %v14297_v59 = vld [vmem:[%s19899_s2 + $0xec] ss:$16 sps:$4 sm:$0xff]   ;;  %v14298_v60 = vld [vmem:[%s19899_s2 + $0xe4] ss:$16 sps:$4 sm:$0xff]  }
 0x10d   :  { %2515 = vmatprep.subr.bf16.mxu1 %v13865_v61  ;;  %2342 = vmatprep.subr.bf16.mxu0 %v13869_v62  ;;  %v15552_v61 = vld [vmem:[%s19901_s0 + $0x18] sm:$0xff]  }
 0x10e   :  { %v14299_v62 = vld [vmem:[%s19899_s2 + $0xe8] ss:$16 sps:$4 sm:$0xff]  }
 0x110   :  { %2516 = vmatpush1.bf16.msra.mxu1 %v13863_v63  ;;  %2343 = vmatpush1.bf16.msra.mxu0 %v13867_v0  ;;  %v14300_v63 = vld [vmem:[%s19899_s2 + $0xe0] ss:$16 sps:$4 sm:$0xff]   ;;  %v14301_v0 = vld [vmem:[%s19899_s2 + $0x10c] ss:$16 sps:$4 sm:$0xff]  }
 0x111   :  { %3248 = vmatprep.subr.bf16.mxu1 %v13874_v2  ;;  %3075 = vmatprep.subr.bf16.mxu0 %v13877_v3  ;;  %v14302_v2 = vld [vmem:[%s19899_s2 + $0x104] ss:$16 sps:$4 sm:$0xff]   ;;  %v14303_v3 = vld [vmem:[%s19899_s2 + $0x108] ss:$16 sps:$4 sm:$0xff]  }
 0x112   :  { %11365 = vmatmul.mubr.msk.bf16.gmra.mrb[12].mxu0 %vm337_vm0, %v15194_v4  ;;  %11379 = vmatmul.mubr.msk.bf16.gmra.mrb[12].mxu1 %vm337_vm0, %v15194_v4 }
 0x113   :  { %1661 = vmatprep.mubr.bf16.mxu0 %v19912_v1  ;;  %1834 = vmatprep.mubr.bf16.mxu1 %v19912_v1 }
 0x11a   :  { %11366 = vmatmul.mubr.msk.bf16.gmra.mrb[16].mxu0 %vm337_vm0, %v15205_v5  ;;  %11380 = vmatmul.mubr.msk.bf16.gmra.mrb[16].mxu1 %vm337_vm0, %v15205_v5 }
 0x11b   :  { %1671 = vmatprep.mubr.bf16.mxu0 %v19912_v1  ;;  %1844 = vmatprep.mubr.bf16.mxu1 %v19912_v1 }
 0x122   :  { %11367 = vmatmul.mubr.msk.bf16.gmra.mrb[20].mxu0 %vm337_vm0, %v15216_v6  ;;  %11381 = vmatmul.mubr.msk.bf16.gmra.mrb[20].mxu1 %vm337_vm0, %v15216_v6 }
 0x123   :  { %1681 = vmatprep.mubr.bf16.mxu0 %v19912_v1  ;;  %1854 = vmatprep.mubr.bf16.mxu1 %v19912_v1 }
 0x12a   :  { %11368 = vmatmul.mubr.msk.bf16.gmra.mrb[24].mxu0 %vm337_vm0, %v15227_v7  ;;  %11382 = vmatmul.mubr.msk.bf16.gmra.mrb[24].mxu1 %vm337_vm0, %v15227_v7 }
 0x12b   :  { %1691 = vmatprep.mubr.bf16.mxu0 %v19912_v1  ;;  %1864 = vmatprep.mubr.bf16.mxu1 %v19912_v1 }
 0x132   :  { %11369 = vmatmul.mubr.msk.bf16.gmra.mrb[28].mxu0 %vm337_vm0, %v15238_v8  ;;  %11383 = vmatmul.mubr.msk.bf16.gmra.mrb[28].mxu1 %vm337_vm0, %v15238_v8 }
 0x133   :  { %1701 = vmatprep.mubr.bf16.mxu0 %v19912_v1  ;;  %1874 = vmatprep.mubr.bf16.mxu1 %v19912_v1 }
 0x13a   :  { %11370 = vmatmul.mubr.msk.bf16.gmra.mrb[32].mxu0 %vm337_vm0, %v15249_v9  ;;  %11384 = vmatmul.mubr.msk.bf16.gmra.mrb[32].mxu1 %vm337_vm0, %v15249_v9 }
 0x13b   :  { %1711 = vmatprep.mubr.bf16.mxu0 %v19912_v1  ;;  %1884 = vmatprep.mubr.bf16.mxu1 %v19912_v1 }
 0x142   :  { %11371 = vmatmul.mubr.msk.bf16.gmra.mrb[36].mxu0 %vm337_vm0, %v15260_v10  ;;  %11385 = vmatmul.mubr.msk.bf16.gmra.mrb[36].mxu1 %vm337_vm0, %v15260_v10 }
 0x143   :  { %1721 = vmatprep.mubr.bf16.mxu0 %v19912_v1  ;;  %1894 = vmatprep.mubr.bf16.mxu1 %v19912_v1 }
 0x14a   :  { %11372 = vmatmul.mubr.msk.bf16.gmra.mrb[40].mxu0 %vm337_vm0, %v15271_v11  ;;  %11386 = vmatmul.mubr.msk.bf16.gmra.mrb[40].mxu1 %vm337_vm0, %v15271_v11 }
 0x14b   :  { %1731 = vmatprep.mubr.bf16.mxu0 %v19912_v1  ;;  %1904 = vmatprep.mubr.bf16.mxu1 %v19912_v1 }
 0x152   :  { %11373 = vmatmul.mubr.msk.bf16.gmra.mrb[44].mxu0 %vm337_vm0, %v15282_v12  ;;  %11387 = vmatmul.mubr.msk.bf16.gmra.mrb[44].mxu1 %vm337_vm0, %v15282_v12 }
 0x153   :  { %1741 = vmatprep.mubr.bf16.mxu0 %v19912_v1  ;;  %1914 = vmatprep.mubr.bf16.mxu1 %v19912_v1 }
 0x15a   :  { %11374 = vmatmul.mubr.msk.bf16.gmra.mrb[48].mxu0 %vm337_vm0, %v15293_v13  ;;  %11388 = vmatmul.mubr.msk.bf16.gmra.mrb[48].mxu1 %vm337_vm0, %v15293_v13 }
 0x15b   :  { %1751 = vmatprep.mubr.bf16.mxu0 %v19912_v1  ;;  %1924 = vmatprep.mubr.bf16.mxu1 %v19912_v1 }
 0x162   :  { %11375 = vmatmul.mubr.msk.bf16.gmra.mrb[52].mxu0 %vm337_vm0, %v15304_v14  ;;  %11389 = vmatmul.mubr.msk.bf16.gmra.mrb[52].mxu1 %vm337_vm0, %v15304_v14 }
 0x163   :  { %2364 = vmatprep.mubr.bf16.mxu0 %v19912_v1  ;;  %2537 = vmatprep.mubr.bf16.mxu1 %v19912_v1 }
 0x16a   :  { %11452 = vmatmul.mubr.msk.bf16.vlgmr.msra.gmra.mrb[0].mxu0 %vm337_vm0, %v13871_v15  ;;  %11466 = vmatmul.mubr.msk.bf16.vlgmr.msra.gmra.mrb[0].mxu1 %vm337_vm0, %v13871_v15  ;;  %v14304_v15 = vld [vmem:[%s19899_s2 + $0x100] ss:$16 sps:$4 sm:$0xff]  }
 0x16b   :  { %3249 = vmatpush1.bf16.msra.mxu1 %v13872_v16  ;;  %3076 = vmatpush1.bf16.msra.mxu0 %v13875_v17  ;;  %v14305_v16 = vld [vmem:[%s19899_s2 + $0x12c] ss:$16 sps:$4 sm:$0xff]   ;;  %v14306_v17 = vld [vmem:[%s19899_s2 + $0x124] ss:$16 sps:$4 sm:$0xff]  }
 0x16c   :  { %2374 = vmatprep.mubr.bf16.mxu0 %v19912_v1  ;;  %2547 = vmatprep.mubr.bf16.mxu1 %v19912_v1 }
 0x16d   :  { %3250 = vmatprep.subr.bf16.mxu1 %v13882_v18  ;;  %3077 = vmatprep.subr.bf16.mxu0 %v13885_v19  ;;  %v15587_v18 = vld [vmem:[%s19901_s0 + $0x20] sm:$0xff]   ;;  %v14307_v19 = vld [vmem:[%s19899_s2 + $0x128] ss:$16 sps:$4 sm:$0xff]  }
 0x16f   :  { %3251 = vmatpush1.bf16.msra.mxu1 %v13880_v20  ;;  %3078 = vmatpush1.bf16.msra.mxu0 %v13883_v21  ;;  %v14308_v20 = vld [vmem:[%s19899_s2 + $0x120] ss:$16 sps:$4 sm:$0xff]   ;;  %v14309_v21 = vld [vmem:[%s19899_s2 + $0x14c] ss:$16 sps:$4 sm:$0xff]  }
 0x170   :  { %3252 = vmatprep.subr.bf16.mxu1 %v13890_v22  ;;  %3079 = vmatprep.subr.bf16.mxu0 %v13894_v23  ;;  %v14310_v22 = vld [vmem:[%s19899_s2 + $0x144] ss:$16 sps:$4 sm:$0xff]   ;;  %v14311_v23 = vld [vmem:[%s19899_s2 + $0x148] ss:$16 sps:$4 sm:$0xff]  }
 0x172   :  { %11453 = vmatmul.mubr.msk.bf16.gmra.mrb[4].mxu0 %vm337_vm0, %v13878_v24  ;;  %11467 = vmatmul.mubr.msk.bf16.gmra.mrb[4].mxu1 %vm337_vm0, %v13878_v24  ;;  %v14312_v24 = vld [vmem:[%s19899_s2 + $0x140] ss:$16 sps:$4 sm:$0xff]  }
 0x173   :  { %2384 = vmatprep.mubr.bf16.mxu0 %v19912_v1  ;;  %2557 = vmatprep.mubr.bf16.mxu1 %v19912_v1 }
 0x174   :  { %3253 = vmatpush1.bf16.msra.mxu1 %v13888_v25  ;;  %3080 = vmatpush1.bf16.msra.mxu0 %v13892_v26  ;;  %v14313_v25 = vld [vmem:[%s19899_s2 + $0x16c] ss:$16 sps:$4 sm:$0xff]   ;;  %v14314_v26 = vld [vmem:[%s19899_s2 + $0x164] ss:$16 sps:$4 sm:$0xff]  }
 0x175   :  { %3254 = vmatprep.subr.bf16.mxu1 %v13899_v27  ;;  %3081 = vmatprep.subr.bf16.mxu0 %v13902_v28  ;;  %v15622_v27 = vld [vmem:[%s19901_s0 + $0x28] sm:$0xff]  }
 0x176   :  { %v14315_v28 = vld [vmem:[%s19899_s2 + $0x168] ss:$16 sps:$4 sm:$0xff]  }
 0x178   :  { %3255 = vmatpush1.bf16.msra.mxu1 %v13897_v29  ;;  %3082 = vmatpush1.bf16.msra.mxu0 %v13900_v30  ;;  %v14316_v29 = vld [vmem:[%s19899_s2 + $0x160] ss:$16 sps:$4 sm:$0xff]   ;;  %v14317_v30 = vld [vmem:[%s19899_s2 + $0xc] ss:$16 sps:$4 sm:$0xff]  }
 0x179   :  { %3256 = vmatprep.subr.bf16.mxu1 %v13907_v31  ;;  %3083 = vmatprep.subr.bf16.mxu0 %v13910_v32  ;;  %v14318_v31 = vld [vmem:[%s19899_s2 + $0x4] ss:$16 sps:$4 sm:$0xff]  }
 0x17a   :  { %11454 = vmatmul.mubr.msk.bf16.gmra.mrb[8].mxu0 %vm337_vm0, %v13879_v33  ;;  %11468 = vmatmul.mubr.msk.bf16.gmra.mrb[8].mxu1 %vm337_vm0, %v13879_v33  ;;  %v15645_v32 = vld [vmem:[%s19901_s0 + $0x30] sm:$0xff]   ;;  %v15656_v33 = vld [vmem:[%s19901_s0 + $0x38] sm:$0xff]  }
 0x17b   :  { %2394 = vmatprep.mubr.bf16.mxu0 %v19912_v1  ;;  %2567 = vmatprep.mubr.bf16.mxu1 %v19912_v1 }
 0x17c   :  { %3257 = vmatpush1.bf16.msra.mxu1 %v13905_v34  ;;  %3084 = vmatpush1.bf16.msra.mxu0 %v13908_v35  ;;  %v15667_v34 = vld [vmem:[%s19901_s0 + $0x40] sm:$0xff]   ;;  %v15678_v35 = vld [vmem:[%s19901_s0 + $0x48] sm:$0xff]  }
 0x17d   :  { %3258 = vmatprep.subr.bf16.mxu1 %v13915_v36  ;;  %3085 = vmatprep.subr.bf16.mxu0 %v13919_v37  ;;  %v15689_v36 = vld [vmem:[%s19901_s0 + $0x50] sm:$0xff]   ;;  %v15700_v37 = vld [vmem:[%s19901_s0 + $0x58] sm:$0xff]  }
 0x180   :  { %3259 = vmatpush1.bf16.msra.mxu1 %v13913_v38  ;;  %3086 = vmatpush1.bf16.msra.mxu0 %v13917_v39  ;;  %v15711_v38 = vld [vmem:[%s19901_s0 + $0x60] sm:$0xff]   ;;  %v15722_v39 = vld [vmem:[%s19901_s0 + $0x68] sm:$0xff]  }
 0x181   :  { %4127 = vmatprep.subr.bf16.mxu1 %v14293_v42  ;;  %3954 = vmatprep.subr.bf16.mxu0 %v14294_v43  ;;  %v15733_v42 = vld [vmem:[%s19901_s0 + $0x70] sm:$0xff]   ;;  %v15744_v43 = vld [vmem:[%s19901_s0 + $0x78] sm:$0xff]  }
 0x182   :  { %11455 = vmatmul.mubr.msk.bf16.gmra.mrb[12].mxu0 %vm337_vm0, %v15402_v41  ;;  %11469 = vmatmul.mubr.msk.bf16.gmra.mrb[12].mxu1 %vm337_vm0, %v15402_v41 }
 0x183   :  { %2404 = vmatprep.mubr.bf16.mxu0 %v19912_v1  ;;  %2577 = vmatprep.mubr.bf16.mxu1 %v19912_v1 }
 0x18a   :  { %11456 = vmatmul.mubr.msk.bf16.gmra.mrb[16].mxu0 %vm337_vm0, %v15419_v44  ;;  %11470 = vmatmul.mubr.msk.bf16.gmra.mrb[16].mxu1 %vm337_vm0, %v15419_v44 }
 0x18b   :  { %2414 = vmatprep.mubr.bf16.mxu0 %v19912_v1  ;;  %2587 = vmatprep.mubr.bf16.mxu1 %v19912_v1 }
 0x192   :  { %11457 = vmatmul.mubr.msk.bf16.gmra.mrb[20].mxu0 %vm337_vm0, %v15430_v45  ;;  %11471 = vmatmul.mubr.msk.bf16.gmra.mrb[20].mxu1 %vm337_vm0, %v15430_v45 }
 0x193   :  { %2424 = vmatprep.mubr.bf16.mxu0 %v19912_v1  ;;  %2597 = vmatprep.mubr.bf16.mxu1 %v19912_v1 }
 0x19a   :  { %11458 = vmatmul.mubr.msk.bf16.gmra.mrb[24].mxu0 %vm337_vm0, %v15441_v46  ;;  %11472 = vmatmul.mubr.msk.bf16.gmra.mrb[24].mxu1 %vm337_vm0, %v15441_v46 }
 0x19b   :  { %2434 = vmatprep.mubr.bf16.mxu0 %v19912_v1  ;;  %2607 = vmatprep.mubr.bf16.mxu1 %v19912_v1 }
 0x1a2   :  { %11459 = vmatmul.mubr.msk.bf16.gmra.mrb[28].mxu0 %vm337_vm0, %v15452_v47  ;;  %11473 = vmatmul.mubr.msk.bf16.gmra.mrb[28].mxu1 %vm337_vm0, %v15452_v47 }
 0x1a3   :  { %2444 = vmatprep.mubr.bf16.mxu0 %v19912_v1  ;;  %2617 = vmatprep.mubr.bf16.mxu1 %v19912_v1 }
 0x1aa   :  { %11460 = vmatmul.mubr.msk.bf16.gmra.mrb[32].mxu0 %vm337_vm0, %v15463_v48  ;;  %11474 = vmatmul.mubr.msk.bf16.gmra.mrb[32].mxu1 %vm337_vm0, %v15463_v48 }
 0x1ab   :  { %2454 = vmatprep.mubr.bf16.mxu0 %v19912_v1  ;;  %2627 = vmatprep.mubr.bf16.mxu1 %v19912_v1 }
 0x1b2   :  { %11461 = vmatmul.mubr.msk.bf16.gmra.mrb[36].mxu0 %vm337_vm0, %v15474_v50  ;;  %11475 = vmatmul.mubr.msk.bf16.gmra.mrb[36].mxu1 %vm337_vm0, %v15474_v50 }
 0x1b3   :  { %2464 = vmatprep.mubr.bf16.mxu0 %v19912_v1  ;;  %2637 = vmatprep.mubr.bf16.mxu1 %v19912_v1 }
 0x1ba   :  { %11462 = vmatmul.mubr.msk.bf16.gmra.mrb[40].mxu0 %vm337_vm0, %v15485_v51  ;;  %11476 = vmatmul.mubr.msk.bf16.gmra.mrb[40].mxu1 %vm337_vm0, %v15485_v51 }
 0x1bb   :  { %2474 = vmatprep.mubr.bf16.mxu0 %v19912_v1  ;;  %2647 = vmatprep.mubr.bf16.mxu1 %v19912_v1 }
 0x1c2   :  { %11463 = vmatmul.mubr.msk.bf16.gmra.mrb[44].mxu0 %vm337_vm0, %v15496_v52  ;;  %11477 = vmatmul.mubr.msk.bf16.gmra.mrb[44].mxu1 %vm337_vm0, %v15496_v52 }
 0x1c3   :  { %2484 = vmatprep.mubr.bf16.mxu0 %v19912_v1  ;;  %2657 = vmatprep.mubr.bf16.mxu1 %v19912_v1 }
 0x1ca   :  { %11464 = vmatmul.mubr.msk.bf16.gmra.mrb[48].mxu0 %vm337_vm0, %v15507_v53  ;;  %11478 = vmatmul.mubr.msk.bf16.gmra.mrb[48].mxu1 %vm337_vm0, %v15507_v53 }
 0x1cb   :  { %2494 = vmatprep.mubr.bf16.mxu0 %v19912_v1  ;;  %2667 = vmatprep.mubr.bf16.mxu1 %v19912_v1 }
 0x1d2   :  { %11465 = vmatmul.mubr.msk.bf16.gmra.mrb[52].mxu0 %vm337_vm0, %v15518_v54  ;;  %11479 = vmatmul.mubr.msk.bf16.gmra.mrb[52].mxu1 %vm337_vm0, %v15518_v54 }
 0x1d3   :  { %3107 = vmatprep.mubr.bf16.mxu0 %v19912_v1  ;;  %3280 = vmatprep.mubr.bf16.mxu1 %v19912_v1 }
 0x1da   :  { %11542 = vmatmul.mubr.msk.bf16.vlgmr.msra.gmra.mrb[0].mxu0 %vm337_vm0, %v15529_v55  ;;  %11556 = vmatmul.mubr.msk.bf16.vlgmr.msra.gmra.mrb[0].mxu1 %vm337_vm0, %v15529_v55 }
 0x1db   :  { %4128 = vmatpush1.bf16.msra.mxu1 %v14295_v56  ;;  %3955 = vmatpush1.bf16.msra.mxu0 %v14296_v57  ;;  %v14319_v56 = vld [vmem:[%s19899_s2 + $0x8] ss:$16 sps:$4 sm:$0xff]   ;;  %v14320_v57 = vld [vmem:[%s19899_s2] ss:$16 sps:$4 sm:$0xff]  }
 0x1dc   :  { %3117 = vmatprep.mubr.bf16.mxu0 %v19912_v1  ;;  %3290 = vmatprep.mubr.bf16.mxu1 %v19912_v1 }
 0x1dd   :  { %4129 = vmatprep.subr.bf16.mxu1 %v14297_v59  ;;  %3956 = vmatprep.subr.bf16.mxu0 %v14298_v60  ;;  %v14321_v59 = vld [vmem:[%s19899_s2 + $0x2c] ss:$16 sps:$4 sm:$0xff]   ;;  %v14323_v60 = vld [vmem:[%s19899_s2 + $0x28] ss:$16 sps:$4 sm:$0xff]  }
 0x1df   :  { %4130 = vmatpush1.bf16.msra.mxu1 %v14299_v62  ;;  %3957 = vmatpush1.bf16.msra.mxu0 %v14300_v63  ;;  %v14324_v62 = vld [vmem:[%s19899_s2 + $0x20] ss:$16 sps:$4 sm:$0xff]   ;;  %v14325_v63 = vld [vmem:[%s19899_s2 + $0x4c] ss:$16 sps:$4 sm:$0xff]  }
 0x1e0   :  { %4131 = vmatprep.subr.bf16.mxu1 %v14301_v0  ;;  %3958 = vmatprep.subr.bf16.mxu0 %v14302_v2  ;;  %v14326_v0 = vld [vmem:[%s19899_s2 + $0x44] ss:$16 sps:$4 sm:$0xff]   ;;  %v14327_v2 = vld [vmem:[%s19899_s2 + $0x48] ss:$16 sps:$4 sm:$0xff]  }
 0x1e2   :  { %11543 = vmatmul.mubr.msk.bf16.gmra.mrb[4].mxu0 %vm337_vm0, %v15552_v61  ;;  %11557 = vmatmul.mubr.msk.bf16.gmra.mrb[4].mxu1 %vm337_vm0, %v15552_v61 }
 0x1e3   :  { %3127 = vmatprep.mubr.bf16.mxu0 %v19912_v1  ;;  %3300 = vmatprep.mubr.bf16.mxu1 %v19912_v1 }
 0x1e4   :  { %4132 = vmatpush1.bf16.msra.mxu1 %v14303_v3  ;;  %3959 = vmatpush1.bf16.msra.mxu0 %v14304_v15  ;;  %v14328_v3 = vld [vmem:[%s19899_s2 + $0x40] ss:$16 sps:$4 sm:$0xff]   ;;  %v14329_v15 = vld [vmem:[%s19899_s2 + $0x6c] ss:$16 sps:$4 sm:$0xff]  }
 0x1e5   :  { %4133 = vmatprep.subr.bf16.mxu1 %v14305_v16  ;;  %3960 = vmatprep.subr.bf16.mxu0 %v14306_v17  ;;  %v14331_v16 = vld [vmem:[%s19899_s2 + $0x68] ss:$16 sps:$4 sm:$0xff]   ;;  %v14332_v17 = vld [vmem:[%s19899_s2 + $0x60] ss:$16 sps:$4 sm:$0xff]  }
 0x1e8   :  { %4134 = vmatpush1.bf16.msra.mxu1 %v14307_v19  ;;  %3961 = vmatpush1.bf16.msra.mxu0 %v14308_v20  ;;  %v14333_v19 = vld [vmem:[%s19899_s2 + $0x8c] ss:$16 sps:$4 sm:$0xff]   ;;  %v14334_v20 = vld [vmem:[%s19899_s2 + $0x84] ss:$16 sps:$4 sm:$0xff]  }
 0x1e9   :  { %4135 = vmatprep.subr.bf16.mxu1 %v14309_v21  ;;  %3962 = vmatprep.subr.bf16.mxu0 %v14310_v22  ;;  %v14335_v21 = vld [vmem:[%s19899_s2 + $0x88] ss:$16 sps:$4 sm:$0xff]   ;;  %v14336_v22 = vld [vmem:[%s19899_s2 + $0x80] ss:$16 sps:$4 sm:$0xff]  }
 0x1ea   :  { %11544 = vmatmul.mubr.msk.bf16.gmra.mrb[8].mxu0 %vm337_vm0, %v15587_v18  ;;  %11558 = vmatmul.mubr.msk.bf16.gmra.mrb[8].mxu1 %vm337_vm0, %v15587_v18 }
 0x1eb   :  { %3137 = vmatprep.mubr.bf16.mxu0 %v19912_v1  ;;  %3310 = vmatprep.mubr.bf16.mxu1 %v19912_v1 }
 0x1ec   :  { %4136 = vmatpush1.bf16.msra.mxu1 %v14311_v23  ;;  %3963 = vmatpush1.bf16.msra.mxu0 %v14312_v24  ;;  %v14337_v23 = vld [vmem:[%s19899_s2 + $0xac] ss:$16 sps:$4 sm:$0xff]   ;;  %v14339_v24 = vld [vmem:[%s19899_s2 + $0xa8] ss:$16 sps:$4 sm:$0xff]  }
 0x1ed   :  { %4137 = vmatprep.subr.bf16.mxu1 %v14313_v25  ;;  %3964 = vmatprep.subr.bf16.mxu0 %v14314_v26  ;;  %v14340_v25 = vld [vmem:[%s19899_s2 + $0xa0] ss:$16 sps:$4 sm:$0xff]   ;;  %v14341_v26 = vld [vmem:[%s19899_s2 + $0x18c] ss:$16 sps:$4 sm:$0xff]  }
 0x1f0   :  { %4138 = vmatpush1.bf16.msra.mxu1 %v14315_v28  ;;  %3965 = vmatpush1.bf16.msra.mxu0 %v14316_v29  ;;  %v14342_v28 = vld [vmem:[%s19899_s2 + $0x184] ss:$16 sps:$4 sm:$0xff]  }
 0x1f1   :  { %4473 = vmatprep.subr.bf16.mxu1 %v14317_v30  ;;  %4300 = vmatprep.subr.bf16.mxu0 %v14318_v31 }
 0x1f2   :  { %11545 = vmatmul.mubr.msk.bf16.gmra.mrb[12].mxu0 %vm337_vm0, %v15622_v27  ;;  %11559 = vmatmul.mubr.msk.bf16.gmra.mrb[12].mxu1 %vm337_vm0, %v15622_v27 }
 0x1f3   :  { %3147 = vmatprep.mubr.bf16.mxu0 %v19912_v1  ;;  %3320 = vmatprep.mubr.bf16.mxu1 %v19912_v1 }
 0x1fa   :  { %11546 = vmatmul.mubr.msk.bf16.gmra.mrb[16].mxu0 %vm337_vm0, %v15645_v32  ;;  %11560 = vmatmul.mubr.msk.bf16.gmra.mrb[16].mxu1 %vm337_vm0, %v15645_v32 }
 0x1fb   :  { %3157 = vmatprep.mubr.bf16.mxu0 %v19912_v1  ;;  %3330 = vmatprep.mubr.bf16.mxu1 %v19912_v1 }
 0x202   :  { %11547 = vmatmul.mubr.msk.bf16.gmra.mrb[20].mxu0 %vm337_vm0, %v15656_v33  ;;  %11561 = vmatmul.mubr.msk.bf16.gmra.mrb[20].mxu1 %vm337_vm0, %v15656_v33 }
 0x203   :  { %3167 = vmatprep.mubr.bf16.mxu0 %v19912_v1  ;;  %3340 = vmatprep.mubr.bf16.mxu1 %v19912_v1 }
 0x20a   :  { %11548 = vmatmul.mubr.msk.bf16.gmra.mrb[24].mxu0 %vm337_vm0, %v15667_v34  ;;  %11562 = vmatmul.mubr.msk.bf16.gmra.mrb[24].mxu1 %vm337_vm0, %v15667_v34 }
 0x20b   :  { %3177 = vmatprep.mubr.bf16.mxu0 %v19912_v1  ;;  %3350 = vmatprep.mubr.bf16.mxu1 %v19912_v1 }
 0x212   :  { %11549 = vmatmul.mubr.msk.bf16.gmra.mrb[28].mxu0 %vm337_vm0, %v15678_v35  ;;  %11563 = vmatmul.mubr.msk.bf16.gmra.mrb[28].mxu1 %vm337_vm0, %v15678_v35 }
 0x213   :  { %3187 = vmatprep.mubr.bf16.mxu0 %v19912_v1  ;;  %3360 = vmatprep.mubr.bf16.mxu1 %v19912_v1 }
 0x21a   :  { %11550 = vmatmul.mubr.msk.bf16.gmra.mrb[32].mxu0 %vm337_vm0, %v15689_v36  ;;  %11564 = vmatmul.mubr.msk.bf16.gmra.mrb[32].mxu1 %vm337_vm0, %v15689_v36 }
 0x21b   :  { %3197 = vmatprep.mubr.bf16.mxu0 %v19912_v1  ;;  %3370 = vmatprep.mubr.bf16.mxu1 %v19912_v1 }
 0x222   :  { %11551 = vmatmul.mubr.msk.bf16.gmra.mrb[36].mxu0 %vm337_vm0, %v15700_v37  ;;  %11565 = vmatmul.mubr.msk.bf16.gmra.mrb[36].mxu1 %vm337_vm0, %v15700_v37 }
 0x223   :  { %3207 = vmatprep.mubr.bf16.mxu0 %v19912_v1  ;;  %3380 = vmatprep.mubr.bf16.mxu1 %v19912_v1 }
 0x22a   :  { %11552 = vmatmul.mubr.msk.bf16.gmra.mrb[40].mxu0 %vm337_vm0, %v15711_v38  ;;  %11566 = vmatmul.mubr.msk.bf16.gmra.mrb[40].mxu1 %vm337_vm0, %v15711_v38 }
 0x22b   :  { %3217 = vmatprep.mubr.bf16.mxu0 %v19912_v1  ;;  %3390 = vmatprep.mubr.bf16.mxu1 %v19912_v1 }
 0x232   :  { %11553 = vmatmul.mubr.msk.bf16.gmra.mrb[44].mxu0 %vm337_vm0, %v15722_v39  ;;  %11567 = vmatmul.mubr.msk.bf16.gmra.mrb[44].mxu1 %vm337_vm0, %v15722_v39 }
 0x233   :  { %3227 = vmatprep.mubr.bf16.mxu0 %v19912_v1  ;;  %3400 = vmatprep.mubr.bf16.mxu1 %v19912_v1 }
 0x23a   :  { %11554 = vmatmul.mubr.msk.bf16.gmra.mrb[48].mxu0 %vm337_vm0, %v15733_v42  ;;  %11568 = vmatmul.mubr.msk.bf16.gmra.mrb[48].mxu1 %vm337_vm0, %v15733_v42 }
 0x23b   :  { %3237 = vmatprep.mubr.bf16.mxu0 %v19912_v1  ;;  %3410 = vmatprep.mubr.bf16.mxu1 %v19912_v1 }
 0x242   :  { %11555 = vmatmul.mubr.msk.bf16.gmra.mrb[52].mxu0 %vm337_vm0, %v15744_v43  ;;  %11569 = vmatmul.mubr.msk.bf16.gmra.mrb[52].mxu1 %vm337_vm0, %v15744_v43 }
 0x243   :  { %3986 = vmatprep.mubr.bf16.mxu0 %v19912_v1  ;;  %4159 = vmatprep.mubr.bf16.mxu1 %v19912_v1 }
 0x24a   :  { %11570 = vmatmul.mubr.msk.bf16.vlgmr.msra.gmra.mrb[56].mxu0 %vm337_vm0, %v15089_v40  ;;  %11584 = vmatmul.mubr.msk.bf16.vlgmr.msra.gmra.mrb[56].mxu1 %vm337_vm0, %v15089_v40  ;;  %v14322_v40 = vld [vmem:[%s19899_s2 + $0x24] ss:$16 sps:$4 sm:$0xff]  }
 0x24b   :  { %4474 = vmatpush1.bf16.msra.mxu1 %v14319_v56  ;;  %4301 = vmatpush1.bf16.msra.mxu0 %v14320_v57 }
 0x24c   :  { %3996 = vmatprep.mubr.bf16.mxu0 %v19912_v1  ;;  %4169 = vmatprep.mubr.bf16.mxu1 %v19912_v1 }
 0x24d   :  { %4475 = vmatprep.subr.bf16.mxu1 %v14321_v59  ;;  %4302 = vmatprep.subr.bf16.mxu0 %v14322_v40  ;;  %v14343_v59 = vld [vmem:[%s19900_s1] sm:$0xff]   ;;  %v14344_v40 = vld [vmem:[%s19899_s2 + $0x188] ss:$16 sps:$4 sm:$0xff]  }
 0x24f   :  { %4476 = vmatpush1.bf16.msra.mxu1 %v14323_v60  ;;  %4303 = vmatpush1.bf16.msra.mxu0 %v14324_v62  ;;  %v14345_v60 = vld [vmem:[%s19899_s2 + $0x180] ss:$16 sps:$4 sm:$0xff]  }
 0x250   :  { %4477 = vmatprep.subr.bf16.mxu1 %v14325_v63  ;;  %4304 = vmatprep.subr.bf16.mxu0 %v14326_v0 }
 0x252   :  { %11571 = vmatmul.mubr.msk.bf16.gmra.mrb[60].mxu0 %vm337_vm0, %v15124_v49  ;;  %11585 = vmatmul.mubr.msk.bf16.gmra.mrb[60].mxu1 %vm337_vm0, %v15124_v49  ;;  %v14330_v49 = vld [vmem:[%s19899_s2 + $0x64] ss:$16 sps:$4 sm:$0xff]  }
 0x253   :  { %4006 = vmatprep.mubr.bf16.mxu0 %v19912_v1  ;;  %4179 = vmatprep.mubr.bf16.mxu1 %v19912_v1 }
 0x254   :  { %4478 = vmatpush1.bf16.msra.mxu1 %v14327_v2  ;;  %4305 = vmatpush1.bf16.msra.mxu0 %v14328_v3  ;;  %v14346_v3 = vld [vmem:[%s19899_s2 + $0x1ac] ss:$16 sps:$4 sm:$0xff]  }
 0x255   :  { %4479 = vmatprep.subr.bf16.mxu1 %v14329_v15  ;;  %4306 = vmatprep.subr.bf16.mxu0 %v14330_v49  ;;  %v14347_v15 = vld [vmem:[%s19899_s2 + $0x1a4] ss:$16 sps:$4 sm:$0xff]  }
 0x258   :  { %4480 = vmatpush1.bf16.msra.mxu1 %v14331_v16  ;;  %4307 = vmatpush1.bf16.msra.mxu0 %v14332_v17  ;;  %v14348_v17 = vld [vmem:[%s19899_s2 + $0x1a8] ss:$16 sps:$4 sm:$0xff]  }
 0x259   :  { %4481 = vmatprep.subr.bf16.mxu1 %v14333_v19  ;;  %4308 = vmatprep.subr.bf16.mxu0 %v14334_v20 }
 0x25a   :  { %11572 = vmatmul.mubr.msk.bf16.gmra.mrb[64].mxu0 %vm337_vm0, %v15159_v58  ;;  %11586 = vmatmul.mubr.msk.bf16.gmra.mrb[64].mxu1 %vm337_vm0, %v15159_v58  ;;  %v14338_v58 = vld [vmem:[%s19899_s2 + $0xa4] ss:$16 sps:$4 sm:$0xff]  }
 0x25b   :  { %4016 = vmatprep.mubr.bf16.mxu0 %v19912_v1  ;;  %4189 = vmatprep.mubr.bf16.mxu1 %v19912_v1 }
 0x25c   :  { %4482 = vmatpush1.bf16.msra.mxu1 %v14335_v21  ;;  %4309 = vmatpush1.bf16.msra.mxu0 %v14336_v22  ;;  %v14349_v21 = vld [vmem:[%s19899_s2 + $0x1a0] ss:$16 sps:$4 sm:$0xff]   ;;  %v14350_v22 = vld [vmem:[%s19899_s2 + $0x1cc] ss:$16 sps:$4 sm:$0xff]  }
 0x25d   :  { %4483 = vmatprep.subr.bf16.mxu1 %v14337_v23  ;;  %4310 = vmatprep.subr.bf16.mxu0 %v14338_v58  ;;  %v14351_v23 = vld [vmem:[%s19899_s2 + $0x1c4] ss:$16 sps:$4 sm:$0xff]   ;;  %v14352_v58 = vld [vmem:[%s19900_s1 + $0x8] sm:$0xff]  }
 0x260   :  { %4484 = vmatpush1.bf16.msra.mxu1 %v14339_v24  ;;  %4311 = vmatpush1.bf16.msra.mxu0 %v14340_v25 }
 0x261   :  { %4819 = vmatprep.subr.bf16.mxu1 %v14341_v26  ;;  %4646 = vmatprep.subr.bf16.mxu0 %v14342_v28  ;;  %v14353_v26 = vld [vmem:[%s19899_s2 + $0x1c8] ss:$16 sps:$4 sm:$0xff]   ;;  %v14354_v28 = vld [vmem:[%s19899_s2 + $0x1c0] ss:$16 sps:$4 sm:$0xff]  }
 0x262   :  { %11573 = vmatmul.mubr.msk.bf16.gmra.mrb[68].mxu0 %vm337_vm0, %v15194_v4  ;;  %11587 = vmatmul.mubr.msk.bf16.gmra.mrb[68].mxu1 %vm337_vm0, %v15194_v4 }
 0x263   :  { %4026 = vmatprep.mubr.bf16.mxu0 %v19912_v1  ;;  %4199 = vmatprep.mubr.bf16.mxu1 %v19912_v1 }
 0x26a   :  { %11574 = vmatmul.mubr.msk.bf16.gmra.mrb[72].mxu0 %vm337_vm0, %v15205_v5  ;;  %11588 = vmatmul.mubr.msk.bf16.gmra.mrb[72].mxu1 %vm337_vm0, %v15205_v5 }
 0x26b   :  { %4036 = vmatprep.mubr.bf16.mxu0 %v19912_v1  ;;  %4209 = vmatprep.mubr.bf16.mxu1 %v19912_v1 }
 0x272   :  { %11575 = vmatmul.mubr.msk.bf16.gmra.mrb[76].mxu0 %vm337_vm0, %v15216_v6  ;;  %11589 = vmatmul.mubr.msk.bf16.gmra.mrb[76].mxu1 %vm337_vm0, %v15216_v6 }
 0x273   :  { %4046 = vmatprep.mubr.bf16.mxu0 %v19912_v1  ;;  %4219 = vmatprep.mubr.bf16.mxu1 %v19912_v1 }
 0x27a   :  { %11576 = vmatmul.mubr.msk.bf16.gmra.mrb[80].mxu0 %vm337_vm0, %v15227_v7  ;;  %11590 = vmatmul.mubr.msk.bf16.gmra.mrb[80].mxu1 %vm337_vm0, %v15227_v7 }
 0x27b   :  { %4056 = vmatprep.mubr.bf16.mxu0 %v19912_v1  ;;  %4229 = vmatprep.mubr.bf16.mxu1 %v19912_v1 }
 0x282   :  { %11577 = vmatmul.mubr.msk.bf16.gmra.mrb[84].mxu0 %vm337_vm0, %v15238_v8  ;;  %11591 = vmatmul.mubr.msk.bf16.gmra.mrb[84].mxu1 %vm337_vm0, %v15238_v8 }
 0x283   :  { %4066 = vmatprep.mubr.bf16.mxu0 %v19912_v1  ;;  %4239 = vmatprep.mubr.bf16.mxu1 %v19912_v1 }
 0x28a   :  { %11578 = vmatmul.mubr.msk.bf16.gmra.mrb[88].mxu0 %vm337_vm0, %v15249_v9  ;;  %11592 = vmatmul.mubr.msk.bf16.gmra.mrb[88].mxu1 %vm337_vm0, %v15249_v9 }
 0x28b   :  { %4076 = vmatprep.mubr.bf16.mxu0 %v19912_v1  ;;  %4249 = vmatprep.mubr.bf16.mxu1 %v19912_v1 }
 0x292   :  { %11579 = vmatmul.mubr.msk.bf16.gmra.mrb[92].mxu0 %vm337_vm0, %v15260_v10  ;;  %11593 = vmatmul.mubr.msk.bf16.gmra.mrb[92].mxu1 %vm337_vm0, %v15260_v10 }
 0x293   :  { %4086 = vmatprep.mubr.bf16.mxu0 %v19912_v1  ;;  %4259 = vmatprep.mubr.bf16.mxu1 %v19912_v1 }
 0x29a   :  { %11580 = vmatmul.mubr.msk.bf16.gmra.mrb[96].mxu0 %vm337_vm0, %v15271_v11  ;;  %11594 = vmatmul.mubr.msk.bf16.gmra.mrb[96].mxu1 %vm337_vm0, %v15271_v11 }
 0x29b   :  { %4096 = vmatprep.mubr.bf16.mxu0 %v19912_v1  ;;  %4269 = vmatprep.mubr.bf16.mxu1 %v19912_v1 }
 0x2a2   :  { %11581 = vmatmul.mubr.msk.bf16.gmra.mrb[100].mxu0 %vm337_vm0, %v15282_v12  ;;  %11595 = vmatmul.mubr.msk.bf16.gmra.mrb[100].mxu1 %vm337_vm0, %v15282_v12 }
 0x2a3   :  { %4106 = vmatprep.mubr.bf16.mxu0 %v19912_v1  ;;  %4279 = vmatprep.mubr.bf16.mxu1 %v19912_v1 }
 0x2aa   :  { %11582 = vmatmul.mubr.msk.bf16.gmra.mrb[104].mxu0 %vm337_vm0, %v15293_v13  ;;  %11596 = vmatmul.mubr.msk.bf16.gmra.mrb[104].mxu1 %vm337_vm0, %v15293_v13 }
 0x2ab   :  { %4116 = vmatprep.mubr.bf16.mxu0 %v19912_v1  ;;  %4289 = vmatprep.mubr.bf16.mxu1 %v19912_v1 }
 0x2ad   :  { %v15902_v4 = vpop.f32.mrb[0].mxu0  ;;  %v3282_v5 = vpop.f32.mrb[0].mxu1 }
 0x2ae   :  { %3619 = vrot.lane.b32.xlu0 %v3282_v5, %s14597_s30  ;;  %v15905_v6 = vpop.f32.mrb[1].mxu0  ;;  %v3284_v7 = vpop.f32.mrb[1].mxu1 }
 0x2af   :  { %3621 = vrot.lane.b32.xlu1 %v3284_v7, %s14597_s30  ;;  %v15908_v8 = vpop.f32.mrb[2].mxu0  ;;  %v3286_v9 = vpop.f32.mrb[2].mxu1 }
 0x2b0   :  { %v15910_v10 = vpop.f32.mrb[3].mxu0  ;;  %v3288_v11 = vpop.f32.mrb[3].mxu1 }
 0x2b2   :  { %11583 = vmatmul.mubr.msk.bf16.gmra.mrb[108].mxu0 %vm337_vm0, %v15304_v14  ;;  %11597 = vmatmul.mubr.msk.bf16.gmra.mrb[108].mxu1 %vm337_vm0, %v15304_v14 }
 0x2b3   :  { %3617 = vrot.lane.b32.xlu0 %v15905_v6, %s14597_s30  ;;  %3627 = vrot.lane.b32.xlu1 %v3288_v11, %s14597_s30  ;;  %v14356_v11 = vld [vmem:[%s19899_s2 + $0x1e4] ss:$16 sps:$4 sm:$0xff]  }
 0x2b4   :  { %4332 = vmatprep.mubr.bf16.mxu0 %v19912_v1  ;;  %4505 = vmatprep.mubr.bf16.mxu1 %v19912_v1 }
 0x2b5   :  { %v15921_v12 = vpop.f32.mrb[4].mxu0  ;;  %v3292_v13 = vpop.f32.mrb[4].mxu1 }
 0x2b6   :  { %v3294_v29 = vpop.f32.mrb[5].mxu1  ;;  %v15923_v30 = vpop.f32.mrb[5].mxu0 }
 0x2b7   :  { %3625 = vrot.lane.b32.xlu0 %v3286_v9, %s14597_s30  ;;  %v3296_v31 = vpop.f32.mrb[6].mxu1  ;;  %3623 = vrot.lane.b32.xlu1 %v15910_v10, %s14597_s30  ;;  %v15928_v14 = vpop.f32.mrb[6].mxu0  ;;  %v14355_v9 = vld [vmem:[%s19899_s2 + $0x1ec] ss:$16 sps:$4 sm:$0xff]  }
 0x2b8   :  { %19981 = vst [vmem:[#allocation2_spill] sm:$0xff] %v15928_v14  ;;  %v15930_v56 = vpop.f32.mrb[7].mxu0  ;;  %v3298_v57 = vpop.f32.mrb[7].mxu1 }
 0x2ba   :  { %11598 = vmatmul.mubr.msk.bf16.vlgmr.msra.gmra.mrb[56].mxu0 %vm337_vm0, %v14343_v59  ;;  %11612 = vmatmul.mubr.msk.bf16.vlgmr.msra.gmra.mrb[56].mxu1 %vm337_vm0, %v14343_v59  ;;  %v14357_v59 = vld [vmem:[%s19899_s2 + $0x1e8] ss:$16 sps:$4 sm:$0xff]  }
 0x2bb   :  { %3631 = vrot.lane.b32.xlu0 %v3292_v13, %s14597_s30  ;;  %4820 = vmatpush1.bf16.msra.mxu1 %v14344_v40  ;;  %v14358_v40 = vld [vmem:[%s19899_s2 + $0x1e0] ss:$16 sps:$4 sm:$0xff]  }
 0x2bc   :  { %3637 = vrot.lane.b32.xlu1 %v3296_v31, %s14597_s30  ;;  %4647 = vmatpush1.bf16.msra.mxu0 %v14345_v60  ;;  %v14359_v60 = vld [vmem:[%s19900_s1 + $0x10] sm:$0xff]  }
 0x2bd   :  { %v15945_v62 = vpop.f32.mrb[8].mxu0  ;;  %v3302_v63 = vpop.f32.mrb[8].mxu1  ;;  %4342 = vmatprep.mubr.bf16.mxu0 %v19912_v1  ;;  %4515 = vmatprep.mubr.bf16.mxu1 %v19912_v1 }
 0x2be   :  { %19982 = vst [vmem:[#allocation3_spill] sm:$0xff] %v15945_v62  ;;  %v3304_v0 = vpop.f32.mrb[9].mxu1  ;;  %v15949_v2 = vpop.f32.mrb[9].mxu0  ;;  %4821 = vmatprep.subr.bf16.mxu1 %v14346_v3  ;;  %4648 = vmatprep.subr.bf16.mxu0 %v14347_v15  ;;  %v14360_v3 = vld [vmem:[%s19899_s2 + $0x20c] ss:$16 sps:$4 sm:$0xff]  }
 0x2bf   :  { %19983 = vst [vmem:[#allocation4_spill] sm:$0xff] %v15949_v2  ;;  %3633 = vrot.lane.b32.xlu0 %v3294_v29, %s14597_s30  ;;  %v3306_v49 = vpop.f32.mrb[10].mxu1  ;;  %v15958_v16 = vpop.f32.mrb[10].mxu0  ;;  %4822 = vmatpush1.bf16.msra.mxu1 %v14348_v17  ;;  %v14361_v15 = vld [vmem:[%s19899_s2 + $0x204] ss:$16 sps:$4 sm:$0xff]  }
 0x2c0   :  { %19984 = vst [vmem:[#allocation5_spill] sm:$0xff] %v15958_v16  ;;  %3639 = vrot.lane.b32.xlu1 %v3298_v57, %s14597_s30  ;;  %v15964_v19 = vpop.f32.mrb[11].mxu0  ;;  %v3308_v20 = vpop.f32.mrb[11].mxu1  ;;  %4649 = vmatpush1.bf16.msra.mxu0 %v14349_v21 }
 0x2c1   :  { %19985 = vst [vmem:[#allocation6_spill] sm:$0xff] %v15964_v19  ;;  %4823 = vmatprep.subr.bf16.mxu1 %v14350_v22  ;;  %4650 = vmatprep.subr.bf16.mxu0 %v14351_v23  ;;  %v14363_v22 = vld [vmem:[%s19899_s2 + $0x200] ss:$16 sps:$4 sm:$0xff]  }
 0x2c2   :  { %11599 = vmatmul.mubr.msk.bf16.gmra.mrb[60].mxu0 %vm337_vm0, %v14352_v58  ;;  %11613 = vmatmul.mubr.msk.bf16.gmra.mrb[60].mxu1 %vm337_vm0, %v14352_v58 }
 0x2c3   :  { %3629 = vrot.lane.b32.xlu0 %v15923_v30, %s14597_s30  ;;  %4352 = vmatprep.mubr.bf16.mxu0 %v19912_v1 }
 0x2c4   :  { %3635 = vrot.lane.b32.xlu1 %v15930_v56, %s14597_s30  ;;  %4525 = vmatprep.mubr.bf16.mxu1 %v19912_v1 }
 0x2c5   :  { %v15986_v24 = vpop.f32.mrb[12].mxu0  ;;  %v3312_v25 = vpop.f32.mrb[12].mxu1  ;;  %4824 = vmatpush1.bf16.msra.mxu1 %v14353_v26  ;;  %4651 = vmatpush1.bf16.msra.mxu0 %v14354_v28  ;;  %v14364_v26 = vld [vmem:[%s19899_s2 + $0x22c] ss:$16 sps:$4 sm:$0xff]  }
 0x2c6   :  { %19986 = vst [vmem:[#allocation7_spill] sm:$0xff] %v15986_v24  ;;  %v3314_v5 = vpop.f32.mrb[13].mxu1  ;;  %v15994_v7 = vpop.f32.mrb[13].mxu0  ;;  %4825 = vmatprep.subr.bf16.mxu1 %v14355_v9  ;;  %4652 = vmatprep.subr.bf16.mxu0 %v14356_v11  ;;  %v14365_v11 = vld [vmem:[%s19899_s2 + $0x224] ss:$16 sps:$4 sm:$0xff]  }
 0x2c7   :  { %19987 = vst [vmem:[#allocation8_spill] sm:$0xff] %v15994_v7  ;;  %3643 = vrot.lane.b32.xlu0 %v3302_v63, %s14597_s30  ;;  %v16003_v13 = vpop.f32.mrb[14].mxu1  ;;  %v16005_v29 = vpop.f32.mrb[14].mxu0 }
 0x2c8   :  { %19988 = vst [vmem:[#allocation9_spill] sm:$0xff] %v16005_v29  ;;  %3645 = vrot.lane.b32.xlu1 %v3304_v0, %s14597_s30  ;;  %v16008_v31 = vpop.f32.mrb[15].mxu0  ;;  %v3318_v57 = vpop.f32.mrb[15].mxu1 }
 0x2c9   :  { %19989 = vst [vmem:[#allocation10_spill] sm:$0xff] %v16008_v31  ;;  %4826 = vmatpush1.bf16.msra.mxu1 %v14357_v59  ;;  %4653 = vmatpush1.bf16.msra.mxu0 %v14358_v40 }
 0x2ca   :  { %11600 = vmatmul.mubr.msk.bf16.gmra.mrb[64].mxu0 %vm337_vm0, %v14359_v60  ;;  %11614 = vmatmul.mubr.msk.bf16.gmra.mrb[64].mxu1 %vm337_vm0, %v14359_v60  ;;  %v14367_v60 = vld [vmem:[%s19899_s2 + $0x228] ss:$16 sps:$4 sm:$0xff]  }
 0x2cb   :  { %3641 = vrot.lane.b32.xlu0 %v15949_v2, %s14597_s30  ;;  %4362 = vmatprep.mubr.bf16.mxu0 %v19912_v1 }
 0x2cc   :  { %3651 = vrot.lane.b32.xlu1 %v3308_v20, %s14597_s30  ;;  %4535 = vmatprep.mubr.bf16.mxu1 %v19912_v1  ;;  %v14362_v20 = vld [vmem:[%s19899_s2 + $0x208] ss:$16 sps:$4 sm:$0xff]  }
 0x2cd   :  { %v16026_v63 = vpop.f32.mrb[16].mxu0  ;;  %v3322_v0 = vpop.f32.mrb[16].mxu1  ;;  %4827 = vmatprep.subr.bf16.mxu1 %v14360_v3  ;;  %4654 = vmatprep.subr.bf16.mxu0 %v14361_v15  ;;  %v14368_v3 = vld [vmem:[%s19899_s2 + $0x220] ss:$16 sps:$4 sm:$0xff]  }
 0x2ce   :  { %19990 = vst [vmem:[#allocation11_spill] sm:$0xff] %v16026_v63  ;;  %v3324_v17 = vpop.f32.mrb[17].mxu1  ;;  %v16034_v21 = vpop.f32.mrb[17].mxu0  ;;  %4828 = vmatpush1.bf16.msra.mxu1 %v14362_v20  ;;  %4655 = vmatpush1.bf16.msra.mxu0 %v14363_v22  ;;  %v14370_v20 = vld [vmem:[%s19899_s2 + $0x244] ss:$16 sps:$4 sm:$0xff]  }
 0x2cf   :  { %3649 = vrot.lane.b32.xlu0 %v3306_v49, %s14597_s30  ;;  %v3326_v23 = vpop.f32.mrb[18].mxu1  ;;  %v16043_v58 = vpop.f32.mrb[18].mxu0  ;;  %4829 = vmatprep.subr.bf16.mxu1 %v14364_v26  ;;  %v14366_v49 = vld [vmem:[%s19900_s1 + $0x18] sm:$0xff]  }
 0x2d0   :  { %19991 = vst [vmem:[#allocation12_spill] sm:$0xff] %v16043_v58  ;;  %3647 = vrot.lane.b32.xlu1 %v15964_v19, %s14597_s30  ;;  %v16050_v28 = vpop.f32.mrb[19].mxu0  ;;  %v3328_v9 = vpop.f32.mrb[19].mxu1  ;;  %4656 = vmatprep.subr.bf16.mxu0 %v14365_v11 }
 0x2d1   :  { %19992 = vst [vmem:[#allocation13_spill] sm:$0xff] %v16050_v28 }
 0x2d2   :  { %11601 = vmatmul.mubr.msk.bf16.gmra.mrb[68].mxu0 %vm337_vm0, %v14366_v49  ;;  %11615 = vmatmul.mubr.msk.bf16.gmra.mrb[68].mxu1 %vm337_vm0, %v14366_v49 }
 0x2d3   :  { %3655 = vrot.lane.b32.xlu0 %v3312_v25, %s14597_s30  ;;  %4372 = vmatprep.mubr.bf16.mxu0 %v19912_v1 }
 0x2d4   :  { %3657 = vrot.lane.b32.xlu1 %v3314_v5, %s14597_s30  ;;  %4545 = vmatprep.mubr.bf16.mxu1 %v19912_v1  ;;  %v14369_v5 = vld [vmem:[%s19899_s2 + $0x24c] ss:$16 sps:$4 sm:$0xff]  }
 0x2d5   :  { %v16064_v59 = vpop.f32.mrb[20].mxu0  ;;  %v3332_v40 = vpop.f32.mrb[20].mxu1  ;;  %4830 = vmatpush1.bf16.msra.mxu1 %v14367_v60  ;;  %4657 = vmatpush1.bf16.msra.mxu0 %v14368_v3  ;;  %v14371_v60 = vld [vmem:[%s19900_s1 + $0x20] sm:$0xff]  }
 0x2d6   :  { %19993 = vst [vmem:[#allocation14_spill] sm:$0xff] %v16064_v59  ;;  %v3334_v25 = vpop.f32.mrb[21].mxu1  ;;  %v16072_v15 = vpop.f32.mrb[21].mxu0  ;;  %5277 = vmatprep.subr.bf16.mxu1 %v14369_v5  ;;  %5104 = vmatprep.subr.bf16.mxu0 %v14370_v20 }
 0x2d7   :  { %19994 = vst [vmem:[#allocation15_spill] sm:$0xff] %v16072_v15  ;;  %3653 = vrot.lane.b32.xlu0 %v15994_v7, %s14597_s30  ;;  %v3336_v22 = vpop.f32.mrb[22].mxu1  ;;  %v16082_v26 = vpop.f32.mrb[22].mxu0 }
 0x2d8   :  { %19995 = vst [vmem:[#allocation16_spill] sm:$0xff] %v16082_v26  ;;  %3663 = vrot.lane.b32.xlu1 %v3318_v57, %s14597_s30  ;;  %v16085_v11 = vpop.f32.mrb[23].mxu0  ;;  %v3338_v49 = vpop.f32.mrb[23].mxu1 }
 0x2d9   :  { %19996 = vst [vmem:[#allocation17_spill] sm:$0xff] %v16085_v11 }
 0x2da   :  { %11602 = vmatmul.mubr.msk.bf16.gmra.mrb[72].mxu0 %vm337_vm0, %v14371_v60  ;;  %11616 = vmatmul.mubr.msk.bf16.gmra.mrb[72].mxu1 %vm337_vm0, %v14371_v60 }
 0x2db   :  { %3661 = vrot.lane.b32.xlu0 %v16003_v13, %s14597_s30  ;;  %4382 = vmatprep.mubr.bf16.mxu0 %v19912_v1 }
 0x2dc   :  { %3659 = vrot.lane.b32.xlu1 %v16008_v31, %s14597_s30  ;;  %4555 = vmatprep.mubr.bf16.mxu1 %v19912_v1  ;;  %v14372_v1 = vld [vmem:[%s19900_s1 + $0x28] sm:$0xff]  }
 0x2dd   :  { %v16098_v57 = vpop.f32.mrb[24].mxu0  ;;  %v16100_v3 = vpop.f32.mrb[24].mxu1 }
 0x2de   :  { %19997 = vst [vmem:[#allocation18_spill] sm:$0xff] %v16098_v57  ;;  %v16102_v5 = vpop.f32.mrb[25].mxu1  ;;  %v16104_v20 = vpop.f32.mrb[25].mxu0 }
 0x2df   :  { %3667 = vrot.lane.b32.xlu0 %v3322_v0, %s14597_s30  ;;  %v16107_v60 = vpop.f32.mrb[26].mxu1  ;;  %v16109_v13 = vpop.f32.mrb[26].mxu0  ;;  %v19999_v0 = vmov 0  }
 0x2e0   :  { %19998 = vst [vmem:[#allocation19_spill] sm:$0xff] %v16109_v13  ;;  %3669 = vrot.lane.b32.xlu1 %v3324_v17, %s14597_s30  ;;  %v16112_v58 = vpop.f32.mrb[27].mxu0  ;;  %v16114_v63 = vpop.f32.mrb[27].mxu1 }
 0x2e2   :  { %11603 = vmatmul.mubr.msk.bf16.gmra.mrb[76].mxu0 %vm337_vm0, %v14372_v1  ;;  %11617 = vmatmul.mubr.msk.bf16.gmra.mrb[76].mxu1 %vm337_vm0, %v14372_v1 }
 0x2e3   :  { %3673 = vrot.lane.b32.xlu0 %v3326_v23, %s14597_s30  ;;  %4392 = vmatprep.mubr.bf16.mxu0 %v19999_v0 }
 0x2e4   :  { %3675 = vrot.lane.b32.xlu1 %v3328_v9, %s14597_s30  ;;  %4565 = vmatprep.mubr.bf16.mxu1 %v19999_v0  ;;  %v14373_v9 = vld [vmem:[%s19900_s1 + $0x30] sm:$0xff]  }
 0x2e5   :  { %v16125_v17 = vpop.f32.mrb[28].mxu0  ;;  %v3352_v13 = vpop.f32.mrb[28].mxu1 }
 0x2e6   :  { %20000 = vst [vmem:[#allocation20_spill] sm:$0xff] %v16125_v17  ;;  %v3354_v57 = vpop.f32.mrb[29].mxu1  ;;  %v16127_v26 = vpop.f32.mrb[29].mxu0 }
 0x2e7   :  { %20001 = vst [vmem:[#allocation21_spill] sm:$0xff] %v16127_v26  ;;  %3679 = vrot.lane.b32.xlu0 %v3332_v40, %s14597_s30  ;;  %v3356_v59 = vpop.f32.mrb[30].mxu1  ;;  %v16130_v29 = vpop.f32.mrb[30].mxu0 }
 0x2e8   :  { %20002 = vst [vmem:[#allocation22_spill] sm:$0xff] %v16130_v29  ;;  %3681 = vrot.lane.b32.xlu1 %v3334_v25, %s14597_s30  ;;  %v16133_v1 = vpop.f32.mrb[31].mxu0  ;;  %v3358_v23 = vpop.f32.mrb[31].mxu1 }
 0x2e9   :  { %20003 = vst [vmem:[#allocation23_spill] sm:$0xff] %v16133_v1 }
 0x2ea   :  { %11604 = vmatmul.mubr.msk.bf16.gmra.mrb[80].mxu0 %vm337_vm0, %v14373_v9  ;;  %11618 = vmatmul.mubr.msk.bf16.gmra.mrb[80].mxu1 %vm337_vm0, %v14373_v9 }
 0x2eb   :  { %3677 = vrot.lane.b32.xlu0 %v16072_v15, %s14597_s30  ;;  %4402 = vmatprep.mubr.bf16.mxu0 %v19999_v0 }
 0x2ec   :  { %3687 = vrot.lane.b32.xlu1 %v3338_v49, %s14597_s30  ;;  %4575 = vmatprep.mubr.bf16.mxu1 %v19999_v0 }
 0x2ed   :  { %v16145_v40 = vpop.f32.mrb[32].mxu0  ;;  %v16147_v25 = vpop.f32.mrb[32].mxu1 }
 0x2ee   :  { %20004 = vst [vmem:[#allocation24_spill] sm:$0xff] %v16145_v40  ;;  %v16149_v29 = vpop.f32.mrb[33].mxu1  ;;  %v16151_v17 = vpop.f32.mrb[33].mxu0  ;;  %v14374_v40 = vld [vmem:[%s19900_s1 + $0x38] sm:$0xff]  }
 0x2ef   :  { %20005 = vst [vmem:[#allocation25_spill] sm:$0xff] %v16151_v17  ;;  %3685 = vrot.lane.b32.xlu0 %v3336_v22, %s14597_s30  ;;  %v16154_v9 = vpop.f32.mrb[34].mxu1  ;;  %v16156_v31 = vpop.f32.mrb[34].mxu0 }
 0x2f0   :  { %20006 = vst [vmem:[#allocation26_spill] sm:$0xff] %v16156_v31  ;;  %3683 = vrot.lane.b32.xlu1 %v16085_v11, %s14597_s30  ;;  %v16160_v49 = vpop.f32.mrb[35].mxu0  ;;  %v16162_v15 = vpop.f32.mrb[35].mxu1 }
 0x2f1   :  { %20007 = vst [vmem:[#allocation27_spill] sm:$0xff] %v16160_v49 }
 0x2f2   :  { %11605 = vmatmul.mubr.msk.bf16.gmra.mrb[84].mxu0 %vm337_vm0, %v14374_v40  ;;  %11619 = vmatmul.mubr.msk.bf16.gmra.mrb[84].mxu1 %vm337_vm0, %v14374_v40 }
 0x2f3   :  { %3703 = vrot.lane.b32.xlu0 %v3352_v13, %s14597_s30  ;;  %4412 = vmatprep.mubr.bf16.mxu0 %v19999_v0 }
 0x2f4   :  { %3705 = vrot.lane.b32.xlu1 %v3354_v57, %s14597_s30  ;;  %4585 = vmatprep.mubr.bf16.mxu1 %v19999_v0  ;;  %v14375_v57 = vld [vmem:[%s19900_s1 + $0x40] sm:$0xff]  }
 0x2f5   :  { %v16173_v22 = vpop.f32.mrb[36].mxu0  ;;  %v3372_v31 = vpop.f32.mrb[36].mxu1 }
 0x2f6   :  { %20008 = vst [vmem:[#allocation28_spill] sm:$0xff] %v16173_v22  ;;  %v3374_v11 = vpop.f32.mrb[37].mxu1  ;;  %v16175_v24 = vpop.f32.mrb[37].mxu0 }
 0x2f7   :  { %20009 = vst [vmem:[#allocation29_spill] sm:$0xff] %v16175_v24  ;;  %3701 = vrot.lane.b32.xlu0 %v16127_v26, %s14597_s30  ;;  %v3376_v7 = vpop.f32.mrb[38].mxu1  ;;  %v16179_v16 = vpop.f32.mrb[38].mxu0 }
 0x2f8   :  { %20010 = vst [vmem:[#allocation30_spill] sm:$0xff] %v16179_v16  ;;  %3711 = vrot.lane.b32.xlu1 %v3358_v23, %s14597_s30  ;;  %v16182_v13 = vpop.f32.mrb[39].mxu0  ;;  %v3378_v40 = vpop.f32.mrb[39].mxu1 }
 0x2f9   :  { %20011 = vst [vmem:[#allocation31_spill] sm:$0xff] %v16182_v13 }
 0x2fa   :  { %11606 = vmatmul.mubr.msk.bf16.gmra.mrb[88].mxu0 %vm337_vm0, %v14375_v57  ;;  %11620 = vmatmul.mubr.msk.bf16.gmra.mrb[88].mxu1 %vm337_vm0, %v14375_v57 }
 0x2fb   :  { %3709 = vrot.lane.b32.xlu0 %v3356_v59, %s14597_s30  ;;  %4422 = vmatprep.mubr.bf16.mxu0 %v19999_v0 }
 0x2fc   :  { %3707 = vrot.lane.b32.xlu1 %v16133_v1, %s14597_s30  ;;  %4595 = vmatprep.mubr.bf16.mxu1 %v19999_v0 }
 0x2fd   :  { %v16194_v23 = vpop.f32.mrb[40].mxu0  ;;  %v16196_v16 = vpop.f32.mrb[40].mxu1 }
 0x2fe   :  { %20012 = vst [vmem:[#allocation32_spill] sm:$0xff] %v16194_v23  ;;  %20013 = vst [vmem:[#allocation33_spill] sm:$0xff] %v16196_v16  ;;  %v16198_v22 = vpop.f32.mrb[41].mxu1  ;;  %v16200_v26 = vpop.f32.mrb[41].mxu0  ;;  %v14376_v23 = vld [vmem:[%s19900_s1 + $0x48] sm:$0xff]  }
 0x2ff   :  { %20014 = vst [vmem:[#allocation34_spill] sm:$0xff] %v16198_v22  ;;  %20015 = vst [vmem:[#allocation35_spill] sm:$0xff] %v16200_v26  ;;  %3727 = vrot.lane.b32.xlu0 %v3372_v31, %s14597_s30  ;;  %v16203_v57 = vpop.f32.mrb[42].mxu1  ;;  %v16205_v59 = vpop.f32.mrb[42].mxu0  ;;  %v14003_v22 = vld [vmem:[%s19902_s4 + $0x28c] ss:$12 sps:$4 sm:$0xff]  }
 0x300   :  { %20016 = vst [vmem:[#allocation36_spill] sm:$0xff] %v16203_v57  ;;  %20017 = vst [vmem:[#allocation37_spill] sm:$0xff] %v16205_v59  ;;  %3729 = vrot.lane.b32.xlu1 %v3374_v11, %s14597_s30  ;;  %v16208_v19 = vpop.f32.mrb[43].mxu0  ;;  %v16210_v1 = vpop.f32.mrb[43].mxu1  ;;  %v13999_v57 = vld [vmem:[%s19902_s4 + $0x274] ss:$12 sps:$4 sm:$0xff]  }
 0x301   :  { %20018 = vst [vmem:[#allocation38_spill] sm:$0xff] %v16208_v19  ;;  %20019 = vst [vmem:[#allocation39_spill] sm:$0xff] %v16210_v1 }
 0x302   :  { %11607 = vmatmul.mubr.msk.bf16.gmra.mrb[92].mxu0 %vm337_vm0, %v14376_v23  ;;  %11621 = vmatmul.mubr.msk.bf16.gmra.mrb[92].mxu1 %vm337_vm0, %v14376_v23 }
 0x303   :  { %3725 = vrot.lane.b32.xlu0 %v16175_v24, %s14597_s30  ;;  %4432 = vmatprep.mubr.bf16.mxu0 %v19999_v0 }
 0x304   :  { %3735 = vrot.lane.b32.xlu1 %v3378_v40, %s14597_s30  ;;  %4605 = vmatprep.mubr.bf16.mxu1 %v19999_v0 }
 0x305   :  { %v16222_v31 = vpop.f32.mrb[44].mxu0  ;;  %v16224_v11 = vpop.f32.mrb[44].mxu1 }
 0x306   :  { %20020 = vst [vmem:[#allocation40_spill] sm:$0xff] %v16222_v31  ;;  %20021 = vst [vmem:[#allocation41_spill] sm:$0xff] %v16224_v11  ;;  %v16226_v59 = vpop.f32.mrb[45].mxu1  ;;  %v16228_v19 = vpop.f32.mrb[45].mxu0  ;;  %v14377_v31 = vld [vmem:[%s19900_s1 + $0x50] sm:$0xff]  }
 0x307   :  { %20022 = vst [vmem:[#allocation42_spill] sm:$0xff] %v16226_v59  ;;  %20023 = vst [vmem:[#allocation43_spill] sm:$0xff] %v16228_v19  ;;  %3733 = vrot.lane.b32.xlu0 %v3376_v7, %s14597_s30  ;;  %v16231_v23 = vpop.f32.mrb[46].mxu1  ;;  %v16233_v26 = vpop.f32.mrb[46].mxu0 }
 0x308   :  { %20024 = vst [vmem:[#allocation44_spill] sm:$0xff] %v16231_v23  ;;  %20025 = vst [vmem:[#allocation45_spill] sm:$0xff] %v16233_v26  ;;  %3731 = vrot.lane.b32.xlu1 %v16182_v13, %s14597_s30  ;;  %v16237_v40 = vpop.f32.mrb[47].mxu0  ;;  %v16239_v24 = vpop.f32.mrb[47].mxu1 }
 0x309   :  { %20026 = vst [vmem:[#allocation46_spill] sm:$0xff] %v16237_v40  ;;  %20027 = vst [vmem:[#allocation47_spill] sm:$0xff] %v16239_v24 }
 0x30a   :  { %11608 = vmatmul.mubr.msk.bf16.gmra.mrb[96].mxu0 %vm337_vm0, %v14377_v31  ;;  %11622 = vmatmul.mubr.msk.bf16.gmra.mrb[96].mxu1 %vm337_vm0, %v14377_v31  ;;  %v14378_v31 = vld [vmem:[%s19900_s1 + $0x58] sm:$0xff]  }
 0x30b   :  { %4442 = vmatprep.mubr.bf16.mxu0 %v19999_v0  ;;  %4615 = vmatprep.mubr.bf16.mxu1 %v19999_v0 }
 0x30d   :  { %v16248_v7 = vpop.f32.mrb[48].mxu0  ;;  %v16250_v26 = vpop.f32.mrb[48].mxu1 }
 0x30e   :  { %20028 = vst [vmem:[#allocation48_spill] sm:$0xff] %v16248_v7  ;;  %20029 = vst [vmem:[#allocation49_spill] sm:$0xff] %v16250_v26  ;;  %v16252_v13 = vpop.f32.mrb[49].mxu0  ;;  %v16254_v40 = vpop.f32.mrb[49].mxu1 }
 0x30f   :  { %20030 = vst [vmem:[#allocation50_spill] sm:$0xff] %v16252_v13  ;;  %20031 = vst [vmem:[#allocation51_spill] sm:$0xff] %v16254_v40  ;;  %v16256_v19 = vpop.f32.mrb[50].mxu0  ;;  %v16258_v24 = vpop.f32.mrb[50].mxu1 }
 0x310   :  { %20032 = vst [vmem:[#allocation52_spill] sm:$0xff] %v16256_v19  ;;  %20033 = vst [vmem:[#allocation53_spill] sm:$0xff] %v16258_v24  ;;  %v16260_v23 = vpop.f32.mrb[51].mxu0  ;;  %v16262_v59 = vpop.f32.mrb[51].mxu1 }
 0x311   :  { %20034 = vst [vmem:[#allocation54_spill] sm:$0xff] %v16260_v23  ;;  %20035 = vst [vmem:[#allocation55_spill] sm:$0xff] %v16262_v59 }
 0x312   :  { %11609 = vmatmul.mubr.msk.bf16.gmra.mrb[100].mxu0 %vm337_vm0, %v14378_v31  ;;  %11623 = vmatmul.mubr.msk.bf16.gmra.mrb[100].mxu1 %vm337_vm0, %v14378_v31  ;;  %v14379_v31 = vld [vmem:[%s19900_s1 + $0x60] sm:$0xff]  }
 0x313   :  { %4452 = vmatprep.mubr.bf16.mxu0 %v19999_v0  ;;  %4625 = vmatprep.mubr.bf16.mxu1 %v19999_v0 }
 0x315   :  { %v16271_v7 = vpop.f32.mrb[52].mxu0  ;;  %v16273_v19 = vpop.f32.mrb[52].mxu1 }
 0x316   :  { %20036 = vst [vmem:[#allocation56_spill] sm:$0xff] %v16271_v7  ;;  %20037 = vst [vmem:[#allocation57_spill] sm:$0xff] %v16273_v19  ;;  %v16275_v13 = vpop.f32.mrb[53].mxu0  ;;  %v16277_v23 = vpop.f32.mrb[53].mxu1  ;;  %v14382_v7 = vld [vmem:[%s19899_s2 + $0x248] ss:$16 sps:$4 sm:$0xff]  }
 0x317   :  { %20038 = vst [vmem:[#allocation58_spill] sm:$0xff] %v16275_v13  ;;  %20039 = vst [vmem:[#allocation59_spill] sm:$0xff] %v16277_v23  ;;  %v16279_v59 = vpop.f32.mrb[54].mxu0  ;;  %v16281_v24 = vpop.f32.mrb[54].mxu1  ;;  %v14388_v13 = vld [vmem:[%s19899_s2 + $0x28c] ss:$16 sps:$4 sm:$0xff]  }
 0x318   :  { %20040 = vst [vmem:[#allocation60_spill] sm:$0xff] %v16279_v59  ;;  %20041 = vst [vmem:[#allocation61_spill] sm:$0xff] %v16281_v24  ;;  %v16283_v40 = vpop.f32.mrb[55].mxu0  ;;  %v16285_v26 = vpop.f32.mrb[55].mxu1  ;;  %v14380_v59 = vld [vmem:[%s19900_s1 + $0x68] sm:$0xff]  }
 0x319   :  { %20042 = vst [vmem:[#allocation62_spill] sm:$0xff] %v16283_v40  ;;  %20043 = vst [vmem:[#allocation63_spill] sm:$0xff] %v16285_v26  ;;  %v14384_v40 = vld [vmem:[%s19899_s2 + $0x26c] ss:$16 sps:$4 sm:$0xff]   ;;  %v13993_v23 = vld [vmem:[%s19902_s4 + $0x258] ss:$12 sps:$4 sm:$0xff]  }
 0x31a   :  { %11610 = vmatmul.mubr.msk.bf16.gmra.mrb[104].mxu0 %vm337_vm0, %v14379_v31  ;;  %11624 = vmatmul.mubr.msk.bf16.gmra.mrb[104].mxu1 %vm337_vm0, %v14379_v31  ;;  %v14381_v31 = vld [vmem:[%s19900_s1 + $0x8] sm:$0xff]  }
 0x31b   :  { %4635 = vmatprep.mubr.bf16.mxu1 %v19999_v0  ;;  %4462 = vmatprep.mubr.bf16.mxu0 %v19999_v0 }
 0x322   :  { %11611 = vmatmul.mubr.msk.bf16.gmra.mrb[108].mxu0 %vm337_vm0, %v14380_v59  ;;  %11625 = vmatmul.mubr.msk.bf16.gmra.mrb[108].mxu1 %vm337_vm0, %v14380_v59  ;;  %v14383_v59 = vld [vmem:[%s19899_s2 + $0x240] ss:$16 sps:$4 sm:$0xff]  }
 0x323   :  { %4678 = vmatprep.mubr.bf16.mxu0 %v19999_v0  ;;  %4851 = vmatprep.mubr.bf16.mxu1 %v19999_v0 }
 0x32a   :  { %11626 = vmatmul.mubr.msk.bf16.vlgmr.msra.gmra.mrb[56].mxu0 %vm337_vm0, %v14381_v31  ;;  %11640 = vmatmul.mubr.msk.bf16.vlgmr.msra.gmra.mrb[56].mxu1 %vm337_vm0, %v14381_v31  ;;  %v14385_v31 = vld [vmem:[%s19899_s2 + $0x264] ss:$16 sps:$4 sm:$0xff]  }
 0x32b   :  { %5278 = vmatpush1.bf16.msra.mxu1 %v14382_v7  ;;  %5105 = vmatpush1.bf16.msra.mxu0 %v14383_v59  ;;  %v14386_v7 = vld [vmem:[%s19899_s2 + $0x268] ss:$16 sps:$4 sm:$0xff]   ;;  %v14387_v59 = vld [vmem:[%s19899_s2 + $0x260] ss:$16 sps:$4 sm:$0xff]  }
 0x32c   :  { %4688 = vmatprep.mubr.bf16.mxu0 %v19999_v0  ;;  %4861 = vmatprep.mubr.bf16.mxu1 %v19999_v0 }
 0x32d   :  { %5279 = vmatprep.subr.bf16.mxu1 %v14384_v40  ;;  %5106 = vmatprep.subr.bf16.mxu0 %v14385_v31  ;;  %v14389_v40 = vld [vmem:[%s19899_s2 + $0x284] ss:$16 sps:$4 sm:$0xff]  }
 0x32e   :  { %v14390_v31 = vld [vmem:[%s19900_s1 + $0x10] sm:$0xff]  }
 0x32f   :  { %5280 = vmatpush1.bf16.msra.mxu1 %v14386_v7  ;;  %5107 = vmatpush1.bf16.msra.mxu0 %v14387_v59  ;;  %v14392_v7 = vld [vmem:[%s19899_s2 + $0x280] ss:$16 sps:$4 sm:$0xff]   ;;  %v14393_v59 = vld [vmem:[%s19899_s2 + $0x2ac] ss:$16 sps:$4 sm:$0xff]  }
 0x330   :  { %5281 = vmatprep.subr.bf16.mxu1 %v14388_v13  ;;  %5108 = vmatprep.subr.bf16.mxu0 %v14389_v40  ;;  %v14391_v13 = vld [vmem:[%s19899_s2 + $0x288] ss:$16 sps:$4 sm:$0xff]   ;;  %v14394_v40 = vld [vmem:[%s19899_s2 + $0x2a4] ss:$16 sps:$4 sm:$0xff]  }
 0x332   :  { %11627 = vmatmul.mubr.msk.bf16.gmra.mrb[60].mxu0 %vm337_vm0, %v14390_v31  ;;  %11641 = vmatmul.mubr.msk.bf16.gmra.mrb[60].mxu1 %vm337_vm0, %v14390_v31  ;;  %v14395_v31 = vld [vmem:[%s19899_s2 + $0x2a8] ss:$16 sps:$4 sm:$0xff]  }
 0x333   :  { %4698 = vmatprep.mubr.bf16.mxu0 %v19999_v0  ;;  %4871 = vmatprep.mubr.bf16.mxu1 %v19999_v0 }
 0x334   :  { %5282 = vmatpush1.bf16.msra.mxu1 %v14391_v13  ;;  %5109 = vmatpush1.bf16.msra.mxu0 %v14392_v7  ;;  %v14396_v13 = vld [vmem:[%s19899_s2 + $0x2a0] ss:$16 sps:$4 sm:$0xff]   ;;  %v14397_v7 = vld [vmem:[%s19899_s2 + $0x2cc] ss:$16 sps:$4 sm:$0xff]  }
 0x335   :  { %5283 = vmatprep.subr.bf16.mxu1 %v14393_v59  ;;  %5110 = vmatprep.subr.bf16.mxu0 %v14394_v40  ;;  %v14398_v59 = vld [vmem:[%s19899_s2 + $0x2c4] ss:$16 sps:$4 sm:$0xff]   ;;  %v14399_v40 = vld [vmem:[%s19900_s1 + $0x18] sm:$0xff]  }
 0x338   :  { %5284 = vmatpush1.bf16.msra.mxu1 %v14395_v31  ;;  %5111 = vmatpush1.bf16.msra.mxu0 %v14396_v13  ;;  %v14400_v31 = vld [vmem:[%s19899_s2 + $0x2c8] ss:$16 sps:$4 sm:$0xff]   ;;  %v14401_v13 = vld [vmem:[%s19899_s2 + $0x2c0] ss:$16 sps:$4 sm:$0xff]  }
 0x339   :  { %5285 = vmatprep.subr.bf16.mxu1 %v14397_v7  ;;  %5112 = vmatprep.subr.bf16.mxu0 %v14398_v59  ;;  %v14402_v7 = vld [vmem:[%s19899_s2 + $0x2ec] ss:$16 sps:$4 sm:$0xff]   ;;  %v14403_v59 = vld [vmem:[%s19899_s2 + $0x2e4] ss:$16 sps:$4 sm:$0xff]  }
 0x33a   :  { %11628 = vmatmul.mubr.msk.bf16.gmra.mrb[64].mxu0 %vm337_vm0, %v14399_v40  ;;  %11642 = vmatmul.mubr.msk.bf16.gmra.mrb[64].mxu1 %vm337_vm0, %v14399_v40  ;;  %v14404_v40 = vld [vmem:[%s19899_s2 + $0x2e8] ss:$16 sps:$4 sm:$0xff]  }
 0x33b   :  { %4708 = vmatprep.mubr.bf16.mxu0 %v19999_v0  ;;  %4881 = vmatprep.mubr.bf16.mxu1 %v19999_v0 }
 0x33c   :  { %5286 = vmatpush1.bf16.msra.mxu1 %v14400_v31  ;;  %5113 = vmatpush1.bf16.msra.mxu0 %v14401_v13  ;;  %v14405_v31 = vld [vmem:[%s19899_s2 + $0x2e0] ss:$16 sps:$4 sm:$0xff]   ;;  %v14406_v13 = vld [vmem:[%s19899_s2 + $0x30c] ss:$16 sps:$4 sm:$0xff]  }
 0x33d   :  { %5287 = vmatprep.subr.bf16.mxu1 %v14402_v7  ;;  %5114 = vmatprep.subr.bf16.mxu0 %v14403_v59  ;;  %v14407_v7 = vld [vmem:[%s19899_s2 + $0x304] ss:$16 sps:$4 sm:$0xff]   ;;  %v14421_v59 = vld [vmem:[%s19899_s2 + $0x360] ss:$16 sps:$4 sm:$0xff]  }
 0x340   :  { %5288 = vmatpush1.bf16.msra.mxu1 %v14404_v40  ;;  %5115 = vmatpush1.bf16.msra.mxu0 %v14405_v31  ;;  %v14422_v40 = vld [vmem:[%s19899_s2 + $0x38c] ss:$16 sps:$4 sm:$0xff]   ;;  %v14423_v31 = vld [vmem:[%s19899_s2 + $0x384] ss:$16 sps:$4 sm:$0xff]  }
 0x341   :  { %5875 = vmatprep.subr.bf16.mxu1 %v14406_v13  ;;  %5702 = vmatprep.subr.bf16.mxu0 %v14407_v7  ;;  %v14424_v13 = vld [vmem:[%s19899_s2 + $0x388] ss:$16 sps:$4 sm:$0xff]   ;;  %v14425_v7 = vld [vmem:[%s19899_s2 + $0x380] ss:$16 sps:$4 sm:$0xff]  }
 0x342   :  { %11629 = vmatmul.mubr.msk.bf16.gmra.mrb[68].mxu0 %vm337_vm0, %v15402_v41  ;;  %11643 = vmatmul.mubr.msk.bf16.gmra.mrb[68].mxu1 %vm337_vm0, %v15402_v41  ;;  %v14408_v41 = vld [vmem:[%s19899_s2 + $0x308] ss:$16 sps:$4 sm:$0xff]  }
 0x343   :  { %4718 = vmatprep.mubr.bf16.mxu0 %v19999_v0  ;;  %4891 = vmatprep.mubr.bf16.mxu1 %v19999_v0 }
 0x34a   :  { %11630 = vmatmul.mubr.msk.bf16.gmra.mrb[72].mxu0 %vm337_vm0, %v15419_v44  ;;  %11644 = vmatmul.mubr.msk.bf16.gmra.mrb[72].mxu1 %vm337_vm0, %v15419_v44  ;;  %v14409_v44 = vld [vmem:[%s19899_s2 + $0x300] ss:$16 sps:$4 sm:$0xff]  }
 0x34b   :  { %4728 = vmatprep.mubr.bf16.mxu0 %v19999_v0  ;;  %4901 = vmatprep.mubr.bf16.mxu1 %v19999_v0 }
 0x352   :  { %11631 = vmatmul.mubr.msk.bf16.gmra.mrb[76].mxu0 %vm337_vm0, %v15430_v45  ;;  %11645 = vmatmul.mubr.msk.bf16.gmra.mrb[76].mxu1 %vm337_vm0, %v15430_v45  ;;  %v14410_v45 = vld [vmem:[%s19899_s2 + $0x32c] ss:$16 sps:$4 sm:$0xff]  }
 0x353   :  { %4738 = vmatprep.mubr.bf16.mxu0 %v19999_v0  ;;  %4911 = vmatprep.mubr.bf16.mxu1 %v19999_v0 }
 0x35a   :  { %11632 = vmatmul.mubr.msk.bf16.gmra.mrb[80].mxu0 %vm337_vm0, %v15441_v46  ;;  %11646 = vmatmul.mubr.msk.bf16.gmra.mrb[80].mxu1 %vm337_vm0, %v15441_v46  ;;  %v14411_v46 = vld [vmem:[%s19899_s2 + $0x324] ss:$16 sps:$4 sm:$0xff]  }
 0x35b   :  { %4748 = vmatprep.mubr.bf16.mxu0 %v19999_v0  ;;  %4921 = vmatprep.mubr.bf16.mxu1 %v19999_v0 }
 0x362   :  { %11633 = vmatmul.mubr.msk.bf16.gmra.mrb[84].mxu0 %vm337_vm0, %v15452_v47  ;;  %11647 = vmatmul.mubr.msk.bf16.gmra.mrb[84].mxu1 %vm337_vm0, %v15452_v47  ;;  %v14412_v47 = vld [vmem:[%s19899_s2 + $0x328] ss:$16 sps:$4 sm:$0xff]  }
 0x363   :  { %4758 = vmatprep.mubr.bf16.mxu0 %v19999_v0  ;;  %4931 = vmatprep.mubr.bf16.mxu1 %v19999_v0 }
 0x36a   :  { %11634 = vmatmul.mubr.msk.bf16.gmra.mrb[88].mxu0 %vm337_vm0, %v15463_v48  ;;  %11648 = vmatmul.mubr.msk.bf16.gmra.mrb[88].mxu1 %vm337_vm0, %v15463_v48  ;;  %v14413_v48 = vld [vmem:[%s19899_s2 + $0x320] ss:$16 sps:$4 sm:$0xff]  }
 0x36b   :  { %4768 = vmatprep.mubr.bf16.mxu0 %v19999_v0  ;;  %4941 = vmatprep.mubr.bf16.mxu1 %v19999_v0 }
 0x372   :  { %11635 = vmatmul.mubr.msk.bf16.gmra.mrb[92].mxu0 %vm337_vm0, %v15474_v50  ;;  %11649 = vmatmul.mubr.msk.bf16.gmra.mrb[92].mxu1 %vm337_vm0, %v15474_v50  ;;  %v14414_v50 = vld [vmem:[%s19899_s2 + $0x34c] ss:$16 sps:$4 sm:$0xff]  }
 0x373   :  { %4778 = vmatprep.mubr.bf16.mxu0 %v19999_v0  ;;  %4951 = vmatprep.mubr.bf16.mxu1 %v19999_v0 }
 0x37a   :  { %11636 = vmatmul.mubr.msk.bf16.gmra.mrb[96].mxu0 %vm337_vm0, %v15485_v51  ;;  %11650 = vmatmul.mubr.msk.bf16.gmra.mrb[96].mxu1 %vm337_vm0, %v15485_v51  ;;  %v14415_v51 = vld [vmem:[%s19899_s2 + $0x344] ss:$16 sps:$4 sm:$0xff]  }
 0x37b   :  { %4788 = vmatprep.mubr.bf16.mxu0 %v19999_v0  ;;  %4961 = vmatprep.mubr.bf16.mxu1 %v19999_v0 }
 0x382   :  { %11637 = vmatmul.mubr.msk.bf16.gmra.mrb[100].mxu0 %vm337_vm0, %v15496_v52  ;;  %11651 = vmatmul.mubr.msk.bf16.gmra.mrb[100].mxu1 %vm337_vm0, %v15496_v52  ;;  %v14416_v52 = vld [vmem:[%s19899_s2 + $0x348] ss:$16 sps:$4 sm:$0xff]  }
 0x383   :  { %4798 = vmatprep.mubr.bf16.mxu0 %v19999_v0  ;;  %4971 = vmatprep.mubr.bf16.mxu1 %v19999_v0 }
 0x38a   :  { %11638 = vmatmul.mubr.msk.bf16.gmra.mrb[104].mxu0 %vm337_vm0, %v15507_v53  ;;  %11652 = vmatmul.mubr.msk.bf16.gmra.mrb[104].mxu1 %vm337_vm0, %v15507_v53  ;;  %v14417_v53 = vld [vmem:[%s19899_s2 + $0x340] ss:$16 sps:$4 sm:$0xff]  }
 0x38b   :  { %4808 = vmatprep.mubr.bf16.mxu0 %v19999_v0  ;;  %4981 = vmatprep.mubr.bf16.mxu1 %v19999_v0 }
 0x392   :  { %11639 = vmatmul.mubr.msk.bf16.gmra.mrb[108].mxu0 %vm337_vm0, %v15518_v54  ;;  %11653 = vmatmul.mubr.msk.bf16.gmra.mrb[108].mxu1 %vm337_vm0, %v15518_v54  ;;  %v14418_v54 = vld [vmem:[%s19899_s2 + $0x36c] ss:$16 sps:$4 sm:$0xff]  }
 0x393   :  { %5136 = vmatprep.mubr.bf16.mxu0 %v19999_v0  ;;  %5309 = vmatprep.mubr.bf16.mxu1 %v19999_v0 }
 0x39a   :  { %11654 = vmatmul.mubr.msk.bf16.vlgmr.msra.gmra.mrb[56].mxu0 %vm337_vm0, %v15529_v55  ;;  %11668 = vmatmul.mubr.msk.bf16.vlgmr.msra.gmra.mrb[56].mxu1 %vm337_vm0, %v15529_v55  ;;  %v14419_v55 = vld [vmem:[%s19899_s2 + $0x364] ss:$16 sps:$4 sm:$0xff]  }
 0x39b   :  { %5876 = vmatpush1.bf16.msra.mxu1 %v14408_v41  ;;  %5703 = vmatpush1.bf16.msra.mxu0 %v14409_v44  ;;  %v14426_v41 = vld [vmem:[%s19899_s2 + $0x3ac] ss:$16 sps:$4 sm:$0xff]   ;;  %v14428_v44 = vld [vmem:[%s19899_s2 + $0x3a8] ss:$16 sps:$4 sm:$0xff]  }
 0x39c   :  { %5146 = vmatprep.mubr.bf16.mxu0 %v19999_v0  ;;  %5319 = vmatprep.mubr.bf16.mxu1 %v19999_v0 }
 0x39d   :  { %5877 = vmatprep.subr.bf16.mxu1 %v14410_v45  ;;  %5704 = vmatprep.subr.bf16.mxu0 %v14411_v46  ;;  %v14429_v45 = vld [vmem:[%s19899_s2 + $0x3a0] ss:$16 sps:$4 sm:$0xff]   ;;  %v13946_v46 = vld [vmem:[%s19900_s1 + $0x68] sm:$0xff]  }
 0x39f   :  { %5878 = vmatpush1.bf16.msra.mxu1 %v14412_v47  ;;  %5705 = vmatpush1.bf16.msra.mxu0 %v14413_v48  ;;  %v13947_v47 = vld [vmem:[%s19900_s1 + $0x70] sm:$0xff]   ;;  %v13948_v48 = vld [vmem:[%s19900_s1 + $0x78] sm:$0xff]  }
 0x3a0   :  { %5879 = vmatprep.subr.bf16.mxu1 %v14414_v50  ;;  %5706 = vmatprep.subr.bf16.mxu0 %v14415_v51  ;;  %v13949_v50 = vld [vmem:[%s19902_s4 + $0x150] ss:$12 sps:$4 sm:$0xff]   ;;  %v13951_v51 = vld [vmem:[%s19902_s4 + $0x154] ss:$12 sps:$4 sm:$0xff]  }
 0x3a2   :  { %11655 = vmatmul.mubr.msk.bf16.gmra.mrb[60].mxu0 %vm337_vm0, %v15552_v61  ;;  %11669 = vmatmul.mubr.msk.bf16.gmra.mrb[60].mxu1 %vm337_vm0, %v15552_v61  ;;  %v14420_v61 = vld [vmem:[%s19899_s2 + $0x368] ss:$16 sps:$4 sm:$0xff]  }
 0x3a3   :  { %5156 = vmatprep.mubr.bf16.mxu0 %v19999_v0  ;;  %5329 = vmatprep.mubr.bf16.mxu1 %v19999_v0 }
 0x3a4   :  { %5880 = vmatpush1.bf16.msra.mxu1 %v14416_v52  ;;  %5707 = vmatpush1.bf16.msra.mxu0 %v14417_v53  ;;  %v13952_v52 = vld [vmem:[%s19902_s4 + $0x158] ss:$12 sps:$4 sm:$0xff]   ;;  %v13953_v53 = vld [vmem:[%s19902_s4 + $0x168] ss:$12 sps:$4 sm:$0xff]  }
 0x3a5   :  { %5881 = vmatprep.subr.bf16.mxu1 %v14418_v54  ;;  %5708 = vmatprep.subr.bf16.mxu0 %v14419_v55  ;;  %v13955_v54 = vld [vmem:[%s19902_s4 + $0x16c] ss:$12 sps:$4 sm:$0xff]   ;;  %v13956_v55 = vld [vmem:[%s19902_s4 + $0x170] ss:$12 sps:$4 sm:$0xff]  }
 0x3a8   :  { %5882 = vmatpush1.bf16.msra.mxu1 %v14420_v61  ;;  %5709 = vmatpush1.bf16.msra.mxu0 %v14421_v59  ;;  %v13957_v61 = vld [vmem:[%s19902_s4 + $0x180] ss:$12 sps:$4 sm:$0xff]   ;;  %v13959_v59 = vld [vmem:[%s19902_s4 + $0x184] ss:$12 sps:$4 sm:$0xff]  }
 0x3a9   :  { %5883 = vmatprep.subr.bf16.mxu1 %v14422_v40  ;;  %5710 = vmatprep.subr.bf16.mxu0 %v14423_v31  ;;  %v13960_v40 = vld [vmem:[%s19902_s4 + $0x188] ss:$12 sps:$4 sm:$0xff]   ;;  %v16737_v31 = vpop.permute.xlu0 %3619 }
 0x3aa   :  { %11656 = vmatmul.mubr.msk.bf16.gmra.mrb[64].mxu0 %vm337_vm0, %v15587_v18  ;;  %11670 = vmatmul.mubr.msk.bf16.gmra.mrb[64].mxu1 %vm337_vm0, %v15587_v18  ;;  %v14427_v18 = vld [vmem:[%s19899_s2 + $0x3a4] ss:$16 sps:$4 sm:$0xff]  }
 0x3ab   :  { %5166 = vmatprep.mubr.bf16.mxu0 %v19999_v0  ;;  %5339 = vmatprep.mubr.bf16.mxu1 %v19999_v0 }
 0x3ac   :  { %5884 = vmatpush1.bf16.msra.mxu1 %v14424_v13  ;;  %5711 = vmatpush1.bf16.msra.mxu0 %v14425_v7  ;;  %v16739_v13 = vpop.permute.xlu1 %3621  ;;  %v13961_v7 = vld [vmem:[%s19902_s4 + $0x198] ss:$12 sps:$4 sm:$0xff]  }
 0x3ad   :  { %5885 = vmatprep.subr.bf16.mxu1 %v14426_v41  ;;  %5712 = vmatprep.subr.bf16.mxu0 %v14427_v18  ;;  %v13963_v41 = vld [vmem:[%s19902_s4 + $0x19c] ss:$12 sps:$4 sm:$0xff]   ;;  %v13964_v18 = vld [vmem:[%s19902_s4 + $0x1a0] ss:$12 sps:$4 sm:$0xff]  }
 0x3b0   :  { %5886 = vmatpush1.bf16.msra.mxu1 %v14428_v44  ;;  %5713 = vmatpush1.bf16.msra.mxu0 %v14429_v45  ;;  %v16750_v44 = vpop.permute.xlu0 %3617  ;;  %v16752_v45 = vpop.permute.xlu1 %3627 }
 0x3b1   :  { %7223 = vmatprep.subr.bf16.mxu1 %v19999_v0  ;;  %7140 = vmatprep.subr.bf16.mxu0 %v13951_v51 }
 0x3b2   :  { %11657 = vmatmul.mubr.msk.bf16.gmra.mrb[68].mxu0 %vm337_vm0, %v15622_v27  ;;  %11671 = vmatmul.mubr.msk.bf16.gmra.mrb[68].mxu1 %vm337_vm0, %v15622_v27  ;;  %v13935_v27 = vld [vmem:[%s19900_s1 + $0x10] sm:$0xff]  }
 0x3b3   :  { %5176 = vmatprep.mubr.bf16.mxu0 %v19999_v0  ;;  %5349 = vmatprep.mubr.bf16.mxu1 %v19999_v0 }
 0x3ba   :  { %11658 = vmatmul.mubr.msk.bf16.gmra.mrb[72].mxu0 %vm337_vm0, %v15645_v32  ;;  %11672 = vmatmul.mubr.msk.bf16.gmra.mrb[72].mxu1 %vm337_vm0, %v15645_v32  ;;  %v13936_v32 = vld [vmem:[%s19900_s1 + $0x18] sm:$0xff]  }
 0x3bb   :  { %5186 = vmatprep.mubr.bf16.mxu0 %v19999_v0  ;;  %5359 = vmatprep.mubr.bf16.mxu1 %v19999_v0 }
 0x3c2   :  { %11659 = vmatmul.mubr.msk.bf16.gmra.mrb[76].mxu0 %vm337_vm0, %v15656_v33  ;;  %11673 = vmatmul.mubr.msk.bf16.gmra.mrb[76].mxu1 %vm337_vm0, %v15656_v33  ;;  %v13937_v33 = vld [vmem:[%s19900_s1 + $0x20] sm:$0xff]  }
 0x3c3   :  { %5196 = vmatprep.mubr.bf16.mxu0 %v19999_v0  ;;  %5369 = vmatprep.mubr.bf16.mxu1 %v19999_v0 }
 0x3ca   :  { %11660 = vmatmul.mubr.msk.bf16.gmra.mrb[80].mxu0 %vm337_vm0, %v15667_v34  ;;  %11674 = vmatmul.mubr.msk.bf16.gmra.mrb[80].mxu1 %vm337_vm0, %v15667_v34  ;;  %v13938_v34 = vld [vmem:[%s19900_s1 + $0x28] sm:$0xff]  }
 0x3cb   :  { %5206 = vmatprep.mubr.bf16.mxu0 %v19999_v0  ;;  %5379 = vmatprep.mubr.bf16.mxu1 %v19999_v0 }
 0x3d2   :  { %11661 = vmatmul.mubr.msk.bf16.gmra.mrb[84].mxu0 %vm337_vm0, %v15678_v35  ;;  %11675 = vmatmul.mubr.msk.bf16.gmra.mrb[84].mxu1 %vm337_vm0, %v15678_v35  ;;  %v13939_v35 = vld [vmem:[%s19900_s1 + $0x30] sm:$0xff]  }
 0x3d3   :  { %5216 = vmatprep.mubr.bf16.mxu0 %v19999_v0  ;;  %5389 = vmatprep.mubr.bf16.mxu1 %v19999_v0 }
 0x3da   :  { %11662 = vmatmul.mubr.msk.bf16.gmra.mrb[88].mxu0 %vm337_vm0, %v15689_v36  ;;  %11676 = vmatmul.mubr.msk.bf16.gmra.mrb[88].mxu1 %vm337_vm0, %v15689_v36  ;;  %v13940_v36 = vld [vmem:[%s19900_s1 + $0x38] sm:$0xff]  }
 0x3db   :  { %5226 = vmatprep.mubr.bf16.mxu0 %v19999_v0  ;;  %5399 = vmatprep.mubr.bf16.mxu1 %v19999_v0 }
 0x3e2   :  { %11663 = vmatmul.mubr.msk.bf16.gmra.mrb[92].mxu0 %vm337_vm0, %v15700_v37  ;;  %11677 = vmatmul.mubr.msk.bf16.gmra.mrb[92].mxu1 %vm337_vm0, %v15700_v37  ;;  %v13941_v37 = vld [vmem:[%s19900_s1 + $0x40] sm:$0xff]  }
 0x3e3   :  { %5236 = vmatprep.mubr.bf16.mxu0 %v19999_v0  ;;  %5409 = vmatprep.mubr.bf16.mxu1 %v19999_v0 }
 0x3ea   :  { %11664 = vmatmul.mubr.msk.bf16.gmra.mrb[96].mxu0 %vm337_vm0, %v15711_v38  ;;  %11678 = vmatmul.mubr.msk.bf16.gmra.mrb[96].mxu1 %vm337_vm0, %v15711_v38  ;;  %v13942_v38 = vld [vmem:[%s19900_s1 + $0x48] sm:$0xff]  }
 0x3eb   :  { %5246 = vmatprep.mubr.bf16.mxu0 %v19999_v0  ;;  %5419 = vmatprep.mubr.bf16.mxu1 %v19999_v0 }
 0x3f2   :  { %11665 = vmatmul.mubr.msk.bf16.gmra.mrb[100].mxu0 %vm337_vm0, %v15722_v39  ;;  %11679 = vmatmul.mubr.msk.bf16.gmra.mrb[100].mxu1 %vm337_vm0, %v15722_v39  ;;  %v13943_v39 = vld [vmem:[%s19900_s1 + $0x50] sm:$0xff]  }
 0x3f3   :  { %5256 = vmatprep.mubr.bf16.mxu0 %v19999_v0  ;;  %5429 = vmatprep.mubr.bf16.mxu1 %v19999_v0 }
 0x3fa   :  { %11666 = vmatmul.mubr.msk.bf16.gmra.mrb[104].mxu0 %vm337_vm0, %v15733_v42  ;;  %11680 = vmatmul.mubr.msk.bf16.gmra.mrb[104].mxu1 %vm337_vm0, %v15733_v42  ;;  %v13944_v42 = vld [vmem:[%s19900_s1 + $0x58] sm:$0xff]  }
 0x3fb   :  { %5266 = vmatprep.mubr.bf16.mxu0 %v19999_v0  ;;  %5439 = vmatprep.mubr.bf16.mxu1 %v19999_v0 }
 0x402   :  { %11667 = vmatmul.mubr.msk.bf16.gmra.mrb[108].mxu0 %vm337_vm0, %v15744_v43  ;;  %11681 = vmatmul.mubr.msk.bf16.gmra.mrb[108].mxu1 %vm337_vm0, %v15744_v43  ;;  %v13945_v43 = vld [vmem:[%s19900_s1 + $0x60] sm:$0xff]  }
 0x403   :  { %5734 = vmatprep.mubr.bf16.mxu0 %v19999_v0  ;;  %5907 = vmatprep.mubr.bf16.mxu1 %v19999_v0 }
 0x40a   :  { %11696 = vmatmul.mubr.msk.bf16.vlgmr.msra.gmra.mrb[56].mxu0 %vm337_vm0, %v13935_v27  ;;  %11710 = vmatmul.mubr.msk.bf16.vlgmr.msra.gmra.mrb[56].mxu1 %vm337_vm0, %v13935_v27  ;;  %v13965_v27 = vld [vmem:[%s19902_s4 + $0x1b0] ss:$12 sps:$4 sm:$0xff]  }
 0x40b   :  { %5744 = vmatprep.mubr.bf16.mxu0 %v19999_v0  ;;  %5917 = vmatprep.mubr.bf16.mxu1 %v19999_v0 }
 0x40c   :  { %7141 = vmatpush1.bf16.msra.mxu0 %v13949_v50  ;;  %7224 = vmatpush1.bf16.msra.mxu1 %v13952_v52  ;;  %v13976_v50 = vld [vmem:[%s19902_s4 + $0x1e8] ss:$12 sps:$4 sm:$0xff]  }
 0x40d   :  { %7225 = vmatprep.subr.bf16.mxu1 %v19999_v0  ;;  %7142 = vmatprep.subr.bf16.mxu0 %v13955_v54  ;;  %v13979_v54 = vld [vmem:[%s19902_s4 + $0x1fc] ss:$12 sps:$4 sm:$0xff]  }
 0x410   :  { %7143 = vmatpush1.bf16.msra.mxu0 %v13953_v53  ;;  %7226 = vmatpush1.bf16.msra.mxu1 %v13956_v55  ;;  %v13977_v53 = vld [vmem:[%s19902_s4 + $0x1f8] ss:$12 sps:$4 sm:$0xff]   ;;  %v13980_v55 = vld [vmem:[%s19902_s4 + $0x200] ss:$12 sps:$4 sm:$0xff]  }
 0x411   :  { %7227 = vmatprep.subr.bf16.mxu1 %v19999_v0  ;;  %7144 = vmatprep.subr.bf16.mxu0 %v13959_v59 }
 0x412   :  { %11697 = vmatmul.mubr.msk.bf16.gmra.mrb[60].mxu0 %vm337_vm0, %v13936_v32  ;;  %11711 = vmatmul.mubr.msk.bf16.gmra.mrb[60].mxu1 %vm337_vm0, %v13936_v32  ;;  %v13967_v32 = vld [vmem:[%s19902_s4 + $0x1b4] ss:$12 sps:$4 sm:$0xff]  }
 0x413   :  { %5754 = vmatprep.mubr.bf16.mxu0 %v19999_v0  ;;  %5927 = vmatprep.mubr.bf16.mxu1 %v19999_v0 }
 0x414   :  { %7145 = vmatpush1.bf16.msra.mxu0 %v13957_v61  ;;  %7228 = vmatpush1.bf16.msra.mxu1 %v13960_v40 }
 0x415   :  { %7229 = vmatprep.subr.bf16.mxu1 %v19999_v0  ;;  %7146 = vmatprep.subr.bf16.mxu0 %v13963_v41  ;;  %v13983_v41 = vld [vmem:[%s19902_s4 + $0x214] ss:$12 sps:$4 sm:$0xff]  }
 0x418   :  { %7147 = vmatpush1.bf16.msra.mxu0 %v13961_v7  ;;  %7230 = vmatpush1.bf16.msra.mxu1 %v13964_v18  ;;  %v13981_v18 = vld [vmem:[%s19902_s4 + $0x210] ss:$12 sps:$4 sm:$0xff]  }
 0x419   :  { %7231 = vmatprep.subr.bf16.mxu1 %v19999_v0  ;;  %7148 = vmatprep.subr.bf16.mxu0 %v13967_v32 }
 0x41a   :  { %11698 = vmatmul.mubr.msk.bf16.gmra.mrb[64].mxu0 %vm337_vm0, %v13937_v33  ;;  %11712 = vmatmul.mubr.msk.bf16.gmra.mrb[64].mxu1 %vm337_vm0, %v13937_v33  ;;  %v13968_v33 = vld [vmem:[%s19902_s4 + $0x1b8] ss:$12 sps:$4 sm:$0xff]  }
 0x41b   :  { %5764 = vmatprep.mubr.bf16.mxu0 %v19999_v0  ;;  %5937 = vmatprep.mubr.bf16.mxu1 %v19999_v0 }
 0x41c   :  { %7149 = vmatpush1.bf16.msra.mxu0 %v13965_v27  ;;  %7232 = vmatpush1.bf16.msra.mxu1 %v13968_v33  ;;  %v13984_v27 = vld [vmem:[%s19902_s4 + $0x218] ss:$12 sps:$4 sm:$0xff]  }
 0x41d   :  { %7233 = vmatprep.subr.bf16.mxu1 %v19999_v0 }
 0x422   :  { %11699 = vmatmul.mubr.msk.bf16.gmra.mrb[68].mxu0 %vm337_vm0, %v13938_v34  ;;  %11713 = vmatmul.mubr.msk.bf16.gmra.mrb[68].mxu1 %vm337_vm0, %v13938_v34  ;;  %v16764_v34 = vpop.permute.xlu0 %3625 }
 0x423   :  { %5774 = vmatprep.mubr.bf16.mxu0 %v19999_v0  ;;  %5947 = vmatprep.mubr.bf16.mxu1 %v19999_v0 }
 0x42a   :  { %11700 = vmatmul.mubr.msk.bf16.gmra.mrb[72].mxu0 %vm337_vm0, %v13939_v35  ;;  %11714 = vmatmul.mubr.msk.bf16.gmra.mrb[72].mxu1 %vm337_vm0, %v13939_v35  ;;  %v16766_v35 = vpop.permute.xlu1 %3623 }
 0x42b   :  { %5784 = vmatprep.mubr.bf16.mxu0 %v19999_v0  ;;  %5957 = vmatprep.mubr.bf16.mxu1 %v19999_v0 }
 0x432   :  { %11701 = vmatmul.mubr.msk.bf16.gmra.mrb[76].mxu0 %vm337_vm0, %v13940_v36  ;;  %11715 = vmatmul.mubr.msk.bf16.gmra.mrb[76].mxu1 %vm337_vm0, %v13940_v36  ;;  %v13969_v36 = vld [vmem:[%s19902_s4 + $0x1c8] ss:$12 sps:$4 sm:$0xff]  }
 0x433   :  { %5794 = vmatprep.mubr.bf16.mxu0 %v19999_v0  ;;  %5967 = vmatprep.mubr.bf16.mxu1 %v19999_v0 }
 0x43a   :  { %11702 = vmatmul.mubr.msk.bf16.gmra.mrb[80].mxu0 %vm337_vm0, %v13941_v37  ;;  %11716 = vmatmul.mubr.msk.bf16.gmra.mrb[80].mxu1 %vm337_vm0, %v13941_v37  ;;  %v13971_v37 = vld [vmem:[%s19902_s4 + $0x1cc] ss:$12 sps:$4 sm:$0xff]  }
 0x43b   :  { %5804 = vmatprep.mubr.bf16.mxu0 %v19999_v0  ;;  %5977 = vmatprep.mubr.bf16.mxu1 %v19999_v0 }
 0x43c   :  { %7150 = vmatprep.subr.bf16.mxu0 %v13971_v37 }
 0x43d   :  { %7151 = vmatpush1.bf16.msra.mxu0 %v13969_v36  ;;  %v13987_v36 = vld [vmem:[%s19902_s4 + $0x22c] ss:$12 sps:$4 sm:$0xff]  }
 0x442   :  { %11703 = vmatmul.mubr.msk.bf16.gmra.mrb[84].mxu0 %vm337_vm0, %v13942_v38  ;;  %11717 = vmatmul.mubr.msk.bf16.gmra.mrb[84].mxu1 %vm337_vm0, %v13942_v38  ;;  %v16775_v38 = vpop.permute.xlu0 %3631 }
 0x443   :  { %5814 = vmatprep.mubr.bf16.mxu0 %v19999_v0  ;;  %5987 = vmatprep.mubr.bf16.mxu1 %v19999_v0 }
 0x44a   :  { %11704 = vmatmul.mubr.msk.bf16.gmra.mrb[88].mxu0 %vm337_vm0, %v13943_v39  ;;  %11718 = vmatmul.mubr.msk.bf16.gmra.mrb[88].mxu1 %vm337_vm0, %v13943_v39  ;;  %v16777_v39 = vpop.permute.xlu1 %3637 }
 0x44b   :  { %5824 = vmatprep.mubr.bf16.mxu0 %v19999_v0  ;;  %5997 = vmatprep.mubr.bf16.mxu1 %v19999_v0 }
 0x452   :  { %11705 = vmatmul.mubr.msk.bf16.gmra.mrb[92].mxu0 %vm337_vm0, %v13944_v42  ;;  %11719 = vmatmul.mubr.msk.bf16.gmra.mrb[92].mxu1 %vm337_vm0, %v13944_v42  ;;  %v13972_v42 = vld [vmem:[%s19902_s4 + $0x1d0] ss:$12 sps:$4 sm:$0xff]  }
 0x453   :  { %5834 = vmatprep.mubr.bf16.mxu0 %v19999_v0  ;;  %6007 = vmatprep.mubr.bf16.mxu1 %v19999_v0 }
 0x454   :  { %7234 = vmatpush1.bf16.msra.mxu1 %v13972_v42 }
 0x455   :  { %7235 = vmatprep.subr.bf16.mxu1 %v19999_v0 }
 0x458   :  { %7236 = vmatpush1.bf16.msra.mxu1 %v13976_v50 }
 0x459   :  { %7237 = vmatprep.subr.bf16.mxu1 %v19999_v0 }
 0x45a   :  { %11706 = vmatmul.mubr.msk.bf16.gmra.mrb[96].mxu0 %vm337_vm0, %v13945_v43  ;;  %11720 = vmatmul.mubr.msk.bf16.gmra.mrb[96].mxu1 %vm337_vm0, %v13945_v43  ;;  %v16783_v43 = vpop.permute.xlu0 %3633 }
 0x45b   :  { %5844 = vmatprep.mubr.bf16.mxu0 %v19999_v0  ;;  %6017 = vmatprep.mubr.bf16.mxu1 %v19999_v0 }
 0x45c   :  { %7238 = vmatpush1.bf16.msra.mxu1 %v13980_v55 }
 0x45d   :  { %7239 = vmatprep.subr.bf16.mxu1 %v19999_v0 }
 0x45e   :  { %v16796_v51 = vpop.permute.xlu0 %3629 }
 0x460   :  { %7240 = vmatpush1.bf16.msra.mxu1 %v13984_v27  ;;  %v13991_v27 = vld [vmem:[%s19902_s4 + $0x244] ss:$12 sps:$4 sm:$0xff]  }
 0x461   :  { %7241 = vmatprep.subr.bf16.mxu1 %v19999_v0 }
 0x462   :  { %11707 = vmatmul.mubr.msk.bf16.gmra.mrb[100].mxu0 %vm337_vm0, %v13946_v46  ;;  %11721 = vmatmul.mubr.msk.bf16.gmra.mrb[100].mxu1 %vm337_vm0, %v13946_v46  ;;  %v16785_v46 = vpop.permute.xlu1 %3639  ;;  %v16810_v61 = vpop.permute.xlu0 %3643 }
 0x463   :  { %5854 = vmatprep.mubr.bf16.mxu0 %v19999_v0  ;;  %6027 = vmatprep.mubr.bf16.mxu1 %v19999_v0  ;;  %20044 = vst [vmem:[#allocation64_spill] sm:$0xff] %v16810_v61 }
 0x466   :  { %v16798_v52 = vpop.permute.xlu1 %3635  ;;  %v16815_v40 = vpop.permute.xlu0 %3641 }
 0x467   :  { %20046 = vst [vmem:[#allocation66_spill] sm:$0xff] %v16815_v40 }
 0x46a   :  { %11708 = vmatmul.mubr.msk.bf16.gmra.mrb[104].mxu0 %vm337_vm0, %v13947_v47  ;;  %11722 = vmatmul.mubr.msk.bf16.gmra.mrb[104].mxu1 %vm337_vm0, %v13947_v47  ;;  %v13973_v47 = vld [vmem:[%s19902_s4 + $0x1e0] ss:$12 sps:$4 sm:$0xff]   ;;  %v16812_v59 = vpop.permute.xlu1 %3645  ;;  %v16828_v32 = vpop.permute.xlu0 %3649 }
 0x46b   :  { %5864 = vmatprep.mubr.bf16.mxu0 %v19999_v0  ;;  %6037 = vmatprep.mubr.bf16.mxu1 %v19999_v0  ;;  %20045 = vst [vmem:[#allocation65_spill] sm:$0xff] %v16812_v59  ;;  %20048 = vst [vmem:[#allocation68_spill] sm:$0xff] %v16828_v32 }
 0x46e   :  { %v16817_v7 = vpop.permute.xlu1 %3651 }
 0x46f   :  { %20047 = vst [vmem:[#allocation67_spill] sm:$0xff] %v16817_v7 }
 0x472   :  { %11709 = vmatmul.mubr.msk.bf16.gmra.mrb[108].mxu0 %vm337_vm0, %v13948_v48  ;;  %11723 = vmatmul.mubr.msk.bf16.gmra.mrb[108].mxu1 %vm337_vm0, %v13948_v48  ;;  %v13975_v48 = vld [vmem:[%s19902_s4 + $0x1e4] ss:$12 sps:$4 sm:$0xff]   ;;  %v16830_v33 = vpop.permute.xlu1 %3647 }
 0x473   :  { %7152 = vmatprep.subr.bf16.mxu0 %v13975_v48  ;;  %20049 = vst [vmem:[#allocation69_spill] sm:$0xff] %v16830_v33  ;;  %v13988_v48 = vld [vmem:[%s19902_s4 + $0x230] ss:$12 sps:$4 sm:$0xff]  }
 0x474   :  { %7153 = vmatpush1.bf16.msra.mxu0 %v13973_v47  ;;  %v13985_v47 = vld [vmem:[%s19902_s4 + $0x228] ss:$12 sps:$4 sm:$0xff]   ;;  %7242 = vmatpush1.bf16.msra.mxu1 %v13988_v48 }
 0x475   :  { %7154 = vmatprep.subr.bf16.mxu0 %v13979_v54  ;;  %7243 = vmatprep.subr.bf16.mxu1 %v19999_v0 }
 0x476   :  { %v16867_v48 = vpop.permute.xlu1 %3657 }
 0x477   :  { %20051 = vst [vmem:[#allocation71_spill] sm:$0xff] %v16867_v48 }
 0x478   :  { %7155 = vmatpush1.bf16.msra.mxu0 %v13977_v53 }
 0x479   :  { %7156 = vmatprep.subr.bf16.mxu0 %v13983_v41 }
 0x47c   :  { %7157 = vmatpush1.bf16.msra.mxu0 %v13981_v18 }
 0x47d   :  { %7158 = vmatprep.subr.bf16.mxu0 %v13987_v36  ;;  %v13992_v36 = vld [vmem:[%s19902_s4 + $0x248] ss:$12 sps:$4 sm:$0xff]  }
 0x47e   :  { %7244 = vmatpush1.bf16.msra.mxu1 %v13992_v36 }
 0x47f   :  { %7245 = vmatprep.subr.bf16.mxu1 %v19999_v0 }
 0x480   :  { %7159 = vmatpush1.bf16.msra.mxu0 %v13985_v47  ;;  %v16865_v47 = vpop.permute.xlu0 %3655 }
 0x481   :  { %7160 = vmatprep.subr.bf16.mxu0 %v13991_v27  ;;  %20050 = vst [vmem:[#allocation70_spill] sm:$0xff] %v16865_v47 }
 0x4dd   :  { %v16836_v37 = vpop.f32.mrb[56].mxu0  ;;  %v5909_v42 = vpop.f32.mrb[56].mxu1 }
 0x4de   :  { %v5911_v50 = vpop.f32.mrb[57].mxu1  ;;  %6246 = vrot.lane.b32.xlu0 %v5909_v42, %s14597_s30  ;;  %v16845_v53 = vpop.f32.mrb[57].mxu0  ;;  %v13989_v42 = vld [vmem:[%s19902_s4 + $0x240] ss:$12 sps:$4 sm:$0xff]  }
 0x4df   :  { %v5913_v54 = vpop.f32.mrb[58].mxu1  ;;  %6248 = vrot.lane.b32.xlu1 %v5911_v50, %s14597_s30  ;;  %v16848_v55 = vpop.f32.mrb[58].mxu0  ;;  %7161 = vmatpush1.bf16.msra.mxu0 %v13989_v42  ;;  %v13995_v50 = vld [vmem:[%s19902_s4 + $0x25c] ss:$12 sps:$4 sm:$0xff]  }
 0x4e0   :  { %v16850_v41 = vpop.f32.mrb[59].mxu0  ;;  %v5915_v18 = vpop.f32.mrb[59].mxu1  ;;  %7162 = vmatprep.subr.bf16.mxu0 %v13995_v50  ;;  %v14000_v50 = vld [vmem:[%s19902_s4 + $0x278] ss:$12 sps:$4 sm:$0xff]  }
 0x4e2   :  { %6244 = vrot.lane.b32.xlu0 %v16845_v53, %s14597_s30 }
 0x4e3   :  { %6254 = vrot.lane.b32.xlu1 %v5915_v18, %s14597_s30  ;;  %v13996_v18 = vld [vmem:[%s19902_s4 + $0x260] ss:$12 sps:$4 sm:$0xff]   ;;  %7163 = vmatpush1.bf16.msra.mxu0 %v13993_v23  ;;  %v16902_v23 = vpop.permute.xlu0 %3653 }
 0x4e4   :  { %7246 = vmatpush1.bf16.msra.mxu1 %v13996_v18  ;;  %7164 = vmatprep.subr.bf16.mxu0 %v13999_v57  ;;  %20053 = vst [vmem:[#allocation73_spill] sm:$0xff] %v16902_v23  ;;  %v16904_v18 = vpop.permute.xlu1 %3663  ;;  %v14004_v57 = vld [vmem:[%s19902_s4 + $0x290] ss:$12 sps:$4 sm:$0xff]  }
 0x4e5   :  { %v16872_v26 = vpop.f32.mrb[60].mxu0  ;;  %v5919_v24 = vpop.f32.mrb[60].mxu1  ;;  %7247 = vmatprep.subr.bf16.mxu1 %v19999_v0  ;;  %20054 = vst [vmem:[#allocation74_spill] sm:$0xff] %v16904_v18 }
 0x4e6   :  { %v5921_v27 = vpop.f32.mrb[61].mxu1  ;;  %6252 = vrot.lane.b32.xlu0 %v5913_v54, %s14597_s30  ;;  %v16882_v42 = vpop.f32.mrb[61].mxu0  ;;  %v13997_v54 = vld [vmem:[%s19902_s4 + $0x270] ss:$12 sps:$4 sm:$0xff]  }
 0x4e7   :  { %v5923_v36 = vpop.f32.mrb[62].mxu1  ;;  %6250 = vrot.lane.b32.xlu1 %v16850_v41, %s14597_s30  ;;  %v16886_v19 = vpop.f32.mrb[62].mxu0  ;;  %7165 = vmatpush1.bf16.msra.mxu0 %v13997_v54 }
 0x4e8   :  { %20052 = vst [vmem:[#allocation72_spill] sm:$0xff] %v16886_v19  ;;  %v16888_v11 = vpop.f32.mrb[63].mxu0  ;;  %v5925_v1 = vpop.f32.mrb[63].mxu1  ;;  %7248 = vmatpush1.bf16.msra.mxu1 %v14000_v50  ;;  %7166 = vmatprep.subr.bf16.mxu0 %v14003_v22 }
 0x4e9   :  { %7249 = vmatprep.subr.bf16.mxu1 %v19999_v0  ;;  %v16931_v33 = vpop.permute.xlu0 %3661  ;;  %v16933_v22 = vpop.permute.xlu1 %3659 }
 0x4ea   :  { %6258 = vrot.lane.b32.xlu0 %v5919_v24, %s14597_s30  ;;  %v14001_v24 = vld [vmem:[%s19902_s4 + $0x288] ss:$12 sps:$4 sm:$0xff]   ;;  %20059 = vst [vmem:[#allocation79_spill] sm:$0xff] %v16931_v33  ;;  %20060 = vst [vmem:[#allocation80_spill] sm:$0xff] %v16933_v22 }
 0x4eb   :  { %6260 = vrot.lane.b32.xlu1 %v5921_v27, %s14597_s30  ;;  %7167 = vmatpush1.bf16.msra.mxu0 %v14001_v24 }
 0x4ec   :  { %7250 = vmatpush1.bf16.msra.mxu1 %v14004_v57 }
 0x4ed   :  { %v16909_v47 = vpop.f32.mrb[64].mxu0  ;;  %v5929_v48 = vpop.f32.mrb[64].mxu1  ;;  %7618 = vmatprep.subr.bf16.mxu1 %v19999_v0 }
 0x4ee   :  { %20055 = vst [vmem:[#allocation75_spill] sm:$0xff] %v16909_v47  ;;  %v5931_v27 = vpop.f32.mrb[65].mxu1  ;;  %6256 = vrot.lane.b32.xlu0 %v16882_v42, %s14597_s30  ;;  %v16920_v54 = vpop.f32.mrb[65].mxu0 }
 0x4ef   :  { %20056 = vst [vmem:[#allocation76_spill] sm:$0xff] %v16920_v54  ;;  %v5933_v50 = vpop.f32.mrb[66].mxu1  ;;  %6266 = vrot.lane.b32.xlu1 %v5925_v1, %s14597_s30  ;;  %v16923_v18 = vpop.f32.mrb[66].mxu0 }
 0x4f0   :  { %20057 = vst [vmem:[#allocation77_spill] sm:$0xff] %v16923_v18  ;;  %v16925_v23 = vpop.f32.mrb[67].mxu0  ;;  %v5935_v16 = vpop.f32.mrb[67].mxu1 }
 0x4f1   :  { %20058 = vst [vmem:[#allocation78_spill] sm:$0xff] %v16925_v23  ;;  %v16948_v22 = vpop.permute.xlu0 %3667  ;;  %v16950_v33 = vpop.permute.xlu1 %3669 }
 0x4f2   :  { %6264 = vrot.lane.b32.xlu0 %v5923_v36, %s14597_s30  ;;  %20065 = vst [vmem:[#allocation85_spill] sm:$0xff] %v16948_v22  ;;  %20066 = vst [vmem:[#allocation86_spill] sm:$0xff] %v16950_v33 }
 0x4f3   :  { %6262 = vrot.lane.b32.xlu1 %v16888_v11, %s14597_s30 }
 0x4f5   :  { %v16935_v32 = vpop.f32.mrb[68].mxu0  ;;  %v5939_v1 = vpop.f32.mrb[68].mxu1 }
 0x4f6   :  { %20061 = vst [vmem:[#allocation81_spill] sm:$0xff] %v16935_v32  ;;  %v5941_v18 = vpop.f32.mrb[69].mxu1  ;;  %6270 = vrot.lane.b32.xlu0 %v5929_v48, %s14597_s30  ;;  %v16938_v24 = vpop.f32.mrb[69].mxu0 }
 0x4f7   :  { %20062 = vst [vmem:[#allocation82_spill] sm:$0xff] %v16938_v24  ;;  %v5943_v57 = vpop.f32.mrb[70].mxu1  ;;  %6272 = vrot.lane.b32.xlu1 %v5931_v27, %s14597_s30  ;;  %v16941_v0 = vpop.f32.mrb[70].mxu0 }
 0x4f8   :  { %20063 = vst [vmem:[#allocation83_spill] sm:$0xff] %v16941_v0  ;;  %v16943_v36 = vpop.f32.mrb[71].mxu0  ;;  %v5945_v7 = vpop.f32.mrb[71].mxu1 }
 0x4f9   :  { %20064 = vst [vmem:[#allocation84_spill] sm:$0xff] %v16943_v36  ;;  %v16974_v33 = vpop.permute.xlu1 %3675 }
 0x4fa   :  { %6268 = vrot.lane.b32.xlu0 %v16920_v54, %s14597_s30  ;;  %20070 = vst [vmem:[#allocation90_spill] sm:$0xff] %v16974_v33 }
 0x4fb   :  { %6278 = vrot.lane.b32.xlu1 %v5935_v16, %s14597_s30 }
 0x4fd   :  { %v16952_v48 = vpop.f32.mrb[72].mxu0  ;;  %v5949_v32 = vpop.f32.mrb[72].mxu1 }
 0x4fe   :  { %20067 = vst [vmem:[#allocation87_spill] sm:$0xff] %v16952_v48  ;;  %v5951_v47 = vpop.f32.mrb[73].mxu1  ;;  %6276 = vrot.lane.b32.xlu0 %v5933_v50, %s14597_s30  ;;  %v16955_v27 = vpop.f32.mrb[73].mxu0  ;;  %v14007_v50 = vld [vmem:[%s19902_s4 + $0x4] ss:$12 sps:$4 sm:$0xff]  }
 0x4ff   :  { %v16957_v0 = vpop.f32.mrb[74].mxu1  ;;  %6274 = vrot.lane.b32.xlu1 %v16925_v23, %s14597_s30  ;;  %v16961_v62 = vpop.f32.mrb[74].mxu0  ;;  %7535 = vmatprep.subr.bf16.mxu0 %v14007_v50 }
 0x500   :  { %20068 = vst [vmem:[#allocation88_spill] sm:$0xff] %v16961_v62  ;;  %v16963_v16 = vpop.f32.mrb[75].mxu0  ;;  %v16965_v22 = vpop.f32.mrb[75].mxu1 }
 0x501   :  { %v16972_v48 = vpop.permute.xlu0 %3673  ;;  %v16992_v33 = vpop.permute.xlu1 %3681 }
 0x502   :  { %6282 = vrot.lane.b32.xlu0 %v5939_v1, %s14597_s30  ;;  %20069 = vst [vmem:[#allocation89_spill] sm:$0xff] %v16972_v48  ;;  %20076 = vst [vmem:[#allocation96_spill] sm:$0xff] %v16992_v33 }
 0x503   :  { %6284 = vrot.lane.b32.xlu1 %v5941_v18, %s14597_s30 }
 0x505   :  { %v16976_v49 = vpop.f32.mrb[76].mxu0  ;;  %v5959_v23 = vpop.f32.mrb[76].mxu1 }
 0x506   :  { %20071 = vst [vmem:[#allocation91_spill] sm:$0xff] %v16976_v49  ;;  %v5961_v62 = vpop.f32.mrb[77].mxu1  ;;  %6280 = vrot.lane.b32.xlu0 %v16938_v24, %s14597_s30  ;;  %v16980_v54 = vpop.f32.mrb[77].mxu0 }
 0x507   :  { %20072 = vst [vmem:[#allocation92_spill] sm:$0xff] %v16980_v54  ;;  %v5963_v1 = vpop.f32.mrb[78].mxu1  ;;  %6290 = vrot.lane.b32.xlu1 %v5945_v7, %s14597_s30  ;;  %v16983_v18 = vpop.f32.mrb[78].mxu0 }
 0x508   :  { %20073 = vst [vmem:[#allocation93_spill] sm:$0xff] %v16983_v18  ;;  %v16985_v40 = vpop.f32.mrb[79].mxu0  ;;  %v5965_v48 = vpop.f32.mrb[79].mxu1 }
 0x509   :  { %20074 = vst [vmem:[#allocation94_spill] sm:$0xff] %v16985_v40  ;;  %v16990_v50 = vpop.permute.xlu0 %3679  ;;  %v17016_v33 = vpop.permute.xlu1 %3687 }
 0x50a   :  { %6288 = vrot.lane.b32.xlu0 %v5943_v57, %s14597_s30  ;;  %20075 = vst [vmem:[#allocation95_spill] sm:$0xff] %v16990_v50  ;;  %20080 = vst [vmem:[#allocation100_spill] sm:$0xff] %v17016_v33 }
 0x50b   :  { %6286 = vrot.lane.b32.xlu1 %v16943_v36, %s14597_s30 }
 0x50d   :  { %v16994_v49 = vpop.f32.mrb[80].mxu0  ;;  %v16996_v24 = vpop.f32.mrb[80].mxu1 }
 0x50e   :  { %20077 = vst [vmem:[#allocation97_spill] sm:$0xff] %v16994_v49  ;;  %v16998_v2 = vpop.f32.mrb[81].mxu1  ;;  %6294 = vrot.lane.b32.xlu0 %v5949_v32, %s14597_s30  ;;  %v17001_v7 = vpop.f32.mrb[81].mxu0 }
 0x50f   :  { %v17003_v18 = vpop.f32.mrb[82].mxu1  ;;  %6296 = vrot.lane.b32.xlu1 %v5951_v47, %s14597_s30  ;;  %v17006_v57 = vpop.f32.mrb[82].mxu0 }
 0x510   :  { %20078 = vst [vmem:[#allocation98_spill] sm:$0xff] %v17006_v57  ;;  %v17008_v36 = vpop.f32.mrb[83].mxu0  ;;  %v17010_v50 = vpop.f32.mrb[83].mxu1 }
 0x511   :  { %v17014_v49 = vpop.permute.xlu0 %3677  ;;  %v17034_v33 = vpop.permute.xlu1 %3683 }
 0x512   :  { %6306 = vrot.lane.b32.xlu0 %v5959_v23, %s14597_s30  ;;  %20079 = vst [vmem:[#allocation99_spill] sm:$0xff] %v17014_v49  ;;  %20086 = vst [vmem:[#allocation106_spill] sm:$0xff] %v17034_v33 }
 0x513   :  { %6308 = vrot.lane.b32.xlu1 %v5961_v62, %s14597_s30 }
 0x515   :  { %v17018_v32 = vpop.f32.mrb[84].mxu0  ;;  %v5979_v17 = vpop.f32.mrb[84].mxu1 }
 0x516   :  { %20081 = vst [vmem:[#allocation101_spill] sm:$0xff] %v17018_v32  ;;  %v5981_v61 = vpop.f32.mrb[85].mxu1  ;;  %6304 = vrot.lane.b32.xlu0 %v16980_v54, %s14597_s30  ;;  %v17022_v47 = vpop.f32.mrb[85].mxu0 }
 0x517   :  { %20082 = vst [vmem:[#allocation102_spill] sm:$0xff] %v17022_v47  ;;  %v5983_v57 = vpop.f32.mrb[86].mxu1  ;;  %6314 = vrot.lane.b32.xlu1 %v5965_v48, %s14597_s30  ;;  %v17025_v59 = vpop.f32.mrb[86].mxu0 }
 0x518   :  { %20083 = vst [vmem:[#allocation103_spill] sm:$0xff] %v17025_v59  ;;  %v17027_v23 = vpop.f32.mrb[87].mxu0  ;;  %v5985_v62 = vpop.f32.mrb[87].mxu1 }
 0x519   :  { %20084 = vst [vmem:[#allocation104_spill] sm:$0xff] %v17027_v23  ;;  %v17032_v32 = vpop.permute.xlu0 %3685 }
 0x51a   :  { %6312 = vrot.lane.b32.xlu0 %v5963_v1, %s14597_s30  ;;  %20085 = vst [vmem:[#allocation105_spill] sm:$0xff] %v17032_v32 }
 0x51b   :  { %6310 = vrot.lane.b32.xlu1 %v16985_v40, %s14597_s30 }
 0x51d   :  { %v17036_v54 = vpop.f32.mrb[88].mxu0  ;;  %v17038_v49 = vpop.f32.mrb[88].mxu1 }
 0x51e   :  { %20087 = vst [vmem:[#allocation107_spill] sm:$0xff] %v17036_v54  ;;  %v17040_v19 = vpop.f32.mrb[89].mxu1  ;;  %6330 = vrot.lane.b32.xlu0 %v5979_v17, %s14597_s30  ;;  %v17043_v48 = vpop.f32.mrb[89].mxu0 }
 0x51f   :  { %20088 = vst [vmem:[#allocation108_spill] sm:$0xff] %v17043_v48  ;;  %v17045_v59 = vpop.f32.mrb[90].mxu1  ;;  %6332 = vrot.lane.b32.xlu1 %v5981_v61, %s14597_s30  ;;  %v17048_v1 = vpop.f32.mrb[90].mxu0 }
 0x520   :  { %20089 = vst [vmem:[#allocation109_spill] sm:$0xff] %v17048_v1  ;;  %v17050_v40 = vpop.f32.mrb[91].mxu0  ;;  %v17052_v32 = vpop.f32.mrb[91].mxu1 }
 0x521   :  { %20090 = vst [vmem:[#allocation110_spill] sm:$0xff] %v17050_v40  ;;  %20091 = vst [vmem:[#allocation111_spill] sm:$0xff] %v17052_v32  ;;  %v17057_v54 = vpop.permute.xlu0 %3703  ;;  %v17059_v17 = vpop.permute.xlu1 %3705 }
 0x522   :  { %6328 = vrot.lane.b32.xlu0 %v17022_v47, %s14597_s30  ;;  %20092 = vst [vmem:[#allocation112_spill] sm:$0xff] %v17057_v54  ;;  %20093 = vst [vmem:[#allocation113_spill] sm:$0xff] %v17059_v17 }
 0x523   :  { %6338 = vrot.lane.b32.xlu1 %v5985_v62, %s14597_s30 }
 0x525   :  { %v17061_v33 = vpop.f32.mrb[92].mxu0  ;;  %v5999_v48 = vpop.f32.mrb[92].mxu1 }
 0x526   :  { %20094 = vst [vmem:[#allocation114_spill] sm:$0xff] %v17061_v33  ;;  %v6001_v14 = vpop.f32.mrb[93].mxu1  ;;  %6336 = vrot.lane.b32.xlu0 %v5983_v57, %s14597_s30  ;;  %v17064_v61 = vpop.f32.mrb[93].mxu0 }
 0x527   :  { %20095 = vst [vmem:[#allocation115_spill] sm:$0xff] %v17064_v61  ;;  %v6003_v1 = vpop.f32.mrb[94].mxu1  ;;  %6334 = vrot.lane.b32.xlu1 %v17027_v23, %s14597_s30  ;;  %v17068_v40 = vpop.f32.mrb[94].mxu0 }
 0x528   :  { %20096 = vst [vmem:[#allocation116_spill] sm:$0xff] %v17068_v40  ;;  %v17070_v47 = vpop.f32.mrb[95].mxu0  ;;  %v6005_v62 = vpop.f32.mrb[95].mxu1 }
 0x529   :  { %20097 = vst [vmem:[#allocation117_spill] sm:$0xff] %v17070_v47  ;;  %v17074_v33 = vpop.permute.xlu0 %3701  ;;  %v17076_v54 = vpop.permute.xlu1 %3711 }
 0x52a   :  { %6354 = vrot.lane.b32.xlu0 %v5999_v48, %s14597_s30  ;;  %20098 = vst [vmem:[#allocation118_spill] sm:$0xff] %v17074_v33  ;;  %20099 = vst [vmem:[#allocation119_spill] sm:$0xff] %v17076_v54 }
 0x52b   :  { %6356 = vrot.lane.b32.xlu1 %v6001_v14, %s14597_s30 }
 0x52d   :  { %v17078_v57 = vpop.f32.mrb[96].mxu0  ;;  %v17080_v17 = vpop.f32.mrb[96].mxu1 }
 0x52e   :  { %20100 = vst [vmem:[#allocation120_spill] sm:$0xff] %v17078_v57  ;;  %v17082_v32 = vpop.f32.mrb[97].mxu1  ;;  %6352 = vrot.lane.b32.xlu0 %v17064_v61, %s14597_s30  ;;  %v17086_v40 = vpop.f32.mrb[97].mxu0 }
 0x52f   :  { %20101 = vst [vmem:[#allocation121_spill] sm:$0xff] %v17086_v40  ;;  %v17088_v23 = vpop.f32.mrb[98].mxu1  ;;  %6302 = vrot.lane.b32.xlu1 %v16965_v22, %s14597_s30  ;;  %v17092_v14 = vpop.f32.mrb[98].mxu0 }
 0x530   :  { %20102 = vst [vmem:[#allocation122_spill] sm:$0xff] %v17088_v23  ;;  %20103 = vst [vmem:[#allocation123_spill] sm:$0xff] %v17092_v14  ;;  %v17094_v48 = vpop.f32.mrb[99].mxu0  ;;  %v17096_v54 = vpop.f32.mrb[99].mxu1 }
 0x531   :  { %v17100_v57 = vpop.permute.xlu0 %3709  ;;  %v17102_v61 = vpop.permute.xlu1 %3707 }
 0x532   :  { %6360 = vrot.lane.b32.xlu0 %v6003_v1, %s14597_s30  ;;  %20104 = vst [vmem:[#allocation124_spill] sm:$0xff] %v17102_v61 }
 0x533   :  { %6362 = vrot.lane.b32.xlu1 %v6005_v62, %s14597_s30 }
 0x535   :  { %v17104_v33 = vpop.f32.mrb[100].mxu0  ;;  %v17106_v40 = vpop.f32.mrb[100].mxu1 }
 0x536   :  { %20105 = vst [vmem:[#allocation125_spill] sm:$0xff] %v17104_v33  ;;  %v17108_v23 = vpop.f32.mrb[101].mxu1  ;;  %6300 = vrot.lane.b32.xlu0 %v16957_v0, %s14597_s30  ;;  %v17112_v22 = vpop.f32.mrb[101].mxu0 }
 0x537   :  { %20106 = vst [vmem:[#allocation126_spill] sm:$0xff] %v17112_v22  ;;  %v17114_v14 = vpop.f32.mrb[102].mxu1  ;;  %6358 = vrot.lane.b32.xlu1 %v17070_v47, %s14597_s30  ;;  %v17118_v1 = vpop.f32.mrb[102].mxu0 }
 0x538   :  { %20107 = vst [vmem:[#allocation127_spill] sm:$0xff] %v17114_v14  ;;  %20108 = vst [vmem:[#allocation128_spill] sm:$0xff] %v17118_v1  ;;  %v17120_v62 = vpop.f32.mrb[103].mxu0  ;;  %v17122_v61 = vpop.f32.mrb[103].mxu1 }
 0x539   :  { %20109 = vst [vmem:[#allocation129_spill] sm:$0xff] %v17120_v62  ;;  %20110 = vst [vmem:[#allocation130_spill] sm:$0xff] %v17122_v61  ;;  %v17128_v0 = vpop.permute.xlu0 %3727  ;;  %v17130_v33 = vpop.permute.xlu1 %3729 }
 0x53a   :  { %3665 = vrot.lane.b32.xlu0 %v16034_v21, %s14597_s30  ;;  %20111 = vst [vmem:[#allocation131_spill] sm:$0xff] %v17128_v0 }
 0x53b   :  { %3671 = vrot.lane.b32.xlu1 %v16050_v28, %s14597_s30 }
 0x53d   :  { %v17132_v22 = vpop.f32.mrb[104].mxu0  ;;  %v17134_v14 = vpop.f32.mrb[104].mxu1 }
 0x53e   :  { %20112 = vst [vmem:[#allocation132_spill] sm:$0xff] %v17132_v22  ;;  %20113 = vst [vmem:[#allocation133_spill] sm:$0xff] %v17134_v14  ;;  %v17136_v47 = vpop.f32.mrb[105].mxu1  ;;  %6292 = vrot.lane.b32.xlu0 %v16955_v27, %s14597_s30  ;;  %v17140_v1 = vpop.f32.mrb[105].mxu0 }
 0x53f   :  { %20114 = vst [vmem:[#allocation134_spill] sm:$0xff] %v17136_v47  ;;  %20115 = vst [vmem:[#allocation135_spill] sm:$0xff] %v17140_v1  ;;  %v17142_v62 = vpop.f32.mrb[106].mxu1  ;;  %6298 = vrot.lane.b32.xlu1 %v16963_v16, %s14597_s30  ;;  %v17146_v28 = vpop.f32.mrb[106].mxu0 }
 0x540   :  { %20116 = vst [vmem:[#allocation136_spill] sm:$0xff] %v17142_v62  ;;  %20117 = vst [vmem:[#allocation137_spill] sm:$0xff] %v17146_v28  ;;  %v17148_v61 = vpop.f32.mrb[107].mxu0  ;;  %v17150_v0 = vpop.f32.mrb[107].mxu1 }
 0x541   :  { %20118 = vst [vmem:[#allocation138_spill] sm:$0xff] %v17148_v61  ;;  %20119 = vst [vmem:[#allocation139_spill] sm:$0xff] %v17150_v0  ;;  %v17156_v22 = vpop.permute.xlu0 %3725  ;;  %v17158_v1 = vpop.permute.xlu1 %3735 }
 0x542   :  { %3691 = vrot.lane.b32.xlu0 %v16100_v3, %s14597_s30 }
 0x543   :  { %3693 = vrot.lane.b32.xlu1 %v16102_v5, %s14597_s30 }
 0x545   :  { %v17160_v62 = vpop.f32.mrb[108].mxu0  ;;  %v17162_v47 = vpop.f32.mrb[108].mxu1 }
 0x546   :  { %20120 = vst [vmem:[#allocation140_spill] sm:$0xff] %v17160_v62  ;;  %v17164_v14 = vpop.f32.mrb[109].mxu1  ;;  %3697 = vrot.lane.b32.xlu0 %v16107_v60, %s14597_s30  ;;  %v17168_v28 = vpop.f32.mrb[109].mxu0  ;;  %v6638_v62 = vlaneseq }
 0x547   :  { %20121 = vst [vmem:[#allocation141_spill] sm:$0xff] %v17164_v14  ;;  %20122 = vst [vmem:[#allocation142_spill] sm:$0xff] %v17168_v28  ;;  %v17170_v61 = vpop.f32.mrb[110].mxu1  ;;  %3699 = vrot.lane.b32.xlu1 %v16114_v63, %s14597_s30  ;;  %v17174_v3 = vpop.f32.mrb[110].mxu0  ;;  %v3787_v63 = vsel %vm3785_vm1, %v16737_v31, %v16739_v13 }
 0x548   :  { %20123 = vst [vmem:[#allocation143_spill] sm:$0xff] %v17170_v61  ;;  %20124 = vst [vmem:[#allocation144_spill] sm:$0xff] %v17174_v3  ;;  %v17176_v5 = vpop.f32.mrb[111].mxu0  ;;  %v17178_v0 = vpop.f32.mrb[111].mxu1  ;;  %v17195_v3 = vshrl.u32 %v6638_v62, 7 }
 0x549   :  { %20125 = vst [vmem:[#allocation145_spill] sm:$0xff] %v17176_v5  ;;  %20126 = vst [vmem:[#allocation146_spill] sm:$0xff] %v17178_v0  ;;  %v17184_v60 = vpop.permute.xlu0 %3733  ;;  %v17186_v28 = vpop.permute.xlu1 %3731  ;;  %v3899_v0 = vmax.f32 %v15905_v6, %v3787_v63 }
 0x54a   :  { %6318 = vrot.lane.b32.xlu0 %v16996_v24, %s14597_s30  ;;  %20127 = vst [vmem:[#allocation147_spill] sm:$0xff] %v17195_v3  ;;  %v19966_v13 = vsub.s32 1, %v17195_v3  ;;  %v19965_v14 = vsub.s32 0, %v17195_v3 }
 0x54b   :  { %6320 = vrot.lane.b32.xlu1 %v16998_v2, %s14597_s30 }
 0x54e   :  { %6324 = vrot.lane.b32.xlu0 %v17003_v18, %s14597_s30  ;;  %v3786_v18 = vsel %vm3785_vm1, %v16750_v44, %v16737_v31 }
 0x54f   :  { %6326 = vrot.lane.b32.xlu1 %v17010_v50, %s14597_s30  ;;  %v3898_v31 = vmax.f32 %v15902_v4, %v3786_v18 }
 0x550   :  { %v6247_v24 = vpop.permute.xlu0 %6246 }
 0x551   :  { %v6249_v2 = vpop.permute.xlu1 %6248 }
 0x552   :  { %v6413_v5 = vsel %vm3785_vm1, %v6247_v24, %v6249_v2  ;;  %3689 = vrot.lane.b32.xlu0 %v16104_v20, %s14597_s30  ;;  %v6636_v2 = vld [vmem:[%s19903_s3] sm:$0x3] }
 0x553   :  { %v6525_v50 = vmax.f32 %v16845_v53, %v6413_v5  ;;  %3695 = vrot.lane.b32.xlu1 %v16112_v58, %s14597_s30  ;;  %v3789_v53 = vsel %vm3785_vm1, %v16764_v34, %v16752_v45  ;;  %v17227_v5 = vrot.slane %v6636_v2, %v19966_v13 }
 0x554   :  { %v6245_v62 = vpop.permute.xlu0 %6244 }
 0x555   :  { %v6581_v61 = vmax.f32 %v3899_v0, %v6525_v50  ;;  %v6412_v6 = vsel %vm3785_vm1, %v6245_v62, %v6247_v24  ;;  %v6255_v63 = vpop.permute.xlu1 %6254  ;;  %v3788_v0 = vsel %vm3785_vm1, %v16766_v35, %v16764_v34  ;;  %v17231_v24 = vrot.slane %v6636_v2, %v19965_v14 }
 0x556   :  { %v6524_v44 = vmax.f32 %v16836_v37, %v6412_v6  ;;  %6316 = vrot.lane.b32.xlu0 %v17001_v7, %s14597_s30  ;;  %v3901_v50 = vmax.f32 %v15910_v10, %v3789_v53  ;;  %v3900_v34 = vmax.f32 %v15908_v8, %v3788_v0  ;;  %v3791_v2 = vsel %vm3785_vm1, %v16775_v38, %v16783_v43 }
 0x557   :  { %6322 = vrot.lane.b32.xlu1 %v17008_v36, %s14597_s30  ;;  %v6649_v10 = vadd.f32 %v17227_v5, %v6581_v61  ;;  %v3790_v43 = vsel %vm3785_vm1, %v16796_v51, %v16775_v38 }
 0x558   :  { %v6580_v4 = vmax.f32 %v3898_v31, %v6524_v44  ;;  %v6253_v37 = vpop.permute.xlu0 %6252 }
 0x559   :  { %v6415_v18 = vsel %vm3785_vm1, %v6253_v37, %v6255_v63  ;;  %v6251_v45 = vpop.permute.xlu1 %6250  ;;  %v6705_v0 = vmax.f32 %v6649_v10, 0.0  ;;  %v20128_v10 = vld [vmem:[#allocation2_spill] sm:$0xff] }
 0x55a   :  { %v6527_v62 = vmax.f32 %v16850_v41, %v6415_v18  ;;  %v6414_v6 = vsel %vm3785_vm1, %v6251_v45, %v6253_v37  ;;  %3715 = vrot.lane.b32.xlu0 %v16147_v25, %s14597_s30  ;;  %v6648_v31 = vadd.f32 %v17231_v24, %v6580_v4 }
 0x55b   :  { %v6526_v35 = vmax.f32 %v16848_v55, %v6414_v6  ;;  %3717 = vrot.lane.b32.xlu1 %v16149_v29, %s14597_s30  ;;  %v3903_v29 = vmax.f32 %v15923_v30, %v3791_v2 }
 0x55c   :  { %v6583_v63 = vmax.f32 %v3901_v50, %v6527_v62  ;;  %v6259_v41 = vpop.permute.xlu0 %6258  ;;  %v6704_v18 = vmax.f32 %v6648_v31, 0.0  ;;  %v3902_v62 = vmax.f32 %v15921_v12, %v3790_v43  ;;  %v3792_v12 = vsel %vm3785_vm1, %v16798_v52, %v16777_v39  ;;  %v20131_v52 = vld [vmem:[#allocation65_spill] sm:$0xff]  ;;  %v20132_v31 = vld [vmem:[#allocation64_spill] sm:$0xff] }
 0x55d   :  { %v6582_v44 = vmax.f32 %v3900_v34, %v6526_v35  ;;  %v6261_v53 = vpop.permute.xlu1 %6260 }
 0x55e   :  { %v6651_v25 = vadd.f32 %v17227_v5, %v6583_v63  ;;  %v6417_v8 = vsel %vm3785_vm1, %v6259_v41, %v6261_v53  ;;  %3721 = vrot.lane.b32.xlu0 %v16154_v9, %s14597_s30  ;;  %v20129_v63 = vld [vmem:[#allocation72_spill] sm:$0xff] }
 0x55f   :  { %v6650_v55 = vadd.f32 %v17231_v24, %v6582_v44  ;;  %v6529_v61 = vmax.f32 %v16882_v42, %v6417_v8  ;;  %3723 = vrot.lane.b32.xlu1 %v16162_v15, %s14597_s30  ;;  %v3793_v15 = vsel %vm3785_vm1, %v16777_v39, %v16785_v46  ;;  %v20130_v39 = vld [vmem:[#allocation111_spill] sm:$0xff]  ;;  %v3795_v44 = vsel %vm3785_vm1, %v20132_v31, %v20131_v52 }
 0x560   :  { %v6707_v4 = vmax.f32 %v6651_v25, 0.0  ;;  %v6257_v37 = vpop.permute.xlu0 %6256  ;;  %v3905_v35 = vmax.f32 %v15930_v56, %v3793_v15 }
 0x561   :  { %v6706_v45 = vmax.f32 %v6650_v55, 0.0  ;;  %v6585_v50 = vmax.f32 %v3903_v29, %v6529_v61  ;;  %v6416_v9 = vsel %vm3785_vm1, %v6257_v37, %v6259_v41  ;;  %v6267_v30 = vpop.permute.xlu1 %6266  ;;  %v20133_v55 = vld [vmem:[#allocation25_spill] sm:$0xff]  ;;  %v20134_v61 = vld [vmem:[#allocation4_spill] sm:$0xff] }
 0x562   :  { %v6528_v38 = vmax.f32 %v16872_v26, %v6416_v9  ;;  %6342 = vrot.lane.b32.xlu0 %v17038_v49, %s14597_s30  ;;  %v17265_v51 = vpack.c.bf16 %v6707_v4, %v6705_v0  ;;  %v3907_v0 = vmax.f32 %v20134_v61, %v3795_v44  ;;  %v20135_v4 = vld [vmem:[#allocation66_spill] sm:$0xff]  ;;  %v20137_v9 = vld [vmem:[#allocation27_spill] sm:$0xff] }
 0x563   :  { %v17270_v42 = vpack.c.bf16 %v6706_v45, %v6704_v18  ;;  %6344 = vrot.lane.b32.xlu1 %v17040_v19, %s14597_s30  ;;  %v3904_v19 = vmax.f32 %v20128_v10, %v3792_v12  ;;  %v6653_v56 = vadd.f32 %v17227_v5, %v6585_v50  ;;  %v3794_v37 = vsel %vm3785_vm1, %v20135_v4, %v20132_v31  ;;  %v20136_v45 = vld [vmem:[#allocation76_spill] sm:$0xff]  ;;  %v20143_v44 = vld [vmem:[#allocation110_spill] sm:$0xff] }
 0x564   :  { %v6584_v6 = vmax.f32 %v3902_v62, %v6528_v38  ;;  %v6265_v26 = vpop.permute.xlu0 %6264  ;;  %v20140_v10 = vld [vmem:[#allocation108_spill] sm:$0xff]  ;;  %v20145_v61 = vld [vmem:[#allocation6_spill] sm:$0xff] }
 0x565   :  { %v6419_v34 = vsel %vm3785_vm1, %v6265_v26, %v6267_v30  ;;  %v6263_v49 = vpop.permute.xlu1 %6262  ;;  %v6709_v30 = vmax.f32 %v6653_v56, 0.0  ;;  %v14008_v56 = vld [vmem:[%s19902_s4 + $0x8] ss:$12 sps:$4 sm:$0xff]   ;;  %v20146_v4 = vld [vmem:[#allocation78_spill] sm:$0xff] }
 0x566   :  { %v6531_v2 = vmax.f32 %v16888_v11, %v6419_v34  ;;  %v6418_v46 = vsel %vm3785_vm1, %v6263_v49, %v6265_v26  ;;  %6348 = vrot.lane.b32.xlu0 %v17045_v59, %s14597_s30  ;;  %v6652_v25 = vadd.f32 %v17231_v24, %v6584_v6  ;;  %v20138_v49 = vld [vmem:[#allocation3_spill] sm:$0xff] }
 0x567   :  { %v6530_v41 = vmax.f32 %v20129_v63, %v6418_v46  ;;  %6350 = vrot.lane.b32.xlu1 %v20130_v39, %s14597_s30  ;;  %v14005_v63 = vld [vmem:[%s19902_s4] ss:$12 sps:$4 sm:$0xff]   ;;  %v20142_v39 = vld [vmem:[#allocation68_spill] sm:$0xff] }
 0x568   :  { %v6587_v53 = vmax.f32 %v3905_v35, %v6531_v2  ;;  %v6271_v11 = vpop.permute.xlu0 %6270  ;;  %v6708_v15 = vmax.f32 %v6652_v25, 0.0  ;;  %v3906_v35 = vmax.f32 %v20138_v49, %v3794_v37  ;;  %v20139_v2 = vld [vmem:[#allocation75_spill] sm:$0xff]  ;;  %v20152_v49 = vld [vmem:[#allocation34_spill] sm:$0xff] }
 0x569   :  { %v6586_v8 = vmax.f32 %v3904_v19, %v6530_v41  ;;  %v6273_v29 = vpop.permute.xlu1 %6272  ;;  %v20141_v41 = vld [vmem:[#allocation67_spill] sm:$0xff] }
 0x56a   :  { %v6655_v59 = vadd.f32 %v17227_v5, %v6587_v53  ;;  %v6421_v43 = vsel %vm3785_vm1, %v6271_v11, %v6273_v29  ;;  %3713 = vrot.lane.b32.xlu0 %v20133_v55, %s14597_s30  ;;  %v3797_v52 = vsel %vm3785_vm1, %v20142_v39, %v20141_v41  ;;  %v20144_v53 = vld [vmem:[#allocation69_spill] sm:$0xff]  ;;  %v20153_v41 = vmov 0  }
 0x56b   :  { %v6654_v18 = vadd.f32 %v17231_v24, %v6586_v8  ;;  %v6533_v50 = vmax.f32 %v20136_v45, %v6421_v43  ;;  %3719 = vrot.lane.b32.xlu1 %v20137_v9, %s14597_s30  ;;  %v14011_v29 = vld [vmem:[%s19902_s4 + $0x1c] ss:$12 sps:$4 sm:$0xff]  }
 0x56c   :  { %v6711_v62 = vmax.f32 %v6655_v59, 0.0  ;;  %v6269_v38 = vpop.permute.xlu0 %6268  ;;  %v20147_v45 = vld [vmem:[#allocation33_spill] sm:$0xff] }
 0x56d   :  { %v6710_v12 = vmax.f32 %v6654_v18, 0.0  ;;  %v6589_v6 = vmax.f32 %v3907_v0, %v6533_v50  ;;  %v6420_v26 = vsel %vm3785_vm1, %v6269_v38, %v6271_v11  ;;  %v6279_v34 = vpop.permute.xlu1 %6278  ;;  %v3796_v11 = vsel %vm3785_vm1, %v20144_v53, %v20142_v39  ;;  %v14009_v50 = vld [vmem:[%s19902_s4 + $0x18] ss:$12 sps:$4 sm:$0xff]   ;;  %v20149_v38 = vld [vmem:[#allocation71_spill] sm:$0xff]  ;;  %v14015_v39 = vld [vmem:[%s19902_s4 + $0x34] ss:$12 sps:$4 sm:$0xff]  }
 0x56e   :  { %v6532_v46 = vmax.f32 %v20139_v2, %v6420_v26  ;;  %6340 = vrot.lane.b32.xlu0 %v20140_v10, %s14597_s30  ;;  %v17309_v19 = vpack.c.bf16 %v6711_v62, %v6709_v30  ;;  %v3909_v0 = vmax.f32 %v20145_v61, %v3797_v52  ;;  %v20148_v30 = vld [vmem:[#allocation5_spill] sm:$0xff] }
 0x56f   :  { %v17317_v31 = vpack.c.bf16 %v6710_v12, %v6708_v15  ;;  %6346 = vrot.lane.b32.xlu1 %v20143_v44, %s14597_s30  ;;  %v3908_v62 = vmax.f32 %v20148_v30, %v3796_v11  ;;  %v20150_v15 = vld [vmem:[#allocation70_spill] sm:$0xff]  ;;  %v20151_v26 = vld [vmem:[#allocation77_spill] sm:$0xff]  ;;  %v6657_v2 = vadd.f32 %v17227_v5, %v6589_v6  ;;  %v20155_v6 = vld [vmem:[#allocation36_spill] sm:$0xff] }
 0x570   :  { %v6588_v25 = vmax.f32 %v3906_v35, %v6532_v46  ;;  %11822 = vmatprep.mubr.msk.bf16.mxu0 %vm337_vm0, %v17309_v19  ;;  %11827 = vmatprep.mubr.msk.bf16.mxu1 %vm337_vm0, %v17309_v19  ;;  %v6277_v8 = vpop.permute.xlu0 %6276  ;;  %v3799_v12 = vsel %vm3785_vm1, %v20150_v15, %v20149_v38  ;;  %v14012_v35 = vld [vmem:[%s19902_s4 + $0x20] ss:$12 sps:$4 sm:$0xff]   ;;  %v20156_v61 = vld [vmem:[#allocation73_spill] sm:$0xff] }
 0x571   :  { %v6423_v59 = vsel %vm3785_vm1, %v6277_v8, %v6279_v34  ;;  %7173 = vmatmul.mubr.bf16.vlgmr.msra.gmra.mrb[112].mxu0 %v17317_v31  ;;  %7256 = vmatmul.mubr.bf16.vlgmr.msra.gmra.mrb[112].mxu1 %v17317_v31  ;;  %v6275_v43 = vpop.permute.xlu1 %6274  ;;  %v14019_v38 = vld [vmem:[%s19902_s4 + $0x4c] ss:$12 sps:$4 sm:$0xff]  }
 0x572   :  { %v6535_v37 = vmax.f32 %v20146_v4, %v6423_v59  ;;  %v6422_v18 = vsel %vm3785_vm1, %v6275_v43, %v6277_v8  ;;  %3739 = vrot.lane.b32.xlu0 %v20147_v45, %s14597_s30  ;;  %7536 = vmatpush1.bf16.msra.mxu0 %v14005_v63  ;;  %v6656_v52 = vadd.f32 %v17231_v24, %v6588_v25  ;;  %v20157_v4 = vld [vmem:[#allocation82_spill] sm:$0xff] }
 0x573   :  { %v6534_v34 = vmax.f32 %v20151_v26, %v6422_v18  ;;  %3741 = vrot.lane.b32.xlu1 %v20152_v49, %s14597_s30  ;;  %7619 = vmatpush1.bf16.msra.mxu1 %v14008_v56  ;;  %v20154_v56 = vld [vmem:[#allocation8_spill] sm:$0xff]  ;;  %v3798_v25 = vsel %vm3785_vm1, %v20156_v61, %v20150_v15  ;;  %v20158_v18 = vld [vmem:[#allocation39_spill] sm:$0xff]  ;;  %v14016_v45 = vld [vmem:[%s19902_s4 + $0x38] ss:$12 sps:$4 sm:$0xff]  }
 0x574   :  { %v6591_v46 = vmax.f32 %v3909_v0, %v6535_v37  ;;  %v6283_v63 = vpop.permute.xlu0 %6282  ;;  %7537 = vmatprep.subr.bf16.mxu0 %v14011_v29  ;;  %7620 = vmatprep.subr.bf16.mxu1 %v20153_v41  ;;  %v3911_v8 = vmax.f32 %v20154_v56, %v3799_v12  ;;  %v14013_v29 = vld [vmem:[%s19902_s4 + $0x30] ss:$12 sps:$4 sm:$0xff]   ;;  %v6712_v15 = vmax.f32 %v6656_v52, 0.0  ;;  %v14017_v56 = vld [vmem:[%s19902_s4 + $0x48] ss:$12 sps:$4 sm:$0xff]   ;;  %v20162_v52 = vld [vmem:[#allocation74_spill] sm:$0xff] }
 0x575   :  { %v6590_v53 = vmax.f32 %v3908_v62, %v6534_v34  ;;  %v6285_v11 = vpop.permute.xlu1 %6284 }
 0x576   :  { %v6659_v59 = vadd.f32 %v17227_v5, %v6591_v46  ;;  %v6425_v43 = vsel %vm3785_vm1, %v6283_v63, %v6285_v11  ;;  %3745 = vrot.lane.b32.xlu0 %v20155_v6, %s14597_s30  ;;  %7538 = vmatpush1.bf16.msra.mxu0 %v14009_v50  ;;  %v6713_v50 = vmax.f32 %v6657_v2, 0.0  ;;  %v20160_v2 = vld [vmem:[#allocation81_spill] sm:$0xff] }
 0x577   :  { %v6658_v0 = vadd.f32 %v17231_v24, %v6590_v53  ;;  %v6537_v37 = vmax.f32 %v20157_v4, %v6425_v43  ;;  %3747 = vrot.lane.b32.xlu1 %v20158_v18, %s14597_s30  ;;  %7621 = vmatpush1.bf16.msra.mxu1 %v14012_v35  ;;  %v20159_v35 = vld [vmem:[#allocation7_spill] sm:$0xff]  ;;  %v20164_v43 = vld [vmem:[#allocation38_spill] sm:$0xff]  ;;  %v14020_v6 = vld [vmem:[%s19902_s4 + $0x50] ss:$12 sps:$4 sm:$0xff]  }
 0x578   :  { %v6715_v30 = vmax.f32 %v6659_v59, 0.0  ;;  %v6281_v62 = vpop.permute.xlu0 %6280  ;;  %7539 = vmatprep.subr.bf16.mxu0 %v14015_v39  ;;  %7622 = vmatprep.subr.bf16.mxu1 %v20153_v41  ;;  %v3910_v46 = vmax.f32 %v20159_v35, %v3798_v25  ;;  %v20161_v39 = vld [vmem:[#allocation35_spill] sm:$0xff]  ;;  %v14023_v4 = vld [vmem:[%s19902_s4 + $0x64] ss:$12 sps:$4 sm:$0xff]  }
 0x579   :  { %v6714_v12 = vmax.f32 %v6658_v0, 0.0  ;;  %v6593_v26 = vmax.f32 %v3911_v8, %v6537_v37  ;;  %v6424_v34 = vsel %vm3785_vm1, %v6281_v62, %v6283_v63  ;;  %v6291_v49 = vpop.permute.xlu1 %6290  ;;  %v20163_v59 = vld [vmem:[#allocation79_spill] sm:$0xff]  ;;  %v20169_v35 = vld [vmem:[#allocation86_spill] sm:$0xff] }
 0x57a   :  { %v17385_v53 = vpack.c.bf16 %v6715_v30, %v6713_v50  ;;  %v6536_v11 = vmax.f32 %v20160_v2, %v6424_v34  ;;  %3737 = vrot.lane.b32.xlu0 %v20161_v39, %s14597_s30  ;;  %7540 = vmatpush1.bf16.msra.mxu0 %v14013_v29  ;;  %v3801_v8 = vsel %vm3785_vm1, %v20163_v59, %v20162_v52  ;;  %v20165_v29 = vld [vmem:[#allocation80_spill] sm:$0xff]  ;;  %v20171_v2 = vld [vmem:[#allocation83_spill] sm:$0xff] }
 0x57b   :  { %v17396_v63 = vpack.c.bf16 %v6714_v12, %v6712_v15  ;;  %3743 = vrot.lane.b32.xlu1 %v20164_v43, %s14597_s30  ;;  %7623 = vmatpush1.bf16.msra.mxu1 %v14016_v45  ;;  %v3800_v61 = vsel %vm3785_vm1, %v20165_v29, %v20163_v59  ;;  %v20166_v45 = vld [vmem:[#allocation10_spill] sm:$0xff]  ;;  %v20167_v30 = vld [vmem:[#allocation84_spill] sm:$0xff]  ;;  %v20168_v12 = vld [vmem:[#allocation9_spill] sm:$0xff] }
 0x57c   :  { %v6592_v25 = vmax.f32 %v3910_v46, %v6536_v11  ;;  %v6289_v0 = vpop.permute.xlu0 %6288  ;;  %7541 = vmatprep.subr.bf16.mxu0 %v14019_v38  ;;  %7624 = vmatprep.subr.bf16.mxu1 %v20153_v41  ;;  %v3913_v50 = vmax.f32 %v20166_v45, %v3801_v8  ;;  %v14021_v38 = vld [vmem:[%s19902_s4 + $0x60] ss:$12 sps:$4 sm:$0xff]   ;;  %v3912_v34 = vmax.f32 %v20168_v12, %v3800_v61  ;;  %v20170_v46 = vld [vmem:[#allocation85_spill] sm:$0xff] }
 0x57d   :  { %v6427_v37 = vsel %vm3785_vm1, %v6289_v0, %v6291_v49  ;;  %v6287_v18 = vpop.permute.xlu1 %6286  ;;  %v3803_v49 = vsel %vm3785_vm1, %v20170_v46, %v20169_v35  ;;  %v14027_v8 = vld [vmem:[%s19902_s4 + $0x7c] ss:$12 sps:$4 sm:$0xff]  }
 0x57e   :  { %v6539_v62 = vmax.f32 %v20167_v30, %v6427_v37  ;;  %v6426_v15 = vsel %vm3785_vm1, %v6287_v18, %v6289_v0  ;;  %6366 = vrot.lane.b32.xlu0 %v17080_v17, %s14597_s30  ;;  %7542 = vmatpush1.bf16.msra.mxu0 %v14017_v56  ;;  %v14024_v17 = vld [vmem:[%s19902_s4 + $0x68] ss:$12 sps:$4 sm:$0xff]   ;;  %v6661_v56 = vadd.f32 %v17227_v5, %v6593_v26  ;;  %v20172_v37 = vld [vmem:[#allocation122_spill] sm:$0xff] }
 0x57f   :  { %v6538_v11 = vmax.f32 %v20171_v2, %v6426_v15  ;;  %6368 = vrot.lane.b32.xlu1 %v17082_v32, %s14597_s30  ;;  %7625 = vmatpush1.bf16.msra.mxu1 %v14020_v6  ;;  %v6660_v29 = vadd.f32 %v17231_v24, %v6592_v25  ;;  %v3915_v61 = vmax.f32 %v16034_v21, %v3803_v49  ;;  %v20173_v18 = vld [vmem:[#allocation96_spill] sm:$0xff]  ;;  %v20174_v45 = vld [vmem:[#allocation95_spill] sm:$0xff] }
 0x580   :  { %v6595_v52 = vmax.f32 %v3913_v50, %v6539_v62  ;;  %v17430_v59 = vpop.permute.xlu0 %6294  ;;  %7543 = vmatprep.subr.bf16.mxu0 %v14023_v4  ;;  %7626 = vmatprep.subr.bf16.mxu1 %v20153_v41  ;;  %v14025_v4 = vld [vmem:[%s19902_s4 + $0x78] ss:$12 sps:$4 sm:$0xff]   ;;  %v3807_v25 = vsel %vm3785_vm1, %v20174_v45, %v20173_v18  ;;  %v14028_v30 = vld [vmem:[%s19902_s4 + $0x80] ss:$12 sps:$4 sm:$0xff]   ;;  %v6717_v62 = vmax.f32 %v6661_v56, 0.0 }
 0x581   :  { %v6594_v32 = vmax.f32 %v3912_v34, %v6538_v11  ;;  %v6297_v6 = vpop.permute.xlu1 %6296  ;;  %v6716_v12 = vmax.f32 %v6660_v29, 0.0  ;;  %v14031_v56 = vld [vmem:[%s19902_s4 + $0x94] ss:$12 sps:$4 sm:$0xff]  }
 0x582   :  { %v6663_v0 = vadd.f32 %v17227_v5, %v6595_v52  ;;  %v6429_v26 = vsel %vm3785_vm1, %v17430_v59, %v6297_v6  ;;  %6372 = vrot.lane.b32.xlu0 %v20172_v37, %s14597_s30  ;;  %7544 = vmatpush1.bf16.msra.mxu0 %v14021_v38  ;;  %v20177_v52 = vld [vmem:[#allocation99_spill] sm:$0xff] }
 0x583   :  { %v6662_v50 = vadd.f32 %v17231_v24, %v6594_v32  ;;  %v6541_v21 = vmax.f32 %v16955_v27, %v6429_v26  ;;  %6374 = vrot.lane.b32.xlu1 %v17096_v54, %s14597_s30  ;;  %7627 = vmatpush1.bf16.msra.mxu1 %v14024_v17  ;;  %v20175_v27 = vld [vmem:[#allocation15_spill] sm:$0xff]  ;;  %v20176_v17 = vld [vmem:[#allocation121_spill] sm:$0xff]  ;;  %v20178_v32 = vld [vmem:[#allocation92_spill] sm:$0xff] }
 0x584   :  { %v6719_v15 = vmax.f32 %v6663_v0, 0.0  ;;  %v6307_v38 = vpop.permute.xlu0 %6306  ;;  %7545 = vmatprep.subr.bf16.mxu0 %v14027_v8  ;;  %7628 = vmatprep.subr.bf16.mxu1 %v20153_v41  ;;  %v3919_v2 = vmax.f32 %v20175_v27, %v3807_v25  ;;  %v3806_v8 = vsel %vm3785_vm1, %v20177_v52, %v20174_v45  ;;  %v14029_v0 = vld [vmem:[%s19902_s4 + $0x90] ss:$12 sps:$4 sm:$0xff]   ;;  %v14032_v26 = vld [vmem:[%s19902_s4 + $0x98] ss:$12 sps:$4 sm:$0xff]  }
 0x585   :  { %v6718_v34 = vmax.f32 %v6662_v50, 0.0  ;;  %v17457_v35 = vmax.f32 %v3915_v61, %v6541_v21  ;;  %v6309_v49 = vpop.permute.xlu1 %6308  ;;  %v14035_v45 = vld [vmem:[%s19902_s4 + $0xac] ss:$12 sps:$4 sm:$0xff]   ;;  %v20179_v25 = vld [vmem:[#allocation14_spill] sm:$0xff]  ;;  %v14036_v52 = vld [vmem:[%s19902_s4 + $0xb0] ss:$12 sps:$4 sm:$0xff]  }
 0x586   :  { %v17460_v11 = vpack.c.bf16 %v6719_v15, %v6717_v62  ;;  %v6433_v54 = vsel %vm3785_vm1, %v6307_v38, %v6309_v49  ;;  %6364 = vrot.lane.b32.xlu0 %v20176_v17, %s14597_s30  ;;  %7546 = vmatpush1.bf16.msra.mxu0 %v14025_v4  ;;  %v3918_v50 = vmax.f32 %v20179_v25, %v3806_v8  ;;  %v20180_v21 = vld [vmem:[#allocation91_spill] sm:$0xff]  ;;  %v20181_v62 = vld [vmem:[#allocation41_spill] sm:$0xff]  ;;  %v20182_v15 = vld [vmem:[#allocation100_spill] sm:$0xff] }
 0x587   :  { %v17471_v29 = vpack.c.bf16 %v6718_v34, %v6716_v12  ;;  %v6545_v6 = vmax.f32 %v20178_v32, %v6433_v54  ;;  %6370 = vrot.lane.b32.xlu1 %v17094_v48, %s14597_s30  ;;  %7629 = vmatpush1.bf16.msra.mxu1 %v14028_v30  ;;  %v20183_v12 = vld [vmem:[#allocation105_spill] sm:$0xff]  ;;  %v20184_v34 = vld [vmem:[#allocation42_spill] sm:$0xff] }
 0x588   :  { %11823 = vmatprep.mubr.msk.bf16.mxu0 %vm337_vm0, %v17460_v11  ;;  %11828 = vmatprep.mubr.msk.bf16.mxu1 %vm337_vm0, %v17460_v11  ;;  %v6305_v61 = vpop.permute.xlu0 %6304  ;;  %v20185_v49 = vld [vmem:[#allocation106_spill] sm:$0xff] }
 0x589   :  { %v6601_v37 = vmax.f32 %v3919_v2, %v6545_v6  ;;  %v6432_v4 = vsel %vm3785_vm1, %v6305_v61, %v6307_v38  ;;  %v6315_v18 = vpop.permute.xlu1 %6314  ;;  %7183 = vmatmul.mubr.bf16.gmra.mrb[116].mxu0 %v17471_v29  ;;  %7264 = vmatmul.mubr.bf16.gmra.mrb[116].mxu1 %v17471_v29  ;;  %v3809_v38 = vsel %vm3785_vm1, %v20183_v12, %v20182_v15  ;;  %v14039_v6 = vld [vmem:[%s19902_s4 + $0xc4] ss:$12 sps:$4 sm:$0xff]   ;;  %v20186_v61 = vld [vmem:[#allocation17_spill] sm:$0xff] }
 0x58a   :  { %v6544_v30 = vmax.f32 %v20180_v21, %v6432_v4  ;;  %3751 = vrot.lane.b32.xlu0 %v20181_v62, %s14597_s30  ;;  %7547 = vmatprep.subr.bf16.mxu0 %v14031_v56  ;;  %v3808_v27 = vsel %vm3785_vm1, %v20185_v49, %v20183_v12  ;;  %v14033_v56 = vld [vmem:[%s19902_s4 + $0xa8] ss:$12 sps:$4 sm:$0xff]   ;;  %v20192_v15 = vld [vmem:[#allocation113_spill] sm:$0xff] }
 0x58b   :  { %3753 = vrot.lane.b32.xlu1 %v20184_v34, %s14597_s30  ;;  %7630 = vmatprep.subr.bf16.mxu1 %v20153_v41  ;;  %v20189_v21 = vld [vmem:[#allocation16_spill] sm:$0xff] }
 0x58c   :  { %v6600_v2 = vmax.f32 %v3918_v50, %v6544_v30  ;;  %v6313_v54 = vpop.permute.xlu0 %6312  ;;  %7548 = vmatpush1.bf16.msra.mxu0 %v14029_v0  ;;  %7631 = vmatpush1.bf16.msra.mxu1 %v14032_v26  ;;  %v3921_v0 = vmax.f32 %v20186_v61, %v3809_v38  ;;  %v20187_v26 = vld [vmem:[#allocation94_spill] sm:$0xff]  ;;  %v20188_v50 = vld [vmem:[#allocation44_spill] sm:$0xff]  ;;  %v3920_v30 = vmax.f32 %v20189_v21, %v3808_v27 }
 0x58d   :  { %v6435_v8 = vsel %vm3785_vm1, %v6313_v54, %v6315_v18  ;;  %v6311_v32 = vpop.permute.xlu1 %6310  ;;  %7549 = vmatprep.subr.bf16.mxu0 %v14035_v45  ;;  %7632 = vmatprep.subr.bf16.mxu1 %v20153_v41  ;;  %v20190_v18 = vld [vmem:[#allocation93_spill] sm:$0xff]  ;;  %v20191_v45 = vld [vmem:[#allocation47_spill] sm:$0xff]  ;;  %v20193_v12 = vld [vmem:[#allocation112_spill] sm:$0xff]  ;;  %v6669_v38 = vadd.f32 %v17227_v5, %v6601_v37 }
 0x58e   :  { %v6547_v4 = vmax.f32 %v20187_v26, %v6435_v8  ;;  %v6434_v25 = vsel %vm3785_vm1, %v6311_v32, %v6313_v54  ;;  %3757 = vrot.lane.b32.xlu0 %v20188_v50, %s14597_s30  ;;  %v3815_v34 = vsel %vm3785_vm1, %v20193_v12, %v20192_v15  ;;  %v14037_v54 = vld [vmem:[%s19902_s4 + $0xc0] ss:$12 sps:$4 sm:$0xff]   ;;  %v14040_v27 = vld [vmem:[%s19902_s4 + $0xc8] ss:$12 sps:$4 sm:$0xff]   ;;  %v6668_v32 = vadd.f32 %v17231_v24, %v6600_v2 }
 0x58f   :  { %v6546_v62 = vmax.f32 %v20190_v18, %v6434_v25  ;;  %3759 = vrot.lane.b32.xlu1 %v20191_v45, %s14597_s30  ;;  %v14043_v37 = vld [vmem:[%s19902_s4 + $0xdc] ss:$12 sps:$4 sm:$0xff]   ;;  %v20196_v2 = vld [vmem:[#allocation118_spill] sm:$0xff] }
 0x590   :  { %v6603_v49 = vmax.f32 %v3921_v0, %v6547_v4  ;;  %v6331_v8 = vpop.permute.xlu0 %6330  ;;  %7550 = vmatpush1.bf16.msra.mxu0 %v14033_v56  ;;  %7633 = vmatpush1.bf16.msra.mxu1 %v14036_v52  ;;  %v20194_v0 = vld [vmem:[#allocation43_spill] sm:$0xff]  ;;  %v20195_v4 = vld [vmem:[#allocation21_spill] sm:$0xff]  ;;  %v3814_v50 = vsel %vm3785_vm1, %v20196_v2, %v20193_v12  ;;  %v20197_v21 = vld [vmem:[#allocation102_spill] sm:$0xff] }
 0x591   :  { %v6602_v61 = vmax.f32 %v3920_v30, %v6546_v62  ;;  %v6333_v26 = vpop.permute.xlu1 %6332  ;;  %7551 = vmatprep.subr.bf16.mxu0 %v14039_v6  ;;  %7634 = vmatprep.subr.bf16.mxu1 %v20153_v41  ;;  %v3927_v25 = vmax.f32 %v20195_v4, %v3815_v34  ;;  %v20198_v18 = vld [vmem:[#allocation46_spill] sm:$0xff]  ;;  %v6725_v62 = vmax.f32 %v6669_v38, 0.0  ;;  %v20199_v12 = vld [vmem:[#allocation20_spill] sm:$0xff]  ;;  %v20200_v2 = vld [vmem:[#allocation101_spill] sm:$0xff] }
 0x592   :  { %v6671_v56 = vadd.f32 %v17227_v5, %v6603_v49  ;;  %v6441_v52 = vsel %vm3785_vm1, %v6331_v8, %v6333_v26  ;;  %3749 = vrot.lane.b32.xlu0 %v20194_v0, %s14597_s30  ;;  %v6724_v49 = vmax.f32 %v6668_v32, 0.0  ;;  %v14041_v38 = vld [vmem:[%s19902_s4 + $0xd8] ss:$12 sps:$4 sm:$0xff]   ;;  %v14044_v32 = vld [vmem:[%s19902_s4 + $0xe0] ss:$12 sps:$4 sm:$0xff]  }
 0x593   :  { %v6670_v6 = vadd.f32 %v17231_v24, %v6602_v61  ;;  %v6553_v30 = vmax.f32 %v20197_v21, %v6441_v52  ;;  %3755 = vrot.lane.b32.xlu1 %v20198_v18, %s14597_s30  ;;  %v3926_v61 = vmax.f32 %v20199_v12, %v3814_v50  ;;  %v20207_v12 = vld [vmem:[#allocation131_spill] sm:$0xff] }
 0x594   :  { %v6727_v45 = vmax.f32 %v6671_v56, 0.0  ;;  %v6329_v15 = vpop.permute.xlu0 %6328  ;;  %7552 = vmatpush1.bf16.msra.mxu0 %v14037_v54  ;;  %7635 = vmatpush1.bf16.msra.mxu1 %v14040_v27  ;;  %v20201_v54 = vld [vmem:[#allocation119_spill] sm:$0xff] }
 0x595   :  { %v6726_v26 = vmax.f32 %v6670_v6, 0.0  ;;  %v6609_v14 = vmax.f32 %v3927_v25, %v6553_v30  ;;  %v6440_v34 = vsel %vm3785_vm1, %v6329_v15, %v6331_v8  ;;  %v6339_v4 = vpop.permute.xlu1 %6338  ;;  %7553 = vmatprep.subr.bf16.mxu0 %v14043_v37  ;;  %7636 = vmatprep.subr.bf16.mxu1 %v20153_v41  ;;  %v3817_v8 = vsel %vm3785_vm1, %v17100_v57, %v20201_v54  ;;  %v20202_v37 = vld [vmem:[#allocation124_spill] sm:$0xff]  ;;  %v20209_v54 = vld [vmem:[#allocation130_spill] sm:$0xff] }
 0x596   :  { %v17555_v52 = vpack.c.bf16 %v6727_v45, %v6725_v62  ;;  %v6552_v21 = vmax.f32 %v20200_v2, %v6440_v34  ;;  %6378 = vrot.lane.b32.xlu0 %v17106_v40, %s14597_s30  ;;  %v3816_v40 = vsel %vm3785_vm1, %v20202_v37, %v17100_v57  ;;  %v20203_v57 = vld [vmem:[#allocation23_spill] sm:$0xff]  ;;  %v20204_v62 = vld [vmem:[#allocation104_spill] sm:$0xff]  ;;  %v20206_v34 = vld [vmem:[#allocation22_spill] sm:$0xff] }
 0x597   :  { %v17566_v27 = vpack.c.bf16 %v6726_v26, %v6724_v49  ;;  %6380 = vrot.lane.b32.xlu1 %v17108_v23, %s14597_s30  ;;  %v14047_v23 = vld [vmem:[%s19902_s4 + $0xf4] ss:$12 sps:$4 sm:$0xff]   ;;  %v3929_v30 = vmax.f32 %v20203_v57, %v3817_v8  ;;  %v20205_v49 = vld [vmem:[#allocation127_spill] sm:$0xff]  ;;  %v14045_v26 = vld [vmem:[%s19902_s4 + $0xf0] ss:$12 sps:$4 sm:$0xff]   ;;  %v6677_v8 = vadd.f32 %v17227_v5, %v6609_v14 }
 0x598   :  { %v6608_v56 = vmax.f32 %v3926_v61, %v6552_v21  ;;  %11824 = vmatprep.mubr.msk.bf16.mxu0 %vm337_vm0, %v17555_v52  ;;  %11829 = vmatprep.mubr.msk.bf16.mxu1 %vm337_vm0, %v17555_v52  ;;  %v6337_v25 = vpop.permute.xlu0 %6336  ;;  %v3823_v61 = vsel %vm3785_vm1, %v20207_v12, %v17130_v33  ;;  %v20208_v2 = vld [vmem:[#allocation103_spill] sm:$0xff]  ;;  %v20211_v14 = vld [vmem:[#allocation126_spill] sm:$0xff] }
 0x599   :  { %v6443_v50 = vsel %vm3785_vm1, %v6337_v25, %v6339_v4  ;;  %7193 = vmatmul.mubr.bf16.gmra.mrb[120].mxu0 %v17566_v27  ;;  %7272 = vmatmul.mubr.bf16.gmra.mrb[120].mxu1 %v17566_v27  ;;  %v6335_v6 = vpop.permute.xlu1 %6334  ;;  %v3928_v4 = vmax.f32 %v20206_v34, %v3816_v40  ;;  %v14051_v33 = vld [vmem:[%s19902_s4 + $0x10c] ss:$12 sps:$4 sm:$0xff]  }
 0x59a   :  { %v6555_v45 = vmax.f32 %v20204_v62, %v6443_v50  ;;  %v6442_v15 = vsel %vm3785_vm1, %v6335_v6, %v6337_v25  ;;  %6384 = vrot.lane.b32.xlu0 %v20205_v49, %s14597_s30  ;;  %7554 = vmatpush1.bf16.msra.mxu0 %v14041_v38  ;;  %v14048_v38 = vld [vmem:[%s19902_s4 + $0xf8] ss:$12 sps:$4 sm:$0xff]   ;;  %v6676_v40 = vadd.f32 %v17231_v24, %v6608_v56 }
 0x59b   :  { %v6554_v21 = vmax.f32 %v20208_v2, %v6442_v15  ;;  %6386 = vrot.lane.b32.xlu1 %v20209_v54, %s14597_s30  ;;  %7637 = vmatpush1.bf16.msra.mxu1 %v14044_v32  ;;  %v20210_v32 = vld [vmem:[#allocation29_spill] sm:$0xff]  ;;  %v3822_v56 = vsel %vm3785_vm1, %v17156_v22, %v20207_v12 }
 0x59c   :  { %v6611_v37 = vmax.f32 %v3929_v30, %v6555_v45  ;;  %v6355_v25 = vpop.permute.xlu0 %6354  ;;  %7555 = vmatprep.subr.bf16.mxu0 %v14047_v23  ;;  %7638 = vmatprep.subr.bf16.mxu1 %v20153_v41  ;;  %v3935_v57 = vmax.f32 %v20210_v32, %v3823_v61  ;;  %v14049_v23 = vld [vmem:[%s19902_s4 + $0x108] ss:$12 sps:$4 sm:$0xff]   ;;  %v20213_v34 = vld [vmem:[#allocation129_spill] sm:$0xff] }
 0x59d   :  { %v6610_v50 = vmax.f32 %v3928_v4, %v6554_v21  ;;  %v6357_v6 = vpop.permute.xlu1 %6356  ;;  %v20212_v45 = vld [vmem:[#allocation115_spill] sm:$0xff]  ;;  %v6733_v4 = vmax.f32 %v6677_v8, 0.0  ;;  %v6732_v21 = vmax.f32 %v6676_v40, 0.0  ;;  %v14055_v8 = vld [vmem:[%s19902_s4 + $0x124] ss:$12 sps:$4 sm:$0xff]  }
 0x59e   :  { %v6679_v62 = vadd.f32 %v17227_v5, %v6611_v37  ;;  %v6449_v15 = vsel %vm3785_vm1, %v6355_v25, %v6357_v6  ;;  %6376 = vrot.lane.b32.xlu0 %v20211_v14, %s14597_s30  ;;  %7556 = vmatpush1.bf16.msra.mxu0 %v14045_v26  ;;  %v14052_v26 = vld [vmem:[%s19902_s4 + $0x110] ss:$12 sps:$4 sm:$0xff]   ;;  %v20217_v40 = vld [vmem:[#allocation51_spill] sm:$0xff] }
 0x59f   :  { %v6678_v30 = vadd.f32 %v17231_v24, %v6610_v50  ;;  %v6561_v49 = vmax.f32 %v20212_v45, %v6449_v15  ;;  %6382 = vrot.lane.b32.xlu1 %v20213_v34, %s14597_s30  ;;  %7639 = vmatpush1.bf16.msra.mxu1 %v14048_v38  ;;  %v20214_v50 = vld [vmem:[#allocation28_spill] sm:$0xff]  ;;  %v20215_v38 = vld [vmem:[#allocation114_spill] sm:$0xff]  ;;  %v20216_v45 = vld [vmem:[#allocation49_spill] sm:$0xff] }
 0x5a0   :  { %v6735_v61 = vmax.f32 %v6679_v62, 0.0  ;;  %v6353_v2 = vpop.permute.xlu0 %6352  ;;  %7557 = vmatprep.subr.bf16.mxu0 %v14051_v33  ;;  %7640 = vmatprep.subr.bf16.mxu1 %v20153_v41  ;;  %v3934_v6 = vmax.f32 %v20214_v50, %v3822_v56  ;;  %v14056_v56 = vld [vmem:[%s19902_s4 + $0x128] ss:$12 sps:$4 sm:$0xff]  }
 0x5a1   :  { %v6734_v22 = vmax.f32 %v6678_v30, 0.0  ;;  %v6617_v12 = vmax.f32 %v3935_v57, %v6561_v49  ;;  %v6448_v54 = vsel %vm3785_vm1, %v6353_v2, %v6355_v25  ;;  %v6303_v37 = vpop.permute.xlu1 %6302  ;;  %v3825_v25 = vsel %vm3785_vm1, %v17184_v60, %v17158_v1  ;;  %v14059_v1 = vld [vmem:[%s19902_s4 + $0x13c] ss:$12 sps:$4 sm:$0xff]  }
 0x5a2   :  { %v17631_v32 = vpack.c.bf16 %v6735_v61, %v6733_v4  ;;  %v6560_v15 = vmax.f32 %v20215_v38, %v6448_v54  ;;  %3763 = vrot.lane.b32.xlu0 %v20216_v45, %s14597_s30  ;;  %7558 = vmatpush1.bf16.msra.mxu0 %v14049_v23  ;;  %v14053_v23 = vld [vmem:[%s19902_s4 + $0x120] ss:$12 sps:$4 sm:$0xff]   ;;  %v20220_v61 = vld [vmem:[#allocation89_spill] sm:$0xff]  ;;  %v3824_v38 = vsel %vm3785_vm1, %v17186_v28, %v17184_v60  ;;  %v14063_v28 = vld [vmem:[%s19902_s4 + $0x2a4] ss:$12 sps:$4 sm:$0xff]  }
 0x5a3   :  { %v17639_v33 = vpack.c.bf16 %v6734_v22, %v6732_v21  ;;  %3765 = vrot.lane.b32.xlu1 %v20217_v40, %s14597_s30  ;;  %7641 = vmatpush1.bf16.msra.mxu1 %v14052_v26  ;;  %v20218_v26 = vld [vmem:[#allocation53_spill] sm:$0xff]  ;;  %v20219_v4 = vld [vmem:[#allocation90_spill] sm:$0xff]  ;;  %v20221_v21 = vld [vmem:[#allocation31_spill] sm:$0xff]  ;;  %v6685_v40 = vadd.f32 %v17227_v5, %v6617_v12 }
 0x5a4   :  { %v6616_v57 = vmax.f32 %v3934_v6, %v6560_v15  ;;  %11825 = vmatprep.mubr.msk.bf16.mxu0 %vm337_vm0, %v17631_v32  ;;  %11830 = vmatprep.mubr.msk.bf16.mxu1 %vm337_vm0, %v17631_v32  ;;  %v6361_v62 = vpop.permute.xlu0 %6360  ;;  %v3805_v2 = vsel %vm3785_vm1, %v20220_v61, %v20219_v4  ;;  %v3937_v22 = vmax.f32 %v20221_v21, %v3825_v25  ;;  %v20222_v54 = vld [vmem:[#allocation117_spill] sm:$0xff]  ;;  %v20223_v6 = vld [vmem:[#allocation55_spill] sm:$0xff]  ;;  %v20225_v4 = vld [vmem:[#allocation50_spill] sm:$0xff] }
 0x5a5   :  { %v6363_v30 = vpop.permute.xlu1 %6362  ;;  %7203 = vmatmul.mubr.bf16.gmra.mrb[124].mxu0 %v17639_v33  ;;  %7280 = vmatmul.mubr.bf16.gmra.mrb[124].mxu1 %v17639_v33  ;;  %v14057_v45 = vld [vmem:[%s19902_s4 + $0x138] ss:$12 sps:$4 sm:$0xff]  }
 0x5a6   :  { %v6451_v49 = vsel %vm3785_vm1, %v6361_v62, %v6363_v30  ;;  %3769 = vrot.lane.b32.xlu0 %v20218_v26, %s14597_s30  ;;  %7559 = vmatprep.subr.bf16.mxu0 %v14055_v8  ;;  %v14060_v8 = vld [vmem:[%s19902_s4 + $0x140] ss:$12 sps:$4 sm:$0xff]   ;;  %v20224_v60 = vld [vmem:[#allocation13_spill] sm:$0xff] }
 0x5a7   :  { %v6563_v50 = vmax.f32 %v20222_v54, %v6451_v49  ;;  %3771 = vrot.lane.b32.xlu1 %v20223_v6, %s14597_s30  ;;  %7642 = vmatprep.subr.bf16.mxu1 %v20153_v41  ;;  %v20226_v12 = vld [vmem:[#allocation30_spill] sm:$0xff] }
 0x5a8   :  { %v6301_v15 = vpop.permute.xlu0 %6300  ;;  %7560 = vmatpush1.bf16.msra.mxu0 %v14053_v23  ;;  %7643 = vmatpush1.bf16.msra.mxu1 %v14056_v56  ;;  %v3917_v23 = vmax.f32 %v20224_v60, %v3805_v2  ;;  %v3936_v21 = vmax.f32 %v20226_v12, %v3824_v38  ;;  %v20228_v54 = vld [vmem:[#allocation54_spill] sm:$0xff]  ;;  %v20229_v60 = vld [vmem:[#allocation133_spill] sm:$0xff] }
 0x5a9   :  { %v6619_v25 = vmax.f32 %v3937_v22, %v6563_v50  ;;  %v6431_v30 = vsel %vm3785_vm1, %v6301_v15, %v6303_v37  ;;  %v6359_v49 = vpop.permute.xlu1 %6358  ;;  %7561 = vmatprep.subr.bf16.mxu0 %v14059_v1  ;;  %7644 = vmatprep.subr.bf16.mxu1 %v20153_v41  ;;  %v20227_v1 = vld [vmem:[#allocation116_spill] sm:$0xff]  ;;  %v6665_v50 = vadd.f32 %v17227_v5, %v17457_v35 }
 0x5aa   :  { %v6543_v56 = vmax.f32 %v16963_v16, %v6431_v30  ;;  %v6450_v26 = vsel %vm3785_vm1, %v6359_v49, %v6361_v62  ;;  %3761 = vrot.lane.b32.xlu0 %v20225_v4, %s14597_s30  ;;  %v6741_v16 = vmax.f32 %v6685_v40, 0.0  ;;  %v6684_v62 = vadd.f32 %v17231_v24, %v6616_v57  ;;  %v20230_v57 = vld [vmem:[#allocation134_spill] sm:$0xff] }
 0x5ab   :  { %v6687_v37 = vadd.f32 %v17227_v5, %v6619_v25  ;;  %v6562_v22 = vmax.f32 %v20227_v1, %v6450_v26  ;;  %3767 = vrot.lane.b32.xlu1 %v20228_v54, %s14597_s30  ;;  %v20231_v1 = vld [vmem:[#allocation11_spill] sm:$0xff] }
 0x5ac   :  { %v6599_v2 = vmax.f32 %v3917_v23, %v6543_v56  ;;  %v3666_v6 = vpop.permute.xlu0 %3665  ;;  %7562 = vmatpush1.bf16.msra.mxu0 %v14057_v45  ;;  %7645 = vmatpush1.bf16.msra.mxu1 %v14060_v8  ;;  %v6721_v8 = vmax.f32 %v6665_v50, 0.0  ;;  %v6740_v56 = vmax.f32 %v6684_v62, 0.0  ;;  %v20232_v50 = vld [vmem:[#allocation87_spill] sm:$0xff] }
 0x5ad   :  { %v6743_v30 = vmax.f32 %v6687_v37, 0.0  ;;  %v6618_v49 = vmax.f32 %v3936_v21, %v6562_v22  ;;  %v3672_v38 = vpop.permute.xlu1 %3671  ;;  %7975 = vmatprep.subr.bf16.mxu0 %v14063_v28  ;;  %8058 = vmatprep.subr.bf16.mxu1 %v20153_v41  ;;  %v3802_v45 = vsel %vm3785_vm1, %v3666_v6, %v20170_v46  ;;  %v20233_v6 = vld [vmem:[#allocation136_spill] sm:$0xff] }
 0x5ae   :  { %v6667_v25 = vadd.f32 %v17227_v5, %v6599_v2  ;;  %6390 = vrot.lane.b32.xlu0 %v20229_v60, %s14597_s30  ;;  %v3804_v28 = vsel %vm3785_vm1, %v3672_v38, %v20220_v61  ;;  %v3914_v22 = vmax.f32 %v20231_v1, %v3802_v45  ;;  %v20236_v38 = vld [vmem:[#allocation139_spill] sm:$0xff]  ;;  %v20239_v1 = vld [vmem:[#allocation57_spill] sm:$0xff] }
 0x5af   :  { %v17704_v26 = vpack.c.bf16 %v6743_v30, %v6741_v16  ;;  %v6686_v35 = vadd.f32 %v17231_v24, %v6618_v49  ;;  %6392 = vrot.lane.b32.xlu1 %v20230_v57, %s14597_s30  ;;  %v20235_v30 = vld [vmem:[#allocation88_spill] sm:$0xff] }
 0x5b0   :  { %v6723_v40 = vmax.f32 %v6667_v25, 0.0  ;;  %v6293_v23 = vpop.permute.xlu0 %6292 }
 0x5b1   :  { %v6742_v12 = vmax.f32 %v6686_v35, 0.0  ;;  %v6428_v21 = vsel %vm3785_vm1, %v6293_v23, %v17430_v59  ;;  %v6299_v37 = vpop.permute.xlu1 %6298  ;;  %11826 = vmatprep.mubr.msk.bf16.mxu0 %vm337_vm0, %v17704_v26  ;;  %11831 = vmatprep.mubr.msk.bf16.mxu1 %vm337_vm0, %v17704_v26  ;;  %v20234_v59 = vld [vmem:[#allocation12_spill] sm:$0xff] }
 0x5b2   :  { %v17719_v46 = vpack.c.bf16 %v6723_v40, %v6721_v8  ;;  %v6540_v2 = vmax.f32 %v20232_v50, %v6428_v21  ;;  %v6430_v61 = vsel %vm3785_vm1, %v6299_v37, %v6301_v15  ;;  %6396 = vrot.lane.b32.xlu0 %v20233_v6, %s14597_s30  ;;  %v3916_v62 = vmax.f32 %v20234_v59, %v3804_v28  ;;  %v20237_v8 = vld [vmem:[#allocation135_spill] sm:$0xff]  ;;  %v20238_v40 = vld [vmem:[#allocation138_spill] sm:$0xff] }
 0x5b3   :  { %v17726_v16 = vpack.c.bf16 %v6742_v12, %v6740_v56  ;;  %v6542_v49 = vmax.f32 %v20235_v30, %v6430_v61  ;;  %6398 = vrot.lane.b32.xlu1 %v20236_v38, %s14597_s30  ;;  %v14061_v21 = vld [vmem:[%s19902_s4 + $0x2a0] ss:$12 sps:$4 sm:$0xff]   ;;  %v14067_v6 = vld [vmem:[%s19902_s4 + $0x2bc] ss:$12 sps:$4 sm:$0xff]  }
 0x5b4   :  { %v6596_v25 = vmax.f32 %v3914_v22, %v6540_v2  ;;  %v17732_v60 = vpop.permute.xlu0 %3691  ;;  %v20240_v22 = vld [vmem:[#allocation59_spill] sm:$0xff]  ;;  %v14071_v38 = vld [vmem:[%s19902_s4 + $0x2d4] ss:$12 sps:$4 sm:$0xff]  }
 0x5b5   :  { %v6598_v35 = vmax.f32 %v3916_v62, %v6542_v49  ;;  %v3694_v45 = vpop.permute.xlu1 %3693  ;;  %7213 = vmatmul.mubr.bf16.gmra.mrb[128].mxu0 %v17726_v16  ;;  %7288 = vmatmul.mubr.bf16.gmra.mrb[128].mxu1 %v17726_v16  ;;  %v14065_v62 = vld [vmem:[%s19902_s4 + $0x2b8] ss:$12 sps:$4 sm:$0xff]   ;;  %v14068_v30 = vld [vmem:[%s19902_s4 + $0x2c0] ss:$12 sps:$4 sm:$0xff]  }
 0x5b6   :  { %v6664_v15 = vadd.f32 %v17231_v24, %v6596_v25  ;;  %11874 = vmatprep.mubr.msk.bf16.mxu0 %vm337_vm0, %v17265_v51  ;;  %11879 = vmatprep.mubr.msk.bf16.mxu1 %vm337_vm0, %v17265_v51  ;;  %v14064_v51 = vld [vmem:[%s19902_s4 + $0x2a8] ss:$12 sps:$4 sm:$0xff]   ;;  %v3811_v50 = vsel %vm3785_vm1, %v17732_v60, %v3694_v45 }
 0x5b7   :  { %v6666_v57 = vadd.f32 %v17231_v24, %v6598_v35  ;;  %6388 = vrot.lane.b32.xlu0 %v20237_v8, %s14597_s30  ;;  %6394 = vrot.lane.b32.xlu1 %v20238_v40, %s14597_s30  ;;  %v3923_v49 = vmax.f32 %v16104_v20, %v3811_v50  ;;  %v20241_v35 = vld [vmem:[#allocation61_spill] sm:$0xff]  ;;  %v20242_v45 = vld [vmem:[#allocation63_spill] sm:$0xff] }
 0x5b8   :  { %v6720_v28 = vmax.f32 %v6664_v15, 0.0  ;;  %v3698_v23 = vpop.permute.xlu0 %3697 }
 0x5b9   :  { %v6722_v56 = vmax.f32 %v6666_v57, 0.0  ;;  %v3700_v12 = vpop.permute.xlu1 %3699 }
 0x5ba   :  { %v3813_v25 = vsel %vm3785_vm1, %v3698_v23, %v3700_v12 }
 0x5bb   :  { %v17752_v37 = vpack.c.bf16 %v6722_v56, %v6720_v28  ;;  %3775 = vrot.lane.b32.xlu0 %v20239_v1, %s14597_s30  ;;  %3777 = vrot.lane.b32.xlu1 %v20240_v22, %s14597_s30  ;;  %v14069_v28 = vld [vmem:[%s19902_s4 + $0x2d0] ss:$12 sps:$4 sm:$0xff]   ;;  %v14072_v56 = vld [vmem:[%s19902_s4 + $0x2d8] ss:$12 sps:$4 sm:$0xff]   ;;  %v3925_v12 = vmax.f32 %v16112_v58, %v3813_v25 }
 0x5bc   :  { %v6319_v2 = vpop.permute.xlu0 %6318  ;;  %v20244_v1 = vld [vmem:[#allocation62_spill] sm:$0xff]  ;;  %v14075_v58 = vld [vmem:[%s19902_s4 + $0x2ec] ss:$12 sps:$4 sm:$0xff]  }
 0x5bd   :  { %v6321_v61 = vpop.permute.xlu1 %6320  ;;  %7568 = vmatmul.mubr.bf16.vlgmr.msra.gmra.mrb[112].mxu0 %v17270_v42  ;;  %7651 = vmatmul.mubr.bf16.vlgmr.msra.gmra.mrb[112].mxu1 %v17270_v42 }
 0x5be   :  { %v6437_v59 = vsel %vm3785_vm1, %v6319_v2, %v6321_v61  ;;  %7976 = vmatpush1.bf16.msra.mxu0 %v14061_v21  ;;  %8059 = vmatpush1.bf16.msra.mxu1 %v14064_v51  ;;  %v20243_v51 = vld [vmem:[#allocation58_spill] sm:$0xff] }
 0x5bf   :  { %v6549_v42 = vmax.f32 %v17001_v7, %v6437_v59  ;;  %11875 = vmatprep.mubr.msk.bf16.mxu0 %vm337_vm0, %v17385_v53  ;;  %11880 = vmatprep.mubr.msk.bf16.mxu1 %vm337_vm0, %v17385_v53  ;;  %v14076_v59 = vld [vmem:[%s19902_s4 + $0x2f0] ss:$12 sps:$4 sm:$0xff]  }
 0x5c0   :  { %3781 = vrot.lane.b32.xlu0 %v20241_v35, %s14597_s30  ;;  %3783 = vrot.lane.b32.xlu1 %v20242_v45, %s14597_s30  ;;  %v6325_v20 = vpop.permute.xlu0 %6324 }
 0x5c1   :  { %v6605_v7 = vmax.f32 %v3923_v49, %v6549_v42  ;;  %7977 = vmatprep.subr.bf16.mxu0 %v14067_v6  ;;  %8060 = vmatprep.subr.bf16.mxu1 %v20153_v41  ;;  %v6327_v15 = vpop.permute.xlu1 %6326  ;;  %v14079_v49 = vld [vmem:[%s19902_s4 + $0x304] ss:$12 sps:$4 sm:$0xff]  }
 0x5c2   :  { %v6439_v57 = vsel %vm3785_vm1, %v6325_v20, %v6327_v15  ;;  %7978 = vmatpush1.bf16.msra.mxu0 %v14065_v62  ;;  %8061 = vmatpush1.bf16.msra.mxu1 %v14068_v30  ;;  %v20246_v15 = vld [vmem:[#allocation18_spill] sm:$0xff] }
 0x5c3   :  { %v6551_v21 = vmax.f32 %v17008_v36, %v6439_v57  ;;  %7979 = vmatprep.subr.bf16.mxu0 %v14071_v38  ;;  %8062 = vmatprep.subr.bf16.mxu1 %v20153_v41  ;;  %v6673_v50 = vadd.f32 %v17227_v5, %v6605_v7  ;;  %v14073_v36 = vld [vmem:[%s19902_s4 + $0x2e8] ss:$12 sps:$4 sm:$0xff]   ;;  %v20245_v38 = vld [vmem:[#allocation141_spill] sm:$0xff] }
 0x5c4   :  { %3773 = vrot.lane.b32.xlu0 %v20243_v51, %s14597_s30  ;;  %3779 = vrot.lane.b32.xlu1 %v20244_v1, %s14597_s30  ;;  %v3690_v22 = vpop.permute.xlu0 %3689 }
 0x5c5   :  { %v6607_v61 = vmax.f32 %v3925_v12, %v6551_v21  ;;  %v3696_v6 = vpop.permute.xlu1 %3695  ;;  %7578 = vmatmul.mubr.bf16.gmra.mrb[116].mxu0 %v17396_v63  ;;  %7659 = vmatmul.mubr.bf16.gmra.mrb[116].mxu1 %v17396_v63  ;;  %v3810_v30 = vsel %vm3785_vm1, %v3690_v22, %v17732_v60  ;;  %v6729_v60 = vmax.f32 %v6673_v50, 0.0  ;;  %v20248_v21 = vld [vmem:[#allocation19_spill] sm:$0xff]  ;;  %v20249_v50 = vld [vmem:[#allocation98_spill] sm:$0xff] }
 0x5c6   :  { %7980 = vmatpush1.bf16.msra.mxu0 %v14069_v28  ;;  %8063 = vmatpush1.bf16.msra.mxu1 %v14072_v56  ;;  %v3812_v42 = vsel %vm3785_vm1, %v3696_v6, %v3698_v23  ;;  %v3922_v57 = vmax.f32 %v20246_v15, %v3810_v30  ;;  %v20247_v28 = vld [vmem:[#allocation97_spill] sm:$0xff]  ;;  %v20250_v6 = vld [vmem:[#allocation143_spill] sm:$0xff] }
 0x5c7   :  { %v6675_v62 = vadd.f32 %v17227_v5, %v6607_v61  ;;  %11876 = vmatprep.mubr.msk.bf16.mxu0 %vm337_vm0, %v17719_v46  ;;  %11881 = vmatprep.mubr.msk.bf16.mxu1 %vm337_vm0, %v17719_v46  ;;  %v3924_v22 = vmax.f32 %v20248_v21, %v3812_v42  ;;  %v14083_v30 = vld [vmem:[%s19902_s4 + $0x31c] ss:$12 sps:$4 sm:$0xff]   ;;  %v14081_v42 = vld [vmem:[%s19902_s4 + $0x318] ss:$12 sps:$4 sm:$0xff]  }
 0x5c8   :  { %6402 = vrot.lane.b32.xlu0 %v17162_v47, %s14597_s30  ;;  %6404 = vrot.lane.b32.xlu1 %v20245_v38, %s14597_s30  ;;  %v6317_v25 = vpop.permute.xlu0 %6316  ;;  %v14077_v47 = vld [vmem:[%s19902_s4 + $0x300] ss:$12 sps:$4 sm:$0xff]  }
 0x5c9   :  { %v6731_v35 = vmax.f32 %v6675_v62, 0.0  ;;  %v6436_v45 = vsel %vm3785_vm1, %v6317_v25, %v6319_v2  ;;  %7981 = vmatprep.subr.bf16.mxu0 %v14075_v58  ;;  %8064 = vmatprep.subr.bf16.mxu1 %v20153_v41  ;;  %v6323_v7 = vpop.permute.xlu1 %6322  ;;  %v14080_v2 = vld [vmem:[%s19902_s4 + $0x308] ss:$12 sps:$4 sm:$0xff]   ;;  %v20251_v58 = vld [vmem:[#allocation146_spill] sm:$0xff] }
 0x5ca   :  { %v6548_v56 = vmax.f32 %v20247_v28, %v6436_v45  ;;  %v6438_v23 = vsel %vm3785_vm1, %v6323_v7, %v6325_v20  ;;  %7982 = vmatpush1.bf16.msra.mxu0 %v14073_v36  ;;  %8065 = vmatpush1.bf16.msra.mxu1 %v14076_v59  ;;  %v14084_v38 = vld [vmem:[%s19902_s4 + $0x320] ss:$12 sps:$4 sm:$0xff]   ;;  %v20253_v7 = vld [vmem:[#allocation145_spill] sm:$0xff] }
 0x5cb   :  { %v17839_v12 = vpack.c.bf16 %v6731_v35, %v6729_v60  ;;  %v6550_v61 = vmax.f32 %v20249_v50, %v6438_v23  ;;  %7983 = vmatprep.subr.bf16.mxu0 %v14079_v49  ;;  %8066 = vmatprep.subr.bf16.mxu1 %v20153_v41  ;;  %v14087_v60 = vld [vmem:[%s19902_s4 + $0x334] ss:$12 sps:$4 sm:$0xff]   ;;  %v14088_v23 = vld [vmem:[%s19902_s4 + $0x338] ss:$12 sps:$4 sm:$0xff]  }
 0x5cc   :  { %v6604_v20 = vmax.f32 %v3922_v57, %v6548_v56  ;;  %6408 = vrot.lane.b32.xlu0 %v20250_v6, %s14597_s30  ;;  %6410 = vrot.lane.b32.xlu1 %v20251_v58, %s14597_s30  ;;  %v17848_v36 = vpop.permute.xlu0 %3715  ;;  %v20252_v45 = vld [vmem:[#allocation142_spill] sm:$0xff]  ;;  %v14085_v56 = vld [vmem:[%s19902_s4 + $0x330] ss:$12 sps:$4 sm:$0xff]  }
 0x5cd   :  { %v6606_v59 = vmax.f32 %v3924_v22, %v6550_v61  ;;  %v3718_v62 = vpop.permute.xlu1 %3717  ;;  %7588 = vmatmul.mubr.bf16.gmra.mrb[120].mxu0 %v17752_v37  ;;  %7667 = vmatmul.mubr.bf16.gmra.mrb[120].mxu1 %v17752_v37  ;;  %v14092_v6 = vld [vmem:[%s19902_s4 + $0x350] ss:$12 sps:$4 sm:$0xff]  }
 0x5ce   :  { %v6672_v49 = vadd.f32 %v17231_v24, %v6604_v20  ;;  %7984 = vmatpush1.bf16.msra.mxu0 %v14077_v47  ;;  %8067 = vmatpush1.bf16.msra.mxu1 %v14080_v2  ;;  %v14091_v2 = vld [vmem:[%s19902_s4 + $0x34c] ss:$12 sps:$4 sm:$0xff]   ;;  %v3819_v21 = vsel %vm3785_vm1, %v17848_v36, %v3718_v62  ;;  %v14089_v20 = vld [vmem:[%s19902_s4 + $0x348] ss:$12 sps:$4 sm:$0xff]   ;;  %v14095_v62 = vld [vmem:[%s19902_s4 + $0x364] ss:$12 sps:$4 sm:$0xff]  }
 0x5cf   :  { %v6674_v25 = vadd.f32 %v17231_v24, %v6606_v59  ;;  %11877 = vmatprep.mubr.msk.bf16.mxu0 %vm337_vm0, %v17839_v12  ;;  %11882 = vmatprep.mubr.msk.bf16.mxu1 %vm337_vm0, %v17839_v12  ;;  %v3931_v58 = vmax.f32 %v20133_v55, %v3819_v21  ;;  %v14093_v55 = vld [vmem:[%s19902_s4 + $0x360] ss:$12 sps:$4 sm:$0xff]  }
 0x5d0   :  { %v6728_v35 = vmax.f32 %v6672_v49, 0.0  ;;  %6400 = vrot.lane.b32.xlu0 %v20252_v45, %s14597_s30  ;;  %6406 = vrot.lane.b32.xlu1 %v20253_v7, %s14597_s30  ;;  %v3722_v15 = vpop.permute.xlu0 %3721 }
 0x5d1   :  { %v6730_v57 = vmax.f32 %v6674_v25, 0.0  ;;  %7985 = vmatprep.subr.bf16.mxu0 %v14083_v30  ;;  %8068 = vmatprep.subr.bf16.mxu1 %v20153_v41  ;;  %v3724_v28 = vpop.permute.xlu1 %3723 }
 0x5d2   :  { %7986 = vmatpush1.bf16.msra.mxu0 %v14081_v42  ;;  %8069 = vmatpush1.bf16.msra.mxu1 %v14084_v38  ;;  %v3821_v30 = vsel %vm3785_vm1, %v3722_v15, %v3724_v28 }
 0x5d3   :  { %v17881_v47 = vpack.c.bf16 %v6730_v57, %v6728_v35  ;;  %7987 = vmatprep.subr.bf16.mxu0 %v14087_v60  ;;  %8070 = vmatprep.subr.bf16.mxu1 %v20153_v41  ;;  %v3933_v60 = vmax.f32 %v20137_v9, %v3821_v30  ;;  %v14099_v57 = vld [vmem:[%s19902_s4 + $0x37c] ss:$12 sps:$4 sm:$0xff]   ;;  %v14097_v9 = vld [vmem:[%s19902_s4 + $0x378] ss:$12 sps:$4 sm:$0xff]  }
 0x5d4   :  { %v6343_v22 = vpop.permute.xlu0 %6342 }
 0x5d5   :  { %v6345_v50 = vpop.permute.xlu1 %6344  ;;  %7598 = vmatmul.mubr.bf16.gmra.mrb[124].mxu0 %v17881_v47  ;;  %7675 = vmatmul.mubr.bf16.gmra.mrb[124].mxu1 %v17881_v47 }
 0x5d6   :  { %v6445_v61 = vsel %vm3785_vm1, %v6343_v22, %v6345_v50  ;;  %7988 = vmatpush1.bf16.msra.mxu0 %v14085_v56  ;;  %8071 = vmatpush1.bf16.msra.mxu1 %v14088_v23 }
 0x5d7   :  { %v6557_v59 = vmax.f32 %v20140_v10, %v6445_v61  ;;  %7989 = vmatprep.subr.bf16.mxu0 %v14091_v2  ;;  %8072 = vmatprep.subr.bf16.mxu1 %v20153_v41  ;;  %v14096_v10 = vld [vmem:[%s19902_s4 + $0x368] ss:$12 sps:$4 sm:$0xff]  }
 0x5d8   :  { %v6349_v49 = vpop.permute.xlu0 %6348  ;;  %v14103_v61 = vld [vmem:[%s19902_s4 + $0x394] ss:$12 sps:$4 sm:$0xff]  }
 0x5d9   :  { %v6613_v42 = vmax.f32 %v3931_v58, %v6557_v59  ;;  %v6351_v38 = vpop.permute.xlu1 %6350 }
 0x5da   :  { %v6447_v25 = vsel %vm3785_vm1, %v6349_v49, %v6351_v38  ;;  %7990 = vmatpush1.bf16.msra.mxu0 %v14089_v20  ;;  %8073 = vmatpush1.bf16.msra.mxu1 %v14092_v6 }
 0x5db   :  { %v6559_v35 = vmax.f32 %v20143_v44, %v6447_v25  ;;  %7991 = vmatprep.subr.bf16.mxu0 %v14095_v62  ;;  %8074 = vmatprep.subr.bf16.mxu1 %v20153_v41  ;;  %v6681_v56 = vadd.f32 %v17227_v5, %v6613_v42  ;;  %v14100_v44 = vld [vmem:[%s19902_s4 + $0x380] ss:$12 sps:$4 sm:$0xff]   ;;  %v20254_v42 = vld [vmem:[#allocation24_spill] sm:$0xff] }
 0x5dc   :  { %v3714_v28 = vpop.permute.xlu0 %3713  ;;  %v20255_v25 = vld [vmem:[#allocation107_spill] sm:$0xff] }
 0x5dd   :  { %v6615_v23 = vmax.f32 %v3933_v60, %v6559_v35  ;;  %v3720_v2 = vpop.permute.xlu1 %3719  ;;  %v3818_v50 = vsel %vm3785_vm1, %v3714_v28, %v17848_v36  ;;  %v6737_v58 = vmax.f32 %v6681_v56, 0.0 }
 0x5de   :  { %7992 = vmatpush1.bf16.msra.mxu0 %v14093_v55  ;;  %8075 = vmatpush1.bf16.msra.mxu1 %v14096_v10  ;;  %v3820_v20 = vsel %vm3785_vm1, %v3720_v2, %v3722_v15  ;;  %v3930_v38 = vmax.f32 %v20254_v42, %v3818_v50  ;;  %v14101_v10 = vld [vmem:[%s19902_s4 + $0x390] ss:$12 sps:$4 sm:$0xff]   ;;  %v14104_v15 = vld [vmem:[%s19902_s4 + $0x398] ss:$12 sps:$4 sm:$0xff]   ;;  %v14112_v42 = vld [vmem:[%s19902_s4 + $0x3c8] ss:$12 sps:$4 sm:$0xff]  }
 0x5df   :  { %v6683_v21 = vadd.f32 %v17227_v5, %v6615_v23  ;;  %7993 = vmatprep.subr.bf16.mxu0 %v14099_v57  ;;  %8076 = vmatprep.subr.bf16.mxu1 %v20153_v41  ;;  %v20257_v57 = vld [vmem:[#allocation109_spill] sm:$0xff] }
 0x5e0   :  { %v6341_v6 = vpop.permute.xlu0 %6340  ;;  %v14108_v50 = vld [vmem:[%s19902_s4 + $0x3b0] ss:$12 sps:$4 sm:$0xff]  }
 0x5e1   :  { %v6739_v59 = vmax.f32 %v6683_v21, 0.0  ;;  %v6444_v62 = vsel %vm3785_vm1, %v6341_v6, %v6343_v22  ;;  %v6347_v30 = vpop.permute.xlu1 %6346  ;;  %v20256_v22 = vld [vmem:[#allocation26_spill] sm:$0xff]  ;;  %v14105_v21 = vld [vmem:[%s19902_s4 + $0x3a8] ss:$12 sps:$4 sm:$0xff]  }
 0x5e2   :  { %v6556_v55 = vmax.f32 %v20255_v25, %v6444_v62  ;;  %v6446_v36 = vsel %vm3785_vm1, %v6347_v30, %v6349_v49  ;;  %7994 = vmatpush1.bf16.msra.mxu0 %v14097_v9  ;;  %8077 = vmatpush1.bf16.msra.mxu1 %v14100_v44  ;;  %v3932_v35 = vmax.f32 %v20256_v22, %v3820_v20  ;;  %v14107_v49 = vld [vmem:[%s19902_s4 + $0x3ac] ss:$12 sps:$4 sm:$0xff]   ;;  %v14111_v20 = vld [vmem:[%s19902_s4 + $0x3c4] ss:$12 sps:$4 sm:$0xff]   ;;  %v14119_v22 = vld [vmem:[%s19902_s4 + $0x3f4] ss:$12 sps:$4 sm:$0xff]  }
 0x5e3   :  { %v17943_v60 = vpack.c.bf16 %v6739_v59, %v6737_v58  ;;  %v6558_v28 = vmax.f32 %v20257_v57, %v6446_v36  ;;  %7995 = vmatprep.subr.bf16.mxu0 %v14103_v61  ;;  %8078 = vmatprep.subr.bf16.mxu1 %v20153_v41  ;;  %v14109_v30 = vld [vmem:[%s19902_s4 + $0x3c0] ss:$12 sps:$4 sm:$0xff]  }
 0x5e4   :  { %v6612_v56 = vmax.f32 %v3930_v38, %v6556_v55  ;;  %v17951_v23 = vpop.permute.xlu0 %3739  ;;  %v14115_v55 = vld [vmem:[%s19902_s4 + $0x3dc] ss:$12 sps:$4 sm:$0xff]  }
 0x5e5   :  { %v6614_v2 = vmax.f32 %v3932_v35, %v6558_v28  ;;  %v3742_v9 = vpop.permute.xlu1 %3741  ;;  %11878 = vmatprep.mubr.msk.bf16.mxu0 %vm337_vm0, %v17943_v60  ;;  %11883 = vmatprep.mubr.msk.bf16.mxu1 %vm337_vm0, %v17943_v60 }
 0x5e6   :  { %v6680_v44 = vadd.f32 %v17231_v24, %v6612_v56  ;;  %7996 = vmatpush1.bf16.msra.mxu0 %v14101_v10  ;;  %8079 = vmatpush1.bf16.msra.mxu1 %v14104_v15  ;;  %v14113_v10 = vld [vmem:[%s19902_s4 + $0x3d8] ss:$12 sps:$4 sm:$0xff]   ;;  %v14116_v15 = vld [vmem:[%s19902_s4 + $0x3e0] ss:$12 sps:$4 sm:$0xff]   ;;  %v3827_v35 = vsel %vm3785_vm1, %v17951_v23, %v3742_v9  ;;  %v14117_v56 = vld [vmem:[%s19902_s4 + $0x3f0] ss:$12 sps:$4 sm:$0xff]  }
 0x5e7   :  { %v6682_v61 = vadd.f32 %v17231_v24, %v6614_v2  ;;  %7997 = vmatprep.subr.bf16.mxu0 %v14107_v49  ;;  %8080 = vmatprep.subr.bf16.mxu1 %v20153_v41  ;;  %v14120_v2 = vld [vmem:[%s19902_s4 + $0x3f8] ss:$12 sps:$4 sm:$0xff]  }
 0x5e8   :  { %v6736_v6 = vmax.f32 %v6680_v44, 0.0  ;;  %v3746_v58 = vpop.permute.xlu0 %3745  ;;  %v3939_v44 = vmax.f32 %v20161_v39, %v3827_v35 }
 0x5e9   :  { %v6738_v59 = vmax.f32 %v6682_v61, 0.0  ;;  %v3748_v62 = vpop.permute.xlu1 %3747  ;;  %v14123_v61 = vld [vmem:[%s19902_s4 + $0x40c] ss:$12 sps:$4 sm:$0xff]  }
 0x5ea   :  { %7998 = vmatpush1.bf16.msra.mxu0 %v14105_v21  ;;  %8081 = vmatpush1.bf16.msra.mxu1 %v14108_v50  ;;  %v3829_v21 = vsel %vm3785_vm1, %v3746_v58, %v3748_v62 }
 0x5eb   :  { %v17975_v38 = vpack.c.bf16 %v6738_v59, %v6736_v6  ;;  %7999 = vmatprep.subr.bf16.mxu0 %v14111_v20  ;;  %8082 = vmatprep.subr.bf16.mxu1 %v20153_v41  ;;  %v14124_v59 = vld [vmem:[%s19902_s4 + $0x410] ss:$12 sps:$4 sm:$0xff]   ;;  %v3941_v62 = vmax.f32 %v20164_v43, %v3829_v21 }
 0x5ec   :  { %v3738_v25 = vpop.permute.xlu0 %3737 }
 0x5ed   :  { %v3744_v36 = vpop.permute.xlu1 %3743  ;;  %7608 = vmatmul.mubr.bf16.gmra.mrb[128].mxu0 %v17975_v38  ;;  %7683 = vmatmul.mubr.bf16.gmra.mrb[128].mxu1 %v17975_v38 }
 0x5ee   :  { %8000 = vmatpush1.bf16.msra.mxu0 %v14109_v30  ;;  %8083 = vmatpush1.bf16.msra.mxu1 %v14112_v42  ;;  %v3826_v30 = vsel %vm3785_vm1, %v3738_v25, %v17951_v23 }
 0x5ef   :  { %11982 = vmatprep.mubr.msk.bf16.mxu0 %vm337_vm0, %v17385_v53  ;;  %11987 = vmatprep.mubr.msk.bf16.mxu1 %vm337_vm0, %v17385_v53 }
 0x5f0   :  { %v6367_v57 = vpop.permute.xlu0 %6366  ;;  %8001 = vmatprep.subr.bf16.mxu0 %v14115_v55  ;;  %8084 = vmatprep.subr.bf16.mxu1 %v20153_v41  ;;  %v14127_v55 = vld [vmem:[%s19902_s4 + $0x424] ss:$12 sps:$4 sm:$0xff]  }
 0x5f1   :  { %v6369_v28 = vpop.permute.xlu1 %6368 }
 0x5f2   :  { %v6453_v49 = vsel %vm3785_vm1, %v6367_v57, %v6369_v28  ;;  %8002 = vmatpush1.bf16.msra.mxu0 %v14113_v10  ;;  %8085 = vmatpush1.bf16.msra.mxu1 %v14116_v15  ;;  %v3828_v10 = vsel %vm3785_vm1, %v3744_v36, %v3746_v58  ;;  %v20259_v28 = vld [vmem:[#allocation120_spill] sm:$0xff]  ;;  %v14125_v58 = vld [vmem:[%s19902_s4 + $0x420] ss:$12 sps:$4 sm:$0xff]  }
 0x5f3   :  { %v6565_v9 = vmax.f32 %v20176_v17, %v6453_v49  ;;  %8445 = vmatprep.subr.bf16.mxu0 %v14119_v22  ;;  %8528 = vmatprep.subr.bf16.mxu1 %v20153_v41  ;;  %v14121_v17 = vld [vmem:[%s19902_s4 + $0x408] ss:$12 sps:$4 sm:$0xff]  }
 0x5f4   :  { %v6373_v50 = vpop.permute.xlu0 %6372  ;;  %v20258_v22 = vld [vmem:[#allocation32_spill] sm:$0xff] }
 0x5f5   :  { %v6621_v20 = vmax.f32 %v3939_v44, %v6565_v9  ;;  %v6375_v6 = vpop.permute.xlu1 %6374  ;;  %8008 = vmatmul.mubr.bf16.vlgmr.msra.gmra.mrb[112].mxu0 %v17396_v63  ;;  %8091 = vmatmul.mubr.bf16.vlgmr.msra.gmra.mrb[112].mxu1 %v17396_v63  ;;  %v3938_v35 = vmax.f32 %v20258_v22, %v3826_v30  ;;  %v14128_v36 = vld [vmem:[%s19902_s4 + $0x428] ss:$12 sps:$4 sm:$0xff]   ;;  %v14129_v30 = vld [vmem:[%s19902_s4 + $0x438] ss:$12 sps:$4 sm:$0xff]   ;;  %v14133_v22 = vld [vmem:[%s19902_s4 + $0x450] ss:$12 sps:$4 sm:$0xff]  }
 0x5f6   :  { %v6455_v39 = vsel %vm3785_vm1, %v6373_v50, %v6375_v6  ;;  %8446 = vmatpush1.bf16.msra.mxu0 %v14117_v56  ;;  %8529 = vmatpush1.bf16.msra.mxu1 %v14120_v2  ;;  %v20260_v2 = vld [vmem:[#allocation37_spill] sm:$0xff]  ;;  %v20261_v9 = vld [vmem:[#allocation123_spill] sm:$0xff] }
 0x5f7   :  { %v6567_v42 = vmax.f32 %v17094_v48, %v6455_v39  ;;  %11983 = vmatprep.mubr.msk.bf16.mxu0 %vm337_vm0, %v17719_v46  ;;  %11988 = vmatprep.mubr.msk.bf16.mxu1 %vm337_vm0, %v17719_v46  ;;  %v6689_v23 = vadd.f32 %v17227_v5, %v6621_v20  ;;  %v3940_v44 = vmax.f32 %v20260_v2, %v3828_v10  ;;  %v14140_v2 = vld [vmem:[%s19902_s4 + $0x470] ss:$12 sps:$4 sm:$0xff]  }
 0x5f8   :  { %8447 = vmatprep.subr.bf16.mxu0 %v14123_v61  ;;  %8530 = vmatprep.subr.bf16.mxu1 %v20153_v41  ;;  %v6365_v43 = vpop.permute.xlu0 %6364 }
 0x5f9   :  { %v6623_v25 = vmax.f32 %v3941_v62, %v6567_v42  ;;  %v6452_v48 = vsel %vm3785_vm1, %v6365_v43, %v6367_v57  ;;  %v6371_v15 = vpop.permute.xlu1 %6370  ;;  %v6745_v6 = vmax.f32 %v6689_v23, 0.0  ;;  %v14132_v42 = vld [vmem:[%s19902_s4 + $0x440] ss:$12 sps:$4 sm:$0xff]  }
 0x5fa   :  { %v6564_v49 = vmax.f32 %v20259_v28, %v6452_v48  ;;  %8448 = vmatpush1.bf16.msra.mxu0 %v14121_v17  ;;  %8531 = vmatpush1.bf16.msra.mxu1 %v14124_v59  ;;  %v6454_v56 = vsel %vm3785_vm1, %v6371_v15, %v6373_v50  ;;  %v14131_v50 = vld [vmem:[%s19902_s4 + $0x43c] ss:$12 sps:$4 sm:$0xff]   ;;  %v14135_v43 = vld [vmem:[%s19902_s4 + $0x454] ss:$12 sps:$4 sm:$0xff]  }
 0x5fb   :  { %v6691_v57 = vadd.f32 %v17227_v5, %v6623_v25  ;;  %v6566_v21 = vmax.f32 %v20261_v9, %v6454_v56  ;;  %8449 = vmatprep.subr.bf16.mxu0 %v14127_v55  ;;  %8532 = vmatprep.subr.bf16.mxu1 %v20153_v41  ;;  %v14139_v56 = vld [vmem:[%s19902_s4 + $0x46c] ss:$12 sps:$4 sm:$0xff]  }
 0x5fc   :  { %v6620_v61 = vmax.f32 %v3938_v35, %v6564_v49  ;;  %v18050_v20 = vpop.permute.xlu0 %3751  ;;  %v14136_v35 = vld [vmem:[%s19902_s4 + $0x458] ss:$12 sps:$4 sm:$0xff]  }
 0x5fd   :  { %v6747_v39 = vmax.f32 %v6691_v57, 0.0  ;;  %v6622_v17 = vmax.f32 %v3940_v44, %v6566_v21  ;;  %8018 = vmatmul.mubr.bf16.gmra.mrb[116].mxu0 %v17752_v37  ;;  %8099 = vmatmul.mubr.bf16.gmra.mrb[116].mxu1 %v17752_v37  ;;  %v3754_v59 = vpop.permute.xlu1 %3753  ;;  %v14143_v44 = vld [vmem:[%s19902_s4 + $0x484] ss:$12 sps:$4 sm:$0xff]  }
 0x5fe   :  { %v6688_v62 = vadd.f32 %v17231_v24, %v6620_v61  ;;  %8450 = vmatpush1.bf16.msra.mxu0 %v14125_v58  ;;  %8533 = vmatpush1.bf16.msra.mxu1 %v14128_v36  ;;  %v14137_v36 = vld [vmem:[%s19902_s4 + $0x468] ss:$12 sps:$4 sm:$0xff]   ;;  %v3831_v57 = vsel %vm3785_vm1, %v18050_v20, %v3754_v59 }
 0x5ff   :  { %v18064_v55 = vpack.c.bf16 %v6747_v39, %v6745_v6  ;;  %v6690_v10 = vadd.f32 %v17231_v24, %v6622_v17  ;;  %11984 = vmatprep.mubr.msk.bf16.mxu0 %vm337_vm0, %v17839_v12  ;;  %11989 = vmatprep.mubr.msk.bf16.mxu1 %vm337_vm0, %v17839_v12  ;;  %v14144_v6 = vld [vmem:[%s19902_s4 + $0x488] ss:$12 sps:$4 sm:$0xff]   ;;  %v3943_v39 = vmax.f32 %v20194_v0, %v3831_v57 }
 0x600   :  { %v6744_v23 = vmax.f32 %v6688_v62, 0.0  ;;  %8451 = vmatprep.subr.bf16.mxu0 %v14131_v50  ;;  %8534 = vmatprep.subr.bf16.mxu1 %v20153_v41  ;;  %v3758_v25 = vpop.permute.xlu0 %3757  ;;  %v14141_v50 = vld [vmem:[%s19902_s4 + $0x480] ss:$12 sps:$4 sm:$0xff]  }
 0x601   :  { %v6746_v48 = vmax.f32 %v6690_v10, 0.0  ;;  %v3760_v15 = vpop.permute.xlu1 %3759 }
 0x602   :  { %8452 = vmatpush1.bf16.msra.mxu0 %v14129_v30  ;;  %8535 = vmatpush1.bf16.msra.mxu1 %v14132_v42  ;;  %v3833_v59 = vsel %vm3785_vm1, %v3758_v25, %v3760_v15  ;;  %v14147_v30 = vld [vmem:[%s19902_s4 + $0x49c] ss:$12 sps:$4 sm:$0xff]  }
 0x603   :  { %v18081_v28 = vpack.c.bf16 %v6746_v48, %v6744_v23  ;;  %8453 = vmatprep.subr.bf16.mxu0 %v14135_v43  ;;  %8536 = vmatprep.subr.bf16.mxu1 %v20153_v41  ;;  %v14148_v43 = vld [vmem:[%s19902_s4 + $0x4a0] ss:$12 sps:$4 sm:$0xff]   ;;  %v3945_v23 = vmax.f32 %v20198_v18, %v3833_v59 }
 0x604   :  { %v3750_v49 = vpop.permute.xlu0 %3749 }
 0x605   :  { %8028 = vmatmul.mubr.bf16.gmra.mrb[120].mxu0 %v17881_v47  ;;  %8107 = vmatmul.mubr.bf16.gmra.mrb[120].mxu1 %v17881_v47  ;;  %v3756_v58 = vpop.permute.xlu1 %3755  ;;  %v3830_v48 = vsel %vm3785_vm1, %v3750_v49, %v18050_v20 }
 0x606   :  { %8454 = vmatpush1.bf16.msra.mxu0 %v14133_v22  ;;  %8537 = vmatpush1.bf16.msra.mxu1 %v14136_v35  ;;  %v14151_v22 = vld [vmem:[%s19902_s4 + $0x4b4] ss:$12 sps:$4 sm:$0xff]   ;;  %v3832_v35 = vsel %vm3785_vm1, %v3756_v58, %v3758_v25  ;;  %v14149_v25 = vld [vmem:[%s19902_s4 + $0x4b0] ss:$12 sps:$4 sm:$0xff]   ;;  %v14152_v58 = vld [vmem:[%s19902_s4 + $0x4b8] ss:$12 sps:$4 sm:$0xff]  }
 0x607   :  { %11985 = vmatprep.mubr.msk.bf16.mxu0 %vm337_vm0, %v17943_v60  ;;  %11990 = vmatprep.mubr.msk.bf16.mxu1 %vm337_vm0, %v17943_v60 }
 0x608   :  { %8455 = vmatprep.subr.bf16.mxu0 %v14139_v56  ;;  %8538 = vmatprep.subr.bf16.mxu1 %v20153_v41  ;;  %v6379_v9 = vpop.permute.xlu0 %6378 }
 0x609   :  { %v6381_v21 = vpop.permute.xlu1 %6380 }
 0x60a   :  { %8456 = vmatpush1.bf16.msra.mxu0 %v14137_v36  ;;  %8539 = vmatpush1.bf16.msra.mxu1 %v14140_v2  ;;  %v6457_v61 = vsel %vm3785_vm1, %v6379_v9, %v6381_v21  ;;  %v20262_v36 = vld [vmem:[#allocation40_spill] sm:$0xff] }
 0x60b   :  { %v6569_v17 = vmax.f32 %v20211_v14, %v6457_v61  ;;  %8457 = vmatprep.subr.bf16.mxu0 %v14143_v44  ;;  %8540 = vmatprep.subr.bf16.mxu1 %v20153_v41  ;;  %v14145_v14 = vld [vmem:[%s19902_s4 + $0x498] ss:$12 sps:$4 sm:$0xff]   ;;  %v3942_v2 = vmax.f32 %v20262_v36, %v3830_v48 }
 0x60c   :  { %v6385_v62 = vpop.permute.xlu0 %6384  ;;  %v20263_v44 = vld [vmem:[#allocation125_spill] sm:$0xff] }
 0x60d   :  { %v6625_v42 = vmax.f32 %v3943_v39, %v6569_v17  ;;  %8038 = vmatmul.mubr.bf16.gmra.mrb[124].mxu0 %v17975_v38  ;;  %8115 = vmatmul.mubr.bf16.gmra.mrb[124].mxu1 %v17975_v38  ;;  %v6387_v10 = vpop.permute.xlu1 %6386  ;;  %v20264_v61 = vld [vmem:[#allocation45_spill] sm:$0xff] }
 0x60e   :  { %8458 = vmatpush1.bf16.msra.mxu0 %v14141_v50  ;;  %8541 = vmatpush1.bf16.msra.mxu1 %v14144_v6  ;;  %v6459_v0 = vsel %vm3785_vm1, %v6385_v62, %v6387_v10  ;;  %v3944_v50 = vmax.f32 %v20264_v61, %v3832_v35  ;;  %v20265_v6 = vld [vmem:[#allocation128_spill] sm:$0xff] }
 0x60f   :  { %v6571_v15 = vmax.f32 %v20213_v34, %v6459_v0  ;;  %11986 = vmatprep.mubr.msk.bf16.mxu0 %vm337_vm0, %v18064_v55  ;;  %11991 = vmatprep.mubr.msk.bf16.mxu1 %vm337_vm0, %v18064_v55  ;;  %v6693_v20 = vadd.f32 %v17227_v5, %v6625_v42 }
 0x610   :  { %8459 = vmatprep.subr.bf16.mxu0 %v14147_v30  ;;  %8542 = vmatprep.subr.bf16.mxu1 %v20153_v41  ;;  %v6377_v18 = vpop.permute.xlu0 %6376 }
 0x611   :  { %v6627_v49 = vmax.f32 %v3945_v23, %v6571_v15  ;;  %v6456_v34 = vsel %vm3785_vm1, %v6377_v18, %v6379_v9  ;;  %v6383_v56 = vpop.permute.xlu1 %6382  ;;  %v6749_v30 = vmax.f32 %v6693_v20, 0.0  ;;  %v14156_v23 = vld [vmem:[%s19902_s4 + $0x4d0] ss:$12 sps:$4 sm:$0xff]  }
 0x612   :  { %v6568_v57 = vmax.f32 %v20263_v44, %v6456_v34  ;;  %8460 = vmatpush1.bf16.msra.mxu0 %v14145_v14  ;;  %8543 = vmatpush1.bf16.msra.mxu1 %v14148_v43  ;;  %v6458_v21 = vsel %vm3785_vm1, %v6383_v56, %v6385_v62  ;;  %v14155_v62 = vld [vmem:[%s19902_s4 + $0x4cc] ss:$12 sps:$4 sm:$0xff]   ;;  %v14153_v43 = vld [vmem:[%s19902_s4 + $0x4c8] ss:$12 sps:$4 sm:$0xff]  }
 0x613   :  { %v6695_v9 = vadd.f32 %v17227_v5, %v6627_v49  ;;  %v6570_v39 = vmax.f32 %v20265_v6, %v6458_v21  ;;  %8461 = vmatprep.subr.bf16.mxu0 %v14151_v22  ;;  %8544 = vmatprep.subr.bf16.mxu1 %v20153_v41  ;;  %v14159_v22 = vld [vmem:[%s19902_s4 + $0x4e4] ss:$12 sps:$4 sm:$0xff]   ;;  %v14157_v34 = vld [vmem:[%s19902_s4 + $0x4e0] ss:$12 sps:$4 sm:$0xff]   ;;  %v14160_v56 = vld [vmem:[%s19902_s4 + $0x4e8] ss:$12 sps:$4 sm:$0xff]  }
 0x614   :  { %v6624_v17 = vmax.f32 %v3942_v2, %v6568_v57  ;;  %v3764_v59 = vpop.permute.xlu0 %3763  ;;  %v14163_v2 = vld [vmem:[%s19902_s4 + $0x4fc] ss:$12 sps:$4 sm:$0xff]   ;;  %v14161_v21 = vld [vmem:[%s19902_s4 + $0x4f8] ss:$12 sps:$4 sm:$0xff]  }
 0x615   :  { %v6751_v42 = vmax.f32 %v6695_v9, 0.0  ;;  %v6626_v10 = vmax.f32 %v3944_v50, %v6570_v39  ;;  %8048 = vmatmul.mubr.bf16.gmra.mrb[128].mxu0 %v18081_v28  ;;  %8123 = vmatmul.mubr.bf16.gmra.mrb[128].mxu1 %v18081_v28  ;;  %v3766_v0 = vpop.permute.xlu1 %3765  ;;  %v14165_v39 = vld [vmem:[%s19902_s4 + $0x510] ss:$12 sps:$4 sm:$0xff]  }
 0x616   :  { %v6692_v14 = vadd.f32 %v17231_v24, %v6624_v17  ;;  %8462 = vmatpush1.bf16.msra.mxu0 %v14149_v25  ;;  %8545 = vmatpush1.bf16.msra.mxu1 %v14152_v58  ;;  %v14164_v25 = vld [vmem:[%s19902_s4 + $0x500] ss:$12 sps:$4 sm:$0xff]   ;;  %v3835_v61 = vsel %vm3785_vm1, %v3764_v59, %v3766_v0  ;;  %v14168_v17 = vld [vmem:[%s19902_s4 + $0x518] ss:$12 sps:$4 sm:$0xff]  }
 0x617   :  { %v18168_v48 = vpack.c.bf16 %v6751_v42, %v6749_v30  ;;  %v6694_v15 = vadd.f32 %v17231_v24, %v6626_v10  ;;  %12090 = vmatprep.mubr.msk.bf16.mxu0 %vm337_vm0, %v17460_v11  ;;  %12095 = vmatprep.mubr.msk.bf16.mxu1 %vm337_vm0, %v17460_v11  ;;  %v14167_v58 = vld [vmem:[%s19902_s4 + $0x514] ss:$12 sps:$4 sm:$0xff]   ;;  %v14171_v42 = vld [vmem:[%s19902_s4 + $0x52c] ss:$12 sps:$4 sm:$0xff]  }
 0x618   :  { %v6748_v35 = vmax.f32 %v6692_v14, 0.0  ;;  %8463 = vmatprep.subr.bf16.mxu0 %v14155_v62  ;;  %8546 = vmatprep.subr.bf16.mxu1 %v20153_v41  ;;  %v3770_v18 = vpop.permute.xlu0 %3769  ;;  %v3947_v62 = vmax.f32 %v20225_v4, %v3835_v61 }
 0x619   :  { %v6750_v20 = vmax.f32 %v6694_v15, 0.0  ;;  %v3772_v49 = vpop.permute.xlu1 %3771 }
 0x61a   :  { %8464 = vmatpush1.bf16.msra.mxu0 %v14153_v43  ;;  %8547 = vmatpush1.bf16.msra.mxu1 %v14156_v23  ;;  %v3837_v10 = vsel %vm3785_vm1, %v3770_v18, %v3772_v49 }
 0x61b   :  { %v18185_v36 = vpack.c.bf16 %v6750_v20, %v6748_v35  ;;  %8465 = vmatprep.subr.bf16.mxu0 %v14159_v22  ;;  %8548 = vmatprep.subr.bf16.mxu1 %v20153_v41  ;;  %v18227_v22 = vld [vmem:[%s19902_s4 + $0x530] ss:$12 sps:$4 sm:$0xff]   ;;  %v3949_v35 = vmax.f32 %v20228_v54, %v3837_v10 }
 0x61c   :  { %v3762_v44 = vpop.permute.xlu0 %3761  ;;  %v20266_v20 = vld [vmem:[#allocation48_spill] sm:$0xff] }
 0x61d   :  { %v3768_v57 = vpop.permute.xlu1 %3767  ;;  %v3834_v23 = vsel %vm3785_vm1, %v3762_v44, %v3764_v59 }
 0x61e   :  { %8466 = vmatpush1.bf16.msra.mxu0 %v14157_v34  ;;  %8549 = vmatpush1.bf16.msra.mxu1 %v14160_v56  ;;  %v3836_v15 = vsel %vm3785_vm1, %v3768_v57, %v3770_v18  ;;  %v18235_v18 = vld [vmem:[%s19902_s4 + $0x544] ss:$12 sps:$4 sm:$0xff]   ;;  %v3946_v49 = vmax.f32 %v20266_v20, %v3834_v23 }
 0x61f   :  { %8467 = vmatprep.subr.bf16.mxu0 %v14163_v2  ;;  %8550 = vmatprep.subr.bf16.mxu1 %v20153_v41  ;;  %v20267_v34 = vld [vmem:[#allocation52_spill] sm:$0xff] }
 0x620   :  { %v6391_v50 = vpop.permute.xlu0 %6390  ;;  %v3948_v56 = vmax.f32 %v20267_v34, %v3836_v15  ;;  %v18277_v15 = vld [vmem:[%s19902_s4 + $0x558] ss:$12 sps:$4 sm:$0xff]  }
 0x621   :  { %v6393_v9 = vpop.permute.xlu1 %6392 }
 0x622   :  { %8468 = vmatpush1.bf16.msra.mxu0 %v14161_v21  ;;  %8551 = vmatpush1.bf16.msra.mxu1 %v14164_v25  ;;  %v6461_v6 = vsel %vm3785_vm1, %v6391_v50, %v6393_v9  ;;  %v20269_v9 = vld [vmem:[#allocation137_spill] sm:$0xff] }
 0x623   :  { %v6573_v30 = vmax.f32 %v20237_v8, %v6461_v6  ;;  %8469 = vmatprep.subr.bf16.mxu0 %v14167_v58  ;;  %8552 = vmatprep.subr.bf16.mxu1 %v20153_v41  ;;  %v18222_v8 = vld [vmem:[%s19902_s4 + $0x528] ss:$12 sps:$4 sm:$0xff]  }
 0x624   :  { %v6397_v0 = vpop.permute.xlu0 %6396  ;;  %v20268_v58 = vld [vmem:[#allocation132_spill] sm:$0xff] }
 0x625   :  { %v6629_v14 = vmax.f32 %v3947_v62, %v6573_v30  ;;  %v6399_v43 = vpop.permute.xlu1 %6398 }
 0x626   :  { %8470 = vmatpush1.bf16.msra.mxu0 %v14165_v39  ;;  %8553 = vmatpush1.bf16.msra.mxu1 %v14168_v17  ;;  %v6463_v4 = vsel %vm3785_vm1, %v6397_v0, %v6399_v43  ;;  %v18250_v39 = vld [vmem:[%s19902_s4 + $0x540] ss:$12 sps:$4 sm:$0xff]   ;;  %v18262_v17 = vld [vmem:[%s19902_s4 + $0x55c] ss:$12 sps:$4 sm:$0xff]  }
 0x627   :  { %v6575_v59 = vmax.f32 %v20238_v40, %v6463_v4  ;;  %8471 = vmatprep.subr.bf16.mxu0 %v14171_v42  ;;  %8554 = vmatprep.subr.bf16.mxu1 %v20153_v41  ;;  %v6697_v21 = vadd.f32 %v17227_v5, %v6629_v14  ;;  %v18282_v4 = vld [vmem:[%s19902_s4 + $0x560] ss:$12 sps:$4 sm:$0xff]  }
 0x629   :  { %v6631_v2 = vmax.f32 %v3949_v35, %v6575_v59  ;;  %v6389_v44 = vpop.permute.xlu0 %6388  ;;  %v6395_v57 = vpop.permute.xlu1 %6394  ;;  %v6753_v14 = vmax.f32 %v6697_v21, 0.0  ;;  %v18289_v35 = vld [vmem:[%s19902_s4 + $0x574] ss:$12 sps:$4 sm:$0xff]   ;;  %v18312_v21 = vld [vmem:[%s19902_s4 + $0x58c] ss:$12 sps:$4 sm:$0xff]  }
 0x62a   :  { %v6460_v54 = vsel %vm3785_vm1, %v6389_v44, %v6391_v50  ;;  %8472 = vmatpush1.bf16.msra.mxu0 %v18222_v8  ;;  %8555 = vmatpush1.bf16.msra.mxu1 %v18227_v22  ;;  %v6462_v40 = vsel %vm3785_vm1, %v6395_v57, %v6397_v0  ;;  %v18257_v50 = vld [vmem:[%s19902_s4 + $0x548] ss:$12 sps:$4 sm:$0xff]   ;;  %v18303_v44 = vld [vmem:[%s19902_s4 + $0x578] ss:$12 sps:$4 sm:$0xff]  }
 0x62b   :  { %v6699_v25 = vadd.f32 %v17227_v5, %v6631_v2  ;;  %v6572_v61 = vmax.f32 %v20268_v58, %v6460_v54  ;;  %v6574_v6 = vmax.f32 %v20269_v9, %v6462_v40  ;;  %8915 = vmatprep.subr.bf16.mxu0 %v18235_v18  ;;  %8998 = vmatprep.subr.bf16.mxu1 %v20153_v41  ;;  %v18298_v2 = vld [vmem:[%s19902_s4 + $0x570] ss:$12 sps:$4 sm:$0xff]  }
 0x62c   :  { %v18330_v58 = vld [vmem:[%s19902_s4 + $0x590] ss:$12 sps:$4 sm:$0xff]  }
 0x62d   :  { %v6755_v62 = vmax.f32 %v6699_v25, 0.0  ;;  %v6628_v30 = vmax.f32 %v3946_v49, %v6572_v61  ;;  %v6630_v42 = vmax.f32 %v3948_v56, %v6574_v6  ;;  %8478 = vmatmul.mubr.bf16.vlgmr.msra.gmra.mrb[112].mxu0 %v17471_v29  ;;  %8561 = vmatmul.mubr.bf16.vlgmr.msra.gmra.mrb[112].mxu1 %v17471_v29  ;;  %v3776_v10 = vpop.permute.xlu0 %3775  ;;  %v3778_v0 = vpop.permute.xlu1 %3777  ;;  %v18325_v25 = vld [vmem:[%s19902_s4 + $0x588] ss:$12 sps:$4 sm:$0xff]   ;;  %v18337_v61 = vld [vmem:[%s19902_s4 + $0x5a4] ss:$12 sps:$4 sm:$0xff]  }
 0x62e   :  { %12091 = vmatprep.mubr.msk.bf16.mxu0 %vm337_vm0, %v17555_v52  ;;  %12096 = vmatprep.mubr.msk.bf16.mxu1 %vm337_vm0, %v17555_v52  ;;  %v3839_v9 = vsel %vm3785_vm1, %v3776_v10, %v3778_v0 }
 0x62f   :  { %v6696_v43 = vadd.f32 %v17231_v24, %v6628_v30  ;;  %v6698_v23 = vadd.f32 %v17231_v24, %v6630_v42  ;;  %8916 = vmatpush1.bf16.msra.mxu0 %v18250_v39  ;;  %8999 = vmatpush1.bf16.msra.mxu1 %v18257_v50  ;;  %v18291_v59 = vpack.c.bf16 %v6755_v62, %v6753_v14  ;;  %v18346_v42 = vld [vmem:[%s19902_s4 + $0x5a0] ss:$12 sps:$4 sm:$0xff]   ;;  %v18351_v14 = vld [vmem:[%s19902_s4 + $0x5a8] ss:$12 sps:$4 sm:$0xff]  }
 0x630   :  { %8917 = vmatprep.subr.bf16.mxu0 %v18262_v17  ;;  %9000 = vmatprep.subr.bf16.mxu1 %v20153_v41  ;;  %20270 = vst [vmem:[#allocation2_spill] sm:$0xff] %v18346_v42  ;;  %20271 = vst [vmem:[#allocation72_spill] sm:$0xff] %v18351_v14  ;;  %v3951_v0 = vmax.f32 %v20243_v51, %v3839_v9  ;;  %v18376_v9 = vld [vmem:[%s19902_s4 + $0x5b8] ss:$12 sps:$4 sm:$0xff]  }
 0x631   :  { %v6752_v20 = vmax.f32 %v6696_v43, 0.0  ;;  %v6754_v49 = vmax.f32 %v6698_v23, 0.0  ;;  %v18360_v23 = vld [vmem:[%s19902_s4 + $0x5bc] ss:$12 sps:$4 sm:$0xff]  }
 0x632   :  { %v3782_v34 = vpop.permute.xlu0 %3781  ;;  %v3784_v56 = vpop.permute.xlu1 %3783 }
 0x633   :  { %8918 = vmatpush1.bf16.msra.mxu0 %v18277_v15  ;;  %9001 = vmatpush1.bf16.msra.mxu1 %v18282_v4  ;;  %v18305_v57 = vpack.c.bf16 %v6754_v49, %v6752_v20  ;;  %v3841_v20 = vsel %vm3785_vm1, %v3782_v34, %v3784_v56 }
 0x634   :  { %8919 = vmatprep.subr.bf16.mxu0 %v18289_v35  ;;  %9002 = vmatprep.subr.bf16.mxu1 %v20153_v41 }
 0x635   :  { %8488 = vmatmul.mubr.bf16.gmra.mrb[116].mxu0 %v17566_v27  ;;  %8569 = vmatmul.mubr.bf16.gmra.mrb[116].mxu1 %v17566_v27 }
 0x636   :  { %v3774_v54 = vpop.permute.xlu0 %3773  ;;  %12092 = vmatprep.mubr.msk.bf16.mxu0 %vm337_vm0, %v17631_v32  ;;  %12097 = vmatprep.mubr.msk.bf16.mxu1 %vm337_vm0, %v17631_v32  ;;  %v3780_v40 = vpop.permute.xlu1 %3779 }
 0x637   :  { %8920 = vmatpush1.bf16.msra.mxu0 %v18298_v2  ;;  %9003 = vmatpush1.bf16.msra.mxu1 %v18303_v44 }
 0x638   :  { %8921 = vmatprep.subr.bf16.mxu0 %v18312_v21  ;;  %9004 = vmatprep.subr.bf16.mxu1 %v20153_v41 }
 0x63a   :  { %v6403_v6 = vpop.permute.xlu0 %6402  ;;  %v6405_v62 = vpop.permute.xlu1 %6404 }
 0x63b   :  { %8922 = vmatpush1.bf16.msra.mxu0 %v18325_v25  ;;  %9005 = vmatpush1.bf16.msra.mxu1 %v18330_v58  ;;  %v6465_v30 = vsel %vm3785_vm1, %v6403_v6, %v6405_v62 }
 0x63c   :  { %v6577_v43 = vmax.f32 %v20252_v45, %v6465_v30  ;;  %8923 = vmatprep.subr.bf16.mxu0 %v18337_v61  ;;  %9006 = vmatprep.subr.bf16.mxu1 %v20153_v41  ;;  %v3838_v45 = vsel %vm3785_vm1, %v3774_v54, %v3776_v10  ;;  %v18381_v30 = vld [vmem:[%s19902_s4 + $0x5c0] ss:$12 sps:$4 sm:$0xff]   ;;  %v3840_v10 = vsel %vm3785_vm1, %v3780_v40, %v3782_v34 }
 0x63d   :  { %8498 = vmatmul.mubr.bf16.gmra.mrb[120].mxu0 %v17639_v33  ;;  %8577 = vmatmul.mubr.bf16.gmra.mrb[120].mxu1 %v17639_v33 }
 0x63e   :  { %v6633_v49 = vmax.f32 %v3951_v0, %v6577_v43  ;;  %v6409_v62 = vpop.permute.xlu0 %6408  ;;  %12093 = vmatprep.mubr.msk.bf16.mxu0 %vm337_vm0, %v17704_v26  ;;  %12098 = vmatprep.mubr.msk.bf16.mxu1 %vm337_vm0, %v17704_v26  ;;  %v6411_v51 = vpop.permute.xlu1 %6410  ;;  %v3953_v0 = vmax.f32 %v20244_v1, %v3841_v20  ;;  %v18391_v43 = vld [vmem:[%s19902_s4 + $0x5d4] ss:$12 sps:$4 sm:$0xff]  }
 0x63f   :  { %8924 = vmatpush1.bf16.msra.mxu0 %v18346_v42  ;;  %9007 = vmatpush1.bf16.msra.mxu1 %v18351_v14  ;;  %v6467_v56 = vsel %vm3785_vm1, %v6409_v62, %v6411_v51  ;;  %v20272_v51 = vld [vmem:[#allocation56_spill] sm:$0xff] }
 0x640   :  { %v6579_v54 = vmax.f32 %v20253_v7, %v6467_v56  ;;  %8925 = vmatprep.subr.bf16.mxu0 %v18360_v23  ;;  %9008 = vmatprep.subr.bf16.mxu1 %v20153_v41  ;;  %v3950_v13 = vmax.f32 %v20272_v51, %v3838_v45  ;;  %v6701_v3 = vadd.f32 %v17227_v5, %v6633_v49  ;;  %v20273_v20 = vld [vmem:[#allocation60_spill] sm:$0xff]  ;;  %v18408_v49 = vld [vmem:[%s19902_s4 + $0x5d8] ss:$12 sps:$4 sm:$0xff]  }
 0x641   :  { %v3952_v34 = vmax.f32 %v20273_v20, %v3840_v10  ;;  %v18403_v56 = vld [vmem:[%s19902_s4 + $0x5d0] ss:$12 sps:$4 sm:$0xff]  }
 0x642   :  { %v6635_v14 = vmax.f32 %v3953_v0, %v6579_v54  ;;  %v6401_v42 = vpop.permute.xlu0 %6400  ;;  %v6407_v1 = vpop.permute.xlu1 %6406  ;;  %v20274_v0 = vld [vmem:[#allocation140_spill] sm:$0xff]  ;;  %v6757_v54 = vmax.f32 %v6701_v3, 0.0 }
 0x643   :  { %v6464_v7 = vsel %vm3785_vm1, %v6401_v42, %v6403_v6  ;;  %8926 = vmatpush1.bf16.msra.mxu0 %v18376_v9  ;;  %9009 = vmatpush1.bf16.msra.mxu1 %v18381_v30  ;;  %v6466_v40 = vsel %vm3785_vm1, %v6407_v1, %v6409_v62  ;;  %v20275_v42 = vld [vmem:[#allocation144_spill] sm:$0xff]  ;;  %v18418_v62 = vld [vmem:[%s19902_s4 + $0x5ec] ss:$12 sps:$4 sm:$0xff]  }
 0x644   :  { %v6703_v45 = vadd.f32 %v17227_v5, %v6635_v14  ;;  %v6576_v6 = vmax.f32 %v20274_v0, %v6464_v7  ;;  %v6578_v10 = vmax.f32 %v20275_v42, %v6466_v40  ;;  %8927 = vmatprep.subr.bf16.mxu0 %v18391_v43  ;;  %9010 = vmatprep.subr.bf16.mxu1 %v20153_v41  ;;  %v18431_v1 = vld [vmem:[%s19902_s4 + $0x5e8] ss:$12 sps:$4 sm:$0xff]   ;;  %v18436_v3 = vld [vmem:[%s19902_s4 + $0x5f0] ss:$12 sps:$4 sm:$0xff]   ;;  %v18454_v0 = vld [vmem:[%s19902_s4 + $0x600] ss:$12 sps:$4 sm:$0xff]  }
 0x645   :  { %8508 = vmatmul.mubr.bf16.gmra.mrb[124].mxu0 %v17726_v16  ;;  %8585 = vmatmul.mubr.bf16.gmra.mrb[124].mxu1 %v17726_v16 }
 0x646   :  { %v6759_v51 = vmax.f32 %v6703_v45, 0.0  ;;  %v6632_v5 = vmax.f32 %v3950_v13, %v6576_v6  ;;  %v6634_v14 = vmax.f32 %v3952_v34, %v6578_v10  ;;  %12094 = vmatprep.mubr.msk.bf16.mxu0 %vm337_vm0, %v18168_v48  ;;  %12099 = vmatprep.mubr.msk.bf16.mxu1 %vm337_vm0, %v18168_v48  ;;  %v18443_v13 = vld [vmem:[%s19902_s4 + $0x604] ss:$12 sps:$4 sm:$0xff]   ;;  %v18459_v6 = vld [vmem:[%s19902_s4 + $0x608] ss:$12 sps:$4 sm:$0xff]  }
 0x647   :  { %8928 = vmatpush1.bf16.msra.mxu0 %v18403_v56  ;;  %9011 = vmatpush1.bf16.msra.mxu1 %v18408_v49  ;;  %v18481_v10 = vld [vmem:[%s19902_s4 + $0x618] ss:$12 sps:$4 sm:$0xff]  }
 0x648   :  { %8929 = vmatprep.subr.bf16.mxu0 %v18418_v62  ;;  %9012 = vmatprep.subr.bf16.mxu1 %v20153_v41  ;;  %v18445_v20 = vpack.c.bf16 %v6759_v51, %v6757_v54  ;;  %v6700_v34 = vadd.f32 %v17231_v24, %v6632_v5  ;;  %v6702_v7 = vadd.f32 %v17231_v24, %v6634_v14  ;;  %v18466_v24 = vld [vmem:[%s19902_s4 + $0x61c] ss:$12 sps:$4 sm:$0xff]   ;;  %v18486_v54 = vld [vmem:[%s19902_s4 + $0x620] ss:$12 sps:$4 sm:$0xff]   ;;  %v18505_v14 = vld [vmem:[%s19902_s4 + $0x638] ss:$12 sps:$4 sm:$0xff]  }
 0x649   :  { %v18493_v51 = vld [vmem:[%s19902_s4 + $0x634] ss:$12 sps:$4 sm:$0xff]   ;;  %v18500_v5 = vld [vmem:[%s19902_s4 + $0x630] ss:$12 sps:$4 sm:$0xff]  }
 0x64a   :  { %20276 = vst [vmem:[#allocation111_spill] sm:$0xff] %v18445_v20  ;;  %v6756_v40 = vmax.f32 %v6700_v34, 0.0  ;;  %v6758_v45 = vmax.f32 %v6702_v7, 0.0  ;;  %v18512_v34 = vld [vmem:[%s19902_s4 + $0x64c] ss:$12 sps:$4 sm:$0xff]  }
 0x64b   :  { %8930 = vmatpush1.bf16.msra.mxu0 %v18431_v1  ;;  %9013 = vmatpush1.bf16.msra.mxu1 %v18436_v3  ;;  %v18519_v7 = vld [vmem:[%s19902_s4 + $0x648] ss:$12 sps:$4 sm:$0xff]  }
 0x64c   :  { %8931 = vmatprep.subr.bf16.mxu0 %v18443_v13  ;;  %9014 = vmatprep.subr.bf16.mxu1 %v20153_v41  ;;  %v18468_v42 = vpack.c.bf16 %v6758_v45, %v6756_v40  ;;  %20278 = vst [vmem:[#allocation64_spill] sm:$0xff] %v18519_v7  ;;  %v18524_v40 = vld [vmem:[%s19902_s4 + $0x650] ss:$12 sps:$4 sm:$0xff]   ;;  %v18543_v20 = vld [vmem:[%s19902_s4 + $0x668] ss:$12 sps:$4 sm:$0xff]  }
 0x64d   :  { %8518 = vmatmul.mubr.bf16.gmra.mrb[128].mxu0 %v18185_v36  ;;  %8593 = vmatmul.mubr.bf16.gmra.mrb[128].mxu1 %v18185_v36  ;;  %20279 = vst [vmem:[#allocation25_spill] sm:$0xff] %v18524_v40  ;;  %v18531_v45 = vld [vmem:[%s19902_s4 + $0x664] ss:$12 sps:$4 sm:$0xff]   ;;  %20281 = vst [vmem:[#allocation66_spill] sm:$0xff] %v18543_v20 }
 0x64e   :  { %20277 = vst [vmem:[#allocation65_spill] sm:$0xff] %v18468_v42  ;;  %12198 = vmatprep.mubr.msk.bf16.mxu0 %vm337_vm0, %v17719_v46  ;;  %12203 = vmatprep.mubr.msk.bf16.mxu1 %vm337_vm0, %v17719_v46  ;;  %20280 = vst [vmem:[#allocation4_spill] sm:$0xff] %v18531_v45  ;;  %v18538_v42 = vld [vmem:[%s19902_s4 + $0x660] ss:$12 sps:$4 sm:$0xff]  }
 0x64f   :  { %8932 = vmatpush1.bf16.msra.mxu0 %v18454_v0  ;;  %9015 = vmatpush1.bf16.msra.mxu1 %v18459_v6 }
 0x650   :  { %8933 = vmatprep.subr.bf16.mxu0 %v18466_v24  ;;  %9016 = vmatprep.subr.bf16.mxu1 %v20153_v41 }
 0x653   :  { %8934 = vmatpush1.bf16.msra.mxu0 %v18481_v10  ;;  %9017 = vmatpush1.bf16.msra.mxu1 %v18486_v54 }
 0x654   :  { %8935 = vmatprep.subr.bf16.mxu0 %v18493_v51  ;;  %9018 = vmatprep.subr.bf16.mxu1 %v20153_v41 }
 0x657   :  { %8936 = vmatpush1.bf16.msra.mxu0 %v18500_v5  ;;  %9019 = vmatpush1.bf16.msra.mxu1 %v18505_v14 }
 0x658   :  { %8937 = vmatprep.subr.bf16.mxu0 %v18512_v34  ;;  %9020 = vmatprep.subr.bf16.mxu1 %v20153_v41 }
 0x65b   :  { %8938 = vmatpush1.bf16.msra.mxu0 %v18519_v7  ;;  %9021 = vmatpush1.bf16.msra.mxu1 %v18524_v40  ;;  %v18550_v7 = vld [vmem:[%s19902_s4 + $0x67c] ss:$12 sps:$4 sm:$0xff]   ;;  %v18557_v40 = vld [vmem:[%s19902_s4 + $0x678] ss:$12 sps:$4 sm:$0xff]  }
 0x65c   :  { %8939 = vmatprep.subr.bf16.mxu0 %v18531_v45  ;;  %9022 = vmatprep.subr.bf16.mxu1 %v20153_v41  ;;  %20282 = vst [vmem:[#allocation76_spill] sm:$0xff] %v18550_v7  ;;  %20283 = vst [vmem:[#allocation27_spill] sm:$0xff] %v18557_v40  ;;  %v18562_v45 = vld [vmem:[%s19902_s4 + $0x680] ss:$12 sps:$4 sm:$0xff]  }
 0x65d   :  { %20284 = vst [vmem:[#allocation3_spill] sm:$0xff] %v18562_v45 }
 0x65f   :  { %8940 = vmatpush1.bf16.msra.mxu0 %v18538_v42  ;;  %9023 = vmatpush1.bf16.msra.mxu1 %v18543_v20  ;;  %v14430_v20 = vld [vmem:[%s19902_s4 + $0x154] ss:$12 sps:$4 sm:$0xff]  }
 0x660   :  { %8941 = vmatprep.subr.bf16.mxu0 %v18550_v7  ;;  %9024 = vmatprep.subr.bf16.mxu1 %v20153_v41  ;;  %v14434_v7 = vld [vmem:[%s19902_s4 + $0x168] ss:$12 sps:$4 sm:$0xff]  }
 0x663   :  { %8942 = vmatpush1.bf16.msra.mxu0 %v18557_v40  ;;  %9025 = vmatpush1.bf16.msra.mxu1 %v18562_v45  ;;  %v14431_v45 = vld [vmem:[%s19902_s4 + $0x150] ss:$12 sps:$4 sm:$0xff]   ;;  %v14433_v40 = vld [vmem:[%s19902_s4 + $0x16c] ss:$12 sps:$4 sm:$0xff]  }
 0x664   :  { %9211 = vmatprep.subr.bf16.mxu0 %v14430_v20  ;;  %9294 = vmatprep.subr.bf16.mxu1 %v20153_v41  ;;  %v14432_v20 = vld [vmem:[%s19902_s4 + $0x158] ss:$12 sps:$4 sm:$0xff]  }
 0x666   :  { %8948 = vmatmul.mubr.bf16.vlgmr.msra.gmra.mrb[112].mxu0 %v17752_v37  ;;  %9031 = vmatmul.mubr.bf16.vlgmr.msra.gmra.mrb[112].mxu1 %v17752_v37 }
 0x667   :  { %12199 = vmatprep.mubr.msk.bf16.mxu0 %vm337_vm0, %v17839_v12  ;;  %12204 = vmatprep.mubr.msk.bf16.mxu1 %vm337_vm0, %v17839_v12 }
 0x668   :  { %9212 = vmatpush1.bf16.msra.mxu0 %v14431_v45  ;;  %9295 = vmatpush1.bf16.msra.mxu1 %v14432_v20  ;;  %v14435_v45 = vld [vmem:[%s19902_s4 + $0x170] ss:$12 sps:$4 sm:$0xff]  }
 0x669   :  { %9213 = vmatprep.subr.bf16.mxu0 %v14433_v40  ;;  %9296 = vmatprep.subr.bf16.mxu1 %v20153_v41  ;;  %v14436_v20 = vld [vmem:[%s19902_s4 + $0x184] ss:$12 sps:$4 sm:$0xff]   ;;  %v14438_v40 = vld [vmem:[%s19902_s4 + $0x188] ss:$12 sps:$4 sm:$0xff]  }
 0x66c   :  { %9214 = vmatpush1.bf16.msra.mxu0 %v14434_v7  ;;  %9297 = vmatpush1.bf16.msra.mxu1 %v14435_v45  ;;  %v14437_v7 = vld [vmem:[%s19902_s4 + $0x180] ss:$12 sps:$4 sm:$0xff]   ;;  %v14439_v45 = vld [vmem:[%s19902_s4 + $0x19c] ss:$12 sps:$4 sm:$0xff]  }
 0x66d   :  { %9215 = vmatprep.subr.bf16.mxu0 %v14436_v20  ;;  %9298 = vmatprep.subr.bf16.mxu1 %v20153_v41  ;;  %v14440_v20 = vld [vmem:[%s19902_s4 + $0x198] ss:$12 sps:$4 sm:$0xff]  }
 0x66e   :  { %8958 = vmatmul.mubr.bf16.gmra.mrb[116].mxu0 %v17881_v47  ;;  %9039 = vmatmul.mubr.bf16.gmra.mrb[116].mxu1 %v17881_v47 }
 0x66f   :  { %12200 = vmatprep.mubr.msk.bf16.mxu0 %vm337_vm0, %v17943_v60  ;;  %12205 = vmatprep.mubr.msk.bf16.mxu1 %vm337_vm0, %v17943_v60 }
 0x670   :  { %9216 = vmatpush1.bf16.msra.mxu0 %v14437_v7  ;;  %9299 = vmatpush1.bf16.msra.mxu1 %v14438_v40  ;;  %v14441_v7 = vld [vmem:[%s19902_s4 + $0x1a0] ss:$12 sps:$4 sm:$0xff]  }
 0x671   :  { %9217 = vmatprep.subr.bf16.mxu0 %v14439_v45  ;;  %9300 = vmatprep.subr.bf16.mxu1 %v20153_v41  ;;  %v14442_v40 = vld [vmem:[%s19902_s4 + $0x1b4] ss:$12 sps:$4 sm:$0xff]   ;;  %v14443_v45 = vld [vmem:[%s19902_s4 + $0x1b0] ss:$12 sps:$4 sm:$0xff]  }
 0x674   :  { %9218 = vmatpush1.bf16.msra.mxu0 %v14440_v20  ;;  %9301 = vmatpush1.bf16.msra.mxu1 %v14441_v7  ;;  %v14444_v20 = vld [vmem:[%s19902_s4 + $0x1b8] ss:$12 sps:$4 sm:$0xff]  }
 0x675   :  { %9219 = vmatprep.subr.bf16.mxu0 %v14442_v40  ;;  %9302 = vmatprep.subr.bf16.mxu1 %v20153_v41  ;;  %v14445_v7 = vld [vmem:[%s19902_s4 + $0x1cc] ss:$12 sps:$4 sm:$0xff]   ;;  %v14446_v40 = vld [vmem:[%s19902_s4 + $0x1c8] ss:$12 sps:$4 sm:$0xff]  }
 0x676   :  { %8968 = vmatmul.mubr.bf16.gmra.mrb[120].mxu0 %v17975_v38  ;;  %9047 = vmatmul.mubr.bf16.gmra.mrb[120].mxu1 %v17975_v38 }
 0x677   :  { %12201 = vmatprep.mubr.msk.bf16.mxu0 %vm337_vm0, %v18064_v55  ;;  %12206 = vmatprep.mubr.msk.bf16.mxu1 %vm337_vm0, %v18064_v55 }
 0x678   :  { %9220 = vmatpush1.bf16.msra.mxu0 %v14443_v45  ;;  %9303 = vmatpush1.bf16.msra.mxu1 %v14444_v20  ;;  %v14447_v45 = vld [vmem:[%s19902_s4 + $0x1d0] ss:$12 sps:$4 sm:$0xff]  }
 0x679   :  { %9221 = vmatprep.subr.bf16.mxu0 %v14445_v7  ;;  %9304 = vmatprep.subr.bf16.mxu1 %v20153_v41  ;;  %v14448_v20 = vld [vmem:[%s19902_s4 + $0x1e4] ss:$12 sps:$4 sm:$0xff]   ;;  %v14449_v7 = vld [vmem:[%s19902_s4 + $0x1e0] ss:$12 sps:$4 sm:$0xff]  }
 0x67c   :  { %9222 = vmatpush1.bf16.msra.mxu0 %v14446_v40  ;;  %9305 = vmatpush1.bf16.msra.mxu1 %v14447_v45  ;;  %v14450_v40 = vld [vmem:[%s19902_s4 + $0x1e8] ss:$12 sps:$4 sm:$0xff]  }
 0x67d   :  { %9223 = vmatprep.subr.bf16.mxu0 %v14448_v20  ;;  %9306 = vmatprep.subr.bf16.mxu1 %v20153_v41  ;;  %v14451_v45 = vld [vmem:[%s19902_s4 + $0x1fc] ss:$12 sps:$4 sm:$0xff]   ;;  %v14452_v20 = vld [vmem:[%s19902_s4 + $0x1f8] ss:$12 sps:$4 sm:$0xff]  }
 0x67e   :  { %8978 = vmatmul.mubr.bf16.gmra.mrb[124].mxu0 %v18081_v28  ;;  %9055 = vmatmul.mubr.bf16.gmra.mrb[124].mxu1 %v18081_v28 }
 0x67f   :  { %12202 = vmatprep.mubr.msk.bf16.mxu0 %vm337_vm0, %v18291_v59  ;;  %12207 = vmatprep.mubr.msk.bf16.mxu1 %vm337_vm0, %v18291_v59 }
 0x680   :  { %9224 = vmatpush1.bf16.msra.mxu0 %v14449_v7  ;;  %9307 = vmatpush1.bf16.msra.mxu1 %v14450_v40  ;;  %v14453_v7 = vld [vmem:[%s19902_s4 + $0x200] ss:$12 sps:$4 sm:$0xff]  }
 0x681   :  { %9225 = vmatprep.subr.bf16.mxu0 %v14451_v45  ;;  %9308 = vmatprep.subr.bf16.mxu1 %v20153_v41  ;;  %v14454_v40 = vld [vmem:[%s19902_s4 + $0x214] ss:$12 sps:$4 sm:$0xff]   ;;  %v14455_v45 = vld [vmem:[%s19902_s4 + $0x210] ss:$12 sps:$4 sm:$0xff]  }
 0x684   :  { %9226 = vmatpush1.bf16.msra.mxu0 %v14452_v20  ;;  %9309 = vmatpush1.bf16.msra.mxu1 %v14453_v7  ;;  %v14456_v20 = vld [vmem:[%s19902_s4 + $0x218] ss:$12 sps:$4 sm:$0xff]  }
 0x685   :  { %9227 = vmatprep.subr.bf16.mxu0 %v14454_v40  ;;  %9310 = vmatprep.subr.bf16.mxu1 %v20153_v41  ;;  %v14457_v7 = vld [vmem:[%s19902_s4 + $0x22c] ss:$12 sps:$4 sm:$0xff]   ;;  %v14459_v40 = vld [vmem:[%s19902_s4 + $0x230] ss:$12 sps:$4 sm:$0xff]  }
 0x686   :  { %8988 = vmatmul.mubr.bf16.gmra.mrb[128].mxu0 %v18305_v57  ;;  %9063 = vmatmul.mubr.bf16.gmra.mrb[128].mxu1 %v18305_v57 }
 0x687   :  { %12208 = vmatprep.mubr.msk.bf16.mxu0 %vm337_vm0, %v17385_v53  ;;  %12213 = vmatprep.mubr.msk.bf16.mxu1 %vm337_vm0, %v17385_v53  ;;  %v14458_v53 = vld [vmem:[%s19902_s4 + $0x228] ss:$12 sps:$4 sm:$0xff]  }
 0x688   :  { %9228 = vmatpush1.bf16.msra.mxu0 %v14455_v45  ;;  %9311 = vmatpush1.bf16.msra.mxu1 %v14456_v20  ;;  %v14460_v45 = vld [vmem:[%s19902_s4 + $0x244] ss:$12 sps:$4 sm:$0xff]   ;;  %v14461_v20 = vld [vmem:[%s19902_s4 + $0x240] ss:$12 sps:$4 sm:$0xff]  }
 0x689   :  { %9229 = vmatprep.subr.bf16.mxu0 %v14457_v7  ;;  %9312 = vmatprep.subr.bf16.mxu1 %v20153_v41  ;;  %v14462_v7 = vld [vmem:[%s19902_s4 + $0x248] ss:$12 sps:$4 sm:$0xff]  }
 0x68c   :  { %9230 = vmatpush1.bf16.msra.mxu0 %v14458_v53  ;;  %9313 = vmatpush1.bf16.msra.mxu1 %v14459_v40  ;;  %v14463_v53 = vld [vmem:[%s19902_s4 + $0x25c] ss:$12 sps:$4 sm:$0xff]   ;;  %v14464_v40 = vld [vmem:[%s19902_s4 + $0x258] ss:$12 sps:$4 sm:$0xff]  }
 0x68d   :  { %9231 = vmatprep.subr.bf16.mxu0 %v14460_v45  ;;  %9314 = vmatprep.subr.bf16.mxu1 %v20153_v41  ;;  %v14465_v45 = vld [vmem:[%s19902_s4 + $0x260] ss:$12 sps:$4 sm:$0xff]  }
 0x690   :  { %9232 = vmatpush1.bf16.msra.mxu0 %v14461_v20  ;;  %9315 = vmatpush1.bf16.msra.mxu1 %v14462_v7  ;;  %v14466_v20 = vld [vmem:[%s19902_s4 + $0x274] ss:$12 sps:$4 sm:$0xff]   ;;  %v14467_v7 = vld [vmem:[%s19902_s4 + $0x270] ss:$12 sps:$4 sm:$0xff]  }
 0x691   :  { %9233 = vmatprep.subr.bf16.mxu0 %v14463_v53  ;;  %9316 = vmatprep.subr.bf16.mxu1 %v20153_v41  ;;  %v14468_v53 = vld [vmem:[%s19902_s4 + $0x278] ss:$12 sps:$4 sm:$0xff]  }
 0x694   :  { %9234 = vmatpush1.bf16.msra.mxu0 %v14464_v40  ;;  %9317 = vmatpush1.bf16.msra.mxu1 %v14465_v45  ;;  %v14469_v40 = vld [vmem:[%s19902_s4 + $0x28c] ss:$12 sps:$4 sm:$0xff]   ;;  %v14470_v45 = vld [vmem:[%s19902_s4 + $0x288] ss:$12 sps:$4 sm:$0xff]  }
 0x695   :  { %9235 = vmatprep.subr.bf16.mxu0 %v14466_v20  ;;  %9318 = vmatprep.subr.bf16.mxu1 %v20153_v41  ;;  %v14471_v20 = vld [vmem:[%s19902_s4 + $0x290] ss:$12 sps:$4 sm:$0xff]  }
 0x698   :  { %9236 = vmatpush1.bf16.msra.mxu0 %v14467_v7  ;;  %9319 = vmatpush1.bf16.msra.mxu1 %v14468_v53  ;;  %v14472_v7 = vld [vmem:[%s19902_s4 + $0x4] ss:$12 sps:$4 sm:$0xff]   ;;  %v14473_v53 = vld [vmem:[%s19902_s4] ss:$12 sps:$4 sm:$0xff]  }
 0x699   :  { %9237 = vmatprep.subr.bf16.mxu0 %v14469_v40  ;;  %9320 = vmatprep.subr.bf16.mxu1 %v20153_v41  ;;  %v14474_v40 = vld [vmem:[%s19902_s4 + $0x8] ss:$12 sps:$4 sm:$0xff]  }
 0x69c   :  { %9238 = vmatpush1.bf16.msra.mxu0 %v14470_v45  ;;  %9321 = vmatpush1.bf16.msra.mxu1 %v14471_v20  ;;  %v14476_v45 = vld [vmem:[%s19902_s4 + $0x18] ss:$12 sps:$4 sm:$0xff]   ;;  %v14477_v20 = vld [vmem:[%s19902_s4 + $0x20] ss:$12 sps:$4 sm:$0xff]  }
 0x69d   :  { %9367 = vmatprep.subr.bf16.mxu0 %v14472_v7  ;;  %9450 = vmatprep.subr.bf16.mxu1 %v20153_v41  ;;  %v14478_v7 = vld [vmem:[%s19902_s4 + $0x34] ss:$12 sps:$4 sm:$0xff]  }
 0x69f   :  { %9244 = vmatmul.mubr.bf16.vlgmr.msra.gmra.mrb[132].mxu0 %v17396_v63  ;;  %9327 = vmatmul.mubr.bf16.vlgmr.msra.gmra.mrb[132].mxu1 %v17396_v63  ;;  %v14475_v63 = vld [vmem:[%s19902_s4 + $0x1c] ss:$12 sps:$4 sm:$0xff]  }
 0x6a0   :  { %12209 = vmatprep.mubr.msk.bf16.mxu0 %vm337_vm0, %v17719_v46  ;;  %12214 = vmatprep.mubr.msk.bf16.mxu1 %vm337_vm0, %v17719_v46 }
 0x6a1   :  { %9368 = vmatpush1.bf16.msra.mxu0 %v14473_v53  ;;  %9451 = vmatpush1.bf16.msra.mxu1 %v14474_v40  ;;  %v14479_v53 = vld [vmem:[%s19902_s4 + $0x30] ss:$12 sps:$4 sm:$0xff]   ;;  %v14480_v40 = vld [vmem:[%s19902_s4 + $0x38] ss:$12 sps:$4 sm:$0xff]  }
 0x6a2   :  { %9369 = vmatprep.subr.bf16.mxu0 %v14475_v63  ;;  %9452 = vmatprep.subr.bf16.mxu1 %v20153_v41  ;;  %v14481_v63 = vld [vmem:[%s19902_s4 + $0x4c] ss:$12 sps:$4 sm:$0xff]  }
 0x6a5   :  { %9370 = vmatpush1.bf16.msra.mxu0 %v14476_v45  ;;  %9453 = vmatpush1.bf16.msra.mxu1 %v14477_v20  ;;  %v14482_v45 = vld [vmem:[%s19902_s4 + $0x48] ss:$12 sps:$4 sm:$0xff]   ;;  %v14483_v20 = vld [vmem:[%s19902_s4 + $0x50] ss:$12 sps:$4 sm:$0xff]  }
 0x6a6   :  { %9371 = vmatprep.subr.bf16.mxu0 %v14478_v7  ;;  %9454 = vmatprep.subr.bf16.mxu1 %v20153_v41  ;;  %v14484_v7 = vld [vmem:[%s19902_s4 + $0x64] ss:$12 sps:$4 sm:$0xff]  }
 0x6a7   :  { %9254 = vmatmul.mubr.bf16.gmra.mrb[136].mxu0 %v17752_v37  ;;  %9335 = vmatmul.mubr.bf16.gmra.mrb[136].mxu1 %v17752_v37 }
 0x6a8   :  { %12210 = vmatprep.mubr.msk.bf16.mxu0 %vm337_vm0, %v17839_v12  ;;  %12215 = vmatprep.mubr.msk.bf16.mxu1 %vm337_vm0, %v17839_v12 }
 0x6a9   :  { %9372 = vmatpush1.bf16.msra.mxu0 %v14479_v53  ;;  %9455 = vmatpush1.bf16.msra.mxu1 %v14480_v40  ;;  %v14485_v53 = vld [vmem:[%s19902_s4 + $0x60] ss:$12 sps:$4 sm:$0xff]   ;;  %v14486_v40 = vld [vmem:[%s19902_s4 + $0x68] ss:$12 sps:$4 sm:$0xff]  }
 0x6aa   :  { %9373 = vmatprep.subr.bf16.mxu0 %v14481_v63  ;;  %9456 = vmatprep.subr.bf16.mxu1 %v20153_v41  ;;  %v14487_v63 = vld [vmem:[%s19902_s4 + $0x7c] ss:$12 sps:$4 sm:$0xff]  }
 0x6ad   :  { %9374 = vmatpush1.bf16.msra.mxu0 %v14482_v45  ;;  %9457 = vmatpush1.bf16.msra.mxu1 %v14483_v20  ;;  %v14488_v45 = vld [vmem:[%s19902_s4 + $0x78] ss:$12 sps:$4 sm:$0xff]   ;;  %v14489_v20 = vld [vmem:[%s19902_s4 + $0x80] ss:$12 sps:$4 sm:$0xff]  }
 0x6ae   :  { %9375 = vmatprep.subr.bf16.mxu0 %v14484_v7  ;;  %9458 = vmatprep.subr.bf16.mxu1 %v20153_v41  ;;  %v14490_v7 = vld [vmem:[%s19902_s4 + $0x94] ss:$12 sps:$4 sm:$0xff]  }
 0x6af   :  { %9264 = vmatmul.mubr.bf16.gmra.mrb[140].mxu0 %v17881_v47  ;;  %9343 = vmatmul.mubr.bf16.gmra.mrb[140].mxu1 %v17881_v47 }
 0x6b0   :  { %12211 = vmatprep.mubr.msk.bf16.mxu0 %vm337_vm0, %v17943_v60  ;;  %12216 = vmatprep.mubr.msk.bf16.mxu1 %vm337_vm0, %v17943_v60 }
 0x6b1   :  { %9376 = vmatpush1.bf16.msra.mxu0 %v14485_v53  ;;  %9459 = vmatpush1.bf16.msra.mxu1 %v14486_v40  ;;  %v14491_v53 = vld [vmem:[%s19902_s4 + $0x90] ss:$12 sps:$4 sm:$0xff]   ;;  %v14492_v40 = vld [vmem:[%s19902_s4 + $0x98] ss:$12 sps:$4 sm:$0xff]  }
 0x6b2   :  { %9377 = vmatprep.subr.bf16.mxu0 %v14487_v63  ;;  %9460 = vmatprep.subr.bf16.mxu1 %v20153_v41  ;;  %v14493_v63 = vld [vmem:[%s19902_s4 + $0xac] ss:$12 sps:$4 sm:$0xff]  }
 0x6b5   :  { %9378 = vmatpush1.bf16.msra.mxu0 %v14488_v45  ;;  %9461 = vmatpush1.bf16.msra.mxu1 %v14489_v20  ;;  %v14494_v45 = vld [vmem:[%s19902_s4 + $0xa8] ss:$12 sps:$4 sm:$0xff]   ;;  %v14495_v20 = vld [vmem:[%s19902_s4 + $0xb0] ss:$12 sps:$4 sm:$0xff]  }
 0x6b6   :  { %9379 = vmatprep.subr.bf16.mxu0 %v14490_v7  ;;  %9462 = vmatprep.subr.bf16.mxu1 %v20153_v41  ;;  %v14496_v7 = vld [vmem:[%s19902_s4 + $0xc4] ss:$12 sps:$4 sm:$0xff]  }
 0x6b7   :  { %9274 = vmatmul.mubr.bf16.gmra.mrb[144].mxu0 %v17975_v38  ;;  %9351 = vmatmul.mubr.bf16.gmra.mrb[144].mxu1 %v17975_v38 }
 0x6b8   :  { %12212 = vmatprep.mubr.msk.bf16.mxu0 %vm337_vm0, %v18064_v55  ;;  %12217 = vmatprep.mubr.msk.bf16.mxu1 %vm337_vm0, %v18064_v55 }
 0x6b9   :  { %9380 = vmatpush1.bf16.msra.mxu0 %v14491_v53  ;;  %9463 = vmatpush1.bf16.msra.mxu1 %v14492_v40  ;;  %v14497_v53 = vld [vmem:[%s19902_s4 + $0xc0] ss:$12 sps:$4 sm:$0xff]   ;;  %v14498_v40 = vld [vmem:[%s19902_s4 + $0xc8] ss:$12 sps:$4 sm:$0xff]  }
 0x6ba   :  { %9381 = vmatprep.subr.bf16.mxu0 %v14493_v63  ;;  %9464 = vmatprep.subr.bf16.mxu1 %v20153_v41  ;;  %v14499_v63 = vld [vmem:[%s19902_s4 + $0xdc] ss:$12 sps:$4 sm:$0xff]  }
 0x6bd   :  { %9382 = vmatpush1.bf16.msra.mxu0 %v14494_v45  ;;  %9465 = vmatpush1.bf16.msra.mxu1 %v14495_v20  ;;  %v14501_v45 = vld [vmem:[%s19902_s4 + $0xe0] ss:$12 sps:$4 sm:$0xff]  }
 0x6be   :  { %9383 = vmatprep.subr.bf16.mxu0 %v14496_v7  ;;  %9466 = vmatprep.subr.bf16.mxu1 %v20153_v41  ;;  %v14502_v20 = vld [vmem:[%s19902_s4 + $0xf4] ss:$12 sps:$4 sm:$0xff]   ;;  %v14503_v7 = vld [vmem:[%s19902_s4 + $0xf0] ss:$12 sps:$4 sm:$0xff]  }
 0x6bf   :  { %9284 = vmatmul.mubr.bf16.gmra.mrb[148].mxu0 %v18081_v28  ;;  %9359 = vmatmul.mubr.bf16.gmra.mrb[148].mxu1 %v18081_v28 }
 0x6c0   :  { %12218 = vmatprep.mubr.msk.bf16.mxu0 %vm337_vm0, %v17309_v19  ;;  %12223 = vmatprep.mubr.msk.bf16.mxu1 %vm337_vm0, %v17309_v19  ;;  %v14500_v19 = vld [vmem:[%s19902_s4 + $0xd8] ss:$12 sps:$4 sm:$0xff]  }
 0x6c1   :  { %9384 = vmatpush1.bf16.msra.mxu0 %v14497_v53  ;;  %9467 = vmatpush1.bf16.msra.mxu1 %v14498_v40  ;;  %v14504_v53 = vld [vmem:[%s19902_s4 + $0xf8] ss:$12 sps:$4 sm:$0xff]  }
 0x6c2   :  { %9385 = vmatprep.subr.bf16.mxu0 %v14499_v63  ;;  %9468 = vmatprep.subr.bf16.mxu1 %v20153_v41  ;;  %v14505_v40 = vld [vmem:[%s19902_s4 + $0x10c] ss:$12 sps:$4 sm:$0xff]   ;;  %v14506_v63 = vld [vmem:[%s19902_s4 + $0x108] ss:$12 sps:$4 sm:$0xff]  }
 0x6c5   :  { %9386 = vmatpush1.bf16.msra.mxu0 %v14500_v19  ;;  %9469 = vmatpush1.bf16.msra.mxu1 %v14501_v45  ;;  %v14507_v19 = vld [vmem:[%s19902_s4 + $0x110] ss:$12 sps:$4 sm:$0xff]  }
 0x6c6   :  { %9387 = vmatprep.subr.bf16.mxu0 %v14502_v20  ;;  %9470 = vmatprep.subr.bf16.mxu1 %v20153_v41  ;;  %v14508_v45 = vld [vmem:[%s19902_s4 + $0x124] ss:$12 sps:$4 sm:$0xff]   ;;  %v14509_v20 = vld [vmem:[%s19902_s4 + $0x120] ss:$12 sps:$4 sm:$0xff]  }
 0x6c9   :  { %9388 = vmatpush1.bf16.msra.mxu0 %v14503_v7  ;;  %9471 = vmatpush1.bf16.msra.mxu1 %v14504_v53  ;;  %v14510_v7 = vld [vmem:[%s19902_s4 + $0x128] ss:$12 sps:$4 sm:$0xff]  }
 0x6ca   :  { %9389 = vmatprep.subr.bf16.mxu0 %v14505_v40  ;;  %9472 = vmatprep.subr.bf16.mxu1 %v20153_v41  ;;  %v14511_v53 = vld [vmem:[%s19902_s4 + $0x13c] ss:$12 sps:$4 sm:$0xff]   ;;  %v14512_v40 = vld [vmem:[%s19902_s4 + $0x138] ss:$12 sps:$4 sm:$0xff]  }
 0x6cd   :  { %9390 = vmatpush1.bf16.msra.mxu0 %v14506_v63  ;;  %9473 = vmatpush1.bf16.msra.mxu1 %v14507_v19  ;;  %v14513_v63 = vld [vmem:[%s19902_s4 + $0x140] ss:$12 sps:$4 sm:$0xff]   ;;  %v14514_v19 = vld [vmem:[%s19902_s4 + $0x2a4] ss:$12 sps:$4 sm:$0xff]  }
 0x6ce   :  { %9391 = vmatprep.subr.bf16.mxu0 %v14508_v45  ;;  %9474 = vmatprep.subr.bf16.mxu1 %v20153_v41  ;;  %v14515_v45 = vld [vmem:[%s19902_s4 + $0x2a0] ss:$12 sps:$4 sm:$0xff]  }
 0x6d1   :  { %9392 = vmatpush1.bf16.msra.mxu0 %v14509_v20  ;;  %9475 = vmatpush1.bf16.msra.mxu1 %v14510_v7  ;;  %v14516_v20 = vld [vmem:[%s19902_s4 + $0x2a8] ss:$12 sps:$4 sm:$0xff]   ;;  %v14518_v7 = vld [vmem:[%s19902_s4 + $0x2b8] ss:$12 sps:$4 sm:$0xff]  }
 0x6d2   :  { %9393 = vmatprep.subr.bf16.mxu0 %v14511_v53  ;;  %9476 = vmatprep.subr.bf16.mxu1 %v20153_v41  ;;  %v14519_v53 = vld [vmem:[%s19902_s4 + $0x2c0] ss:$12 sps:$4 sm:$0xff]  }
 0x6d5   :  { %9394 = vmatpush1.bf16.msra.mxu0 %v14512_v40  ;;  %9477 = vmatpush1.bf16.msra.mxu1 %v14513_v63  ;;  %v14520_v40 = vld [vmem:[%s19902_s4 + $0x2d4] ss:$12 sps:$4 sm:$0xff]   ;;  %v14521_v63 = vld [vmem:[%s19902_s4 + $0x2d0] ss:$12 sps:$4 sm:$0xff]  }
 0x6d6   :  { %9523 = vmatprep.subr.bf16.mxu0 %v14514_v19  ;;  %9606 = vmatprep.subr.bf16.mxu1 %v20153_v41  ;;  %v14522_v19 = vld [vmem:[%s19902_s4 + $0x2d8] ss:$12 sps:$4 sm:$0xff]  }
 0x6d8   :  { %9400 = vmatmul.mubr.bf16.vlgmr.msra.gmra.mrb[132].mxu0 %v17317_v31  ;;  %9483 = vmatmul.mubr.bf16.vlgmr.msra.gmra.mrb[132].mxu1 %v17317_v31  ;;  %v14517_v31 = vld [vmem:[%s19902_s4 + $0x2bc] ss:$12 sps:$4 sm:$0xff]  }
 0x6d9   :  { %12219 = vmatprep.mubr.msk.bf16.mxu0 %vm337_vm0, %v17460_v11  ;;  %12224 = vmatprep.mubr.msk.bf16.mxu1 %vm337_vm0, %v17460_v11 }
 0x6da   :  { %9524 = vmatpush1.bf16.msra.mxu0 %v14515_v45  ;;  %9607 = vmatpush1.bf16.msra.mxu1 %v14516_v20  ;;  %v14523_v45 = vld [vmem:[%s19902_s4 + $0x2ec] ss:$12 sps:$4 sm:$0xff]   ;;  %v14524_v20 = vld [vmem:[%s19902_s4 + $0x2e8] ss:$12 sps:$4 sm:$0xff]  }
 0x6db   :  { %9525 = vmatprep.subr.bf16.mxu0 %v14517_v31  ;;  %9608 = vmatprep.subr.bf16.mxu1 %v20153_v41  ;;  %v14525_v31 = vld [vmem:[%s19902_s4 + $0x2f0] ss:$12 sps:$4 sm:$0xff]  }
 0x6de   :  { %9526 = vmatpush1.bf16.msra.mxu0 %v14518_v7  ;;  %9609 = vmatpush1.bf16.msra.mxu1 %v14519_v53  ;;  %v14526_v7 = vld [vmem:[%s19902_s4 + $0x304] ss:$12 sps:$4 sm:$0xff]   ;;  %v14527_v53 = vld [vmem:[%s19902_s4 + $0x300] ss:$12 sps:$4 sm:$0xff]  }
 0x6df   :  { %9527 = vmatprep.subr.bf16.mxu0 %v14520_v40  ;;  %9610 = vmatprep.subr.bf16.mxu1 %v20153_v41  ;;  %v14528_v40 = vld [vmem:[%s19902_s4 + $0x308] ss:$12 sps:$4 sm:$0xff]  }
 0x6e0   :  { %9410 = vmatmul.mubr.bf16.gmra.mrb[136].mxu0 %v17471_v29  ;;  %9491 = vmatmul.mubr.bf16.gmra.mrb[136].mxu1 %v17471_v29 }
 0x6e1   :  { %12220 = vmatprep.mubr.msk.bf16.mxu0 %vm337_vm0, %v17555_v52  ;;  %12225 = vmatprep.mubr.msk.bf16.mxu1 %vm337_vm0, %v17555_v52 }
 0x6e2   :  { %9528 = vmatpush1.bf16.msra.mxu0 %v14521_v63  ;;  %9611 = vmatpush1.bf16.msra.mxu1 %v14522_v19  ;;  %v14529_v63 = vld [vmem:[%s19902_s4 + $0x31c] ss:$12 sps:$4 sm:$0xff]   ;;  %v14530_v19 = vld [vmem:[%s19902_s4 + $0x318] ss:$12 sps:$4 sm:$0xff]  }
 0x6e3   :  { %9529 = vmatprep.subr.bf16.mxu0 %v14523_v45  ;;  %9612 = vmatprep.subr.bf16.mxu1 %v20153_v41  ;;  %v14531_v45 = vld [vmem:[%s19902_s4 + $0x320] ss:$12 sps:$4 sm:$0xff]  }
 0x6e6   :  { %9530 = vmatpush1.bf16.msra.mxu0 %v14524_v20  ;;  %9613 = vmatpush1.bf16.msra.mxu1 %v14525_v31  ;;  %v14532_v20 = vld [vmem:[%s19902_s4 + $0x334] ss:$12 sps:$4 sm:$0xff]   ;;  %v14533_v31 = vld [vmem:[%s19902_s4 + $0x330] ss:$12 sps:$4 sm:$0xff]  }
 0x6e7   :  { %9531 = vmatprep.subr.bf16.mxu0 %v14526_v7  ;;  %9614 = vmatprep.subr.bf16.mxu1 %v20153_v41  ;;  %v14534_v7 = vld [vmem:[%s19902_s4 + $0x338] ss:$12 sps:$4 sm:$0xff]  }
 0x6e8   :  { %9420 = vmatmul.mubr.bf16.gmra.mrb[140].mxu0 %v17566_v27  ;;  %9499 = vmatmul.mubr.bf16.gmra.mrb[140].mxu1 %v17566_v27 }
 0x6e9   :  { %12221 = vmatprep.mubr.msk.bf16.mxu0 %vm337_vm0, %v17631_v32  ;;  %12226 = vmatprep.mubr.msk.bf16.mxu1 %vm337_vm0, %v17631_v32 }
 0x6ea   :  { %9532 = vmatpush1.bf16.msra.mxu0 %v14527_v53  ;;  %9615 = vmatpush1.bf16.msra.mxu1 %v14528_v40  ;;  %v14535_v53 = vld [vmem:[%s19902_s4 + $0x34c] ss:$12 sps:$4 sm:$0xff]   ;;  %v14536_v40 = vld [vmem:[%s19902_s4 + $0x348] ss:$12 sps:$4 sm:$0xff]  }
 0x6eb   :  { %9533 = vmatprep.subr.bf16.mxu0 %v14529_v63  ;;  %9616 = vmatprep.subr.bf16.mxu1 %v20153_v41  ;;  %v14537_v63 = vld [vmem:[%s19902_s4 + $0x350] ss:$12 sps:$4 sm:$0xff]  }
 0x6ee   :  { %9534 = vmatpush1.bf16.msra.mxu0 %v14530_v19  ;;  %9617 = vmatpush1.bf16.msra.mxu1 %v14531_v45  ;;  %v14538_v19 = vld [vmem:[%s19902_s4 + $0x364] ss:$12 sps:$4 sm:$0xff]   ;;  %v14539_v45 = vld [vmem:[%s19902_s4 + $0x360] ss:$12 sps:$4 sm:$0xff]  }
 0x6ef   :  { %9535 = vmatprep.subr.bf16.mxu0 %v14532_v20  ;;  %9618 = vmatprep.subr.bf16.mxu1 %v20153_v41  ;;  %v14540_v20 = vld [vmem:[%s19902_s4 + $0x368] ss:$12 sps:$4 sm:$0xff]  }
 0x6f0   :  { %9430 = vmatmul.mubr.bf16.gmra.mrb[144].mxu0 %v17639_v33  ;;  %9507 = vmatmul.mubr.bf16.gmra.mrb[144].mxu1 %v17639_v33 }
 0x6f1   :  { %12222 = vmatprep.mubr.msk.bf16.mxu0 %vm337_vm0, %v17704_v26  ;;  %12227 = vmatprep.mubr.msk.bf16.mxu1 %vm337_vm0, %v17704_v26 }
 0x6f2   :  { %9536 = vmatpush1.bf16.msra.mxu0 %v14533_v31  ;;  %9619 = vmatpush1.bf16.msra.mxu1 %v14534_v7  ;;  %v14541_v31 = vld [vmem:[%s19902_s4 + $0x37c] ss:$12 sps:$4 sm:$0xff]   ;;  %v14543_v7 = vld [vmem:[%s19902_s4 + $0x380] ss:$12 sps:$4 sm:$0xff]  }
 0x6f3   :  { %9537 = vmatprep.subr.bf16.mxu0 %v14535_v53  ;;  %9620 = vmatprep.subr.bf16.mxu1 %v20153_v41  ;;  %v14544_v53 = vld [vmem:[%s19902_s4 + $0x394] ss:$12 sps:$4 sm:$0xff]  }
 0x6f6   :  { %9538 = vmatpush1.bf16.msra.mxu0 %v14536_v40  ;;  %9621 = vmatpush1.bf16.msra.mxu1 %v14537_v63  ;;  %v14545_v40 = vld [vmem:[%s19902_s4 + $0x390] ss:$12 sps:$4 sm:$0xff]   ;;  %v14546_v63 = vld [vmem:[%s19902_s4 + $0x398] ss:$12 sps:$4 sm:$0xff]  }
 0x6f7   :  { %9539 = vmatprep.subr.bf16.mxu0 %v14538_v19  ;;  %9622 = vmatprep.subr.bf16.mxu1 %v20153_v41  ;;  %v14547_v19 = vld [vmem:[%s19902_s4 + $0x3ac] ss:$12 sps:$4 sm:$0xff]  }
 0x6f8   :  { %9440 = vmatmul.mubr.bf16.gmra.mrb[148].mxu0 %v17726_v16  ;;  %9515 = vmatmul.mubr.bf16.gmra.mrb[148].mxu1 %v17726_v16 }
 0x6f9   :  { %12228 = vmatprep.mubr.msk.bf16.mxu0 %vm337_vm0, %v17460_v11  ;;  %12233 = vmatprep.mubr.msk.bf16.mxu1 %vm337_vm0, %v17460_v11  ;;  %v14542_v11 = vld [vmem:[%s19902_s4 + $0x378] ss:$12 sps:$4 sm:$0xff]  }
 0x6fa   :  { %9540 = vmatpush1.bf16.msra.mxu0 %v14539_v45  ;;  %9623 = vmatpush1.bf16.msra.mxu1 %v14540_v20  ;;  %v14548_v45 = vld [vmem:[%s19902_s4 + $0x3a8] ss:$12 sps:$4 sm:$0xff]   ;;  %v14549_v20 = vld [vmem:[%s19902_s4 + $0x3b0] ss:$12 sps:$4 sm:$0xff]  }
 0x6fb   :  { %9541 = vmatprep.subr.bf16.mxu0 %v14541_v31  ;;  %9624 = vmatprep.subr.bf16.mxu1 %v20153_v41  ;;  %v14550_v31 = vld [vmem:[%s19902_s4 + $0x3c4] ss:$12 sps:$4 sm:$0xff]  }
 0x6fe   :  { %9542 = vmatpush1.bf16.msra.mxu0 %v14542_v11  ;;  %9625 = vmatpush1.bf16.msra.mxu1 %v14543_v7  ;;  %v14551_v11 = vld [vmem:[%s19902_s4 + $0x3c0] ss:$12 sps:$4 sm:$0xff]   ;;  %v14552_v7 = vld [vmem:[%s19902_s4 + $0x3c8] ss:$12 sps:$4 sm:$0xff]  }
 0x6ff   :  { %9543 = vmatprep.subr.bf16.mxu0 %v14544_v53  ;;  %9626 = vmatprep.subr.bf16.mxu1 %v20153_v41  ;;  %v14553_v53 = vld [vmem:[%s19902_s4 + $0x3dc] ss:$12 sps:$4 sm:$0xff]  }
 0x702   :  { %9544 = vmatpush1.bf16.msra.mxu0 %v14545_v40  ;;  %9627 = vmatpush1.bf16.msra.mxu1 %v14546_v63  ;;  %v14554_v40 = vld [vmem:[%s19902_s4 + $0x3d8] ss:$12 sps:$4 sm:$0xff]   ;;  %v14555_v63 = vld [vmem:[%s19902_s4 + $0x3e0] ss:$12 sps:$4 sm:$0xff]  }
 0x703   :  { %9545 = vmatprep.subr.bf16.mxu0 %v14547_v19  ;;  %9628 = vmatprep.subr.bf16.mxu1 %v20153_v41  ;;  %v14556_v19 = vld [vmem:[%s19902_s4 + $0x3f4] ss:$12 sps:$4 sm:$0xff]  }
 0x706   :  { %9546 = vmatpush1.bf16.msra.mxu0 %v14548_v45  ;;  %9629 = vmatpush1.bf16.msra.mxu1 %v14549_v20  ;;  %v14557_v45 = vld [vmem:[%s19902_s4 + $0x3f0] ss:$12 sps:$4 sm:$0xff]   ;;  %v14558_v20 = vld [vmem:[%s19902_s4 + $0x3f8] ss:$12 sps:$4 sm:$0xff]  }
 0x707   :  { %9547 = vmatprep.subr.bf16.mxu0 %v14550_v31  ;;  %9630 = vmatprep.subr.bf16.mxu1 %v20153_v41  ;;  %v14560_v31 = vld [vmem:[%s19902_s4 + $0x408] ss:$12 sps:$4 sm:$0xff]  }
 0x70a   :  { %9548 = vmatpush1.bf16.msra.mxu0 %v14551_v11  ;;  %9631 = vmatpush1.bf16.msra.mxu1 %v14552_v7  ;;  %v14561_v11 = vld [vmem:[%s19902_s4 + $0x410] ss:$12 sps:$4 sm:$0xff]  }
 0x70b   :  { %9549 = vmatprep.subr.bf16.mxu0 %v14553_v53  ;;  %9632 = vmatprep.subr.bf16.mxu1 %v20153_v41  ;;  %v14562_v7 = vld [vmem:[%s19902_s4 + $0x424] ss:$12 sps:$4 sm:$0xff]   ;;  %v14563_v53 = vld [vmem:[%s19902_s4 + $0x420] ss:$12 sps:$4 sm:$0xff]  }
 0x70e   :  { %9550 = vmatpush1.bf16.msra.mxu0 %v14554_v40  ;;  %9633 = vmatpush1.bf16.msra.mxu1 %v14555_v63  ;;  %v14564_v40 = vld [vmem:[%s19902_s4 + $0x428] ss:$12 sps:$4 sm:$0xff]  }
 0x70f   :  { %9709 = vmatprep.subr.bf16.mxu0 %v14556_v19  ;;  %9792 = vmatprep.subr.bf16.mxu1 %v20153_v41  ;;  %v14565_v63 = vld [vmem:[%s19902_s4 + $0x43c] ss:$12 sps:$4 sm:$0xff]   ;;  %v14566_v19 = vld [vmem:[%s19902_s4 + $0x438] ss:$12 sps:$4 sm:$0xff]  }
 0x711   :  { %9556 = vmatmul.mubr.bf16.vlgmr.msra.gmra.mrb[132].mxu0 %v17471_v29  ;;  %9639 = vmatmul.mubr.bf16.vlgmr.msra.gmra.mrb[132].mxu1 %v17471_v29  ;;  %v14559_v29 = vld [vmem:[%s19902_s4 + $0x40c] ss:$12 sps:$4 sm:$0xff]  }
 0x712   :  { %12229 = vmatprep.mubr.msk.bf16.mxu0 %vm337_vm0, %v17555_v52  ;;  %12234 = vmatprep.mubr.msk.bf16.mxu1 %vm337_vm0, %v17555_v52 }
 0x713   :  { %9710 = vmatpush1.bf16.msra.mxu0 %v14557_v45  ;;  %9793 = vmatpush1.bf16.msra.mxu1 %v14558_v20  ;;  %v14567_v45 = vld [vmem:[%s19902_s4 + $0x440] ss:$12 sps:$4 sm:$0xff]  }
 0x714   :  { %9711 = vmatprep.subr.bf16.mxu0 %v14559_v29  ;;  %9794 = vmatprep.subr.bf16.mxu1 %v20153_v41  ;;  %v14568_v20 = vld [vmem:[%s19902_s4 + $0x454] ss:$12 sps:$4 sm:$0xff]   ;;  %v14569_v29 = vld [vmem:[%s19902_s4 + $0x450] ss:$12 sps:$4 sm:$0xff]  }
 0x717   :  { %9712 = vmatpush1.bf16.msra.mxu0 %v14560_v31  ;;  %9795 = vmatpush1.bf16.msra.mxu1 %v14561_v11  ;;  %v14570_v31 = vld [vmem:[%s19902_s4 + $0x458] ss:$12 sps:$4 sm:$0xff]  }
 0x718   :  { %9713 = vmatprep.subr.bf16.mxu0 %v14562_v7  ;;  %9796 = vmatprep.subr.bf16.mxu1 %v20153_v41  ;;  %v14571_v11 = vld [vmem:[%s19902_s4 + $0x46c] ss:$12 sps:$4 sm:$0xff]   ;;  %v14572_v7 = vld [vmem:[%s19902_s4 + $0x468] ss:$12 sps:$4 sm:$0xff]  }
 0x719   :  { %9566 = vmatmul.mubr.bf16.gmra.mrb[136].mxu0 %v17566_v27  ;;  %9647 = vmatmul.mubr.bf16.gmra.mrb[136].mxu1 %v17566_v27 }
 0x71a   :  { %12230 = vmatprep.mubr.msk.bf16.mxu0 %vm337_vm0, %v17631_v32  ;;  %12235 = vmatprep.mubr.msk.bf16.mxu1 %vm337_vm0, %v17631_v32 }
 0x71b   :  { %9714 = vmatpush1.bf16.msra.mxu0 %v14563_v53  ;;  %9797 = vmatpush1.bf16.msra.mxu1 %v14564_v40  ;;  %v14573_v53 = vld [vmem:[%s19902_s4 + $0x470] ss:$12 sps:$4 sm:$0xff]  }
 0x71c   :  { %9715 = vmatprep.subr.bf16.mxu0 %v14565_v63  ;;  %9798 = vmatprep.subr.bf16.mxu1 %v20153_v41  ;;  %v14574_v40 = vld [vmem:[%s19902_s4 + $0x484] ss:$12 sps:$4 sm:$0xff]   ;;  %v14575_v63 = vld [vmem:[%s19902_s4 + $0x480] ss:$12 sps:$4 sm:$0xff]  }
 0x71f   :  { %9716 = vmatpush1.bf16.msra.mxu0 %v14566_v19  ;;  %9799 = vmatpush1.bf16.msra.mxu1 %v14567_v45  ;;  %v14576_v19 = vld [vmem:[%s19902_s4 + $0x488] ss:$12 sps:$4 sm:$0xff]  }
 0x720   :  { %9717 = vmatprep.subr.bf16.mxu0 %v14568_v20  ;;  %9800 = vmatprep.subr.bf16.mxu1 %v20153_v41  ;;  %v14577_v45 = vld [vmem:[%s19902_s4 + $0x49c] ss:$12 sps:$4 sm:$0xff]   ;;  %v14578_v20 = vld [vmem:[%s19902_s4 + $0x498] ss:$12 sps:$4 sm:$0xff]  }
 0x721   :  { %9576 = vmatmul.mubr.bf16.gmra.mrb[140].mxu0 %v17639_v33  ;;  %9655 = vmatmul.mubr.bf16.gmra.mrb[140].mxu1 %v17639_v33 }
 0x722   :  { %12231 = vmatprep.mubr.msk.bf16.mxu0 %vm337_vm0, %v17704_v26  ;;  %12236 = vmatprep.mubr.msk.bf16.mxu1 %vm337_vm0, %v17704_v26 }
 0x723   :  { %9718 = vmatpush1.bf16.msra.mxu0 %v14569_v29  ;;  %9801 = vmatpush1.bf16.msra.mxu1 %v14570_v31  ;;  %v14579_v29 = vld [vmem:[%s19902_s4 + $0x4a0] ss:$12 sps:$4 sm:$0xff]  }
 0x724   :  { %9719 = vmatprep.subr.bf16.mxu0 %v14571_v11  ;;  %9802 = vmatprep.subr.bf16.mxu1 %v20153_v41  ;;  %v14580_v31 = vld [vmem:[%s19902_s4 + $0x4b4] ss:$12 sps:$4 sm:$0xff]   ;;  %v14581_v11 = vld [vmem:[%s19902_s4 + $0x4b0] ss:$12 sps:$4 sm:$0xff]  }
 0x727   :  { %9720 = vmatpush1.bf16.msra.mxu0 %v14572_v7  ;;  %9803 = vmatpush1.bf16.msra.mxu1 %v14573_v53  ;;  %v14582_v7 = vld [vmem:[%s19902_s4 + $0x4b8] ss:$12 sps:$4 sm:$0xff]  }
 0x728   :  { %9721 = vmatprep.subr.bf16.mxu0 %v14574_v40  ;;  %9804 = vmatprep.subr.bf16.mxu1 %v20153_v41  ;;  %v14583_v53 = vld [vmem:[%s19902_s4 + $0x4cc] ss:$12 sps:$4 sm:$0xff]   ;;  %v14585_v40 = vld [vmem:[%s19902_s4 + $0x4d0] ss:$12 sps:$4 sm:$0xff]  }
 0x729   :  { %9586 = vmatmul.mubr.bf16.gmra.mrb[144].mxu0 %v17726_v16  ;;  %9663 = vmatmul.mubr.bf16.gmra.mrb[144].mxu1 %v17726_v16 }
 0x72a   :  { %12232 = vmatprep.mubr.msk.bf16.mxu0 %vm337_vm0, %v18168_v48  ;;  %12237 = vmatprep.mubr.msk.bf16.mxu1 %vm337_vm0, %v18168_v48 }
 0x72b   :  { %9722 = vmatpush1.bf16.msra.mxu0 %v14575_v63  ;;  %9805 = vmatpush1.bf16.msra.mxu1 %v14576_v19  ;;  %v14586_v63 = vld [vmem:[%s19902_s4 + $0x4e4] ss:$12 sps:$4 sm:$0xff]  }
 0x72c   :  { %9723 = vmatprep.subr.bf16.mxu0 %v14577_v45  ;;  %9806 = vmatprep.subr.bf16.mxu1 %v20153_v41 }
 0x72f   :  { %9724 = vmatpush1.bf16.msra.mxu0 %v14578_v20  ;;  %9807 = vmatpush1.bf16.msra.mxu1 %v14579_v29 }
 0x730   :  { %9725 = vmatprep.subr.bf16.mxu0 %v14580_v31  ;;  %9808 = vmatprep.subr.bf16.mxu1 %v20153_v41  ;;  %v14587_v31 = vld [vmem:[%s19902_s4 + $0x4e0] ss:$12 sps:$4 sm:$0xff]  }
 0x731   :  { %9596 = vmatmul.mubr.bf16.gmra.mrb[148].mxu0 %v18185_v36  ;;  %9671 = vmatmul.mubr.bf16.gmra.mrb[148].mxu1 %v18185_v36 }
 0x732   :  { %12238 = vmatprep.mubr.msk.bf16.mxu0 %vm337_vm0, %v17719_v46  ;;  %12243 = vmatprep.mubr.msk.bf16.mxu1 %vm337_vm0, %v17719_v46  ;;  %v14584_v46 = vld [vmem:[%s19902_s4 + $0x4c8] ss:$12 sps:$4 sm:$0xff]  }
 0x733   :  { %9726 = vmatpush1.bf16.msra.mxu0 %v14581_v11  ;;  %9809 = vmatpush1.bf16.msra.mxu1 %v14582_v7  ;;  %v14588_v11 = vld [vmem:[%s19902_s4 + $0x4e8] ss:$12 sps:$4 sm:$0xff]  }
 0x734   :  { %9727 = vmatprep.subr.bf16.mxu0 %v14583_v53  ;;  %9810 = vmatprep.subr.bf16.mxu1 %v20153_v41 }
 0x737   :  { %9728 = vmatpush1.bf16.msra.mxu0 %v14584_v46  ;;  %9811 = vmatpush1.bf16.msra.mxu1 %v14585_v40  ;;  %v14589_v46 = vld [vmem:[%s19902_s4 + $0x4fc] ss:$12 sps:$4 sm:$0xff]  }
 0x738   :  { %9729 = vmatprep.subr.bf16.mxu0 %v14586_v63  ;;  %9812 = vmatprep.subr.bf16.mxu1 %v20153_v41 }
 0x739   :  { %v19212_v19 = vpop.f32.mrb[112].mxu0  ;;  %v19214_v45 = vpop.f32.mrb[112].mxu1 }
 0x73a   :  { %20285 = vst [vmem:[#allocation75_spill] sm:$0xff] %v19212_v19  ;;  %v19216_v20 = vpop.f32.mrb[113].mxu0  ;;  %v9034_v29 = vpop.f32.mrb[113].mxu1 }
 0x73b   :  { %9730 = vmatpush1.bf16.msra.mxu0 %v14587_v31  ;;  %9813 = vmatpush1.bf16.msra.mxu1 %v14588_v11  ;;  %v19224_v7 = vpop.f32.mrb[114].mxu0  ;;  %v19226_v53 = vpop.f32.mrb[114].mxu1  ;;  %v14590_v29 = vld [vmem:[%s19902_s4 + $0x4f8] ss:$12 sps:$4 sm:$0xff]   ;;  %v14591_v31 = vld [vmem:[%s19902_s4 + $0x500] ss:$12 sps:$4 sm:$0xff]  }
 0x73c   :  { %20286 = vst [vmem:[#allocation108_spill] sm:$0xff] %v19224_v7  ;;  %9731 = vmatprep.subr.bf16.mxu0 %v14589_v46  ;;  %9814 = vmatprep.subr.bf16.mxu1 %v20153_v41  ;;  %v19232_v40 = vpop.f32.mrb[115].mxu0  ;;  %v9037_v63 = vpop.f32.mrb[115].mxu1  ;;  %v14592_v11 = vld [vmem:[%s19902_s4 + $0x514] ss:$12 sps:$4 sm:$0xff]  }
 0x73d   :  { %20287 = vst [vmem:[#allocation67_spill] sm:$0xff] %v19232_v40 }
 0x73f   :  { %9732 = vmatpush1.bf16.msra.mxu0 %v14590_v29  ;;  %9815 = vmatpush1.bf16.msra.mxu1 %v14591_v31  ;;  %v14593_v31 = vld [vmem:[%s19902_s4 + $0x510] ss:$12 sps:$4 sm:$0xff]  }
 0x740   :  { %9733 = vmatprep.subr.bf16.mxu0 %v14592_v11  ;;  %9816 = vmatprep.subr.bf16.mxu1 %v20153_v41  ;;  %v14594_v11 = vld [vmem:[%s19902_s4 + $0x518] ss:$12 sps:$4 sm:$0xff]  }
 0x741   :  { %v19244_v46 = vpop.f32.mrb[116].mxu0  ;;  %v9040_v63 = vpop.f32.mrb[116].mxu1 }
 0x742   :  { %20288 = vst [vmem:[#allocation68_spill] sm:$0xff] %v19244_v46  ;;  %v9042_v7 = vpop.f32.mrb[117].mxu1  ;;  %9131 = vrot.lane.b32.xlu1 %v9040_v63, %s14598_s24  ;;  %v19247_v29 = vpop.f32.mrb[117].mxu0 }
 0x743   :  { %9734 = vmatpush1.bf16.msra.mxu0 %v14593_v31  ;;  %9817 = vmatpush1.bf16.msra.mxu1 %v14594_v11  ;;  %v9043_v19 = vpop.f32.mrb[118].mxu1  ;;  %v19255_v40 = vpop.f32.mrb[118].mxu0  ;;  %v14595_v7 = vld [vmem:[%s19902_s4 + $0x52c] ss:$12 sps:$4 sm:$0xff]  }
 0x744   :  { %9735 = vmatprep.subr.bf16.mxu0 %v14595_v7  ;;  %9818 = vmatprep.subr.bf16.mxu1 %v20153_v41  ;;  %v19261_v63 = vpop.f32.mrb[119].mxu0  ;;  %v9045_v46 = vpop.f32.mrb[119].mxu1  ;;  %v20290_v7 = vld [vmem:[#allocation72_spill] sm:$0xff] }
 0x745   :  { %9129 = vrot.lane.b32.xlu0 %v19247_v29, %s14598_s24 }
 0x746   :  { %9135 = vrot.lane.b32.xlu1 %v9043_v19, %s14598_s24 }
 0x747   :  { %9736 = vmatpush1.bf16.msra.mxu0 %v18222_v8  ;;  %9819 = vmatpush1.bf16.msra.mxu1 %v18227_v22 }
 0x748   :  { %9898 = vmatprep.subr.bf16.mxu0 %v18235_v18  ;;  %9981 = vmatprep.subr.bf16.mxu1 %v20153_v41 }
 0x749   :  { %9133 = vrot.lane.b32.xlu0 %v19261_v63, %s14598_s24  ;;  %v19272_v31 = vpop.f32.mrb[120].mxu0  ;;  %v19274_v11 = vpop.f32.mrb[120].mxu1 }
 0x74a   :  { %9742 = vmatmul.mubr.bf16.vlgmr.msra.gmra.mrb[132].mxu0 %v17752_v37  ;;  %9825 = vmatmul.mubr.bf16.vlgmr.msra.gmra.mrb[132].mxu1 %v17752_v37  ;;  %v19278_v19 = vpop.f32.mrb[121].mxu0  ;;  %v9050_v8 = vpop.f32.mrb[121].mxu1 }
 0x74b   :  { %12239 = vmatprep.mubr.msk.bf16.mxu0 %vm337_vm0, %v17839_v12  ;;  %12244 = vmatprep.mubr.msk.bf16.mxu1 %vm337_vm0, %v17839_v12  ;;  %v19284_v22 = vpop.f32.mrb[122].mxu0  ;;  %v19286_v18 = vpop.f32.mrb[122].mxu1 }
 0x74c   :  { %9899 = vmatpush1.bf16.msra.mxu0 %v18250_v39  ;;  %9982 = vmatpush1.bf16.msra.mxu1 %v18257_v50  ;;  %v19290_v46 = vpop.f32.mrb[123].mxu0  ;;  %v9053_v37 = vpop.f32.mrb[123].mxu1 }
 0x74d   :  { %9900 = vmatprep.subr.bf16.mxu0 %v18262_v17  ;;  %9983 = vmatprep.subr.bf16.mxu1 %v20153_v41  ;;  %v14244_v37 = vld [vmem:[%s19904_s6 + $0x28] sm:$0xff]  }
 0x750   :  { %9901 = vmatpush1.bf16.msra.mxu0 %v18277_v15  ;;  %9984 = vmatpush1.bf16.msra.mxu1 %v18282_v4 }
 0x751   :  { %9902 = vmatprep.subr.bf16.mxu0 %v18289_v35  ;;  %9985 = vmatprep.subr.bf16.mxu1 %v20153_v41  ;;  %v19298_v12 = vpop.f32.mrb[124].mxu0  ;;  %v19300_v39 = vpop.f32.mrb[124].mxu1 }
 0x752   :  { %9752 = vmatmul.mubr.bf16.gmra.mrb[136].mxu0 %v17881_v47  ;;  %9833 = vmatmul.mubr.bf16.gmra.mrb[136].mxu1 %v17881_v47  ;;  %v19304_v50 = vpop.f32.mrb[125].mxu0  ;;  %v9058_v17 = vpop.f32.mrb[125].mxu1 }
 0x753   :  { %12240 = vmatprep.mubr.msk.bf16.mxu0 %vm337_vm0, %v17943_v60  ;;  %12245 = vmatprep.mubr.msk.bf16.mxu1 %vm337_vm0, %v17943_v60  ;;  %v19310_v15 = vpop.f32.mrb[126].mxu0  ;;  %v19312_v4 = vpop.f32.mrb[126].mxu1 }
 0x754   :  { %9903 = vmatpush1.bf16.msra.mxu0 %v18298_v2  ;;  %9986 = vmatpush1.bf16.msra.mxu1 %v18303_v44  ;;  %v19316_v35 = vpop.f32.mrb[127].mxu0  ;;  %v9061_v47 = vpop.f32.mrb[127].mxu1 }
 0x755   :  { %9904 = vmatprep.subr.bf16.mxu0 %v18312_v21  ;;  %9987 = vmatprep.subr.bf16.mxu1 %v20153_v41 }
 0x758   :  { %9905 = vmatpush1.bf16.msra.mxu0 %v18325_v25  ;;  %9988 = vmatpush1.bf16.msra.mxu1 %v18330_v58 }
 0x759   :  { %9906 = vmatprep.subr.bf16.mxu0 %v18337_v61  ;;  %9989 = vmatprep.subr.bf16.mxu1 %v20153_v41  ;;  %v19324_v60 = vpop.f32.mrb[128].mxu0  ;;  %v19326_v2 = vpop.f32.mrb[128].mxu1  ;;  %v20289_v61 = vld [vmem:[#allocation2_spill] sm:$0xff] }
 0x75a   :  { %9762 = vmatmul.mubr.bf16.gmra.mrb[140].mxu0 %v17975_v38  ;;  %9841 = vmatmul.mubr.bf16.gmra.mrb[140].mxu1 %v17975_v38  ;;  %v19330_v44 = vpop.f32.mrb[129].mxu0  ;;  %v9066_v21 = vpop.f32.mrb[129].mxu1 }
 0x75b   :  { %12241 = vmatprep.mubr.msk.bf16.mxu0 %vm337_vm0, %v18064_v55  ;;  %12246 = vmatprep.mubr.msk.bf16.mxu1 %vm337_vm0, %v18064_v55  ;;  %v19336_v25 = vpop.f32.mrb[130].mxu0  ;;  %v19338_v58 = vpop.f32.mrb[130].mxu1  ;;  %v20292_v55 = vld [vmem:[#allocation25_spill] sm:$0xff] }
 0x75c   :  { %9907 = vmatpush1.bf16.msra.mxu0 %v20289_v61  ;;  %9990 = vmatpush1.bf16.msra.mxu1 %v20290_v7  ;;  %v19342_v8 = vpop.f32.mrb[131].mxu0  ;;  %v9069_v38 = vpop.f32.mrb[131].mxu1 }
 0x75d   :  { %9908 = vmatprep.subr.bf16.mxu0 %v18360_v23  ;;  %9991 = vmatprep.subr.bf16.mxu1 %v20153_v41  ;;  %v20296_v23 = vld [vmem:[#allocation27_spill] sm:$0xff] }
 0x760   :  { %9909 = vmatpush1.bf16.msra.mxu0 %v18376_v9  ;;  %9992 = vmatpush1.bf16.msra.mxu1 %v18381_v30  ;;  %v20297_v9 = vld [vmem:[#allocation3_spill] sm:$0xff] }
 0x761   :  { %9910 = vmatprep.subr.bf16.mxu0 %v18391_v43  ;;  %9993 = vmatprep.subr.bf16.mxu1 %v20153_v41  ;;  %v14232_v30 = vld [vmem:[%s19904_s6 + $0x68] sm:$0xff]   ;;  %v14233_v43 = vld [vmem:[%s19904_s6 + $0x70] sm:$0xff]  }
 0x762   :  { %9772 = vmatmul.mubr.bf16.gmra.mrb[144].mxu0 %v18081_v28  ;;  %9849 = vmatmul.mubr.bf16.gmra.mrb[144].mxu1 %v18081_v28  ;;  %v20293_v28 = vld [vmem:[#allocation4_spill] sm:$0xff] }
 0x763   :  { %12242 = vmatprep.mubr.msk.bf16.mxu0 %vm337_vm0, %v18291_v59  ;;  %12247 = vmatprep.mubr.msk.bf16.mxu1 %vm337_vm0, %v18291_v59  ;;  %v20294_v59 = vld [vmem:[#allocation66_spill] sm:$0xff] }
 0x764   :  { %9911 = vmatpush1.bf16.msra.mxu0 %v18403_v56  ;;  %9994 = vmatpush1.bf16.msra.mxu1 %v18408_v49  ;;  %v14235_v56 = vld [vmem:[%s19904_s6 + $0x78] sm:$0xff]   ;;  %v14237_v49 = vld [vmem:[%s19904_s6 + $0x80] sm:$0xff]  }
 0x765   :  { %9912 = vmatprep.subr.bf16.mxu0 %v18418_v62  ;;  %9995 = vmatprep.subr.bf16.mxu1 %v20153_v41  ;;  %v14238_v62 = vld [vmem:[%s19904_s6 + $0x10] sm:$0xff]  }
 0x768   :  { %9913 = vmatpush1.bf16.msra.mxu0 %v18431_v1  ;;  %9996 = vmatpush1.bf16.msra.mxu1 %v18436_v3  ;;  %v14239_v1 = vld [vmem:[%s19904_s6 + $0x88] sm:$0xff]   ;;  %v14240_v3 = vld [vmem:[%s19904_s6 + $0x18] sm:$0xff]  }
 0x769   :  { %9914 = vmatprep.subr.bf16.mxu0 %v18443_v13  ;;  %9997 = vmatprep.subr.bf16.mxu1 %v20153_v41 }
 0x76a   :  { %9782 = vmatmul.mubr.bf16.gmra.mrb[148].mxu0 %v18305_v57  ;;  %9857 = vmatmul.mubr.bf16.gmra.mrb[148].mxu1 %v18305_v57  ;;  %v20295_v57 = vld [vmem:[#allocation76_spill] sm:$0xff] }
 0x76b   :  { %12248 = vmatprep.mubr.msk.bf16.mxu0 %vm337_vm0, %v17555_v52  ;;  %12253 = vmatprep.mubr.msk.bf16.mxu1 %vm337_vm0, %v17555_v52  ;;  %v20291_v52 = vld [vmem:[#allocation64_spill] sm:$0xff] }
 0x76c   :  { %9915 = vmatpush1.bf16.msra.mxu0 %v18454_v0  ;;  %9998 = vmatpush1.bf16.msra.mxu1 %v18459_v6 }
 0x76d   :  { %9916 = vmatprep.subr.bf16.mxu0 %v18466_v24  ;;  %9999 = vmatprep.subr.bf16.mxu1 %v20153_v41 }
 0x770   :  { %9917 = vmatpush1.bf16.msra.mxu0 %v18481_v10  ;;  %10000 = vmatpush1.bf16.msra.mxu1 %v18486_v54  ;;  %v14241_v54 = vld [vmem:[%s19904_s6 + $0x90] sm:$0xff]  }
 0x771   :  { %9918 = vmatprep.subr.bf16.mxu0 %v18493_v51  ;;  %10001 = vmatprep.subr.bf16.mxu1 %v20153_v41 }
 0x774   :  { %9919 = vmatpush1.bf16.msra.mxu0 %v18500_v5  ;;  %10002 = vmatpush1.bf16.msra.mxu1 %v18505_v14  ;;  %v14242_v14 = vld [vmem:[%s19904_s6 + $0x20] sm:$0xff]  }
 0x775   :  { %9920 = vmatprep.subr.bf16.mxu0 %v18512_v34  ;;  %10003 = vmatprep.subr.bf16.mxu1 %v20153_v41  ;;  %v14243_v34 = vld [vmem:[%s19904_s6 + $0x98] sm:$0xff]  }
 0x778   :  { %9921 = vmatpush1.bf16.msra.mxu0 %v20291_v52  ;;  %10004 = vmatpush1.bf16.msra.mxu1 %v20292_v55 }
 0x779   :  { %9922 = vmatprep.subr.bf16.mxu0 %v20293_v28  ;;  %10005 = vmatprep.subr.bf16.mxu1 %v20153_v41  ;;  %v14246_v28 = vld [vmem:[%s19904_s6 + $0x30] sm:$0xff]  }
 0x77c   :  { %9923 = vmatpush1.bf16.msra.mxu0 %v18538_v42  ;;  %10006 = vmatpush1.bf16.msra.mxu1 %v20294_v59 }
 0x77d   :  { %9924 = vmatprep.subr.bf16.mxu0 %v20295_v57  ;;  %10007 = vmatprep.subr.bf16.mxu1 %v20153_v41 }
 0x780   :  { %9925 = vmatpush1.bf16.msra.mxu0 %v20296_v23  ;;  %10008 = vmatpush1.bf16.msra.mxu1 %v20297_v9  ;;  %v14248_v23 = vld [vmem:[%s19904_s6 + $0x38] sm:$0xff]  }
 0x781   :  { %10380 = vmatprep.subr.bf16.mxu0 %v20153_v41  ;;  %10484 = vmatprep.subr.bf16.mxu1 %v20153_v41 }
 0x783   :  { %9931 = vmatmul.mubr.bf16.vlgmr.msra.gmra.mrb[132].mxu0 %v17566_v27  ;;  %10014 = vmatmul.mubr.bf16.vlgmr.msra.gmra.mrb[132].mxu1 %v17566_v27  ;;  %v20298_v27 = vld [vmem:[#allocation111_spill] sm:$0xff] }
 0x784   :  { %12249 = vmatprep.mubr.msk.bf16.mxu0 %vm337_vm0, %v17631_v32  ;;  %12254 = vmatprep.mubr.msk.bf16.mxu1 %vm337_vm0, %v17631_v32  ;;  %v20299_v32 = vld [vmem:[#allocation65_spill] sm:$0xff] }
 0x78b   :  { %9941 = vmatmul.mubr.bf16.gmra.mrb[136].mxu0 %v17639_v33  ;;  %10022 = vmatmul.mubr.bf16.gmra.mrb[136].mxu1 %v17639_v33  ;;  %v14229_v33 = vld [vmem:[%s19904_s6 + $0x50] sm:$0xff]  }
 0x78c   :  { %12250 = vmatprep.mubr.msk.bf16.mxu0 %vm337_vm0, %v17704_v26  ;;  %12255 = vmatprep.mubr.msk.bf16.mxu1 %vm337_vm0, %v17704_v26  ;;  %v14230_v26 = vld [vmem:[%s19904_s6 + $0x58] sm:$0xff]  }
 0x78d   :  { %10381 = vmatpush1.bf16.msra.mxu0 %v14229_v33 }
 0x78e   :  { %10382 = vmatprep.subr.bf16.mxu0 %v20153_v41 }
 0x791   :  { %10383 = vmatpush1.bf16.msra.mxu0 %v14230_v26 }
 0x792   :  { %10384 = vmatprep.subr.bf16.mxu0 %v20153_v41 }
 0x793   :  { %9951 = vmatmul.mubr.bf16.gmra.mrb[140].mxu0 %v17726_v16  ;;  %10030 = vmatmul.mubr.bf16.gmra.mrb[140].mxu1 %v17726_v16  ;;  %v14234_v16 = vld [vmem:[%s19904_s6] sm:$0xff]  }
 0x794   :  { %12251 = vmatprep.mubr.msk.bf16.mxu0 %vm337_vm0, %v18168_v48  ;;  %12256 = vmatprep.mubr.msk.bf16.mxu1 %vm337_vm0, %v18168_v48  ;;  %v14231_v48 = vld [vmem:[%s19904_s6 + $0x60] sm:$0xff]  }
 0x795   :  { %10485 = vmatpush1.bf16.msra.mxu1 %v14234_v16  ;;  %10385 = vmatpush1.bf16.msra.mxu0 %v14231_v48  ;;  %v14250_v48 = vld [vmem:[%s19904_s6 + $0x40] sm:$0xff]  }
 0x796   :  { %10486 = vmatprep.subr.bf16.mxu1 %v20153_v41  ;;  %10386 = vmatprep.subr.bf16.mxu0 %v20153_v41 }
 0x799   :  { %10387 = vmatpush1.bf16.msra.mxu0 %v14232_v30 }
 0x79a   :  { %10388 = vmatprep.subr.bf16.mxu0 %v20153_v41 }
 0x79b   :  { %9961 = vmatmul.mubr.bf16.gmra.mrb[144].mxu0 %v18185_v36  ;;  %10038 = vmatmul.mubr.bf16.gmra.mrb[144].mxu1 %v18185_v36  ;;  %v14236_v36 = vld [vmem:[%s19904_s6 + $0x8] sm:$0xff]  }
 0x79c   :  { %12252 = vmatprep.mubr.msk.bf16.mxu0 %vm337_vm0, %v20298_v27  ;;  %12257 = vmatprep.mubr.msk.bf16.mxu1 %vm337_vm0, %v20298_v27 }
 0x79d   :  { %10487 = vmatpush1.bf16.msra.mxu1 %v14236_v36  ;;  %10389 = vmatpush1.bf16.msra.mxu0 %v14233_v43  ;;  %v14252_v43 = vld [vmem:[%s19904_s6 + $0x48] sm:$0xff]  }
 0x79e   :  { %10488 = vmatprep.subr.bf16.mxu1 %v20153_v41  ;;  %10390 = vmatprep.subr.bf16.mxu0 %v20153_v41 }
 0x7a1   :  { %10391 = vmatpush1.bf16.msra.mxu0 %v14235_v56  ;;  %10489 = vmatpush1.bf16.msra.mxu1 %v14238_v62 }
 0x7a2   :  { %10392 = vmatprep.subr.bf16.mxu0 %v20153_v41  ;;  %10490 = vmatprep.subr.bf16.mxu1 %v20153_v41 }
 0x7a3   :  { %9971 = vmatmul.mubr.bf16.gmra.mrb[148].mxu0 %v20299_v32  ;;  %10046 = vmatmul.mubr.bf16.gmra.mrb[148].mxu1 %v20299_v32 }
 0x7a5   :  { %10393 = vmatpush1.bf16.msra.mxu0 %v14237_v49  ;;  %10491 = vmatpush1.bf16.msra.mxu1 %v14240_v3 }
 0x7a6   :  { %10394 = vmatprep.subr.bf16.mxu0 %v20153_v41  ;;  %10492 = vmatprep.subr.bf16.mxu1 %v20153_v41 }
 0x7a9   :  { %10395 = vmatpush1.bf16.msra.mxu0 %v14239_v1  ;;  %10493 = vmatpush1.bf16.msra.mxu1 %v14242_v14 }
 0x7aa   :  { %10396 = vmatprep.subr.bf16.mxu0 %v20153_v41  ;;  %10494 = vmatprep.subr.bf16.mxu1 %v20153_v41 }
 0x7ad   :  { %10397 = vmatpush1.bf16.msra.mxu0 %v14241_v54  ;;  %10495 = vmatpush1.bf16.msra.mxu1 %v14244_v37 }
 0x7ae   :  { %10398 = vmatprep.subr.bf16.mxu0 %v20153_v41  ;;  %10496 = vmatprep.subr.bf16.mxu1 %v20153_v41 }
 0x7b1   :  { %10399 = vmatpush1.bf16.msra.mxu0 %v14243_v34  ;;  %10497 = vmatpush1.bf16.msra.mxu1 %v14246_v28 }
 0x7b2   :  { %10609 = vmatprep.subr.bf16.mxu0 %v20153_v41  ;;  %10498 = vmatprep.subr.bf16.mxu1 %v20153_v41 }
 0x7b5   :  { %10499 = vmatpush1.bf16.msra.mxu1 %v14248_v23 }
 0x7b6   :  { %10500 = vmatprep.subr.bf16.mxu1 %v20153_v41 }
 0x7b9   :  { %10501 = vmatpush1.bf16.msra.mxu1 %v14250_v48 }
 0x7ba   :  { %10502 = vmatprep.subr.bf16.mxu1 %v20153_v41 }
 0x7bd   :  { %10503 = vmatpush1.bf16.msra.mxu1 %v14252_v43 }
 0x7be   :  { %10736 = vmatprep.subr.bf16.mxu1 %v20153_v41 }
 0x856   :  { %v19466_v13 = vpop.f32.mrb[132].mxu0  ;;  %v10015_v0 = vpop.f32.mrb[132].mxu1 }
 0x857   :  { %v19468_v6 = vpop.f32.mrb[133].mxu0  ;;  %v10017_v24 = vpop.f32.mrb[133].mxu1 }
 0x858   :  { %v19471_v42 = vpop.f32.mrb[134].mxu0  ;;  %v10018_v10 = vpop.f32.mrb[134].mxu1 }
 0x859   :  { %v19477_v51 = vpop.f32.mrb[135].mxu0  ;;  %v10020_v5 = vpop.f32.mrb[135].mxu1 }
 0x85e   :  { %v19490_v17 = vpop.f32.mrb[136].mxu0  ;;  %v10023_v47 = vpop.f32.mrb[136].mxu1 }
 0x85f   :  { %v10025_v21 = vpop.f32.mrb[137].mxu1  ;;  %10114 = vrot.lane.b32.xlu1 %v10023_v47, %s14598_s24  ;;  %v19493_v61 = vpop.f32.mrb[137].mxu0 }
 0x860   :  { %v10026_v7 = vpop.f32.mrb[138].mxu1  ;;  %10112 = vrot.lane.b32.xlu0 %v19493_v61, %s14598_s24  ;;  %v19497_v38 = vpop.f32.mrb[138].mxu0 }
 0x861   :  { %v19500_v52 = vpop.f32.mrb[139].mxu0  ;;  %v10028_v55 = vpop.f32.mrb[139].mxu1 }
 0x863   :  { %10118 = vrot.lane.b32.xlu1 %v10026_v7, %s14598_s24 }
 0x864   :  { %10116 = vrot.lane.b32.xlu0 %v19500_v52, %s14598_s24 }
 0x866   :  { %v19510_v59 = vpop.f32.mrb[140].mxu0  ;;  %v10031_v57 = vpop.f32.mrb[140].mxu1 }
 0x867   :  { %v10033_v9 = vpop.f32.mrb[141].mxu1  ;;  %9123 = vrot.lane.b32.xlu1 %v19214_v45, %s14598_s24  ;;  %v19517_v27 = vpop.f32.mrb[141].mxu0  ;;  %v20300_v45 = vld [vmem:[#allocation67_spill] sm:$0xff] }
 0x868   :  { %v10034_v32 = vpop.f32.mrb[142].mxu1  ;;  %9121 = vrot.lane.b32.xlu0 %v19216_v20, %s14598_s24  ;;  %v19521_v33 = vpop.f32.mrb[142].mxu0  ;;  %v20302_v9 = vld [vmem:[#allocation147_spill] sm:$0xff] }
 0x869   :  { %v19523_v26 = vpop.f32.mrb[143].mxu0  ;;  %v10036_v16 = vpop.f32.mrb[143].mxu1 }
 0x86b   :  { %9127 = vrot.lane.b32.xlu1 %v19226_v53, %s14598_s24 }
 0x86c   :  { %9125 = vrot.lane.b32.xlu0 %v20300_v45, %s14598_s24 }
 0x86e   :  { %v19534_v36 = vpop.f32.mrb[144].mxu0  ;;  %v10039_v30 = vpop.f32.mrb[144].mxu1 }
 0x86f   :  { %v10041_v56 = vpop.f32.mrb[145].mxu1  ;;  %10106 = vrot.lane.b32.xlu1 %v10015_v0, %s14598_s24  ;;  %v19540_v49 = vpop.f32.mrb[145].mxu0 }
 0x870   :  { %v10042_v62 = vpop.f32.mrb[146].mxu1  ;;  %10104 = vrot.lane.b32.xlu0 %v19468_v6, %s14598_s24  ;;  %v19544_v53 = vpop.f32.mrb[146].mxu0 }
 0x871   :  { %v19546_v1 = vpop.f32.mrb[147].mxu0  ;;  %v10044_v3 = vpop.f32.mrb[147].mxu1 }
 0x873   :  { %10110 = vrot.lane.b32.xlu1 %v10018_v10, %s14598_s24 }
 0x874   :  { %10108 = vrot.lane.b32.xlu0 %v19477_v51, %s14598_s24 }
 0x876   :  { %v19552_v0 = vpop.f32.mrb[148].mxu0  ;;  %v10047_v24 = vpop.f32.mrb[148].mxu1 }
 0x877   :  { %9139 = vrot.lane.b32.xlu1 %v19274_v11, %s14598_s24  ;;  %v19556_v54 = vpop.f32.mrb[149].mxu0  ;;  %v10049_v5 = vpop.f32.mrb[149].mxu1 }
 0x878   :  { %9137 = vrot.lane.b32.xlu0 %v19278_v19, %s14598_s24  ;;  %v19560_v14 = vpop.f32.mrb[150].mxu0  ;;  %v10050_v34 = vpop.f32.mrb[150].mxu1 }
 0x879   :  { %v19562_v37 = vpop.f32.mrb[151].mxu0  ;;  %v10052_v10 = vpop.f32.mrb[151].mxu1 }
 0x87a   :  { %v9132_v11 = vpop.permute.xlu1 %9131 }
 0x87b   :  { %9143 = vrot.lane.b32.xlu1 %v19286_v18, %s14598_s24  ;;  %v9130_v18 = vpop.permute.xlu0 %9129  ;;  %v9196_v21 = vmax.f32 %v19247_v29, %v9132_v11  ;;  %v20304_v29 = vsub.s32 0, %v20302_v9 }
 0x87c   :  { %9141 = vrot.lane.b32.xlu0 %v19290_v46, %s14598_s24 }
 0x87f   :  { %10122 = vrot.lane.b32.xlu1 %v10031_v57, %s14598_s24  ;;  %v20301_v57 = vld [vmem:[#allocation68_spill] sm:$0xff] }
 0x880   :  { %10120 = vrot.lane.b32.xlu0 %v19517_v27, %s14598_s24 }
 0x883   :  { %10126 = vrot.lane.b32.xlu1 %v10034_v32, %s14598_s24  ;;  %v20303_v32 = vsub.s32 1, %v20302_v9 }
 0x884   :  { %10124 = vrot.lane.b32.xlu0 %v19523_v26, %s14598_s24 }
 0x887   :  { %9147 = vrot.lane.b32.xlu1 %v19300_v39, %s14598_s24  ;;  %v9136_v39 = vpop.permute.xlu1 %9135 }
 0x888   :  { %9145 = vrot.lane.b32.xlu0 %v19304_v50, %s14598_s24 }
 0x88b   :  { %9151 = vrot.lane.b32.xlu1 %v19312_v4, %s14598_s24  ;;  %v9134_v4 = vpop.permute.xlu0 %9133 }
 0x88c   :  { %9149 = vrot.lane.b32.xlu0 %v19316_v35, %s14598_s24  ;;  %v9164_v43 = vsel %vm337_vm0, %v9134_v4, %v9136_v39 }
 0x88d   :  { %v9197_v10 = vmax.f32 %v19255_v40, %v9164_v43 }
 0x88f   :  { %9155 = vrot.lane.b32.xlu1 %v19326_v2, %s14598_s24  ;;  %v9163_v2 = vsel %vm337_vm0, %v9130_v18, %v9132_v11 }
 0x890   :  { %9153 = vrot.lane.b32.xlu0 %v19330_v44, %s14598_s24  ;;  %v9195_v23 = vmax.f32 %v20301_v57, %v9163_v2 }
 0x893   :  { %9159 = vrot.lane.b32.xlu1 %v19338_v58, %s14598_s24  ;;  %v10214_v58 = vld [vmem:[%s19905_s5] sm:$0x3] }
 0x894   :  { %9157 = vrot.lane.b32.xlu0 %v19342_v8, %s14598_s24  ;;  %v19612_v16 = vrot.slane %v10214_v58, %v20303_v32 }
 0x897   :  { %10130 = vrot.lane.b32.xlu1 %v10039_v30, %s14598_s24 }
 0x898   :  { %10128 = vrot.lane.b32.xlu0 %v19540_v49, %s14598_s24 }
 0x89b   :  { %10134 = vrot.lane.b32.xlu1 %v10042_v62, %s14598_s24  ;;  %v9198_v62 = vmax.f32 %v19261_v63, %v9136_v39 }
 0x89c   :  { %10132 = vrot.lane.b32.xlu0 %v19546_v1, %s14598_s24 }
 0x89f   :  { %10138 = vrot.lane.b32.xlu1 %v10047_v24, %s14598_s24 }
 0x8a0   :  { %10136 = vrot.lane.b32.xlu0 %v19556_v54, %s14598_s24 }
 0x8a3   :  { %10142 = vrot.lane.b32.xlu1 %v10050_v34, %s14598_s24 }
 0x8a4   :  { %10140 = vrot.lane.b32.xlu0 %v19562_v37, %s14598_s24 }
 0x8d1   :  { %v10115_v47 = vpop.permute.xlu1 %10114 }
 0x8d2   :  { %v10179_v7 = vmax.f32 %v19493_v61, %v10115_v47  ;;  %v10113_v55 = vpop.permute.xlu0 %10112  ;;  %v19619_v61 = vrot.slane %v10214_v58, %v20304_v29  ;;  %v20305_v29 = vld [vmem:[#allocation75_spill] sm:$0xff] }
 0x8d3   :  { %v10146_v28 = vsel %vm337_vm0, %v10113_v55, %v10115_v47 }
 0x8d4   :  { %v10199_v48 = vmax.f32 %v9196_v21, %v10179_v7  ;;  %v10178_v30 = vmax.f32 %v19490_v17, %v10146_v28 }
 0x8d5   :  { %v10119_v56 = vpop.permute.xlu1 %10118 }
 0x8d6   :  { %v10198_v3 = vmax.f32 %v9195_v23, %v10178_v30  ;;  %v10181_v24 = vmax.f32 %v19500_v52, %v10119_v56  ;;  %v10117_v5 = vpop.permute.xlu0 %10116  ;;  %v10231_v11 = vadd.f32 %v19612_v16, %v10199_v48 }
 0x8d7   :  { %v10147_v34 = vsel %vm337_vm0, %v10117_v5, %v10119_v56 }
 0x8d8   :  { %v10201_v17 = vmax.f32 %v9198_v62, %v10181_v24  ;;  %v10180_v18 = vmax.f32 %v19497_v38, %v10147_v34  ;;  %v10230_v63 = vadd.f32 %v19619_v61, %v10198_v3  ;;  %v10251_v47 = vmax.f32 %v10231_v11, 0.0  ;;  %v14245_v38 = vld [vmem:[%s19904_s6 + $0xa0] sm:$0xff]   ;;  %v14247_v62 = vld [vmem:[%s19904_s6 + $0xa8] sm:$0xff]  }
 0x8d9   :  { %v9124_v4 = vpop.permute.xlu1 %9123 }
 0x8da   :  { %v10233_v39 = vadd.f32 %v19612_v16, %v10201_v17  ;;  %v10200_v2 = vmax.f32 %v9197_v10, %v10180_v18  ;;  %v9122_v58 = vpop.permute.xlu0 %9121  ;;  %v10250_v55 = vmax.f32 %v10230_v63, 0.0  ;;  %v9192_v48 = vmax.f32 %v19216_v20, %v9124_v4  ;;  %v20306_v63 = vld [vmem:[#allocation108_spill] sm:$0xff] }
 0x8db   :  { %v9161_v9 = vsel %vm337_vm0, %v9122_v58, %v9124_v4  ;;  %v14249_v4 = vld [vmem:[%s19904_s6 + $0xb0] sm:$0xff]  }
 0x8dc   :  { %v10253_v21 = vmax.f32 %v10233_v39, 0.0  ;;  %v10232_v52 = vadd.f32 %v19619_v61, %v10200_v2  ;;  %v9191_v3 = vmax.f32 %v20305_v29, %v9161_v9 }
 0x8dd   :  { %v9128_v7 = vpop.permute.xlu1 %9127 }
 0x8de   :  { %v10252_v28 = vmax.f32 %v10232_v52, 0.0  ;;  %v9126_v40 = vpop.permute.xlu0 %9125  ;;  %v10269_v57 = vpack.c.bf16 %v10253_v21, %v10251_v47 }
 0x8df   :  { %v9162_v20 = vsel %vm337_vm0, %v9126_v40, %v9128_v7 }
 0x8e0   :  { %v10268_v23 = vpack.c.bf16 %v10252_v28, %v10250_v55  ;;  %12288 = vmatprep.mubr.msk.bf16.mxu0 %vm3785_vm1, %v10269_v57 }
 0x8e1   :  { %v10107_v32 = vpop.permute.xlu1 %10106 }
 0x8e2   :  { %v10175_v30 = vmax.f32 %v19468_v6, %v10107_v32  ;;  %v10105_v43 = vpop.permute.xlu0 %10104  ;;  %10413 = vmatmul.mubr.bf16.vlgmr.msra.gmra.mrb[152].mxu0 %v10268_v23  ;;  %v9194_v6 = vmax.f32 %v20300_v45, %v9128_v7  ;;  %v14251_v7 = vld [vmem:[%s19904_s6 + $0xb8] sm:$0xff]  }
 0x8e3   :  { %v10144_v56 = vsel %vm337_vm0, %v10105_v43, %v10107_v32  ;;  %10610 = vmatpush1.bf16.msra.mxu0 %v14245_v38  ;;  %v14253_v32 = vld [vmem:[%s19904_s6 + $0xc0] sm:$0xff]  }
 0x8e4   :  { %v10195_v24 = vmax.f32 %v9192_v48, %v10175_v30  ;;  %v10174_v5 = vmax.f32 %v19466_v13, %v10144_v56  ;;  %10611 = vmatprep.subr.bf16.mxu0 %v20153_v41  ;;  %v9193_v13 = vmax.f32 %v20306_v63, %v9162_v20  ;;  %v14254_v48 = vld [vmem:[%s19904_s6 + $0xf0] sm:$0xff]   ;;  %v14255_v20 = vld [vmem:[%s19904_s6 + $0xc8] sm:$0xff]  }
 0x8e5   :  { %v10111_v34 = vpop.permute.xlu1 %10110 }
 0x8e6   :  { %v10194_v10 = vmax.f32 %v9191_v3, %v10174_v5  ;;  %v10177_v11 = vmax.f32 %v19477_v51, %v10111_v34  ;;  %v10109_v17 = vpop.permute.xlu0 %10108  ;;  %v10227_v39 = vadd.f32 %v19612_v16, %v10195_v24 }
 0x8e7   :  { %v10145_v18 = vsel %vm337_vm0, %v10109_v17, %v10111_v34  ;;  %10612 = vmatpush1.bf16.msra.mxu0 %v14247_v62  ;;  %v14256_v34 = vld [vmem:[%s19904_s6 + $0xf8] sm:$0xff]  }
 0x8e8   :  { %v10197_v2 = vmax.f32 %v9194_v6, %v10177_v11  ;;  %v10176_v58 = vmax.f32 %v19471_v42, %v10145_v18  ;;  %10613 = vmatprep.subr.bf16.mxu0 %v20153_v41  ;;  %v10226_v51 = vadd.f32 %v19619_v61, %v10194_v10  ;;  %v10247_v55 = vmax.f32 %v10227_v39, 0.0 }
 0x8e9   :  { %v9140_v45 = vpop.permute.xlu1 %9139 }
 0x8ea   :  { %v10229_v47 = vadd.f32 %v19612_v16, %v10197_v2  ;;  %v10196_v21 = vmax.f32 %v9193_v13, %v10176_v58  ;;  %v9138_v52 = vpop.permute.xlu0 %9137  ;;  %v10246_v57 = vmax.f32 %v10226_v51, 0.0  ;;  %v9200_v62 = vmax.f32 %v19278_v19, %v9140_v45  ;;  %v14258_v13 = vld [vmem:[%s19904_s6 + $0x100] sm:$0xff]  }
 0x8eb   :  { %10614 = vmatpush1.bf16.msra.mxu0 %v14249_v4  ;;  %v9165_v43 = vsel %vm337_vm0, %v9138_v52, %v9140_v45 }
 0x8ec   :  { %v10249_v28 = vmax.f32 %v10229_v47, 0.0  ;;  %v10228_v40 = vadd.f32 %v19619_v61, %v10196_v21  ;;  %10615 = vmatprep.subr.bf16.mxu0 %v20153_v41  ;;  %v9199_v24 = vmax.f32 %v19272_v31, %v9165_v43  ;;  %v14259_v47 = vld [vmem:[%s19904_s6 + $0xd8] sm:$0xff]  }
 0x8ed   :  { %v9144_v42 = vpop.permute.xlu1 %9143  ;;  %v14264_v43 = vld [vmem:[%s19904_s6 + $0x118] sm:$0xff]  }
 0x8ee   :  { %v10248_v38 = vmax.f32 %v10228_v40, 0.0  ;;  %v9142_v23 = vpop.permute.xlu0 %9141  ;;  %v10267_v9 = vpack.c.bf16 %v10249_v28, %v10247_v55  ;;  %v9202_v10 = vmax.f32 %v19290_v46, %v9144_v42 }
 0x8ef   :  { %10616 = vmatpush1.bf16.msra.mxu0 %v14251_v7  ;;  %v9166_v19 = vsel %vm337_vm0, %v9142_v23, %v9144_v42  ;;  %v14262_v23 = vld [vmem:[%s19904_s6 + $0x110] sm:$0xff]  }
 0x8f0   :  { %v10266_v30 = vpack.c.bf16 %v10248_v38, %v10246_v57  ;;  %12299 = vmatprep.mubr.msk.bf16.mxu1 %vm3785_vm1, %v10267_v9  ;;  %10617 = vmatprep.subr.bf16.mxu0 %v20153_v41  ;;  %v9201_v4 = vmax.f32 %v19284_v22, %v9166_v19  ;;  %v14261_v38 = vld [vmem:[%s19904_s6 + $0xe0] sm:$0xff]  }
 0x8f1   :  { %v10123_v56 = vpop.permute.xlu1 %10122 }
 0x8f2   :  { %v10183_v29 = vmax.f32 %v19517_v27, %v10123_v56  ;;  %v10121_v3 = vpop.permute.xlu0 %10120  ;;  %10517 = vmatmul.mubr.bf16.vlgmr.msra.gmra.mrb[152].mxu1 %v10266_v30  ;;  %v14263_v30 = vld [vmem:[%s19904_s6 + $0xe8] sm:$0xff]  }
 0x8f3   :  { %v10148_v5 = vsel %vm337_vm0, %v10121_v3, %v10123_v56  ;;  %10618 = vmatpush1.bf16.msra.mxu0 %v14253_v32  ;;  %10737 = vmatpush1.bf16.msra.mxu1 %v14254_v48  ;;  %v14266_v3 = vld [vmem:[%s19904_s6 + $0x120] sm:$0xff]  }
 0x8f4   :  { %v10203_v6 = vmax.f32 %v9200_v62, %v10183_v29  ;;  %v10182_v27 = vmax.f32 %v19510_v59, %v10148_v5  ;;  %10619 = vmatprep.subr.bf16.mxu0 %v20153_v41  ;;  %10738 = vmatprep.subr.bf16.mxu1 %v20153_v41  ;;  %v14257_v59 = vld [vmem:[%s19904_s6 + $0xd0] sm:$0xff]   ;;  %v14265_v29 = vld [vmem:[%s19904_s6 + $0x140] sm:$0xff]  }
 0x8f5   :  { %v10127_v31 = vpop.permute.xlu1 %10126 }
 0x8f6   :  { %v10202_v11 = vmax.f32 %v9199_v24, %v10182_v27  ;;  %v10185_v17 = vmax.f32 %v19523_v26, %v10127_v31  ;;  %v10125_v18 = vpop.permute.xlu0 %10124  ;;  %v10235_v46 = vadd.f32 %v19612_v16, %v10203_v6 }
 0x8f7   :  { %v10149_v63 = vsel %vm337_vm0, %v10125_v18, %v10127_v31  ;;  %10620 = vmatpush1.bf16.msra.mxu0 %v14255_v20  ;;  %10739 = vmatpush1.bf16.msra.mxu1 %v14256_v34  ;;  %v14267_v31 = vld [vmem:[%s19904_s6 + $0x148] sm:$0xff]  }
 0x8f8   :  { %v10205_v39 = vmax.f32 %v9202_v10, %v10185_v17  ;;  %v10184_v26 = vmax.f32 %v19521_v33, %v10149_v63  ;;  %10621 = vmatprep.subr.bf16.mxu0 %v20153_v41  ;;  %10740 = vmatprep.subr.bf16.mxu1 %v20153_v41  ;;  %v10234_v2 = vadd.f32 %v19619_v61, %v10202_v11  ;;  %v14260_v33 = vld [vmem:[%s19904_s6 + $0x108] sm:$0xff]   ;;  %v10255_v21 = vmax.f32 %v10235_v46, 0.0  ;;  %v14270_v46 = vld [vmem:[%s19904_s6 + $0x130] sm:$0xff]  }
 0x8f9   :  { %v9148_v22 = vpop.permute.xlu1 %9147  ;;  %v14268_v10 = vld [vmem:[%s19904_s6 + $0x128] sm:$0xff]  }
 0x8fa   :  { %v10237_v58 = vadd.f32 %v19612_v16, %v10205_v39  ;;  %v10204_v45 = vmax.f32 %v9201_v4, %v10184_v26  ;;  %v9146_v51 = vpop.permute.xlu0 %9145  ;;  %v10254_v28 = vmax.f32 %v10234_v2, 0.0  ;;  %v9204_v20 = vmax.f32 %v19304_v50, %v9148_v22 }
 0x8fb   :  { %10622 = vmatpush1.bf16.msra.mxu0 %v14257_v59  ;;  %10741 = vmatpush1.bf16.msra.mxu1 %v14258_v13  ;;  %v9167_v24 = vsel %vm337_vm0, %v9146_v51, %v9148_v22 }
 0x8fc   :  { %v10257_v52 = vmax.f32 %v10237_v58, 0.0  ;;  %v10236_v7 = vadd.f32 %v19619_v61, %v10204_v45  ;;  %10623 = vmatprep.subr.bf16.mxu0 %v20153_v41  ;;  %10742 = vmatprep.subr.bf16.mxu1 %v20153_v41  ;;  %v9203_v6 = vmax.f32 %v19298_v12, %v9167_v24 }
 0x8fd   :  { %v9152_v55 = vpop.permute.xlu1 %9151 }
 0x8fe   :  { %v10256_v40 = vmax.f32 %v10236_v7, 0.0  ;;  %v9150_v42 = vpop.permute.xlu0 %9149  ;;  %v10271_v57 = vpack.c.bf16 %v10257_v52, %v10255_v21  ;;  %v9206_v17 = vmax.f32 %v19316_v35, %v9152_v55  ;;  %v14271_v21 = vld [vmem:[%s19904_s6 + $0x158] sm:$0xff]  }
 0x8ff   :  { %10624 = vmatpush1.bf16.msra.mxu0 %v14259_v47  ;;  %10743 = vmatpush1.bf16.msra.mxu1 %v14260_v33  ;;  %v9168_v50 = vsel %vm337_vm0, %v9150_v42, %v9152_v55 }
 0x900   :  { %12330 = vmatprep.mubr.msk.bf16.mxu0 %vm3785_vm1, %v10271_v57  ;;  %10625 = vmatprep.subr.bf16.mxu0 %v20153_v41  ;;  %v10270_v9 = vpack.c.bf16 %v10256_v40, %v10254_v28  ;;  %v9205_v59 = vmax.f32 %v19310_v15, %v9168_v50  ;;  %v14279_v50 = vld [vmem:[%s19906_s8] sm:$0xff]  }
 0x901   :  { %v19717_v32 = vpop.permute.xlu1 %9155  ;;  %10744 = vmatprep.subr.bf16.mxu1 %v20153_v41 }
 0x902   :  { %v9154_v48 = vpop.permute.xlu0 %9153  ;;  %v9208_v22 = vmax.f32 %v19330_v44, %v19717_v32  ;;  %v14272_v44 = vld [vmem:[%s19904_s6 + $0x138] sm:$0xff]  }
 0x903   :  { %10626 = vmatpush1.bf16.msra.mxu0 %v14261_v38  ;;  %10745 = vmatpush1.bf16.msra.mxu1 %v14262_v23  ;;  %v9169_v35 = vsel %vm337_vm0, %v9154_v48, %v19717_v32 }
 0x904   :  { %10627 = vmatprep.subr.bf16.mxu0 %v20153_v41  ;;  %10746 = vmatprep.subr.bf16.mxu1 %v20153_v41  ;;  %v9207_v47 = vmax.f32 %v19324_v60, %v9169_v35 }
 0x905   :  { %v19728_v56 = vpop.permute.xlu1 %9159 }
 0x906   :  { %v9158_v62 = vpop.permute.xlu0 %9157  ;;  %v9210_v55 = vmax.f32 %v19342_v8, %v19728_v56  ;;  %v14273_v8 = vld [vmem:[%s19904_s6 + $0x160] sm:$0xff]  }
 0x907   :  { %10628 = vmatpush1.bf16.msra.mxu0 %v14263_v30  ;;  %10747 = vmatpush1.bf16.msra.mxu1 %v14264_v43  ;;  %v9170_v28 = vsel %vm337_vm0, %v9158_v62, %v19728_v56 }
 0x908   :  { %10863 = vmatprep.subr.bf16.mxu0 %v20153_v41  ;;  %10748 = vmatprep.subr.bf16.mxu1 %v20153_v41  ;;  %v9209_v43 = vmax.f32 %v19336_v25, %v9170_v28  ;;  %v12393_v28 = vld [vmem:[%s19908_s7] ss:$0 sm:$0xff] }
 0x909   :  { %v10131_v5 = vpop.permute.xlu1 %10130 }
 0x90a   :  { %v10187_v34 = vmax.f32 %v19540_v49, %v10131_v5  ;;  %10642 = vmatmul.mubr.bf16.vlgmr.msra.gmra.mrb[156].mxu0 %v10270_v9  ;;  %v10129_v19 = vpop.permute.xlu0 %10128 }
 0x90b   :  { %v10150_v27 = vsel %vm337_vm0, %v10129_v19, %v10131_v5  ;;  %10864 = vmatpush1.bf16.msra.mxu0 %v14265_v29  ;;  %10749 = vmatpush1.bf16.msra.mxu1 %v14266_v3  ;;  %v14274_v5 = vld [vmem:[%s19904_s6 + $0x168] sm:$0xff]  }
 0x90c   :  { %v10207_v11 = vmax.f32 %v9204_v20, %v10187_v34  ;;  %v10186_v49 = vmax.f32 %v19534_v36, %v10150_v27  ;;  %10865 = vmatprep.subr.bf16.mxu0 %v20153_v41  ;;  %10750 = vmatprep.subr.bf16.mxu1 %v20153_v41  ;;  %v14269_v36 = vld [vmem:[%s19904_s6 + $0x150] sm:$0xff]  }
 0x90d   :  { %v10135_v12 = vpop.permute.xlu1 %10134 }
 0x90e   :  { %v10206_v18 = vmax.f32 %v9203_v6, %v10186_v49  ;;  %v10189_v4 = vmax.f32 %v19546_v1, %v10135_v12  ;;  %v10133_v63 = vpop.permute.xlu0 %10132  ;;  %v10239_v15 = vadd.f32 %v19612_v16, %v10207_v11  ;;  %v14599_v11 = vmov 0.0   ;;  %v14280_v49 = vld [vmem:[%s19906_s8 + $0x8] sm:$0xff]  }
 0x90f   :  { %v10151_v13 = vsel %vm337_vm0, %v10133_v63, %v10135_v12  ;;  %10866 = vmatpush1.bf16.msra.mxu0 %v14267_v31  ;;  %10751 = vmatpush1.bf16.msra.mxu1 %v14268_v10  ;;  %v14277_v31 = vld [vmem:[%s19904_s6 + $0x180] sm:$0xff]   ;;  %v14278_v10 = vld [vmem:[%s19904_s6 + $0x188] sm:$0xff]   ;;  %v14282_v12 = vld [vmem:[%s19906_s8 + $0x18] sm:$0xff]  }
 0x910   :  { %v10209_v39 = vmax.f32 %v9206_v17, %v10189_v4  ;;  %v10188_v1 = vmax.f32 %v19544_v53, %v10151_v13  ;;  %10867 = vmatprep.subr.bf16.mxu0 %v20153_v41  ;;  %10752 = vmatprep.subr.bf16.mxu1 %v20153_v41  ;;  %v10238_v53 = vadd.f32 %v19619_v61, %v10206_v18  ;;  %v10259_v40 = vmax.f32 %v10239_v15, 0.0  ;;  %v14283_v17 = vld [vmem:[%s19906_s8 + $0x20] sm:$0xff]   ;;  %v14284_v18 = vld [vmem:[%s19906_s8 + $0x28] sm:$0xff]   ;;  %v14285_v4 = vld [vmem:[%s19906_s8 + $0x30] sm:$0xff]  }
 0x911   :  { %v10139_v26 = vpop.permute.xlu1 %10138  ;;  %v14286_v63 = vld [vmem:[%s19906_s8 + $0x38] ss:$0 sps:$4 sm:$0xff]  }
 0x912   :  { %v10241_v2 = vadd.f32 %v19612_v16, %v10209_v39  ;;  %v10208_v58 = vmax.f32 %v9205_v59, %v10188_v1  ;;  %v10191_v45 = vmax.f32 %v19556_v54, %v10139_v26  ;;  %v10137_v51 = vpop.permute.xlu0 %10136  ;;  %v10991_v59 = vsel %vm10989_vm2, %v14286_v63, 0 }
 0x913   :  { %10868 = vmatpush1.bf16.msra.mxu0 %v14269_v36  ;;  %v10152_v33 = vsel %vm337_vm0, %v10137_v51, %v10139_v26  ;;  %10753 = vmatpush1.bf16.msra.mxu1 %v14270_v46 }
 0x914   :  { %v10261_v52 = vmax.f32 %v10241_v2, 0.0  ;;  %v10240_v54 = vadd.f32 %v19619_v61, %v10208_v58  ;;  %v10211_v7 = vmax.f32 %v9208_v22, %v10191_v45  ;;  %v10190_v60 = vmax.f32 %v19552_v0, %v10152_v33  ;;  %10869 = vmatprep.subr.bf16.mxu0 %v20153_v41  ;;  %10754 = vmatprep.subr.bf16.mxu1 %v20153_v41 }
 0x915   :  { %v10143_v42 = vpop.permute.xlu1 %10142  ;;  %v10258_v0 = vmax.f32 %v10238_v53, 0.0 }
 0x916   :  { %v10260_v57 = vmax.f32 %v10240_v54, 0.0  ;;  %v10243_v38 = vadd.f32 %v19612_v16, %v10211_v7  ;;  %v10210_v23 = vmax.f32 %v9207_v47, %v10190_v60  ;;  %v10193_v9 = vmax.f32 %v19562_v37, %v10143_v42  ;;  %v10141_v32 = vpop.permute.xlu0 %10140 }
 0x917   :  { %10870 = vmatpush1.bf16.msra.mxu0 %v14271_v21  ;;  %v10153_v48 = vsel %vm337_vm0, %v10141_v32, %v10143_v42  ;;  %10755 = vmatpush1.bf16.msra.mxu1 %v14272_v44  ;;  %v10273_v30 = vpack.c.bf16 %v10261_v52, %v10259_v40 }
 0x918   :  { %v10213_v56 = vmax.f32 %v9210_v55, %v10193_v9  ;;  %v10192_v62 = vmax.f32 %v19560_v14, %v10153_v48  ;;  %10871 = vmatprep.subr.bf16.mxu0 %v20153_v41  ;;  %v10272_v37 = vpack.c.bf16 %v10260_v57, %v10258_v0  ;;  %v10242_v29 = vadd.f32 %v19619_v61, %v10210_v23 }
 0x919   :  { %12361 = vmatprep.mubr.msk.bf16.mxu1 %vm3785_vm1, %v10273_v30  ;;  %v10263_v25 = vmax.f32 %v10243_v38, 0.0  ;;  %12428 = vmatprep.subr.bf16.mxu1 %v14599_v11  ;;  %v14287_v30 = vld [vmem:[%s19907_s10] sm:$0xff]  }
 0x91a   :  { %v10245_v3 = vadd.f32 %v19612_v16, %v10213_v56  ;;  %v10212_v24 = vmax.f32 %v9209_v43, %v10192_v62  ;;  %10769 = vmatmul.mubr.bf16.vlgmr.msra.gmra.mrb[156].mxu1 %v10272_v37  ;;  %v10262_v34 = vmax.f32 %v10242_v29, 0.0  ;;  %v14275_v16 = vld [vmem:[%s19904_s6 + $0x170] sm:$0xff]   ;;  %v14288_v43 = vld [vmem:[%s19907_s10 + $0x8] sm:$0xff]   ;;  %v14290_v62 = vld [vmem:[%s19907_s10 + $0x18] sm:$0xff]  }
 0x91b   :  { %10872 = vmatpush1.bf16.msra.mxu0 %v14273_v8  ;;  %12429 = vmatpush3.bf16.msra.mxu1 %v14279_v50  ;;  %v14289_v56 = vld [vmem:[%s19907_s10 + $0x10] sm:$0xff]   ;;  %v14291_v37 = vld [vmem:[%s19907_s10 + $0x20] sm:$0xff]   ;;  %v14292_v29 = vld [vmem:[%s19907_s10 + $0x28] ss:$0 sps:$4 sm:$0x33]  }
 0x91c   :  { %v10265_v20 = vmax.f32 %v10245_v3, 0.0  ;;  %v10244_v14 = vadd.f32 %v19619_v61, %v10212_v24  ;;  %10873 = vmatprep.subr.bf16.mxu0 %v20153_v41  ;;  %v14276_v61 = vld [vmem:[%s19904_s6 + $0x178] sm:$0xff]   ;;  %12430 = vmatprep.subr.bf16.mxu1 %v14599_v11  ;;  %v11094_v3 = vsel %vm11092_vm5, %v14292_v29, 0  ;;  %v12394_v24 = vld [vmem:[%s19909_s9] ss:$0 sm:$0xff] }
 0x91d   :  { %12444 = vmatprep.mubr.msk.bf16.mxu1 %vm14600_vm3, %v14599_v11 }
 0x91e   :  { %v10275_v19 = vpack.c.bf16 %v10265_v20, %v10263_v25  ;;  %v10264_v6 = vmax.f32 %v10244_v14, 0.0 }
 0x91f   :  { %10874 = vmatpush1.bf16.msra.mxu0 %v14274_v5  ;;  %12431 = vmatpush3.bf16.msra.mxu1 %v14280_v49 }
 0x920   :  { %12392 = vmatprep.mubr.msk.bf16.mxu0 %vm3785_vm1, %v10275_v19  ;;  %10875 = vmatprep.subr.bf16.mxu0 %v20153_v41  ;;  %v10274_v27 = vpack.c.bf16 %v10264_v6, %v10262_v34 }
 0x921   :  { %12432 = vmatprep.subr.bf16.mxu1 %v14599_v11 }
 0x923   :  { %10876 = vmatpush1.bf16.msra.mxu0 %v14275_v16 }
 0x924   :  { %10877 = vmatprep.subr.bf16.mxu0 %v20153_v41 }
 0x927   :  { %10878 = vmatpush1.bf16.msra.mxu0 %v14276_v61  ;;  %v12404_v61 = vld [vmem:[%s19910_s11] ss:$0 sm:$0xff] }
 0x928   :  { %10879 = vmatprep.subr.bf16.mxu0 %v20153_v41 }
 0x92b   :  { %10880 = vmatpush1.bf16.msra.mxu0 %v14277_v31 }
 0x92c   :  { %10881 = vmatprep.subr.bf16.mxu0 %v20153_v41  ;;  %v14281_v41 = vld [vmem:[%s19906_s8 + $0x10] sm:$0xff]  }
 0x92d   :  { %12433 = vmatpush3.bf16.msra.mxu1 %v14281_v41 }
 0x92e   :  { %12434 = vmatprep.subr.bf16.mxu1 %v14599_v11 }
 0x92f   :  { %10882 = vmatpush1.bf16.msra.mxu0 %v14278_v10 }
 0x931   :  { %12435 = vmatpush3.bf16.msra.mxu1 %v14282_v12 }
 0x932   :  { %10896 = vmatmul.mubr.bf16.vlgmr.msra.gmra.mrb[160].mxu0 %v10274_v27  ;;  %12436 = vmatprep.subr.bf16.mxu1 %v14599_v11 }
 0x935   :  { %12437 = vmatpush3.bf16.msra.mxu1 %v14283_v17 }
 0x936   :  { %12438 = vmatprep.subr.bf16.mxu1 %v14599_v11 }
 0x939   :  { %12439 = vmatpush3.bf16.msra.mxu1 %v14284_v18 }
 0x93a   :  { %12440 = vmatprep.subr.bf16.mxu1 %v14599_v11 }
 0x93d   :  { %12441 = vmatpush3.bf16.msra.mxu1 %v14285_v4 }
 0x93e   :  { %12442 = vmatprep.subr.bf16.mxu1 %v14599_v11 }
 0x941   :  { %12443 = vmatpush3.bf16.msra.mxu1 %v10991_v59 }
 0x942   :  { %12448 = vmatprep.subr.bf16.mxu1 %v14599_v11 }
 0x9b5   :  { %v10414_v13 = vpop.f32.mrb[152].mxu0 }
 0x9b6   :  { %v10416_v36 = vpop.f32.mrb[153].mxu0 }
 0x9b7   :  { %v10417_v46 = vpop.f32.mrb[154].mxu0 }
 0x9b8   :  { %v10419_v35 = vpop.f32.mrb[155].mxu0 }
 0x9c5   :  { %v10518_v39 = vpop.f32.mrb[152].mxu1 }
 0x9c6   :  { %v10519_v1 = vadd.f32 %v10518_v39, %v10414_v13  ;;  %v10520_v15 = vpop.f32.mrb[153].mxu1 }
 0x9c7   :  { %v10521_v26 = vpop.f32.mrb[154].mxu1 }
 0x9c8   :  { %v10522_v22 = vadd.f32 %v10521_v26, %v10417_v46  ;;  %v10523_v2 = vpop.f32.mrb[155].mxu1 }
 0x9dd   :  { %v10643_v58 = vpop.f32.mrb[156].mxu0 }
 0x9de   :  { %v10650_v45 = vadd.f32 %v10643_v58, %v10519_v1  ;;  %v10645_v51 = vpop.f32.mrb[157].mxu0 }
 0x9df   :  { %v10646_v47 = vpop.f32.mrb[158].mxu0 }
 0x9e0   :  { %v10651_v53 = vadd.f32 %v10646_v47, %v10522_v22  ;;  %v10648_v33 = vpop.f32.mrb[159].mxu0 }
 0x9ed   :  { %v10770_v21 = vpop.f32.mrb[156].mxu1 }
 0x9ee   :  { %v10777_v44 = vadd.f32 %v10770_v21, %v10650_v45  ;;  %v10772_v52 = vpop.f32.mrb[157].mxu1 }
 0x9ef   :  { %v10773_v54 = vpop.f32.mrb[158].mxu1 }
 0x9f0   :  { %v10778_v7 = vadd.f32 %v10773_v54, %v10651_v53  ;;  %v10775_v60 = vpop.f32.mrb[159].mxu1 }
 0xa05   :  { %v10897_v55 = vpop.f32.mrb[160].mxu0 }
 0xa06   :  { %v10904_v40 = vadd.f32 %v10897_v55, %v10777_v44  ;;  %v10899_v42 = vpop.f32.mrb[161].mxu0 }
 0xa07   :  { %v10900_v57 = vpop.f32.mrb[162].mxu0 }
 0xa08   :  { %v10913_v38 = vadd.f32 %v12393_v28, %v10904_v40  ;;  %v10905_v23 = vadd.f32 %v10900_v57, %v10778_v7  ;;  %v10902_v9 = vpop.f32.mrb[163].mxu0 }
 0xa0a   :  { %v10914_v32 = vadd.f32 %v12393_v28, %v10905_v23  ;;  %v10915_v0 = vmax.f32 %v10913_v38, 0.0 }
 0xa0c   :  { %v10916_v48 = vmax.f32 %v10914_v32, 0.0 }
 0xa0e   :  { %v10917_v8 = vpack.c.bf16 %v10916_v48, %v10915_v0 }
 0xa10   :  { %12445 = vmatmul.mubr.msk.bf16.vlgmr.msra.gmra.mrb[160].mxu1 %vm10985_vm4, %v10917_v8 }
 0xa11   :  { %12449 = vmatpush3.bf16.msra.mxu1 %v14287_v30  ;;  %12460 = vmatprep.mubr.msk.bf16.mxu1 %vm14600_vm3, %v14599_v11 }
 0xa12   :  { %12450 = vmatprep.subr.bf16.mxu1 %v14599_v11 }
 0xa15   :  { %12451 = vmatpush3.bf16.msra.mxu1 %v14288_v43 }
 0xa16   :  { %12452 = vmatprep.subr.bf16.mxu1 %v14599_v11 }
 0xa19   :  { %12453 = vmatpush3.bf16.msra.mxu1 %v14289_v56 }
 0xa1a   :  { %12454 = vmatprep.subr.bf16.mxu1 %v14599_v11 }
 0xa1d   :  { %12455 = vmatpush3.bf16.msra.mxu1 %v14290_v62 }
 0xa1e   :  { %12456 = vmatprep.subr.bf16.mxu1 %v14599_v11 }
 0xa21   :  { %12457 = vmatpush3.bf16.msra.mxu1 %v14291_v37 }
 0xa22   :  { %12458 = vmatprep.subr.bf16.mxu1 %v14599_v11 }
 0xa25   :  { %12459 = vmatpush3.bf16.msra.mxu1 %v11094_v3 }
 0xae3   :  { %v11027_v5 = vpop.f32.mrb[160].mxu1 }
 0xae4   :  { %v11028_v25 = vadd.f32 %v12394_v24, %v11027_v5  ;;  %v12446_v20 = vpop.f32.mrb[161].mxu1 }
 0xae5   :  { %v11030_v14 = vpop.f32.mrb[162].mxu1 }
 0xae6   :  { %v11031_v34 = vadd.f32 %v12394_v24, %v11030_v14  ;;  %v12447_v19 = vpop.f32.mrb[163].mxu1  ;;  %v11034_v6 = vmax.f32 %v11028_v25, 0.0 }
 0xae8   :  { %v11035_v16 = vmax.f32 %v11031_v34, 0.0 }
 0xaea   :  { %v11036_v27 = vpack.c.bf16 %v11035_v16, %v11034_v6 }
 0xaec   :  { %12461 = vmatmul.mubr.msk.bf16.vlgmr.msra.gmra.mrb[164].mxu1 %vm11088_vm6, %v11036_v27 }
 0xbbf   :  { %v11130_v31 = vpop.f32.mrb[164].mxu1 }
 0xbc0   :  { %v11131_v10 = vadd.f32 %v12404_v61, %v11130_v31  ;;  %v12462_v50 = vpop.f32.mrb[165].mxu1 }
 0xbc1   :  { %v11133_v11 = vpop.f32.mrb[166].mxu1 }
 0xbc2   :  { %11138 = vst.msk [vmem:[%s19911_s12] sm:$0xff] %vm11137_vm7, %v11131_v10  ;;  %v11134_v49 = vadd.f32 %v12404_v61, %v11133_v11  ;;  %v12463_v41 = vpop.f32.mrb[167].mxu1 }
 0xbc4   :  { %11139 = vst.msk [vmem:[%s19911_s12 + $0x8] sm:$0xff] %vm11137_vm7, %v11134_v49 }

</bundles_post_ra>
